<compile_context>
chip_gen: v7x
topology: tpu7x:2x2x1
jax: 0.10.0
libtpu: 0.0.40
codegen_flags: <defaults>
</compile_context>

<pallas_src>
import functools

import jax
import jax.numpy as jnp
import numpy as np
from jax.experimental import pallas as pl
from jax.experimental.pallas import tpu as pltpu


# ---------------------------------------------------------------------------
# Pallas kernels
# ---------------------------------------------------------------------------
def _conv_pool_kernel(x00_ref, x01_ref, x10_ref, x11_ref, w_ref, b_ref, o_ref):
    """Fused 3x3-conv (as im2col matmul) + bias + ReLU + 2x2 max-pool.

    x??_ref: (tm, 9C) bf16 -- the 4 members of each pool window (same output row
             ordering, 4 parity planes).  Single K step, so each dot + epilogue
             writes the output block exactly once.
    """
    w = w_ref[...]
    b = b_ref[...]

    def branch(x_ref):
        y = jnp.dot(x_ref[...], w, preferred_element_type=jnp.float32)
        return jnp.maximum(y + b, 0.0)

    y = jnp.maximum(jnp.maximum(branch(x00_ref), branch(x01_ref)),
                    jnp.maximum(branch(x10_ref), branch(x11_ref)))
    o_ref[...] = y.astype(o_ref.dtype)


def _fc_fused_kernel(x_ref, w1_ref, b1_ref, w2_ref, b2_ref, o_ref, h_ref):
    """relu(x @ w1 + b1) @ w2 + b2, streaming w1 over the K grid axis."""
    k = pl.program_id(0)

    @pl.when(k == 0)
    def _():
        h_ref[...] = jnp.zeros_like(h_ref)

    h_ref[...] += jnp.dot(x_ref[...], w1_ref[...],
                          preferred_element_type=jnp.float32)

    @pl.when(k == pl.num_programs(0) - 1)
    def _():
        h = jnp.maximum(h_ref[...] + b1_ref[...], 0.0)
        y = jnp.dot(h.astype(w2_ref.dtype), w2_ref[...],
                    preferred_element_type=jnp.float32) + b2_ref[...]
        o_ref[...] = y.astype(o_ref.dtype)


# ---------------------------------------------------------------------------
# Wrappers
# ---------------------------------------------------------------------------
def _pick_tile(m, cap=1024):
    """Largest multiple-of-8 divisor of m that is <= cap (and <= m//2 when
    possible so the grid has >=2 steps for the v7x dual-TC split)."""
    if m % 2 == 0 and (m // 2) % 8 == 0:
        cap = min(cap, m // 2)
    best = None
    t = 8
    while t <= min(m, cap):
        if m % t == 0:
            best = t
        t += 8
    return best if best is not None else m


def _im2col_pooled(x, ksize=3, pad=1):
    """x: NHWC -> four (B*Ho*Wo, ksize*ksize*C) bf16 parity matrices.

    Rows are pooled-output pixels in (b, ho, wo) raster order; the 4 matrices
    are the (hh, ww) members of each 2x2 pool window.  Patch column order is
    (ky, kx, cin), matching the weight layout below.
    """
    B, H, W, C = x.shape
    Ho, Wo = H // 2, W // 2
    xp = jnp.pad(x, ((0, 0), (pad, pad), (pad, pad), (0, 0)))
    outs = []
    for hh in range(2):
        for ww in range(2):
            planes = []
            for ky in range(ksize):
                for kx in range(ksize):
                    planes.append(
                        xp[:, hh + ky:hh + ky + H:2, ww + kx:ww + kx + W:2, :])
            cols = jnp.concatenate(planes, axis=-1)          # (B, Ho, Wo, 9C)
            outs.append(cols.reshape(B * Ho * Wo, ksize * ksize * C)
                        .astype(jnp.bfloat16))
    return outs


def conv3x3_relu_pool(x, wmat, b2):
    """Fused conv3x3(SAME) + bias + ReLU + MaxPool2d(2,2).

    x: (B, H, W, C) bf16; wmat: (9*C, Cout) bf16; b2: (1, Cout) f32.
    Returns (B, H//2, W//2, Cout) bf16.
    """
    B, H, W, C = x.shape
    Ho, Wo = H // 2, W // 2
    KC, Cout = wmat.shape
    assert KC == 9 * C
    M = B * Ho * Wo

    c00, c01, c10, c11 = _im2col_pooled(x)
    tm = _pick_tile(M)
    assert M % tm == 0

    x_spec = pl.BlockSpec((tm, KC), lambda i: (i, 0))
    out = pl.pallas_call(
        _conv_pool_kernel,
        out_shape=jax.ShapeDtypeStruct((M, Cout), jnp.bfloat16),
        grid_spec=pltpu.PrefetchScalarGridSpec(
            num_scalar_prefetch=0,
            grid=(M // tm,),
            in_specs=[x_spec, x_spec, x_spec, x_spec,
                      pl.BlockSpec((KC, Cout), lambda i: (0, 0)),
                      pl.BlockSpec((1, Cout), lambda i: (0, 0))],
            out_specs=pl.BlockSpec((tm, Cout), lambda i: (i, 0)),
        ),
        compiler_params=pltpu.CompilerParams(
            dimension_semantics=("parallel",)),
    )(c00, c01, c10, c11, wmat, b2)
    return out.reshape(B, Ho, Wo, Cout)


def pallas_fc_head(x, w1, b1, w2, b2, *, tk):
    """Fused fc1(+ReLU)+fc2, streaming w1.  x:(M,K) bf16 -> (M,N) f32."""
    M, K = x.shape
    K1, H = w1.shape
    H2, N = w2.shape
    assert K == K1 and H == H2 and K % tk == 0
    return pl.pallas_call(
        _fc_fused_kernel,
        out_shape=jax.ShapeDtypeStruct((M, N), jnp.float32),
        grid_spec=pltpu.PrefetchScalarGridSpec(
            num_scalar_prefetch=0,
            grid=(K // tk,),
            in_specs=[
                pl.BlockSpec((M, tk), lambda k: (0, k)),
                pl.BlockSpec((tk, H), lambda k: (k, 0)),
                pl.BlockSpec((1, H), lambda k: (0, 0)),
                pl.BlockSpec((H, N), lambda k: (0, 0)),
                pl.BlockSpec((1, N), lambda k: (0, 0)),
            ],
            out_specs=pl.BlockSpec((M, N), lambda k: (0, 0)),
            scratch_shapes=[pltpu.VMEM((M, H), jnp.float32)],
        ),
        compiler_params=pltpu.CompilerParams(
            dimension_semantics=("arbitrary",)),
    )(x, w1, b1, w2, b2)


# ---------------------------------------------------------------------------
# One-time parameter preparation (NOT inside the per-call forward)
# ---------------------------------------------------------------------------
def prepare_params(params):
    """Conv weights -> (9*Cin, Cout) bf16 matmul layout; fc1 rows permuted from
    torch (C,H,W) flatten order to NHWC (H,W,C) order; fc weights pre-cast to
    bf16; biases reshaped to (1, N) f32."""
    def conv_wmat(w):                      # (Cout, Cin, 3, 3) -> (9*Cin, Cout)
        cout, cin, kh, kw = w.shape
        return (jnp.transpose(w, (2, 3, 1, 0))
                .reshape(kh * kw * cin, cout).astype(jnp.bfloat16))

    C2, Hf, Wf = 32, 16, 16                # post-conv2 feature map (C, H, W)
    wfc1 = params["wfc1"].reshape(C2, Hf, Wf, -1)
    wfc1 = jnp.transpose(wfc1, (1, 2, 0, 3)).reshape(C2 * Hf * Wf, -1)

    return {
        "w1": conv_wmat(params["w1"]),
        "b1": params["b1"].reshape(1, -1).astype(jnp.float32),
        "w2": conv_wmat(params["w2"]),
        "b2": params["b2"].reshape(1, -1).astype(jnp.float32),
        "wfc1": wfc1.astype(jnp.bfloat16),
        "bfc1": params["bfc1"].reshape(1, -1).astype(jnp.float32),
        "wfc2": params["wfc2"].astype(jnp.bfloat16),
        "bfc2": params["bfc2"].reshape(1, -1).astype(jnp.float32),
    }


# ---------------------------------------------------------------------------
# Full CNN forward (matches torch CNN.forward semantics)
# ---------------------------------------------------------------------------
def cnn_forward(prepared, x_nchw):
    B = x_nchw.shape[0]
    x = jnp.transpose(x_nchw, (0, 2, 3, 1)).astype(jnp.bfloat16)   # NCHW -> NHWC
    x = conv3x3_relu_pool(x, prepared["w1"], prepared["b1"])       # (B,32,32,16)
    x = conv3x3_relu_pool(x, prepared["w2"], prepared["b2"])       # (B,16,16,32)
    # fc1 rows were pre-permuted to NHWC order -> flatten directly, no transpose
    x = x.reshape(B, 16 * 16 * 32)
    logits = pallas_fc_head(x, prepared["wfc1"], prepared["bfc1"],
                            prepared["wfc2"], prepared["bfc2"], tk=4096)
    return logits


# ---------------------------------------------------------------------------
# Pure-JAX reference (for numerical sanity check)
# ---------------------------------------------------------------------------
def reference_forward(params, x_nchw):
    dn = ("NCHW", "OIHW", "NCHW")
    hp = jax.lax.Precision.HIGHEST

    def conv(x, w, b):
        y = jax.lax.conv_general_dilated(x, w, (1, 1), "SAME",
                                         dimension_numbers=dn, precision=hp)
        return jax.nn.relu(y + b[None, :, None, None])

    def pool(x):
        return jax.lax.reduce_window(x, -jnp.inf, jax.lax.max,
                                     (1, 1, 2, 2), (1, 1, 2, 2), "VALID")

    y = pool(conv(x_nchw, params["w1"], params["b1"]))
    y = pool(conv(y, params["w2"], params["b2"]))
    y = y.reshape(y.shape[0], -1)
    y = jax.nn.relu(jnp.dot(y, params["wfc1"], precision=hp) + params["bfc1"])
    y = jnp.dot(y, params["wfc2"], precision=hp) + params["bfc2"]
    return y


# ---------------------------------------------------------------------------
if __name__ == "__main__":
    num_classes = 10
    B = 2                      # spatial 64x64 / 3 channels forced by fc1 = 32*16*16

    key = jax.random.PRNGKey(0)
    ks = jax.random.split(key, 9)
    params = {
        # conv weights in torch (Cout, Cin, kH, kW) layout
        "w1":  0.05 * jax.random.normal(ks[0], (16, 3, 3, 3), jnp.float32),
        "b1":  0.05 * jax.random.normal(ks[1], (16,), jnp.float32),
        "w2":  0.05 * jax.random.normal(ks[2], (32, 16, 3, 3), jnp.float32),
        "b2":  0.05 * jax.random.normal(ks[3], (32,), jnp.float32),
        # fc weights stored as (in, out) == torch Linear weight transposed
        "wfc1": 0.02 * jax.random.normal(ks[4], (32 * 16 * 16, 256), jnp.float32),
        "bfc1": 0.05 * jax.random.normal(ks[5], (256,), jnp.float32),
        "wfc2": 0.05 * jax.random.normal(ks[6], (256, num_classes), jnp.float32),
        "bfc2": 0.05 * jax.random.normal(ks[7], (num_classes,), jnp.float32),
    }
    x = jax.random.normal(ks[8], (B, 3, 64, 64), jnp.float32)   # NCHW like PyTorch

    prepared = jax.tree_util.tree_map(jax.block_until_ready, prepare_params(params))

    out = jax.jit(cnn_forward)(prepared, x)
    out = jax.block_until_ready(out)

    assert out.shape == (B, num_classes), out.shape
    assert bool(jnp.all(jnp.isfinite(out)))

    ref = jax.block_until_ready(jax.jit(reference_forward)(params, x))
    np.testing.assert_allclose(np.asarray(out), np.asarray(ref), rtol=2e-2, atol=2e-2)

    print("KERNEL_OK")
</pallas_src>

<mosaic_0001>
module attributes {stable_mosaic.version = 11 : i64} {
  func.func @_conv_pool_kernel(%arg0: i32, %arg1: memref<1024x27xbf16, #tpu.memory_space<vmem>>, %arg2: memref<1024x27xbf16, #tpu.memory_space<vmem>>, %arg3: memref<1024x27xbf16, #tpu.memory_space<vmem>>, %arg4: memref<1024x27xbf16, #tpu.memory_space<vmem>>, %arg5: memref<27x16xbf16, #tpu.memory_space<vmem>>, %arg6: memref<1x16xf32, #tpu.memory_space<vmem>>, %arg7: memref<1024x16xbf16, #tpu.memory_space<vmem>>) attributes {dimension_semantics = [#tpu.dimension_semantics<parallel>], iteration_bounds = array<i64: 2>, scalar_prefetch = 0 : i64, scratch_operands = 0 : i64, tpu.core_type = #tpu.core_type<tc>, window_params = [{transform_indices = @transform_0, window_bounds = array<i64: 1024, 27>}, {transform_indices = @transform_1, window_bounds = array<i64: 1024, 27>}, {transform_indices = @transform_2, window_bounds = array<i64: 1024, 27>}, {transform_indices = @transform_3, window_bounds = array<i64: 1024, 27>}, {pipeline_mode = #tpu.pipeline_mode<synchronous>, transform_indices = @transform_4, window_bounds = array<i64: 27, 16>}, {pipeline_mode = #tpu.pipeline_mode<synchronous>, transform_indices = @transform_5, window_bounds = array<i64: 1, 16>}, {transform_indices = @transform_6, window_bounds = array<i64: 1024, 16>}]} {
    %c0 = arith.constant 0 : index
    %c0_0 = arith.constant 0 : index
    %0 = vector.load %arg5[%c0, %c0_0] : memref<27x16xbf16, #tpu.memory_space<vmem>>, vector<27x16xbf16>
    %c0_1 = arith.constant 0 : index
    %c0_2 = arith.constant 0 : index
    %1 = vector.load %arg6[%c0_1, %c0_2] : memref<1x16xf32, #tpu.memory_space<vmem>>, vector<1x16xf32>
    %c0_3 = arith.constant 0 : index
    %c0_4 = arith.constant 0 : index
    %2 = vector.load %arg1[%c0_3, %c0_4] : memref<1024x27xbf16, #tpu.memory_space<vmem>>, vector<1024x27xbf16>
    %cst = arith.constant dense<0.000000e+00> : vector<1024x16xf32>
    %3 = tpu.matmul %2, %0, %cst {dimension_numbers = #tpu.dot_dimension_numbers<[1], [0], [0], [1], [0, 0, 1, 1], [], []>} : vector<1024x27xbf16>, vector<27x16xbf16>, vector<1024x16xf32> -> vector<1024x16xf32>
    %4 = vector.broadcast %1 : vector<1x16xf32> to vector<1024x16xf32>
    %5 = arith.addf %3, %4 : vector<1024x16xf32>
    %cst_5 = arith.constant 0.000000e+00 : f32
    %6 = vector.broadcast %cst_5 : f32 to vector<1024x16xf32>
    %7 = arith.maximumf %5, %6 : vector<1024x16xf32>
    %c0_6 = arith.constant 0 : index
    %c0_7 = arith.constant 0 : index
    %8 = vector.load %arg2[%c0_6, %c0_7] : memref<1024x27xbf16, #tpu.memory_space<vmem>>, vector<1024x27xbf16>
    %cst_8 = arith.constant dense<0.000000e+00> : vector<1024x16xf32>
    %9 = tpu.matmul %8, %0, %cst_8 {dimension_numbers = #tpu.dot_dimension_numbers<[1], [0], [0], [1], [0, 0, 1, 1], [], []>} : vector<1024x27xbf16>, vector<27x16xbf16>, vector<1024x16xf32> -> vector<1024x16xf32>
    %10 = vector.broadcast %1 : vector<1x16xf32> to vector<1024x16xf32>
    %11 = arith.addf %9, %10 : vector<1024x16xf32>
    %cst_9 = arith.constant 0.000000e+00 : f32
    %12 = vector.broadcast %cst_9 : f32 to vector<1024x16xf32>
    %13 = arith.maximumf %11, %12 : vector<1024x16xf32>
    %14 = arith.maximumf %7, %13 : vector<1024x16xf32>
    %c0_10 = arith.constant 0 : index
    %c0_11 = arith.constant 0 : index
    %15 = vector.load %arg3[%c0_10, %c0_11] : memref<1024x27xbf16, #tpu.memory_space<vmem>>, vector<1024x27xbf16>
    %cst_12 = arith.constant dense<0.000000e+00> : vector<1024x16xf32>
    %16 = tpu.matmul %15, %0, %cst_12 {dimension_numbers = #tpu.dot_dimension_numbers<[1], [0], [0], [1], [0, 0, 1, 1], [], []>} : vector<1024x27xbf16>, vector<27x16xbf16>, vector<1024x16xf32> -> vector<1024x16xf32>
    %17 = vector.broadcast %1 : vector<1x16xf32> to vector<1024x16xf32>
    %18 = arith.addf %16, %17 : vector<1024x16xf32>
    %cst_13 = arith.constant 0.000000e+00 : f32
    %19 = vector.broadcast %cst_13 : f32 to vector<1024x16xf32>
    %20 = arith.maximumf %18, %19 : vector<1024x16xf32>
    %c0_14 = arith.constant 0 : index
    %c0_15 = arith.constant 0 : index
    %21 = vector.load %arg4[%c0_14, %c0_15] : memref<1024x27xbf16, #tpu.memory_space<vmem>>, vector<1024x27xbf16>
    %cst_16 = arith.constant dense<0.000000e+00> : vector<1024x16xf32>
    %22 = tpu.matmul %21, %0, %cst_16 {dimension_numbers = #tpu.dot_dimension_numbers<[1], [0], [0], [1], [0, 0, 1, 1], [], []>} : vector<1024x27xbf16>, vector<27x16xbf16>, vector<1024x16xf32> -> vector<1024x16xf32>
    %23 = vector.broadcast %1 : vector<1x16xf32> to vector<1024x16xf32>
    %24 = arith.addf %22, %23 : vector<1024x16xf32>
    %cst_17 = arith.constant 0.000000e+00 : f32
    %25 = vector.broadcast %cst_17 : f32 to vector<1024x16xf32>
    %26 = arith.maximumf %24, %25 : vector<1024x16xf32>
    %27 = arith.maximumf %20, %26 : vector<1024x16xf32>
    %28 = arith.maximumf %14, %27 : vector<1024x16xf32>
    %29 = arith.truncf %28 : vector<1024x16xf32> to vector<1024x16xbf16>
    %c0_18 = arith.constant 0 : index
    %c0_19 = arith.constant 0 : index
    %30 = vector.load %arg7[%c0_18, %c0_19] : memref<1024x16xbf16, #tpu.memory_space<vmem>>, vector<1024x16xbf16>
    tpu.vector_store %arg7[%c0_18, %c0_19], %29 {strides = array<i32>} : memref<1024x16xbf16, #tpu.memory_space<vmem>>, vector<1024x16xbf16>,
    return
  }
  func.func @transform_0(%arg0: i32) -> (i32, i32) {
    %c0_i32 = arith.constant 0 : i32
    %c0_i32_0 = arith.constant 0 : i32
    return %arg0, %c0_i32 : i32, i32
  }
  func.func @transform_1(%arg0: i32) -> (i32, i32) {
    %c0_i32 = arith.constant 0 : i32
    %c0_i32_0 = arith.constant 0 : i32
    return %arg0, %c0_i32 : i32, i32
  }
  func.func @transform_2(%arg0: i32) -> (i32, i32) {
    %c0_i32 = arith.constant 0 : i32
    %c0_i32_0 = arith.constant 0 : i32
    return %arg0, %c0_i32 : i32, i32
  }
  func.func @transform_3(%arg0: i32) -> (i32, i32) {
    %c0_i32 = arith.constant 0 : i32
    %c0_i32_0 = arith.constant 0 : i32
    return %arg0, %c0_i32 : i32, i32
  }
  func.func @transform_4(%arg0: i32) -> (i32, i32) {
    %c0_i32 = arith.constant 0 : i32
    %c0_i32_0 = arith.constant 0 : i32
    %c0_i32_1 = arith.constant 0 : i32
    return %c0_i32, %c0_i32_0 : i32, i32
  }
  func.func @transform_5(%arg0: i32) -> (i32, i32) {
    %c0_i32 = arith.constant 0 : i32
    %c0_i32_0 = arith.constant 0 : i32
    %c0_i32_1 = arith.constant 0 : i32
    return %c0_i32, %c0_i32_0 : i32, i32
  }
  func.func @transform_6(%arg0: i32) -> (i32, i32) {
    %c0_i32 = arith.constant 0 : i32
    %c0_i32_0 = arith.constant 0 : i32
    return %arg0, %c0_i32 : i32, i32
  }
}

module attributes {stable_mosaic.version = 11 : i64} {
  func.func @_conv_pool_kernel(%arg0: i32, %arg1: memref<256x144xbf16, #tpu.memory_space<vmem>>, %arg2: memref<256x144xbf16, #tpu.memory_space<vmem>>, %arg3: memref<256x144xbf16, #tpu.memory_space<vmem>>, %arg4: memref<256x144xbf16, #tpu.memory_space<vmem>>, %arg5: memref<144x32xbf16, #tpu.memory_space<vmem>>, %arg6: memref<1x32xf32, #tpu.memory_space<vmem>>, %arg7: memref<256x32xbf16, #tpu.memory_space<vmem>>) attributes {dimension_semantics = [#tpu.dimension_semantics<parallel>], iteration_bounds = array<i64: 2>, scalar_prefetch = 0 : i64, scratch_operands = 0 : i64, tpu.core_type = #tpu.core_type<tc>, window_params = [{transform_indices = @transform_0, window_bounds = array<i64: 256, 144>}, {transform_indices = @transform_1, window_bounds = array<i64: 256, 144>}, {transform_indices = @transform_2, window_bounds = array<i64: 256, 144>}, {transform_indices = @transform_3, window_bounds = array<i64: 256, 144>}, {pipeline_mode = #tpu.pipeline_mode<synchronous>, transform_indices = @transform_4, window_bounds = array<i64: 144, 32>}, {pipeline_mode = #tpu.pipeline_mode<synchronous>, transform_indices = @transform_5, window_bounds = array<i64: 1, 32>}, {transform_indices = @transform_6, window_bounds = array<i64: 256, 32>}]} {
    %c0 = arith.constant 0 : index
    %c0_0 = arith.constant 0 : index
    %0 = vector.load %arg5[%c0, %c0_0] : memref<144x32xbf16, #tpu.memory_space<vmem>>, vector<144x32xbf16>
    %c0_1 = arith.constant 0 : index
    %c0_2 = arith.constant 0 : index
    %1 = vector.load %arg6[%c0_1, %c0_2] : memref<1x32xf32, #tpu.memory_space<vmem>>, vector<1x32xf32>
    %c0_3 = arith.constant 0 : index
    %c0_4 = arith.constant 0 : index
    %2 = vector.load %arg1[%c0_3, %c0_4] : memref<256x144xbf16, #tpu.memory_space<vmem>>, vector<256x144xbf16>
    %cst = arith.constant dense<0.000000e+00> : vector<256x32xf32>
    %3 = tpu.matmul %2, %0, %cst {dimension_numbers = #tpu.dot_dimension_numbers<[1], [0], [0], [1], [0, 0, 1, 1], [], []>} : vector<256x144xbf16>, vector<144x32xbf16>, vector<256x32xf32> -> vector<256x32xf32>
    %4 = vector.broadcast %1 : vector<1x32xf32> to vector<256x32xf32>
    %5 = arith.addf %3, %4 : vector<256x32xf32>
    %cst_5 = arith.constant 0.000000e+00 : f32
    %6 = vector.broadcast %cst_5 : f32 to vector<256x32xf32>
    %7 = arith.maximumf %5, %6 : vector<256x32xf32>
    %c0_6 = arith.constant 0 : index
    %c0_7 = arith.constant 0 : index
    %8 = vector.load %arg2[%c0_6, %c0_7] : memref<256x144xbf16, #tpu.memory_space<vmem>>, vector<256x144xbf16>
    %cst_8 = arith.constant dense<0.000000e+00> : vector<256x32xf32>
    %9 = tpu.matmul %8, %0, %cst_8 {dimension_numbers = #tpu.dot_dimension_numbers<[1], [0], [0], [1], [0, 0, 1, 1], [], []>} : vector<256x144xbf16>, vector<144x32xbf16>, vector<256x32xf32> -> vector<256x32xf32>
    %10 = vector.broadcast %1 : vector<1x32xf32> to vector<256x32xf32>
    %11 = arith.addf %9, %10 : vector<256x32xf32>
    %cst_9 = arith.constant 0.000000e+00 : f32
    %12 = vector.broadcast %cst_9 : f32 to vector<256x32xf32>
    %13 = arith.maximumf %11, %12 : vector<256x32xf32>
    %14 = arith.maximumf %7, %13 : vector<256x32xf32>
    %c0_10 = arith.constant 0 : index
    %c0_11 = arith.constant 0 : index
    %15 = vector.load %arg3[%c0_10, %c0_11] : memref<256x144xbf16, #tpu.memory_space<vmem>>, vector<256x144xbf16>
    %cst_12 = arith.constant dense<0.000000e+00> : vector<256x32xf32>
    %16 = tpu.matmul %15, %0, %cst_12 {dimension_numbers = #tpu.dot_dimension_numbers<[1], [0], [0], [1], [0, 0, 1, 1], [], []>} : vector<256x144xbf16>, vector<144x32xbf16>, vector<256x32xf32> -> vector<256x32xf32>
    %17 = vector.broadcast %1 : vector<1x32xf32> to vector<256x32xf32>
    %18 = arith.addf %16, %17 : vector<256x32xf32>
    %cst_13 = arith.constant 0.000000e+00 : f32
    %19 = vector.broadcast %cst_13 : f32 to vector<256x32xf32>
    %20 = arith.maximumf %18, %19 : vector<256x32xf32>
    %c0_14 = arith.constant 0 : index
    %c0_15 = arith.constant 0 : index
    %21 = vector.load %arg4[%c0_14, %c0_15] : memref<256x144xbf16, #tpu.memory_space<vmem>>, vector<256x144xbf16>
    %cst_16 = arith.constant dense<0.000000e+00> : vector<256x32xf32>
    %22 = tpu.matmul %21, %0, %cst_16 {dimension_numbers = #tpu.dot_dimension_numbers<[1], [0], [0], [1], [0, 0, 1, 1], [], []>} : vector<256x144xbf16>, vector<144x32xbf16>, vector<256x32xf32> -> vector<256x32xf32>
    %23 = vector.broadcast %1 : vector<1x32xf32> to vector<256x32xf32>
    %24 = arith.addf %22, %23 : vector<256x32xf32>
    %cst_17 = arith.constant 0.000000e+00 : f32
    %25 = vector.broadcast %cst_17 : f32 to vector<256x32xf32>
    %26 = arith.maximumf %24, %25 : vector<256x32xf32>
    %27 = arith.maximumf %20, %26 : vector<256x32xf32>
    %28 = arith.maximumf %14, %27 : vector<256x32xf32>
    %29 = arith.truncf %28 : vector<256x32xf32> to vector<256x32xbf16>
    %c0_18 = arith.constant 0 : index
    %c0_19 = arith.constant 0 : index
    %30 = vector.load %arg7[%c0_18, %c0_19] : memref<256x32xbf16, #tpu.memory_space<vmem>>, vector<256x32xbf16>
    tpu.vector_store %arg7[%c0_18, %c0_19], %29 {strides = array<i32>} : memref<256x32xbf16, #tpu.memory_space<vmem>>, vector<256x32xbf16>,
    return
  }
  func.func @transform_0(%arg0: i32) -> (i32, i32) {
    %c0_i32 = arith.constant 0 : i32
    %c0_i32_0 = arith.constant 0 : i32
    return %arg0, %c0_i32 : i32, i32
  }
  func.func @transform_1(%arg0: i32) -> (i32, i32) {
    %c0_i32 = arith.constant 0 : i32
    %c0_i32_0 = arith.constant 0 : i32
    return %arg0, %c0_i32 : i32, i32
  }
  func.func @transform_2(%arg0: i32) -> (i32, i32) {
    %c0_i32 = arith.constant 0 : i32
    %c0_i32_0 = arith.constant 0 : i32
    return %arg0, %c0_i32 : i32, i32
  }
  func.func @transform_3(%arg0: i32) -> (i32, i32) {
    %c0_i32 = arith.constant 0 : i32
    %c0_i32_0 = arith.constant 0 : i32
    return %arg0, %c0_i32 : i32, i32
  }
  func.func @transform_4(%arg0: i32) -> (i32, i32) {
    %c0_i32 = arith.constant 0 : i32
    %c0_i32_0 = arith.constant 0 : i32
    %c0_i32_1 = arith.constant 0 : i32
    return %c0_i32, %c0_i32_0 : i32, i32
  }
  func.func @transform_5(%arg0: i32) -> (i32, i32) {
    %c0_i32 = arith.constant 0 : i32
    %c0_i32_0 = arith.constant 0 : i32
    %c0_i32_1 = arith.constant 0 : i32
    return %c0_i32, %c0_i32_0 : i32, i32
  }
  func.func @transform_6(%arg0: i32) -> (i32, i32) {
    %c0_i32 = arith.constant 0 : i32
    %c0_i32_0 = arith.constant 0 : i32
    return %arg0, %c0_i32 : i32, i32
  }
}

module attributes {stable_mosaic.version = 11 : i64} {
  func.func @_fc_fused_kernel(%arg0: i32, %arg1: memref<2x4096xbf16, #tpu.memory_space<vmem>>, %arg2: memref<4096x256xbf16, #tpu.memory_space<vmem>>, %arg3: memref<1x256xf32, #tpu.memory_space<vmem>>, %arg4: memref<256x10xbf16, #tpu.memory_space<vmem>>, %arg5: memref<1x10xf32, #tpu.memory_space<vmem>>, %arg6: memref<2x10xf32, #tpu.memory_space<vmem>>, %arg7: memref<2x256xf32, #tpu.memory_space<vmem>>) attributes {dimension_semantics = [#tpu.dimension_semantics<arbitrary>], iteration_bounds = array<i64: 2>, scalar_prefetch = 0 : i64, scratch_operands = 1 : i64, tpu.core_type = #tpu.core_type<tc>, window_params = [{transform_indices = @transform_0, window_bounds = array<i64: 2, 4096>}, {transform_indices = @transform_1, window_bounds = array<i64: 4096, 256>}, {pipeline_mode = #tpu.pipeline_mode<synchronous>, transform_indices = @transform_2, window_bounds = array<i64: 1, 256>}, {pipeline_mode = #tpu.pipeline_mode<synchronous>, transform_indices = @transform_3, window_bounds = array<i64: 256, 10>}, {pipeline_mode = #tpu.pipeline_mode<synchronous>, transform_indices = @transform_4, window_bounds = array<i64: 1, 10>}, {pipeline_mode = #tpu.pipeline_mode<synchronous>, transform_indices = @transform_5, window_bounds = array<i64: 2, 10>}]} {
    %c0_i32 = arith.constant 0 : i32
    %0 = arith.cmpi eq, %arg0, %c0_i32 : i32
    %1 = arith.extui %0 : i1 to i32
    %c0_i32_0 = arith.constant 0 : i32
    %2 = arith.cmpi ne, %1, %c0_i32_0 : i32
    scf.if %2 {
      %cst_9 = arith.constant 0.000000e+00 : f32
      %12 = vector.broadcast %cst_9 : f32 to vector<2x256xf32>
      %c0_10 = arith.constant 0 : index
      %c0_11 = arith.constant 0 : index
      %13 = vector.load %arg7[%c0_10, %c0_11] : memref<2x256xf32, #tpu.memory_space<vmem>>, vector<2x256xf32>
      tpu.vector_store %arg7[%c0_10, %c0_11], %12 {strides = array<i32>} : memref<2x256xf32, #tpu.memory_space<vmem>>, vector<2x256xf32>,
    } else {
    }
    %c0 = arith.constant 0 : index
    %c0_1 = arith.constant 0 : index
    %3 = vector.load %arg7[%c0, %c0_1] : memref<2x256xf32, #tpu.memory_space<vmem>>, vector<2x256xf32>
    %c0_2 = arith.constant 0 : index
    %c0_3 = arith.constant 0 : index
    %4 = vector.load %arg1[%c0_2, %c0_3] : memref<2x4096xbf16, #tpu.memory_space<vmem>>, vector<2x4096xbf16>
    %c0_4 = arith.constant 0 : index
    %c0_5 = arith.constant 0 : index
    %5 = vector.load %arg2[%c0_4, %c0_5] : memref<4096x256xbf16, #tpu.memory_space<vmem>>, vector<4096x256xbf16>
    %cst = arith.constant dense<0.000000e+00> : vector<2x256xf32>
    %6 = tpu.matmul %4, %5, %cst {dimension_numbers = #tpu.dot_dimension_numbers<[1], [0], [0], [1], [0, 0, 1, 1], [], []>} : vector<2x4096xbf16>, vector<4096x256xbf16>, vector<2x256xf32> -> vector<2x256xf32>
    %7 = arith.addf %3, %6 : vector<2x256xf32>
    %c0_6 = arith.constant 0 : index
    %c0_7 = arith.constant 0 : index
    %8 = vector.load %arg7[%c0_6, %c0_7] : memref<2x256xf32, #tpu.memory_space<vmem>>, vector<2x256xf32>
    tpu.vector_store %arg7[%c0_6, %c0_7], %7 {strides = array<i32>} : memref<2x256xf32, #tpu.memory_space<vmem>>, vector<2x256xf32>,
    %c1_i32 = arith.constant 1 : i32
    %9 = arith.cmpi eq, %arg0, %c1_i32 : i32
    %10 = arith.extui %9 : i1 to i32
    %c0_i32_8 = arith.constant 0 : i32
    %11 = arith.cmpi ne, %10, %c0_i32_8 : i32
    scf.if %11 {
      %c0_9 = arith.constant 0 : index
      %c0_10 = arith.constant 0 : index
      %12 = vector.load %arg7[%c0_9, %c0_10] : memref<2x256xf32, #tpu.memory_space<vmem>>, vector<2x256xf32>
      %c0_11 = arith.constant 0 : index
      %c0_12 = arith.constant 0 : index
      %13 = vector.load %arg3[%c0_11, %c0_12] : memref<1x256xf32, #tpu.memory_space<vmem>>, vector<1x256xf32>
      %14 = vector.broadcast %13 : vector<1x256xf32> to vector<2x256xf32>
      %15 = arith.addf %12, %14 : vector<2x256xf32>
      %cst_13 = arith.constant 0.000000e+00 : f32
      %16 = vector.broadcast %cst_13 : f32 to vector<2x256xf32>
      %17 = arith.maximumf %15, %16 : vector<2x256xf32>
      %18 = arith.truncf %17 : vector<2x256xf32> to vector<2x256xbf16>
      %c0_14 = arith.constant 0 : index
      %c0_15 = arith.constant 0 : index
      %19 = vector.load %arg4[%c0_14, %c0_15] : memref<256x10xbf16, #tpu.memory_space<vmem>>, vector<256x10xbf16>
      %cst_16 = arith.constant dense<0.000000e+00> : vector<2x10xf32>
      %20 = tpu.matmul %18, %19, %cst_16 {dimension_numbers = #tpu.dot_dimension_numbers<[1], [0], [0], [1], [0, 0, 1, 1], [], []>} : vector<2x256xbf16>, vector<256x10xbf16>, vector<2x10xf32> -> vector<2x10xf32>
      %c0_17 = arith.constant 0 : index
      %c0_18 = arith.constant 0 : index
      %21 = vector.load %arg5[%c0_17, %c0_18] : memref<1x10xf32, #tpu.memory_space<vmem>>, vector<1x10xf32>
      %22 = vector.broadcast %21 : vector<1x10xf32> to vector<2x10xf32>
      %23 = arith.addf %20, %22 : vector<2x10xf32>
      %c0_19 = arith.constant 0 : index
      %c0_20 = arith.constant 0 : index
      %24 = vector.load %arg6[%c0_19, %c0_20] : memref<2x10xf32, #tpu.memory_space<vmem>>, vector<2x10xf32>
      tpu.vector_store %arg6[%c0_19, %c0_20], %23 {strides = array<i32>} : memref<2x10xf32, #tpu.memory_space<vmem>>, vector<2x10xf32>,
    } else {
    }
    return
  }
  func.func @transform_0(%arg0: i32) -> (i32, i32) {
    %c0_i32 = arith.constant 0 : i32
    %c0_i32_0 = arith.constant 0 : i32
    return %c0_i32, %arg0 : i32, i32
  }
  func.func @transform_1(%arg0: i32) -> (i32, i32) {
    %c0_i32 = arith.constant 0 : i32
    %c0_i32_0 = arith.constant 0 : i32
    return %arg0, %c0_i32 : i32, i32
  }
  func.func @transform_2(%arg0: i32) -> (i32, i32) {
    %c0_i32 = arith.constant 0 : i32
    %c0_i32_0 = arith.constant 0 : i32
    %c0_i32_1 = arith.constant 0 : i32
    return %c0_i32, %c0_i32_0 : i32, i32
  }
  func.func @transform_3(%arg0: i32) -> (i32, i32) {
    %c0_i32 = arith.constant 0 : i32
    %c0_i32_0 = arith.constant 0 : i32
    %c0_i32_1 = arith.constant 0 : i32
    return %c0_i32, %c0_i32_0 : i32, i32
  }
  func.func @transform_4(%arg0: i32) -> (i32, i32) {
    %c0_i32 = arith.constant 0 : i32
    %c0_i32_0 = arith.constant 0 : i32
    %c0_i32_1 = arith.constant 0 : i32
    return %c0_i32, %c0_i32_0 : i32, i32
  }
  func.func @transform_5(%arg0: i32) -> (i32, i32) {
    %c0_i32 = arith.constant 0 : i32
    %c0_i32_0 = arith.constant 0 : i32
    %c0_i32_1 = arith.constant 0 : i32
    return %c0_i32, %c0_i32_0 : i32, i32
  }
}

</mosaic_0001>

<bundles_post_ra>
// kernel: cnn_forward.3
= control target key start
LH: loop header
LB: loop body
LE: loop exit
PB: predicated region body
PF: predicated region fallthrough
CT: control target
= control target key end

     0   :  { %s8616_s21 = smov 0   ;;  %s10354_s0 = inlined_call_operand.vmem [shape: bf16[2048,27], index: 0, kind: input, shape index: {}]   ;;  %s10355_s1 = inlined_call_operand.vmem [shape: bf16[2048,27], index: 1, kind: input, shape index: {}]   ;;  %s10356_s2 = inlined_call_operand.vmem [shape: bf16[2048,27], index: 2, kind: input, shape index: {}]   ;;  %s10357_s3 = inlined_call_operand.vmem [shape: bf16[2048,27], index: 3, kind: input, shape index: {}]   ;;  %s10358_s4 = inlined_call_operand.vmem [shape: bf16[27,16], index: 4, kind: input, shape index: {}]   ;;  %s10359_s5 = inlined_call_operand.vmem [shape: f32[1,16], index: 5, kind: input, shape index: {}]   ;;  %s10360_s6 = inlined_call_operand.vmem [shape: bf16[2048,16], index: 6, kind: output, shape index: {}]  }
   0x1 LB: > { %s6721_s22 = sadd.s32 4294967295, %s8578_s21   ;;  %p6725_p0 = scmp.ge.s32.totalorder %s8578_s21, 1  ;;  %s8578_s21 = sphi %s8616_s21, %s16_s21  }
   0x2   : > { %p246_p1 = scmp.lt.s32.totalorder %s8578_s21, 3 }
   0x4   : > { %p247_p2 = pnand %p6725_p0, %p246_p1 }
   0x6   : > { %250 = sbr.rel (%p247_p2) target bundleno = 755 (0x2f3), region = 44 }
   0xd   : > { %v8310_v0 = vld [vmem:[%s10358_s4] sm:$0xff]   ;;  %vm985_vm0 = vcmask 1044480   ;;  %v8311_v1 = vld [vmem:[%s10358_s4 + $0x8] sm:$0x3f]   ;;  %vm986_vm1 = vcmask 1045504   ;;  %s6726_s27 = sshll.u32 %s6721_s22, 7 }
   0xe   : > { %7773 = vmatprep.subr.bf16.mxu0 %v8310_v0  ;;  %7905 = vmatprep.subr.bf16.mxu1 %v8310_v0  ;;  %v8580_v2 = vmov 65535   ;;  %p292_p3 = scmp.lt.s32.totalorder %s6726_s27, 255  ;;  %vm792_vm2 = vcmask 220160   ;;  %vm6500_vm3 = vcmask 125952  }
   0xf   : > { %7774 = vmatpush3.bf16.msra.mxu0 %v8310_v0  ;;  %7906 = vmatpush3.bf16.msra.mxu1 %v8310_v0  ;;  %v987_v3 = vsel %vm985_vm0, 4294967295, %v8580_v2 }
  0x10   : > { %v988_v4 = vsel %vm986_vm1, %v987_v3, 0  ;;  %s10536_s27 = smov (!%p292_p3, %s6726_s27), 255 }
  0x11   : > { %v990_v5 = vand.u32 %v8311_v1, %v988_v4  ;;  %s8630_s28 = sshll.u32 %s10536_s27, 2 }
  0x12   : > { %s8636_s7 = scalar_lea.vmem %s10354_s0, %s8630_s28  ;;  %s8642_s10 = scalar_lea.vmem %s10355_s1, %s8630_s28 }
  0x13   : > { %7775 = vmatprep.subr.bf16.mxu0 %v990_v5  ;;  %7907 = vmatprep.subr.bf16.mxu1 %v990_v5  ;;  %v8312_v6 = vld [vmem:[%s8636_s7] sm:$0xff]   ;;  %v8314_v8 = vld [vmem:[%s8636_s7 + $0x8] sm:$0xff]   ;;  %v8316_v10 = vld [vmem:[%s8636_s7 + $0x10] sm:$0xff]   ;;  %s8783_s13 = scalar_lea.vmem %s10356_s2, %s8630_s28  ;;  %s8790_s16 = scalar_lea.vmem %s10357_s3, %s8630_s28 }
  0x14   : > { %7776 = vmatpush3.bf16.msra.mxu0 %v990_v5  ;;  %7908 = vmatpush3.bf16.msra.mxu1 %v990_v5  ;;  %v8313_v7 = vld [vmem:[%s8642_s10] sm:$0xff]   ;;  %v8315_v9 = vld [vmem:[%s8642_s10 + $0x8] sm:$0xff]   ;;  %v8317_v11 = vld [vmem:[%s8642_s10 + $0x10] sm:$0xff]   ;;  %s9680_s26 = scalar_lea.vmem %s10360_s6, %s8630_s28 }
  0x15   : > { %8037 = vmatprep.subr.bf16.mxu0 %v8310_v0  ;;  %8169 = vmatprep.subr.bf16.mxu1 %v8310_v0  ;;  %v8318_v12 = vld [vmem:[%s8636_s7 + $0x18] sm:$0xff]   ;;  %v8320_v14 = vld [vmem:[%s8636_s7 + $0x20] sm:$0xff]   ;;  %v8322_v16 = vld [vmem:[%s8636_s7 + $0x28] sm:$0xff]  }
  0x16   : > { %7777 = vmatprep.mubr.msk.bf16.mxu0 %vm792_vm2, %v8312_v6  ;;  %7909 = vmatprep.mubr.msk.bf16.mxu1 %vm792_vm2, %v8313_v7  ;;  %v8319_v13 = vld [vmem:[%s8642_s10 + $0x18] sm:$0xff]   ;;  %v8321_v15 = vld [vmem:[%s8642_s10 + $0x20] sm:$0xff]   ;;  %v8323_v17 = vld [vmem:[%s8642_s10 + $0x28] sm:$0xff]  }
  0x17   : > { %7778 = vmatmul.mubr.msk.bf16.vlgmr.msra.gmra.mrb[0].mxu0 %vm792_vm2, %v8314_v8  ;;  %7910 = vmatmul.mubr.msk.bf16.vlgmr.msra.gmra.mrb[0].mxu1 %vm792_vm2, %v8315_v9  ;;  %v8324_v18 = vld [vmem:[%s8636_s7 + $0x30] sm:$0xff]   ;;  %v8326_v20 = vld [vmem:[%s8636_s7 + $0x38] sm:$0xff]   ;;  %v8328_v22 = vld [vmem:[%s8636_s7 + $0x40] sm:$0xff]  }
  0x18   : > { %8038 = vmatpush3.bf16.msra.mxu0 %v8310_v0  ;;  %8170 = vmatpush3.bf16.msra.mxu1 %v8310_v0  ;;  %v8325_v19 = vld [vmem:[%s8642_s10 + $0x30] sm:$0xff]   ;;  %v8327_v21 = vld [vmem:[%s8642_s10 + $0x38] sm:$0xff]   ;;  %v8329_v23 = vld [vmem:[%s8642_s10 + $0x40] sm:$0xff]  }
  0x19   : > { %7781 = vmatprep.mubr.msk.bf16.mxu0 %vm792_vm2, %v8316_v10  ;;  %7913 = vmatprep.mubr.msk.bf16.mxu1 %vm792_vm2, %v8317_v11  ;;  %v8330_v24 = vld [vmem:[%s8636_s7 + $0x48] sm:$0xff]   ;;  %v8332_v26 = vld [vmem:[%s8636_s7 + $0x50] sm:$0xff]   ;;  %v8334_v28 = vld [vmem:[%s8636_s7 + $0x58] sm:$0xff]  }
  0x1a   : > { %8039 = vmatprep.subr.bf16.mxu0 %v990_v5  ;;  %8171 = vmatprep.subr.bf16.mxu1 %v990_v5  ;;  %v8331_v25 = vld [vmem:[%s8642_s10 + $0x48] sm:$0xff]   ;;  %v8333_v27 = vld [vmem:[%s8642_s10 + $0x50] sm:$0xff]   ;;  %v8335_v29 = vld [vmem:[%s8642_s10 + $0x58] sm:$0xff]  }
  0x1b   : > { %v8336_v30 = vld [vmem:[%s8636_s7 + $0x60] sm:$0xff]   ;;  %v8338_v32 = vld [vmem:[%s8636_s7 + $0x68] sm:$0xff]   ;;  %v8340_v34 = vld [vmem:[%s8636_s7 + $0x70] sm:$0xff]  }
  0x1c   : > { %8040 = vmatpush3.bf16.msra.mxu0 %v990_v5  ;;  %8172 = vmatpush3.bf16.msra.mxu1 %v990_v5  ;;  %v8337_v31 = vld [vmem:[%s8642_s10 + $0x60] sm:$0xff]   ;;  %v8339_v33 = vld [vmem:[%s8642_s10 + $0x68] sm:$0xff]   ;;  %v8341_v35 = vld [vmem:[%s8642_s10 + $0x70] sm:$0xff]  }
  0x1d   : > { %v8342_v36 = vld [vmem:[%s8636_s7 + $0x78] sm:$0xff]   ;;  %v8344_v38 = vld [vmem:[%s8636_s7 + $0x80] sm:$0xff]   ;;  %v8346_v40 = vld [vmem:[%s8636_s7 + $0x88] sm:$0xff]  }
  0x1e   : > { %v8343_v37 = vld [vmem:[%s8642_s10 + $0x78] sm:$0xff]   ;;  %v8345_v39 = vld [vmem:[%s8642_s10 + $0x80] sm:$0xff]   ;;  %v8347_v41 = vld [vmem:[%s8642_s10 + $0x88] sm:$0xff]  }
  0x1f   : > { %7782 = vmatmul.mubr.msk.bf16.gmra.mrb[4].mxu0 %vm792_vm2, %v8318_v12  ;;  %7914 = vmatmul.mubr.msk.bf16.gmra.mrb[4].mxu1 %vm792_vm2, %v8319_v13  ;;  %v8348_v42 = vld [vmem:[%s8636_s7 + $0x90] sm:$0xff]   ;;  %v8350_v44 = vld [vmem:[%s8636_s7 + $0x98] sm:$0xff]   ;;  %v8352_v46 = vld [vmem:[%s8636_s7 + $0xa0] sm:$0xff]  }
  0x20   : > { %7785 = vmatprep.mubr.msk.bf16.mxu0 %vm792_vm2, %v8320_v14  ;;  %7917 = vmatprep.mubr.msk.bf16.mxu1 %vm792_vm2, %v8321_v15  ;;  %v8349_v43 = vld [vmem:[%s8642_s10 + $0x90] sm:$0xff]   ;;  %v8351_v45 = vld [vmem:[%s8642_s10 + $0x98] sm:$0xff]   ;;  %v8353_v47 = vld [vmem:[%s8642_s10 + $0xa0] sm:$0xff]  }
  0x21   : > { %v8354_v48 = vld [vmem:[%s8636_s7 + $0xa8] sm:$0xff]   ;;  %v8356_v50 = vld [vmem:[%s8636_s7 + $0xb0] sm:$0xff]   ;;  %v8358_v52 = vld [vmem:[%s8636_s7 + $0xb8] sm:$0xff]  }
  0x22   : > { %v8355_v49 = vld [vmem:[%s8642_s10 + $0xa8] sm:$0xff]   ;;  %v8357_v51 = vld [vmem:[%s8642_s10 + $0xb0] sm:$0xff]   ;;  %v8359_v53 = vld [vmem:[%s8642_s10 + $0xb8] sm:$0xff]  }
  0x23   : > { %v8360_v54 = vld [vmem:[%s8636_s7 + $0xc0] sm:$0xff]   ;;  %v8362_v56 = vld [vmem:[%s8636_s7 + $0xc8] sm:$0xff]   ;;  %v8364_v58 = vld [vmem:[%s8636_s7 + $0xd0] sm:$0xff]  }
  0x24   : > { %v8361_v55 = vld [vmem:[%s8642_s10 + $0xc0] sm:$0xff]   ;;  %v8363_v57 = vld [vmem:[%s8642_s10 + $0xc8] sm:$0xff]   ;;  %v8365_v59 = vld [vmem:[%s8642_s10 + $0xd0] sm:$0xff]  }
  0x25   : > { %v8366_v60 = vld [vmem:[%s8636_s7 + $0xd8] sm:$0xff]   ;;  %v8368_v62 = vld [vmem:[%s8636_s7 + $0xe0] sm:$0xff]   ;;  %v8370_v0 = vld [vmem:[%s8636_s7 + $0xe8] sm:$0xff]  }
  0x26   : > { %v8367_v61 = vld [vmem:[%s8642_s10 + $0xd8] sm:$0xff]   ;;  %v8369_v63 = vld [vmem:[%s8642_s10 + $0xe0] sm:$0xff]   ;;  %v8371_v1 = vld [vmem:[%s8642_s10 + $0xe8] sm:$0xff]  }
  0x27   : > { %7786 = vmatmul.mubr.msk.bf16.gmra.mrb[8].mxu0 %vm792_vm2, %v8322_v16  ;;  %7918 = vmatmul.mubr.msk.bf16.gmra.mrb[8].mxu1 %vm792_vm2, %v8323_v17  ;;  %v8372_v2 = vld [vmem:[%s8636_s7 + $0xf0] sm:$0xff]   ;;  %v8374_v4 = vld [vmem:[%s8636_s7 + $0xf8] sm:$0xff]   ;;  %v8376_v6 = vld [vmem:[%s8636_s7 + $0x100] sm:$0xff]  }
  0x28   : > { %7789 = vmatprep.mubr.msk.bf16.mxu0 %vm792_vm2, %v8324_v18  ;;  %7921 = vmatprep.mubr.msk.bf16.mxu1 %vm792_vm2, %v8325_v19  ;;  %v8373_v3 = vld [vmem:[%s8642_s10 + $0xf0] sm:$0xff]   ;;  %v8375_v5 = vld [vmem:[%s8642_s10 + $0xf8] sm:$0xff]   ;;  %v8377_v7 = vld [vmem:[%s8642_s10 + $0x100] sm:$0xff]  }
  0x29   : > { %v8378_v8 = vld [vmem:[%s8636_s7 + $0x108] sm:$0xff]   ;;  %v8380_v10 = vld [vmem:[%s8636_s7 + $0x110] sm:$0xff]   ;;  %v8382_v12 = vld [vmem:[%s8636_s7 + $0x118] sm:$0xff]  }
  0x2a   : > { %v8379_v9 = vld [vmem:[%s8642_s10 + $0x108] sm:$0xff]   ;;  %v8381_v11 = vld [vmem:[%s8642_s10 + $0x110] sm:$0xff]   ;;  %v8383_v13 = vld [vmem:[%s8642_s10 + $0x118] sm:$0xff]  }
  0x2b   : > { %v8384_v14 = vld [vmem:[%s8636_s7 + $0x120] sm:$0xff]   ;;  %v8386_v16 = vld [vmem:[%s8636_s7 + $0x128] sm:$0xff]   ;;  %v8388_v18 = vld [vmem:[%s8636_s7 + $0x130] sm:$0xff]  }
  0x2c   : > { %v8385_v15 = vld [vmem:[%s8642_s10 + $0x120] sm:$0xff]   ;;  %v8387_v17 = vld [vmem:[%s8642_s10 + $0x128] sm:$0xff]   ;;  %v8389_v19 = vld [vmem:[%s8642_s10 + $0x130] sm:$0xff]  }
  0x2f   : > { %7790 = vmatmul.mubr.msk.bf16.gmra.mrb[12].mxu0 %vm792_vm2, %v8326_v20  ;;  %7922 = vmatmul.mubr.msk.bf16.gmra.mrb[12].mxu1 %vm792_vm2, %v8327_v21  ;;  %v8390_v20 = vld [vmem:[%s8636_s7 + $0x138] sm:$0xff]  }
  0x30   : > { %7793 = vmatprep.mubr.msk.bf16.mxu0 %vm792_vm2, %v8328_v22  ;;  %7925 = vmatprep.mubr.msk.bf16.mxu1 %vm792_vm2, %v8329_v23  ;;  %v8391_v21 = vld [vmem:[%s8642_s10 + $0x138] sm:$0xff]   ;;  %v8392_v22 = vld [vmem:[%s8636_s7 + $0x140] sm:$0xff]  }
  0x31   : > { %v8393_v23 = vld [vmem:[%s8642_s10 + $0x140] sm:$0xff]  }
  0x37   : > { %7794 = vmatmul.mubr.msk.bf16.gmra.mrb[16].mxu0 %vm792_vm2, %v8330_v24  ;;  %7926 = vmatmul.mubr.msk.bf16.gmra.mrb[16].mxu1 %vm792_vm2, %v8331_v25  ;;  %v8394_v24 = vld [vmem:[%s8636_s7 + $0x148] sm:$0xff]  }
  0x38   : > { %7797 = vmatprep.mubr.msk.bf16.mxu0 %vm792_vm2, %v8332_v26  ;;  %7929 = vmatprep.mubr.msk.bf16.mxu1 %vm792_vm2, %v8333_v27  ;;  %v8395_v25 = vld [vmem:[%s8642_s10 + $0x148] sm:$0xff]   ;;  %v8396_v26 = vld [vmem:[%s8636_s7 + $0x150] sm:$0xff]  }
  0x39   : > { %v8397_v27 = vld [vmem:[%s8642_s10 + $0x150] sm:$0xff]  }
  0x3f   : > { %7798 = vmatmul.mubr.msk.bf16.gmra.mrb[20].mxu0 %vm792_vm2, %v8334_v28  ;;  %7930 = vmatmul.mubr.msk.bf16.gmra.mrb[20].mxu1 %vm792_vm2, %v8335_v29  ;;  %v8398_v28 = vld [vmem:[%s8636_s7 + $0x158] sm:$0xff]  }
  0x40   : > { %7801 = vmatprep.mubr.msk.bf16.mxu0 %vm792_vm2, %v8336_v30  ;;  %7933 = vmatprep.mubr.msk.bf16.mxu1 %vm792_vm2, %v8337_v31  ;;  %v8399_v29 = vld [vmem:[%s8642_s10 + $0x158] sm:$0xff]   ;;  %v8400_v30 = vld [vmem:[%s8636_s7 + $0x160] sm:$0xff]  }
  0x41   : > { %v8401_v31 = vld [vmem:[%s8642_s10 + $0x160] sm:$0xff]  }
  0x47   : > { %7802 = vmatmul.mubr.msk.bf16.gmra.mrb[24].mxu0 %vm792_vm2, %v8338_v32  ;;  %7934 = vmatmul.mubr.msk.bf16.gmra.mrb[24].mxu1 %vm792_vm2, %v8339_v33  ;;  %v8402_v32 = vld [vmem:[%s8636_s7 + $0x168] sm:$0xff]  }
  0x48   : > { %7805 = vmatprep.mubr.msk.bf16.mxu0 %vm792_vm2, %v8340_v34  ;;  %7937 = vmatprep.mubr.msk.bf16.mxu1 %vm792_vm2, %v8341_v35  ;;  %v8403_v33 = vld [vmem:[%s8642_s10 + $0x168] sm:$0xff]   ;;  %v8404_v34 = vld [vmem:[%s8636_s7 + $0x170] sm:$0xff]  }
  0x49   : > { %v8405_v35 = vld [vmem:[%s8642_s10 + $0x170] sm:$0xff]  }
  0x4f   : > { %7806 = vmatmul.mubr.msk.bf16.gmra.mrb[28].mxu0 %vm792_vm2, %v8342_v36  ;;  %7938 = vmatmul.mubr.msk.bf16.gmra.mrb[28].mxu1 %vm792_vm2, %v8343_v37  ;;  %v8406_v36 = vld [vmem:[%s8636_s7 + $0x178] sm:$0xff]  }
  0x50   : > { %7809 = vmatprep.mubr.msk.bf16.mxu0 %vm792_vm2, %v8344_v38  ;;  %7941 = vmatprep.mubr.msk.bf16.mxu1 %vm792_vm2, %v8345_v39  ;;  %v8407_v37 = vld [vmem:[%s8642_s10 + $0x178] sm:$0xff]   ;;  %v8408_v38 = vld [vmem:[%s8636_s7 + $0x180] sm:$0xff]  }
  0x51   : > { %v8409_v39 = vld [vmem:[%s8642_s10 + $0x180] sm:$0xff]  }
  0x57   : > { %7810 = vmatmul.mubr.msk.bf16.gmra.mrb[32].mxu0 %vm792_vm2, %v8346_v40  ;;  %7942 = vmatmul.mubr.msk.bf16.gmra.mrb[32].mxu1 %vm792_vm2, %v8347_v41  ;;  %v8410_v40 = vld [vmem:[%s8636_s7 + $0x188] sm:$0xff]  }
  0x58   : > { %7813 = vmatprep.mubr.msk.bf16.mxu0 %vm792_vm2, %v8348_v42  ;;  %7945 = vmatprep.mubr.msk.bf16.mxu1 %vm792_vm2, %v8349_v43  ;;  %v8411_v41 = vld [vmem:[%s8642_s10 + $0x188] sm:$0xff]   ;;  %v8412_v42 = vld [vmem:[%s8636_s7 + $0x190] sm:$0xff]  }
  0x59   : > { %v8413_v43 = vld [vmem:[%s8642_s10 + $0x190] sm:$0xff]  }
  0x5f   : > { %7814 = vmatmul.mubr.msk.bf16.gmra.mrb[36].mxu0 %vm792_vm2, %v8350_v44  ;;  %7946 = vmatmul.mubr.msk.bf16.gmra.mrb[36].mxu1 %vm792_vm2, %v8351_v45  ;;  %v8414_v44 = vld [vmem:[%s8636_s7 + $0x198] sm:$0xff]  }
  0x60   : > { %7817 = vmatprep.mubr.msk.bf16.mxu0 %vm792_vm2, %v8352_v46  ;;  %7949 = vmatprep.mubr.msk.bf16.mxu1 %vm792_vm2, %v8353_v47  ;;  %v8415_v45 = vld [vmem:[%s8642_s10 + $0x198] sm:$0xff]   ;;  %v8416_v46 = vld [vmem:[%s8636_s7 + $0x1a0] sm:$0xff]  }
  0x61   : > { %v8417_v47 = vld [vmem:[%s8642_s10 + $0x1a0] sm:$0xff]  }
  0x67   : > { %7818 = vmatmul.mubr.msk.bf16.gmra.mrb[40].mxu0 %vm792_vm2, %v8354_v48  ;;  %7950 = vmatmul.mubr.msk.bf16.gmra.mrb[40].mxu1 %vm792_vm2, %v8355_v49  ;;  %v8418_v48 = vld [vmem:[%s8636_s7 + $0x1a8] sm:$0xff]  }
  0x68   : > { %7821 = vmatprep.mubr.msk.bf16.mxu0 %vm792_vm2, %v8356_v50  ;;  %7953 = vmatprep.mubr.msk.bf16.mxu1 %vm792_vm2, %v8357_v51  ;;  %v8419_v49 = vld [vmem:[%s8642_s10 + $0x1a8] sm:$0xff]   ;;  %v8420_v50 = vld [vmem:[%s8636_s7 + $0x1b0] sm:$0xff]  }
  0x69   : > { %v8421_v51 = vld [vmem:[%s8642_s10 + $0x1b0] sm:$0xff]  }
  0x6f   : > { %7822 = vmatmul.mubr.msk.bf16.gmra.mrb[44].mxu0 %vm792_vm2, %v8358_v52  ;;  %7954 = vmatmul.mubr.msk.bf16.gmra.mrb[44].mxu1 %vm792_vm2, %v8359_v53  ;;  %v8875_v52 = vld [vmem:[%s10359_s5] ss:$0 sm:$0xff]  ;;  %v8422_v53 = vld [vmem:[%s8636_s7 + $0x1b8] sm:$0xff]  }
  0x70   : > { %7825 = vmatprep.mubr.msk.bf16.mxu0 %vm792_vm2, %v8360_v54  ;;  %7957 = vmatprep.mubr.msk.bf16.mxu1 %vm792_vm2, %v8361_v55  ;;  %v8423_v55 = vld [vmem:[%s8642_s10 + $0x1b8] sm:$0xff]  }
  0x77   : > { %7826 = vmatmul.mubr.msk.bf16.gmra.mrb[48].mxu0 %vm792_vm2, %v8362_v56  ;;  %7958 = vmatmul.mubr.msk.bf16.gmra.mrb[48].mxu1 %vm792_vm2, %v8363_v57  ;;  %v8424_v56 = vld [vmem:[%s8636_s7 + $0x1c0] sm:$0xff]  }
  0x78   : > { %7829 = vmatprep.mubr.msk.bf16.mxu0 %vm792_vm2, %v8364_v58  ;;  %7961 = vmatprep.mubr.msk.bf16.mxu1 %vm792_vm2, %v8365_v59 }
  0x7f   : > { %7830 = vmatmul.mubr.msk.bf16.gmra.mrb[52].mxu0 %vm792_vm2, %v8366_v60  ;;  %7962 = vmatmul.mubr.msk.bf16.gmra.mrb[52].mxu1 %vm792_vm2, %v8367_v61 }
  0x80   : > { %7833 = vmatprep.mubr.msk.bf16.mxu0 %vm792_vm2, %v8368_v62  ;;  %7965 = vmatprep.mubr.msk.bf16.mxu1 %vm792_vm2, %v8369_v63 }
  0x87   : > { %7834 = vmatmul.mubr.msk.bf16.gmra.mrb[56].mxu0 %vm792_vm2, %v8370_v0  ;;  %7966 = vmatmul.mubr.msk.bf16.gmra.mrb[56].mxu1 %vm792_vm2, %v8371_v1 }
  0x88   : > { %7837 = vmatprep.mubr.msk.bf16.mxu0 %vm792_vm2, %v8372_v2  ;;  %7969 = vmatprep.mubr.msk.bf16.mxu1 %vm792_vm2, %v8373_v3 }
  0x8f   : > { %7838 = vmatmul.mubr.msk.bf16.gmra.mrb[60].mxu0 %vm792_vm2, %v8374_v4  ;;  %7970 = vmatmul.mubr.msk.bf16.gmra.mrb[60].mxu1 %vm792_vm2, %v8375_v5  ;;  %v8425_v5 = vld [vmem:[%s8642_s10 + $0x1c0] sm:$0xff]  }
  0x90   : > { %7841 = vmatprep.mubr.msk.bf16.mxu0 %vm792_vm2, %v8376_v6  ;;  %7973 = vmatprep.mubr.msk.bf16.mxu1 %vm792_vm2, %v8377_v7 }
  0x97   : > { %7842 = vmatmul.mubr.msk.bf16.gmra.mrb[64].mxu0 %vm792_vm2, %v8378_v8  ;;  %7974 = vmatmul.mubr.msk.bf16.gmra.mrb[64].mxu1 %vm792_vm2, %v8379_v9 }
  0x98   : > { %7845 = vmatprep.mubr.msk.bf16.mxu0 %vm792_vm2, %v8380_v10  ;;  %7977 = vmatprep.mubr.msk.bf16.mxu1 %vm792_vm2, %v8381_v11 }
  0x9f   : > { %7846 = vmatmul.mubr.msk.bf16.gmra.mrb[68].mxu0 %vm792_vm2, %v8382_v12  ;;  %7978 = vmatmul.mubr.msk.bf16.gmra.mrb[68].mxu1 %vm792_vm2, %v8383_v13 }
  0xa0   : > { %7849 = vmatprep.mubr.msk.bf16.mxu0 %vm792_vm2, %v8384_v14  ;;  %7981 = vmatprep.mubr.msk.bf16.mxu1 %vm792_vm2, %v8385_v15 }
  0xa7   : > { %7850 = vmatmul.mubr.msk.bf16.gmra.mrb[72].mxu0 %vm792_vm2, %v8386_v16  ;;  %7982 = vmatmul.mubr.msk.bf16.gmra.mrb[72].mxu1 %vm792_vm2, %v8387_v17 }
  0xa8   : > { %7853 = vmatprep.mubr.msk.bf16.mxu0 %vm792_vm2, %v8388_v18  ;;  %7985 = vmatprep.mubr.msk.bf16.mxu1 %vm792_vm2, %v8389_v19  ;;  %v8426_v19 = vld [vmem:[%s8636_s7 + $0x1c8] sm:$0xff]  }
  0xaf   : > { %7854 = vmatmul.mubr.msk.bf16.gmra.mrb[76].mxu0 %vm792_vm2, %v8390_v20  ;;  %7986 = vmatmul.mubr.msk.bf16.gmra.mrb[76].mxu1 %vm792_vm2, %v8391_v21 }
  0xb0   : > { %7857 = vmatprep.mubr.msk.bf16.mxu0 %vm792_vm2, %v8392_v22  ;;  %7989 = vmatprep.mubr.msk.bf16.mxu1 %vm792_vm2, %v8393_v23  ;;  %v8427_v22 = vld [vmem:[%s8642_s10 + $0x1c8] sm:$0xff]   ;;  %v8428_v23 = vld [vmem:[%s8636_s7 + $0x1d0] sm:$0xff]  }
  0xb7   : > { %7858 = vmatmul.mubr.msk.bf16.gmra.mrb[80].mxu0 %vm792_vm2, %v8394_v24  ;;  %7990 = vmatmul.mubr.msk.bf16.gmra.mrb[80].mxu1 %vm792_vm2, %v8395_v25 }
  0xb8   : > { %7861 = vmatprep.mubr.msk.bf16.mxu0 %vm792_vm2, %v8396_v26  ;;  %7993 = vmatprep.mubr.msk.bf16.mxu1 %vm792_vm2, %v8397_v27 }
  0xbf   : > { %7862 = vmatmul.mubr.msk.bf16.gmra.mrb[84].mxu0 %vm792_vm2, %v8398_v28  ;;  %7994 = vmatmul.mubr.msk.bf16.gmra.mrb[84].mxu1 %vm792_vm2, %v8399_v29 }
  0xc0   : > { %7865 = vmatprep.mubr.msk.bf16.mxu0 %vm792_vm2, %v8400_v30  ;;  %7997 = vmatprep.mubr.msk.bf16.mxu1 %vm792_vm2, %v8401_v31 }
  0xc7   : > { %7866 = vmatmul.mubr.msk.bf16.gmra.mrb[88].mxu0 %vm792_vm2, %v8402_v32  ;;  %7998 = vmatmul.mubr.msk.bf16.gmra.mrb[88].mxu1 %vm792_vm2, %v8403_v33 }
  0xc8   : > { %7869 = vmatprep.mubr.msk.bf16.mxu0 %vm792_vm2, %v8404_v34  ;;  %8001 = vmatprep.mubr.msk.bf16.mxu1 %vm792_vm2, %v8405_v35 }
  0xcf   : > { %7870 = vmatmul.mubr.msk.bf16.gmra.mrb[92].mxu0 %vm792_vm2, %v8406_v36  ;;  %8002 = vmatmul.mubr.msk.bf16.gmra.mrb[92].mxu1 %vm792_vm2, %v8407_v37  ;;  %v8429_v37 = vld [vmem:[%s8642_s10 + $0x1d0] sm:$0xff]  }
  0xd0   : > { %7873 = vmatprep.mubr.msk.bf16.mxu0 %vm792_vm2, %v8408_v38  ;;  %8005 = vmatprep.mubr.msk.bf16.mxu1 %vm792_vm2, %v8409_v39 }
  0xd7   : > { %7874 = vmatmul.mubr.msk.bf16.gmra.mrb[96].mxu0 %vm792_vm2, %v8410_v40  ;;  %8006 = vmatmul.mubr.msk.bf16.gmra.mrb[96].mxu1 %vm792_vm2, %v8411_v41 }
  0xd8   : > { %7877 = vmatprep.mubr.msk.bf16.mxu0 %vm792_vm2, %v8412_v42  ;;  %8009 = vmatprep.mubr.msk.bf16.mxu1 %vm792_vm2, %v8413_v43 }
  0xdf   : > { %7878 = vmatmul.mubr.msk.bf16.gmra.mrb[100].mxu0 %vm792_vm2, %v8414_v44  ;;  %8010 = vmatmul.mubr.msk.bf16.gmra.mrb[100].mxu1 %vm792_vm2, %v8415_v45 }
  0xe0   : > { %7881 = vmatprep.mubr.msk.bf16.mxu0 %vm792_vm2, %v8416_v46  ;;  %8013 = vmatprep.mubr.msk.bf16.mxu1 %vm792_vm2, %v8417_v47 }
  0xe7   : > { %7882 = vmatmul.mubr.msk.bf16.gmra.mrb[104].mxu0 %vm792_vm2, %v8418_v48  ;;  %8014 = vmatmul.mubr.msk.bf16.gmra.mrb[104].mxu1 %vm792_vm2, %v8419_v49 }
  0xe8   : > { %7885 = vmatprep.mubr.msk.bf16.mxu0 %vm792_vm2, %v8420_v50  ;;  %8017 = vmatprep.mubr.msk.bf16.mxu1 %vm792_vm2, %v8421_v51  ;;  %v8430_v51 = vld [vmem:[%s8636_s7 + $0x1d8] sm:$0xff]  }
  0xea   : > { %v7779_v54 = vpop.f32.mrb[0].mxu0  ;;  %v7911_v58 = vpop.f32.mrb[0].mxu1 }
  0xeb   : > { %v1035_v57 = vadd.f32 %v7779_v54, %v8875_v52  ;;  %v1026_v59 = vpop.f32.mrb[1].mxu0  ;;  %v2348_v60 = vadd.f32 %v7911_v58, %v8875_v52  ;;  %v2339_v62 = vpop.f32.mrb[1].mxu1 }
  0xec   : > { %v1027_v61 = vadd.f32 %v8875_v52, %v1026_v59  ;;  %v7780_v63 = vpop.f32.mrb[2].mxu0  ;;  %v2340_v1 = vadd.f32 %v8875_v52, %v2339_v62  ;;  %v7912_v3 = vpop.f32.mrb[2].mxu1 }
  0xed   : > { %v1539_v0 = vmax.f32 %v1035_v57, 0.0  ;;  %v1038_v2 = vadd.f32 %v7780_v63, %v8875_v52  ;;  %v1029_v4 = vpop.f32.mrb[3].mxu0  ;;  %v2852_v6 = vmax.f32 %v2348_v60, 0.0  ;;  %v2351_v8 = vadd.f32 %v7912_v3, %v8875_v52  ;;  %v2342_v10 = vpop.f32.mrb[3].mxu1 }
  0xee   : > { %v1537_v7 = vmax.f32 %v1027_v61, 0.0  ;;  %v1030_v9 = vadd.f32 %v8875_v52, %v1029_v4  ;;  %v2850_v11 = vmax.f32 %v2340_v1, 0.0  ;;  %v2343_v13 = vadd.f32 %v8875_v52, %v2342_v10 }
  0xef   : > { %v1540_v12 = vmax.f32 %v1038_v2, 0.0  ;;  %7886 = vmatmul.mubr.msk.bf16.gmra.mrb[108].mxu0 %vm792_vm2, %v8422_v53  ;;  %v8894_v14 = vmax.f32 %v1539_v0, %v2852_v6  ;;  %v2853_v15 = vmax.f32 %v2351_v8, 0.0  ;;  %8018 = vmatmul.mubr.msk.bf16.gmra.mrb[108].mxu1 %vm792_vm2, %v8423_v55  ;;  %v8431_v55 = vld [vmem:[%s8642_s10 + $0x1d8] sm:$0xff]   ;;  %v8433_v6 = vld [vmem:[%s8642_s10 + $0x1e0] sm:$0xff]  }
  0xf0   : > { %v1538_v16 = vmax.f32 %v1030_v9, 0.0  ;;  %7889 = vmatprep.mubr.msk.bf16.mxu0 %vm792_vm2, %v8424_v56  ;;  %v8898_v17 = vmax.f32 %v1537_v7, %v2850_v11  ;;  %v2851_v18 = vmax.f32 %v2343_v13, 0.0  ;;  %8021 = vmatprep.mubr.msk.bf16.mxu1 %vm792_vm2, %v8425_v5  ;;  %v8432_v56 = vld [vmem:[%s8636_s7 + $0x1e0] sm:$0xff]  }
  0xf1   : > { %v8902_v20 = vmax.f32 %v1540_v12, %v2853_v15 }
  0xf2   : > { %v7783_v21 = vpop.f32.mrb[4].mxu0  ;;  %v8906_v24 = vmax.f32 %v1538_v16, %v2851_v18  ;;  %v7915_v26 = vpop.f32.mrb[4].mxu1 }
  0xf3   : > { %v1051_v25 = vadd.f32 %v7783_v21, %v8875_v52  ;;  %v1042_v27 = vpop.f32.mrb[5].mxu0  ;;  %v2364_v28 = vadd.f32 %v7915_v26, %v8875_v52  ;;  %v2355_v30 = vpop.f32.mrb[5].mxu1 }
  0xf4   : > { %v1043_v29 = vadd.f32 %v8875_v52, %v1042_v27  ;;  %v7784_v31 = vpop.f32.mrb[6].mxu0  ;;  %v2356_v33 = vadd.f32 %v8875_v52, %v2355_v30  ;;  %v7916_v35 = vpop.f32.mrb[6].mxu1  ;;  %v8435_v27 = vld [vmem:[%s8642_s10 + $0x1e8] sm:$0xff]  }
  0xf5   : > { %v1543_v32 = vmax.f32 %v1051_v25, 0.0  ;;  %v1054_v34 = vadd.f32 %v7784_v31, %v8875_v52  ;;  %v1045_v36 = vpop.f32.mrb[7].mxu0  ;;  %v2856_v38 = vmax.f32 %v2364_v28, 0.0  ;;  %v2367_v40 = vadd.f32 %v7916_v35, %v8875_v52  ;;  %v2358_v42 = vpop.f32.mrb[7].mxu1  ;;  %v8436_v28 = vld [vmem:[%s8636_s7 + $0x1f0] sm:$0xff]  }
  0xf6   : > { %v1541_v39 = vmax.f32 %v1043_v29, 0.0  ;;  %v1046_v41 = vadd.f32 %v8875_v52, %v1045_v36  ;;  %v2854_v43 = vmax.f32 %v2356_v33, 0.0  ;;  %v2359_v45 = vadd.f32 %v8875_v52, %v2358_v42  ;;  %v8437_v42 = vld [vmem:[%s8642_s10 + $0x1f0] sm:$0xff]  }
  0xf7   : > { %v1544_v44 = vmax.f32 %v1054_v34, 0.0  ;;  %7890 = vmatmul.mubr.msk.bf16.gmra.mrb[112].mxu0 %vm792_vm2, %v8426_v19  ;;  %v8918_v46 = vmax.f32 %v1543_v32, %v2856_v38  ;;  %v2857_v47 = vmax.f32 %v2367_v40, 0.0  ;;  %8022 = vmatmul.mubr.msk.bf16.gmra.mrb[112].mxu1 %vm792_vm2, %v8427_v22 }
  0xf8   : > { %v1542_v48 = vmax.f32 %v1046_v41, 0.0  ;;  %7893 = vmatprep.mubr.msk.bf16.mxu0 %vm792_vm2, %v8428_v23  ;;  %v8922_v49 = vmax.f32 %v1541_v39, %v2854_v43  ;;  %v2855_v50 = vmax.f32 %v2359_v45, 0.0  ;;  %8025 = vmatprep.mubr.msk.bf16.mxu1 %vm792_vm2, %v8429_v37  ;;  %v8434_v23 = vld [vmem:[%s8636_s7 + $0x1e8] sm:$0xff]  }
  0xf9   : > { %v8926_v53 = vmax.f32 %v1544_v44, %v2857_v47 }
  0xfa   : > { %v7787_v54 = vpop.f32.mrb[8].mxu0  ;;  %v8930_v57 = vmax.f32 %v1542_v48, %v2855_v50  ;;  %v7919_v59 = vpop.f32.mrb[8].mxu1 }
  0xfb   : > { %v1067_v58 = vadd.f32 %v7787_v54, %v8875_v52  ;;  %v1058_v60 = vpop.f32.mrb[9].mxu0  ;;  %v2380_v61 = vadd.f32 %v7919_v59, %v8875_v52  ;;  %v2371_v63 = vpop.f32.mrb[9].mxu1 }
  0xfc   : > { %v1059_v62 = vadd.f32 %v8875_v52, %v1058_v60  ;;  %v7788_v0 = vpop.f32.mrb[10].mxu0  ;;  %v2372_v2 = vadd.f32 %v8875_v52, %v2371_v63  ;;  %v7920_v4 = vpop.f32.mrb[10].mxu1 }
  0xfd   : > { %v1547_v1 = vmax.f32 %v1067_v58, 0.0  ;;  %v1070_v3 = vadd.f32 %v7788_v0, %v8875_v52  ;;  %v1061_v5 = vpop.f32.mrb[11].mxu0  ;;  %v2860_v7 = vmax.f32 %v2380_v61, 0.0  ;;  %v2383_v9 = vadd.f32 %v7920_v4, %v8875_v52  ;;  %v2374_v11 = vpop.f32.mrb[11].mxu1 }
  0xfe   : > { %v1545_v8 = vmax.f32 %v1059_v62, 0.0  ;;  %v1062_v10 = vadd.f32 %v8875_v52, %v1061_v5  ;;  %v2858_v12 = vmax.f32 %v2372_v2, 0.0  ;;  %v2375_v15 = vadd.f32 %v8875_v52, %v2374_v11 }
  0xff   : > { %v1548_v13 = vmax.f32 %v1070_v3, 0.0  ;;  %7894 = vmatmul.mubr.msk.bf16.gmra.mrb[116].mxu0 %vm792_vm2, %v8430_v51  ;;  %v8942_v16 = vmax.f32 %v1547_v1, %v2860_v7  ;;  %v2861_v18 = vmax.f32 %v2383_v9, 0.0  ;;  %8026 = vmatmul.mubr.msk.bf16.gmra.mrb[116].mxu1 %vm792_vm2, %v8431_v55  ;;  %v8438_v3 = vld [vmem:[%s8636_s7 + $0x1f8] sm:$0xff]   ;;  %v8440_v9 = vld [vmem:[%s8783_s13] sm:$0xff]  }
 0x100   : > { %v1546_v19 = vmax.f32 %v1062_v10, 0.0  ;;  %7897 = vmatprep.mubr.msk.bf16.mxu0 %vm792_vm2, %v8432_v56  ;;  %v8946_v21 = vmax.f32 %v1545_v8, %v2858_v12  ;;  %v2859_v22 = vmax.f32 %v2375_v15, 0.0  ;;  %8029 = vmatprep.mubr.msk.bf16.mxu1 %vm792_vm2, %v8433_v6  ;;  %v8439_v8 = vld [vmem:[%s8642_s10 + $0x1f8] sm:$0xff]  }
 0x101   : > { %v8950_v25 = vmax.f32 %v1548_v13, %v2861_v18  ;;  %v8441_v18 = vld [vmem:[%s8790_s16] sm:$0xff]  }
 0x102   : > { %v7791_v26 = vpop.f32.mrb[12].mxu0  ;;  %v8954_v29 = vmax.f32 %v1546_v19, %v2859_v22  ;;  %v7923_v31 = vpop.f32.mrb[12].mxu1 }
 0x103   : > { %v1083_v30 = vadd.f32 %v7791_v26, %v8875_v52  ;;  %v1074_v32 = vpop.f32.mrb[13].mxu0  ;;  %v2396_v33 = vadd.f32 %v7923_v31, %v8875_v52  ;;  %v2387_v35 = vpop.f32.mrb[13].mxu1 }
 0x104   : > { %v1075_v34 = vadd.f32 %v8875_v52, %v1074_v32  ;;  %v7792_v36 = vpop.f32.mrb[14].mxu0  ;;  %v2388_v38 = vadd.f32 %v8875_v52, %v2387_v35  ;;  %v7924_v40 = vpop.f32.mrb[14].mxu1 }
 0x105   : > { %v1551_v37 = vmax.f32 %v1083_v30, 0.0  ;;  %v1086_v39 = vadd.f32 %v7792_v36, %v8875_v52  ;;  %v1077_v41 = vpop.f32.mrb[15].mxu0  ;;  %v2864_v43 = vmax.f32 %v2396_v33, 0.0  ;;  %v2399_v45 = vadd.f32 %v7924_v40, %v8875_v52  ;;  %v2390_v48 = vpop.f32.mrb[15].mxu1 }
 0x106   : > { %v1549_v44 = vmax.f32 %v1075_v34, 0.0  ;;  %v1078_v47 = vadd.f32 %v8875_v52, %v1077_v41  ;;  %v2862_v50 = vmax.f32 %v2388_v38, 0.0  ;;  %v2391_v54 = vadd.f32 %v8875_v52, %v2390_v48 }
 0x107   : > { %v1552_v51 = vmax.f32 %v1086_v39, 0.0  ;;  %7898 = vmatmul.mubr.msk.bf16.gmra.mrb[120].mxu0 %vm792_vm2, %v8434_v23  ;;  %v8966_v55 = vmax.f32 %v1551_v37, %v2864_v43  ;;  %v2865_v56 = vmax.f32 %v2399_v45, 0.0  ;;  %8030 = vmatmul.mubr.msk.bf16.gmra.mrb[120].mxu1 %vm792_vm2, %v8435_v27  ;;  %v8442_v43 = vld [vmem:[%s8783_s13 + $0x8] sm:$0xff]  }
 0x108   : > { %v1550_v58 = vmax.f32 %v1078_v47, 0.0  ;;  %7901 = vmatprep.mubr.msk.bf16.mxu0 %vm792_vm2, %v8436_v28  ;;  %v8970_v59 = vmax.f32 %v1549_v44, %v2862_v50  ;;  %v2863_v60 = vmax.f32 %v2391_v54, 0.0  ;;  %8033 = vmatprep.mubr.msk.bf16.mxu1 %vm792_vm2, %v8437_v42  ;;  %v8443_v50 = vld [vmem:[%s8790_s16 + $0x8] sm:$0xff]  }
 0x109   : > { %v8973_v61 = vmax.f32 %v1552_v51, %v2865_v56  ;;  %v8444_v51 = vld [vmem:[%s8783_s13 + $0x10] sm:$0xff]  }
 0x10a   : > { %v7795_v62 = vpop.f32.mrb[16].mxu0  ;;  %v8975_v63 = vmax.f32 %v1550_v58, %v2863_v60  ;;  %v7927_v1 = vpop.f32.mrb[16].mxu1 }
 0x10b   : > { %v1099_v0 = vadd.f32 %v7795_v62, %v8875_v52  ;;  %v1090_v2 = vpop.f32.mrb[17].mxu0  ;;  %v2412_v4 = vadd.f32 %v7927_v1, %v8875_v52  ;;  %v2403_v6 = vpop.f32.mrb[17].mxu1 }
 0x10c   : > { %v1091_v5 = vadd.f32 %v8875_v52, %v1090_v2  ;;  %v7796_v7 = vpop.f32.mrb[18].mxu0  ;;  %v2404_v11 = vadd.f32 %v8875_v52, %v2403_v6  ;;  %v7928_v13 = vpop.f32.mrb[18].mxu1 }
 0x10d   : > { %v1555_v10 = vmax.f32 %v1099_v0, 0.0  ;;  %v1102_v12 = vadd.f32 %v7796_v7, %v8875_v52  ;;  %v1093_v15 = vpop.f32.mrb[19].mxu0  ;;  %v2868_v19 = vmax.f32 %v2412_v4, 0.0  ;;  %v2415_v23 = vadd.f32 %v7928_v13, %v8875_v52  ;;  %v2406_v27 = vpop.f32.mrb[19].mxu1  ;;  %v8445_v0 = vld [vmem:[%s8790_s16 + $0x10] sm:$0xff]  }
 0x10e   : > { %v1553_v22 = vmax.f32 %v1091_v5, 0.0  ;;  %v1094_v26 = vadd.f32 %v8875_v52, %v1093_v15  ;;  %v2866_v28 = vmax.f32 %v2404_v11, 0.0  ;;  %v2407_v31 = vadd.f32 %v8875_v52, %v2406_v27  ;;  %v8446_v27 = vld [vmem:[%s8783_s13 + $0x18] sm:$0xff]  }
 0x10f   : > { %v1556_v30 = vmax.f32 %v1102_v12, 0.0  ;;  %7902 = vmatmul.mubr.msk.bf16.gmra.mrb[124].mxu0 %vm792_vm2, %v8438_v3  ;;  %v8990_v32 = vmax.f32 %v1555_v10, %v2868_v19  ;;  %v2869_v33 = vmax.f32 %v2415_v23, 0.0  ;;  %8034 = vmatmul.mubr.msk.bf16.gmra.mrb[124].mxu1 %vm792_vm2, %v8439_v8 }
 0x110   : > { %v1554_v34 = vmax.f32 %v1094_v26, 0.0  ;;  %8041 = vmatprep.mubr.msk.bf16.mxu0 %vm792_vm2, %v8440_v9  ;;  %v8994_v35 = vmax.f32 %v1553_v22, %v2866_v28  ;;  %v2867_v36 = vmax.f32 %v2407_v31, 0.0  ;;  %8173 = vmatprep.mubr.msk.bf16.mxu1 %vm792_vm2, %v8441_v18 }
 0x111   : > { %v8997_v37 = vmax.f32 %v1556_v30, %v2869_v33 }
 0x112   : > { %v7799_v38 = vpop.f32.mrb[20].mxu0  ;;  %v8999_v39 = vmax.f32 %v1554_v34, %v2867_v36  ;;  %v7931_v41 = vpop.f32.mrb[20].mxu1  ;;  %v8447_v34 = vld [vmem:[%s8790_s16 + $0x18] sm:$0xff]   ;;  %v8448_v36 = vld [vmem:[%s8783_s13 + $0x20] sm:$0xff]  }
 0x113   : > { %v1115_v40 = vadd.f32 %v7799_v38, %v8875_v52  ;;  %v1106_v42 = vpop.f32.mrb[21].mxu0  ;;  %v2428_v44 = vadd.f32 %v7931_v41, %v8875_v52  ;;  %v2419_v47 = vpop.f32.mrb[21].mxu1 }
 0x114   : > { %v1107_v45 = vadd.f32 %v8875_v52, %v1106_v42  ;;  %v7800_v48 = vpop.f32.mrb[22].mxu0  ;;  %v2420_v56 = vadd.f32 %v8875_v52, %v2419_v47  ;;  %v7932_v60 = vpop.f32.mrb[22].mxu1 }
 0x115   : > { %v1559_v54 = vmax.f32 %v1115_v40, 0.0  ;;  %v1118_v58 = vadd.f32 %v7800_v48, %v8875_v52  ;;  %v1109_v62 = vpop.f32.mrb[23].mxu0  ;;  %v2872_v1 = vmax.f32 %v2428_v44, 0.0  ;;  %v2431_v3 = vadd.f32 %v7932_v60, %v8875_v52  ;;  %v2422_v5 = vpop.f32.mrb[23].mxu1  ;;  %v8449_v44 = vld [vmem:[%s8790_s16 + $0x20] sm:$0xff]  }
 0x116   : > { %v1557_v2 = vmax.f32 %v1107_v45, 0.0  ;;  %v1110_v4 = vadd.f32 %v8875_v52, %v1109_v62  ;;  %v2870_v6 = vmax.f32 %v2420_v56, 0.0  ;;  %v2423_v8 = vadd.f32 %v8875_v52, %v2422_v5 }
 0x117   : > { %v1560_v7 = vmax.f32 %v1118_v58, 0.0  ;;  %8042 = vmatmul.mubr.msk.bf16.vlgmr.msra.gmra.mrb[128].mxu0 %vm792_vm2, %v8442_v43  ;;  %v9014_v9 = vmax.f32 %v1559_v54, %v2872_v1  ;;  %v2873_v10 = vmax.f32 %v2431_v3, 0.0  ;;  %8174 = vmatmul.mubr.msk.bf16.vlgmr.msra.gmra.mrb[128].mxu1 %vm792_vm2, %v8443_v50 }
 0x118   : > { %v1558_v11 = vmax.f32 %v1110_v4, 0.0  ;;  %8045 = vmatprep.mubr.msk.bf16.mxu0 %vm792_vm2, %v8444_v51  ;;  %v9018_v12 = vmax.f32 %v1557_v2, %v2870_v6  ;;  %v2871_v13 = vmax.f32 %v2423_v8, 0.0  ;;  %8177 = vmatprep.mubr.msk.bf16.mxu1 %vm792_vm2, %v8445_v0 }
 0x119   : > { %v9021_v15 = vmax.f32 %v1560_v7, %v2873_v10  ;;  %v8450_v10 = vld [vmem:[%s8783_s13 + $0x28] sm:$0xff]  }
 0x11a   : > { %v7803_v18 = vpop.f32.mrb[24].mxu0  ;;  %v9023_v19 = vmax.f32 %v1558_v11, %v2871_v13  ;;  %v7935_v23 = vpop.f32.mrb[24].mxu1 }
 0x11b   : > { %v1131_v22 = vadd.f32 %v7803_v18, %v8875_v52  ;;  %v1122_v26 = vpop.f32.mrb[25].mxu0  ;;  %v2444_v28 = vadd.f32 %v7935_v23, %v8875_v52  ;;  %v2435_v31 = vpop.f32.mrb[25].mxu1  ;;  %v8451_v23 = vld [vmem:[%s8790_s16 + $0x28] sm:$0xff]  }
 0x11c   : > { %v1123_v30 = vadd.f32 %v8875_v52, %v1122_v26  ;;  %v7804_v33 = vpop.f32.mrb[26].mxu0  ;;  %v2436_v40 = vadd.f32 %v8875_v52, %v2435_v31  ;;  %v7936_v42 = vpop.f32.mrb[26].mxu1  ;;  %v8452_v26 = vld [vmem:[%s8783_s13 + $0x30] sm:$0xff]  }
 0x11d   : > { %v1563_v38 = vmax.f32 %v1131_v22, 0.0  ;;  %v1134_v41 = vadd.f32 %v7804_v33, %v8875_v52  ;;  %v1125_v43 = vpop.f32.mrb[27].mxu0  ;;  %v2876_v45 = vmax.f32 %v2444_v28, 0.0  ;;  %v2447_v48 = vadd.f32 %v7936_v42, %v8875_v52  ;;  %v2438_v51 = vpop.f32.mrb[27].mxu1 }
 0x11e   : > { %v1561_v47 = vmax.f32 %v1123_v30, 0.0  ;;  %v1126_v50 = vadd.f32 %v8875_v52, %v1125_v43  ;;  %v2874_v54 = vmax.f32 %v2436_v40, 0.0  ;;  %v2439_v58 = vadd.f32 %v8875_v52, %v2438_v51 }
 0x11f   : > { %v1564_v56 = vmax.f32 %v1134_v41, 0.0  ;;  %8046 = vmatmul.mubr.msk.bf16.gmra.mrb[132].mxu0 %vm792_vm2, %v8446_v27  ;;  %v9038_v60 = vmax.f32 %v1563_v38, %v2876_v45  ;;  %v2877_v62 = vmax.f32 %v2447_v48, 0.0  ;;  %8178 = vmatmul.mubr.msk.bf16.gmra.mrb[132].mxu1 %vm792_vm2, %v8447_v34  ;;  %v8453_v34 = vld [vmem:[%s8790_s16 + $0x30] sm:$0xff]  }
 0x120   : > { %v1562_v0 = vmax.f32 %v1126_v50, 0.0  ;;  %8049 = vmatprep.mubr.msk.bf16.mxu0 %vm792_vm2, %v8448_v36  ;;  %v9042_v1 = vmax.f32 %v1561_v47, %v2874_v54  ;;  %v2875_v2 = vmax.f32 %v2439_v58, 0.0  ;;  %8181 = vmatprep.mubr.msk.bf16.mxu1 %vm792_vm2, %v8449_v44 }
 0x121   : > { %v9045_v3 = vmax.f32 %v1564_v56, %v2877_v62 }
 0x122   : > { %v7807_v4 = vpop.f32.mrb[28].mxu0  ;;  %v9047_v5 = vmax.f32 %v1562_v0, %v2875_v2  ;;  %v7939_v7 = vpop.f32.mrb[28].mxu1 }
 0x123   : > { %v1147_v6 = vadd.f32 %v7807_v4, %v8875_v52  ;;  %v1138_v8 = vpop.f32.mrb[29].mxu0  ;;  %v2460_v11 = vadd.f32 %v7939_v7, %v8875_v52  ;;  %v2451_v18 = vpop.f32.mrb[29].mxu1 }
 0x124   : > { %v1139_v13 = vadd.f32 %v8875_v52, %v1138_v8  ;;  %v7808_v22 = vpop.f32.mrb[30].mxu0  ;;  %v2452_v28 = vadd.f32 %v8875_v52, %v2451_v18  ;;  %v7940_v31 = vpop.f32.mrb[30].mxu1  ;;  %v8456_v18 = vld [vmem:[%s8783_s13 + $0x40] sm:$0xff]  }
 0x125   : > { %v1567_v27 = vmax.f32 %v1147_v6, 0.0  ;;  %v1150_v30 = vadd.f32 %v7808_v22, %v8875_v52  ;;  %v1141_v33 = vpop.f32.mrb[31].mxu0  ;;  %v2880_v36 = vmax.f32 %v2460_v11, 0.0  ;;  %v2463_v40 = vadd.f32 %v7940_v31, %v8875_v52  ;;  %v2454_v42 = vpop.f32.mrb[31].mxu1  ;;  %v8454_v6 = vld [vmem:[%s8783_s13 + $0x38] sm:$0xff]  }
 0x126   : > { %v1565_v38 = vmax.f32 %v1139_v13, 0.0  ;;  %v1142_v41 = vadd.f32 %v8875_v52, %v1141_v33  ;;  %v2878_v43 = vmax.f32 %v2452_v28, 0.0  ;;  %v2455_v45 = vadd.f32 %v8875_v52, %v2454_v42  ;;  %v8455_v13 = vld [vmem:[%s8790_s16 + $0x38] sm:$0xff]  }
 0x127   : > { %v1568_v44 = vmax.f32 %v1150_v30, 0.0  ;;  %8050 = vmatmul.mubr.msk.bf16.gmra.mrb[136].mxu0 %vm792_vm2, %v8450_v10  ;;  %v9062_v47 = vmax.f32 %v1567_v27, %v2880_v36  ;;  %v2881_v48 = vmax.f32 %v2463_v40, 0.0  ;;  %8182 = vmatmul.mubr.msk.bf16.gmra.mrb[136].mxu1 %vm792_vm2, %v8451_v23  ;;  %v8457_v30 = vld [vmem:[%s8790_s16 + $0x40] sm:$0xff]  }
 0x128   : > { %v1566_v50 = vmax.f32 %v1142_v41, 0.0  ;;  %8053 = vmatprep.mubr.msk.bf16.mxu0 %vm792_vm2, %v8452_v26  ;;  %v9066_v51 = vmax.f32 %v1565_v38, %v2878_v43  ;;  %v2879_v54 = vmax.f32 %v2455_v45, 0.0  ;;  %8185 = vmatprep.mubr.msk.bf16.mxu1 %vm792_vm2, %v8453_v34 }
 0x129   : > { %v9069_v56 = vmax.f32 %v1568_v44, %v2881_v48 }
 0x12a   : > { %v7811_v58 = vpop.f32.mrb[32].mxu0  ;;  %v9071_v62 = vmax.f32 %v1566_v50, %v2879_v54  ;;  %v7943_v2 = vpop.f32.mrb[32].mxu1 }
 0x12b   : > { %v1163_v0 = vadd.f32 %v7811_v58, %v8875_v52  ;;  %v1154_v4 = vpop.f32.mrb[33].mxu0  ;;  %v2476_v7 = vadd.f32 %v7943_v2, %v8875_v52  ;;  %v2467_v10 = vpop.f32.mrb[33].mxu1 }
 0x12c   : > { %v1155_v8 = vadd.f32 %v8875_v52, %v1154_v4  ;;  %v7812_v11 = vpop.f32.mrb[34].mxu0  ;;  %v2468_v23 = vadd.f32 %v8875_v52, %v2467_v10  ;;  %v7944_v27 = vpop.f32.mrb[34].mxu1 }
 0x12d   : > { %v1571_v22 = vmax.f32 %v1163_v0, 0.0  ;;  %v1166_v26 = vadd.f32 %v7812_v11, %v8875_v52  ;;  %v1157_v28 = vpop.f32.mrb[35].mxu0  ;;  %v2884_v31 = vmax.f32 %v2476_v7, 0.0  ;;  %v2479_v34 = vadd.f32 %v7944_v27, %v8875_v52  ;;  %v2470_v38 = vpop.f32.mrb[35].mxu1  ;;  %v8458_v7 = vld [vmem:[%s8783_s13 + $0x48] sm:$0xff]  }
 0x12e   : > { %v1569_v33 = vmax.f32 %v1155_v8, 0.0  ;;  %v1158_v36 = vadd.f32 %v8875_v52, %v1157_v28  ;;  %v2882_v40 = vmax.f32 %v2468_v23, 0.0  ;;  %v2471_v42 = vadd.f32 %v8875_v52, %v2470_v38 }
 0x12f   : > { %v1572_v41 = vmax.f32 %v1166_v26, 0.0  ;;  %8054 = vmatmul.mubr.msk.bf16.gmra.mrb[140].mxu0 %vm792_vm2, %v8454_v6  ;;  %v9086_v43 = vmax.f32 %v1571_v22, %v2884_v31  ;;  %v2885_v44 = vmax.f32 %v2479_v34, 0.0  ;;  %8186 = vmatmul.mubr.msk.bf16.gmra.mrb[140].mxu1 %vm792_vm2, %v8455_v13  ;;  %v8460_v22 = vld [vmem:[%s8783_s13 + $0x50] sm:$0xff]  }
 0x130   : > { %v1570_v45 = vmax.f32 %v1158_v36, 0.0  ;;  %8057 = vmatprep.mubr.msk.bf16.mxu0 %vm792_vm2, %v8456_v18  ;;  %v9090_v48 = vmax.f32 %v1569_v33, %v2882_v40  ;;  %v2883_v50 = vmax.f32 %v2471_v42, 0.0  ;;  %8189 = vmatprep.mubr.msk.bf16.mxu1 %vm792_vm2, %v8457_v30  ;;  %v8459_v18 = vld [vmem:[%s8790_s16 + $0x48] sm:$0xff]   ;;  %v8461_v31 = vld [vmem:[%s8790_s16 + $0x50] sm:$0xff]  }
 0x131   : > { %v9093_v54 = vmax.f32 %v1572_v41, %v2885_v44 }
 0x132   : > { %v7815_v58 = vpop.f32.mrb[36].mxu0  ;;  %v9095_v0 = vmax.f32 %v1570_v45, %v2883_v50  ;;  %v7947_v4 = vpop.f32.mrb[36].mxu1 }
 0x133   : > { %v1179_v2 = vadd.f32 %v7815_v58, %v8875_v52  ;;  %v1170_v6 = vpop.f32.mrb[37].mxu0  ;;  %v2492_v8 = vadd.f32 %v7947_v4, %v8875_v52  ;;  %v2483_v11 = vpop.f32.mrb[37].mxu1 }
 0x134   : > { %v1171_v10 = vadd.f32 %v8875_v52, %v1170_v6  ;;  %v7816_v13 = vpop.f32.mrb[38].mxu0  ;;  %v2484_v26 = vadd.f32 %v8875_v52, %v2483_v11  ;;  %v7948_v28 = vpop.f32.mrb[38].mxu1 }
 0x135   : > { %v1575_v23 = vmax.f32 %v1179_v2, 0.0  ;;  %v1182_v27 = vadd.f32 %v7816_v13, %v8875_v52  ;;  %v1173_v30 = vpop.f32.mrb[39].mxu0  ;;  %v2888_v33 = vmax.f32 %v2492_v8, 0.0  ;;  %v2495_v36 = vadd.f32 %v7948_v28, %v8875_v52  ;;  %v2486_v40 = vpop.f32.mrb[39].mxu1  ;;  %v8463_v28 = vld [vmem:[%s8790_s16 + $0x58] sm:$0xff]  }
 0x136   : > { %v1573_v34 = vmax.f32 %v1171_v10, 0.0  ;;  %v1174_v38 = vadd.f32 %v8875_v52, %v1173_v30  ;;  %v2886_v41 = vmax.f32 %v2484_v26, 0.0  ;;  %v2487_v44 = vadd.f32 %v8875_v52, %v2486_v40  ;;  %v8464_v30 = vld [vmem:[%s8783_s13 + $0x60] sm:$0xff]  }
 0x137   : > { %v1576_v42 = vmax.f32 %v1182_v27, 0.0  ;;  %8058 = vmatmul.mubr.msk.bf16.gmra.mrb[144].mxu0 %vm792_vm2, %v8458_v7  ;;  %v9110_v45 = vmax.f32 %v1575_v23, %v2888_v33  ;;  %v2889_v50 = vmax.f32 %v2495_v36, 0.0  ;;  %8190 = vmatmul.mubr.msk.bf16.gmra.mrb[144].mxu1 %vm792_vm2, %v8459_v18  ;;  %v8462_v18 = vld [vmem:[%s8783_s13 + $0x58] sm:$0xff]   ;;  %v8465_v40 = vld [vmem:[%s8790_s16 + $0x60] sm:$0xff]  }
 0x138   : > { %v1574_v58 = vmax.f32 %v1174_v38, 0.0  ;;  %8061 = vmatprep.mubr.msk.bf16.mxu0 %vm792_vm2, %v8460_v22  ;;  %v9114_v2 = vmax.f32 %v1573_v34, %v2886_v41  ;;  %v2887_v4 = vmax.f32 %v2487_v44, 0.0  ;;  %8193 = vmatprep.mubr.msk.bf16.mxu1 %vm792_vm2, %v8461_v31 }
 0x139   : > { %v9117_v6 = vmax.f32 %v1576_v42, %v2889_v50 }
 0x13a   : > { %v7819_v8 = vpop.f32.mrb[40].mxu0  ;;  %v9119_v10 = vmax.f32 %v1574_v58, %v2887_v4  ;;  %v7951_v11 = vpop.f32.mrb[40].mxu1 }
 0x13b   : > { %v1195_v7 = vadd.f32 %v7819_v8, %v8875_v52  ;;  %v1186_v13 = vpop.f32.mrb[41].mxu0  ;;  %v2508_v23 = vadd.f32 %v7951_v11, %v8875_v52  ;;  %v2499_v26 = vpop.f32.mrb[41].mxu1 }
 0x13c   : > { %v1187_v22 = vadd.f32 %v8875_v52, %v1186_v13  ;;  %v7820_v27 = vpop.f32.mrb[42].mxu0  ;;  %v2500_v33 = vadd.f32 %v8875_v52, %v2499_v26  ;;  %v7952_v36 = vpop.f32.mrb[42].mxu1 }
 0x13d   : > { %v1579_v31 = vmax.f32 %v1195_v7, 0.0  ;;  %v1198_v34 = vadd.f32 %v7820_v27, %v8875_v52  ;;  %v1189_v38 = vpop.f32.mrb[43].mxu0  ;;  %v2892_v41 = vmax.f32 %v2508_v23, 0.0  ;;  %v2511_v44 = vadd.f32 %v7952_v36, %v8875_v52  ;;  %v2502_v58 = vpop.f32.mrb[43].mxu1 }
 0x13e   : > { %v1577_v42 = vmax.f32 %v1187_v22, 0.0  ;;  %v1190_v50 = vadd.f32 %v8875_v52, %v1189_v38  ;;  %v2890_v4 = vmax.f32 %v2500_v33, 0.0  ;;  %v2503_v11 = vadd.f32 %v8875_v52, %v2502_v58 }
 0x13f   : > { %v1580_v8 = vmax.f32 %v1198_v34, 0.0  ;;  %8062 = vmatmul.mubr.msk.bf16.gmra.mrb[148].mxu0 %vm792_vm2, %v8462_v18  ;;  %v9134_v7 = vmax.f32 %v1579_v31, %v2892_v41  ;;  %v2893_v13 = vmax.f32 %v2511_v44, 0.0  ;;  %8194 = vmatmul.mubr.msk.bf16.gmra.mrb[148].mxu1 %vm792_vm2, %v8463_v28  ;;  %v8466_v28 = vld [vmem:[%s8783_s13 + $0x68] sm:$0xff]  }
 0x140   : > { %v1578_v26 = vmax.f32 %v1190_v50, 0.0  ;;  %8065 = vmatprep.mubr.msk.bf16.mxu0 %vm792_vm2, %v8464_v30  ;;  %v9138_v23 = vmax.f32 %v1577_v42, %v2890_v4  ;;  %v2891_v22 = vmax.f32 %v2503_v11, 0.0  ;;  %8197 = vmatprep.mubr.msk.bf16.mxu1 %vm792_vm2, %v8465_v40  ;;  %v8467_v44 = vld [vmem:[%s8790_s16 + $0x68] sm:$0xff]   ;;  %v8468_v50 = vld [vmem:[%s8783_s13 + $0x70] sm:$0xff]  }
 0x141   : > { %v9141_v27 = vmax.f32 %v1580_v8, %v2893_v13  ;;  %v8469_v13 = vld [vmem:[%s8790_s16 + $0x70] sm:$0xff]  }
 0x142   : > { %10361 = vst [vmem:[#allocation2_spill] sm:$0xff] %v9138_v23  ;;  %v7823_v33 = vpop.f32.mrb[44].mxu0  ;;  %v9143_v34 = vmax.f32 %v1578_v26, %v2891_v22  ;;  %v7955_v31 = vpop.f32.mrb[44].mxu1 }
 0x143   : > { %10362 = vst [vmem:[#allocation3_spill] sm:$0xff] %v9141_v27  ;;  %v1211_v18 = vadd.f32 %v7823_v33, %v8875_v52  ;;  %v1202_v36 = vpop.f32.mrb[45].mxu0  ;;  %v2524_v38 = vadd.f32 %v7955_v31, %v8875_v52  ;;  %v2515_v41 = vpop.f32.mrb[45].mxu1 }
 0x144   : > { %10363 = vst [vmem:[#allocation4_spill] sm:$0xff] %v9143_v34  ;;  %v1203_v30 = vadd.f32 %v8875_v52, %v1202_v36  ;;  %v7824_v42 = vpop.f32.mrb[46].mxu0  ;;  %v2516_v58 = vadd.f32 %v8875_v52, %v2515_v41  ;;  %v7956_v8 = vpop.f32.mrb[46].mxu1 }
 0x145   : > { %v1583_v40 = vmax.f32 %v1211_v18, 0.0  ;;  %v1214_v4 = vadd.f32 %v7824_v42, %v8875_v52  ;;  %v1205_v11 = vpop.f32.mrb[47].mxu0  ;;  %v2896_v26 = vmax.f32 %v2524_v38, 0.0  ;;  %v2527_v33 = vadd.f32 %v7956_v8, %v8875_v52  ;;  %v2518_v34 = vpop.f32.mrb[47].mxu1 }
 0x146   : > { %v1581_v22 = vmax.f32 %v1203_v30, 0.0  ;;  %v1206_v31 = vadd.f32 %v8875_v52, %v1205_v11  ;;  %v2894_v36 = vmax.f32 %v2516_v58, 0.0  ;;  %v2519_v23 = vadd.f32 %v8875_v52, %v2518_v34 }
 0x147   : > { %v1584_v27 = vmax.f32 %v1214_v4, 0.0  ;;  %8066 = vmatmul.mubr.msk.bf16.gmra.mrb[152].mxu0 %vm792_vm2, %v8466_v28  ;;  %v9158_v18 = vmax.f32 %v1583_v40, %v2896_v26  ;;  %v2897_v41 = vmax.f32 %v2527_v33, 0.0  ;;  %8198 = vmatmul.mubr.msk.bf16.gmra.mrb[152].mxu1 %vm792_vm2, %v8467_v44  ;;  %v8470_v44 = vld [vmem:[%s8783_s13 + $0x78] sm:$0xff]   ;;  %v8472_v33 = vld [vmem:[%s8783_s13 + $0x80] sm:$0xff]  }
 0x148   : > { %v1582_v42 = vmax.f32 %v1206_v31, 0.0  ;;  %8069 = vmatprep.mubr.msk.bf16.mxu0 %vm792_vm2, %v8468_v50  ;;  %v9162_v38 = vmax.f32 %v1581_v22, %v2894_v36  ;;  %v2895_v30 = vmax.f32 %v2519_v23, 0.0  ;;  %8201 = vmatprep.mubr.msk.bf16.mxu1 %vm792_vm2, %v8469_v13  ;;  %v8471_v23 = vld [vmem:[%s8790_s16 + $0x78] sm:$0xff]  }
 0x149   : > { %10364 = vst [vmem:[#allocation5_spill] sm:$0xff] %v9158_v18  ;;  %v9165_v58 = vmax.f32 %v1584_v27, %v2897_v41 }
 0x14a   : > { %10365 = vst [vmem:[#allocation6_spill] sm:$0xff] %v9162_v38  ;;  %v7827_v34 = vpop.f32.mrb[48].mxu0  ;;  %v9167_v4 = vmax.f32 %v1582_v42, %v2895_v30  ;;  %v7959_v40 = vpop.f32.mrb[48].mxu1  ;;  %v8473_v42 = vld [vmem:[%s8790_s16 + $0x80] sm:$0xff]  }
 0x14b   : > { %10366 = vst [vmem:[#allocation7_spill] sm:$0xff] %v9165_v58  ;;  %v1227_v28 = vadd.f32 %v7827_v34, %v8875_v52  ;;  %v1218_v8 = vpop.f32.mrb[49].mxu0  ;;  %v2540_v11 = vadd.f32 %v7959_v40, %v8875_v52  ;;  %v2531_v26 = vpop.f32.mrb[49].mxu1  ;;  %v9182_v40 = vld [vmem:[%s10359_s5] ss:$0 sm:$0xff] }
 0x14c   : > { %10367 = vst [vmem:[#allocation8_spill] sm:$0xff] %v9167_v4  ;;  %v1219_v50 = vadd.f32 %v8875_v52, %v1218_v8  ;;  %v7828_v22 = vpop.f32.mrb[50].mxu0  ;;  %v2532_v27 = vadd.f32 %v8875_v52, %v2531_v26  ;;  %v7960_v36 = vpop.f32.mrb[50].mxu1 }
 0x14d   : > { %v1587_v13 = vmax.f32 %v1227_v28, 0.0  ;;  %v1230_v31 = vadd.f32 %v7828_v22, %v8875_v52  ;;  %v1221_v41 = vpop.f32.mrb[51].mxu0  ;;  %v2900_v30 = vmax.f32 %v2540_v11, 0.0  ;;  %v2543_v4 = vadd.f32 %v7960_v36, %v8875_v52  ;;  %v2534_v58 = vpop.f32.mrb[51].mxu1 }
 0x14e   : > { %v1585_v34 = vmax.f32 %v1219_v50, 0.0  ;;  %v1222_v8 = vadd.f32 %v9182_v40, %v1221_v41  ;;  %v2898_v28 = vmax.f32 %v2532_v27, 0.0  ;;  %v2535_v26 = vadd.f32 %v9182_v40, %v2534_v58 }
 0x14f   : > { %v1588_v38 = vmax.f32 %v1230_v31, 0.0  ;;  %8070 = vmatmul.mubr.msk.bf16.gmra.mrb[156].mxu0 %vm792_vm2, %v8470_v44  ;;  %v9187_v22 = vmax.f32 %v1587_v13, %v2900_v30  ;;  %v2901_v11 = vmax.f32 %v2543_v4, 0.0  ;;  %8202 = vmatmul.mubr.msk.bf16.gmra.mrb[156].mxu1 %vm792_vm2, %v8471_v23  ;;  %v8474_v23 = vld [vmem:[%s8783_s13 + $0x88] sm:$0xff]  }
 0x150   : > { %v1586_v50 = vmax.f32 %v1222_v8, 0.0  ;;  %8073 = vmatprep.mubr.msk.bf16.mxu0 %vm792_vm2, %v8472_v33  ;;  %v9191_v52 = vmax.f32 %v1585_v34, %v2898_v28  ;;  %v2899_v36 = vmax.f32 %v2535_v26, 0.0  ;;  %8205 = vmatprep.mubr.msk.bf16.mxu1 %vm792_vm2, %v8473_v42  ;;  %v8475_v8 = vld [vmem:[%s8790_s16 + $0x88] sm:$0xff]   ;;  %v8476_v28 = vld [vmem:[%s8783_s13 + $0x90] sm:$0xff]  }
 0x151   : > { %10368 = vst [vmem:[#allocation9_spill] sm:$0xff] %v9187_v22  ;;  %v9194_v27 = vmax.f32 %v1588_v38, %v2901_v11 }
 0x152   : > { %10369 = vst [vmem:[#allocation10_spill] sm:$0xff] %v9191_v52  ;;  %v7831_v58 = vpop.f32.mrb[52].mxu0  ;;  %v9196_v31 = vmax.f32 %v1586_v50, %v2899_v36  ;;  %v7963_v44 = vpop.f32.mrb[52].mxu1  ;;  %v8477_v36 = vld [vmem:[%s8790_s16 + $0x90] sm:$0xff]  }
 0x153   : > { %10370 = vst [vmem:[#allocation11_spill] sm:$0xff] %v9194_v27  ;;  %v1243_v4 = vadd.f32 %v9182_v40, %v7831_v58  ;;  %v1234_v13 = vpop.f32.mrb[53].mxu0  ;;  %v2556_v41 = vadd.f32 %v9182_v40, %v7963_v44  ;;  %v2547_v30 = vpop.f32.mrb[53].mxu1 }
 0x154   : > { %10371 = vst [vmem:[#allocation12_spill] sm:$0xff] %v9196_v31  ;;  %v1235_v33 = vadd.f32 %v9182_v40, %v1234_v13  ;;  %v7832_v34 = vpop.f32.mrb[54].mxu0  ;;  %v2548_v38 = vadd.f32 %v9182_v40, %v2547_v30  ;;  %v7964_v11 = vpop.f32.mrb[54].mxu1 }
 0x155   : > { %v1591_v42 = vmax.f32 %v1243_v4, 0.0  ;;  %v1246_v26 = vadd.f32 %v9182_v40, %v7832_v34  ;;  %v1237_v50 = vpop.f32.mrb[55].mxu0  ;;  %v2904_v58 = vmax.f32 %v2556_v41, 0.0  ;;  %v2559_v27 = vadd.f32 %v9182_v40, %v7964_v11  ;;  %v2550_v52 = vpop.f32.mrb[55].mxu1 }
 0x156   : > { %v1589_v31 = vmax.f32 %v1235_v33, 0.0  ;;  %v1238_v44 = vadd.f32 %v9182_v40, %v1237_v50  ;;  %v2902_v13 = vmax.f32 %v2548_v38, 0.0  ;;  %v2551_v18 = vadd.f32 %v9182_v40, %v2550_v52 }
 0x157   : > { %v1592_v22 = vmax.f32 %v1246_v26, 0.0  ;;  %8074 = vmatmul.mubr.msk.bf16.gmra.mrb[160].mxu0 %vm792_vm2, %v8474_v23  ;;  %v9211_v4 = vmax.f32 %v1591_v42, %v2904_v58  ;;  %v2905_v30 = vmax.f32 %v2559_v27, 0.0  ;;  %8206 = vmatmul.mubr.msk.bf16.gmra.mrb[160].mxu1 %vm792_vm2, %v8475_v8  ;;  %v8478_v8 = vld [vmem:[%s8783_s13 + $0x98] sm:$0xff]   ;;  %v8480_v58 = vld [vmem:[%s8783_s13 + $0xa0] sm:$0xff]  }
 0x158   : > { %v1590_v34 = vmax.f32 %v1238_v44, 0.0  ;;  %8077 = vmatprep.mubr.msk.bf16.mxu0 %vm792_vm2, %v8476_v28  ;;  %v9215_v41 = vmax.f32 %v1589_v31, %v2902_v13  ;;  %v2903_v33 = vmax.f32 %v2551_v18, 0.0  ;;  %8209 = vmatprep.mubr.msk.bf16.mxu1 %vm792_vm2, %v8477_v36  ;;  %v8479_v18 = vld [vmem:[%s8790_s16 + $0x98] sm:$0xff]  }
 0x159   : > { %10372 = vst [vmem:[#allocation13_spill] sm:$0xff] %v9211_v4  ;;  %v9218_v38 = vmax.f32 %v1592_v22, %v2905_v30 }
 0x15a   : > { %10373 = vst [vmem:[#allocation14_spill] sm:$0xff] %v9215_v41  ;;  %v7835_v52 = vpop.f32.mrb[56].mxu0  ;;  %v9220_v26 = vmax.f32 %v1590_v34, %v2903_v33  ;;  %v7967_v23 = vpop.f32.mrb[56].mxu1  ;;  %v8481_v34 = vld [vmem:[%s8790_s16 + $0xa0] sm:$0xff]  }
 0x15b   : > { %10374 = vst [vmem:[#allocation15_spill] sm:$0xff] %v9218_v38  ;;  %v1259_v27 = vadd.f32 %v9182_v40, %v7835_v52  ;;  %v1250_v42 = vpop.f32.mrb[57].mxu0  ;;  %v2572_v11 = vadd.f32 %v9182_v40, %v7967_v23  ;;  %v2563_v31 = vpop.f32.mrb[57].mxu1 }
 0x15c   : > { %10375 = vst [vmem:[#allocation16_spill] sm:$0xff] %v9220_v26  ;;  %v1251_v28 = vadd.f32 %v9182_v40, %v1250_v42  ;;  %v7836_v50 = vpop.f32.mrb[58].mxu0  ;;  %v2564_v22 = vadd.f32 %v9182_v40, %v2563_v31  ;;  %v7968_v13 = vpop.f32.mrb[58].mxu1 }
 0x15d   : > { %v1595_v36 = vmax.f32 %v1259_v27, 0.0  ;;  %v1262_v44 = vadd.f32 %v9182_v40, %v7836_v50  ;;  %v1253_v30 = vpop.f32.mrb[59].mxu0  ;;  %v2908_v33 = vmax.f32 %v2572_v11, 0.0  ;;  %v2575_v26 = vadd.f32 %v9182_v40, %v7968_v13  ;;  %v2566_v38 = vpop.f32.mrb[59].mxu1 }
 0x15e   : > { %v1593_v52 = vmax.f32 %v1251_v28, 0.0  ;;  %v1254_v23 = vadd.f32 %v9182_v40, %v1253_v30  ;;  %v2906_v42 = vmax.f32 %v2564_v22, 0.0  ;;  %v2567_v4 = vadd.f32 %v9182_v40, %v2566_v38 }
 0x15f   : > { %v1596_v41 = vmax.f32 %v1262_v44, 0.0  ;;  %8078 = vmatmul.mubr.msk.bf16.gmra.mrb[164].mxu0 %vm792_vm2, %v8478_v8  ;;  %v9235_v27 = vmax.f32 %v1595_v36, %v2908_v33  ;;  %v2909_v31 = vmax.f32 %v2575_v26, 0.0  ;;  %8210 = vmatmul.mubr.msk.bf16.gmra.mrb[164].mxu1 %vm792_vm2, %v8479_v18  ;;  %v8482_v18 = vld [vmem:[%s8783_s13 + $0xa8] sm:$0xff]  }
 0x160   : > { %v1594_v50 = vmax.f32 %v1254_v23, 0.0  ;;  %8081 = vmatprep.mubr.msk.bf16.mxu0 %vm792_vm2, %v8480_v58  ;;  %v9239_v11 = vmax.f32 %v1593_v52, %v2906_v42  ;;  %v2907_v28 = vmax.f32 %v2567_v4, 0.0  ;;  %8213 = vmatprep.mubr.msk.bf16.mxu1 %vm792_vm2, %v8481_v34  ;;  %v8483_v4 = vld [vmem:[%s8790_s16 + $0xa8] sm:$0xff]   ;;  %v8484_v52 = vld [vmem:[%s8783_s13 + $0xb0] sm:$0xff]  }
 0x161   : > { %10376 = vst [vmem:[#allocation17_spill] sm:$0xff] %v9235_v27  ;;  %v9242_v22 = vmax.f32 %v1596_v41, %v2909_v31 }
 0x162   : > { %10377 = vst [vmem:[#allocation18_spill] sm:$0xff] %v9239_v11  ;;  %v7839_v38 = vpop.f32.mrb[60].mxu0  ;;  %v9244_v44 = vmax.f32 %v1594_v50, %v2907_v28  ;;  %v7971_v8 = vpop.f32.mrb[60].mxu1  ;;  %v8485_v50 = vld [vmem:[%s8790_s16 + $0xb0] sm:$0xff]  }
 0x163   : > { %10378 = vst [vmem:[#allocation19_spill] sm:$0xff] %v9242_v22  ;;  %v1275_v26 = vadd.f32 %v9182_v40, %v7839_v38  ;;  %v1266_v36 = vpop.f32.mrb[61].mxu0  ;;  %v2588_v13 = vadd.f32 %v9182_v40, %v7971_v8  ;;  %v2579_v30 = vpop.f32.mrb[61].mxu1 }
 0x164   : > { %10379 = vst [vmem:[#allocation20_spill] sm:$0xff] %v9244_v44  ;;  %v1267_v58 = vadd.f32 %v9182_v40, %v1266_v36  ;;  %v7840_v33 = vpop.f32.mrb[62].mxu0  ;;  %v2580_v41 = vadd.f32 %v9182_v40, %v2579_v30  ;;  %v7972_v42 = vpop.f32.mrb[62].mxu1 }
 0x165   : > { %v1599_v34 = vmax.f32 %v1275_v26, 0.0  ;;  %v1278_v23 = vadd.f32 %v9182_v40, %v7840_v33  ;;  %v1269_v31 = vpop.f32.mrb[63].mxu0  ;;  %v2912_v28 = vmax.f32 %v2588_v13, 0.0  ;;  %v2591_v44 = vadd.f32 %v9182_v40, %v7972_v42  ;;  %v2582_v22 = vpop.f32.mrb[63].mxu1 }
 0x166   : > { %v1597_v38 = vmax.f32 %v1267_v58, 0.0  ;;  %v1270_v8 = vadd.f32 %v9182_v40, %v1269_v31  ;;  %v2910_v36 = vmax.f32 %v2580_v41, 0.0  ;;  %v2583_v27 = vadd.f32 %v9182_v40, %v2582_v22 }
 0x167   : > { %v1600_v11 = vmax.f32 %v1278_v23, 0.0  ;;  %8082 = vmatmul.mubr.msk.bf16.gmra.mrb[168].mxu0 %vm792_vm2, %v8482_v18  ;;  %v9259_v26 = vmax.f32 %v1599_v34, %v2912_v28  ;;  %v2913_v30 = vmax.f32 %v2591_v44, 0.0  ;;  %8214 = vmatmul.mubr.msk.bf16.gmra.mrb[168].mxu1 %vm792_vm2, %v8483_v4  ;;  %v8486_v4 = vld [vmem:[%s8783_s13 + $0xb8] sm:$0xff]  }
 0x168   : > { %v1598_v33 = vmax.f32 %v1270_v8, 0.0  ;;  %8085 = vmatprep.mubr.msk.bf16.mxu0 %vm792_vm2, %v8484_v52  ;;  %v9263_v13 = vmax.f32 %v1597_v38, %v2910_v36  ;;  %v2911_v58 = vmax.f32 %v2583_v27, 0.0  ;;  %8217 = vmatprep.mubr.msk.bf16.mxu1 %vm792_vm2, %v8485_v50  ;;  %v8487_v27 = vld [vmem:[%s8790_s16 + $0xb8] sm:$0xff]   ;;  %v8488_v38 = vld [vmem:[%s8783_s13 + $0xc0] sm:$0xff]  }
 0x169   : > { %10380 = vst [vmem:[#allocation21_spill] sm:$0xff] %v9259_v26  ;;  %v9266_v41 = vmax.f32 %v1600_v11, %v2913_v30 }
 0x16a   : > { %10381 = vst [vmem:[#allocation22_spill] sm:$0xff] %v9263_v13  ;;  %v7843_v22 = vpop.f32.mrb[64].mxu0  ;;  %v9268_v23 = vmax.f32 %v1598_v33, %v2911_v58  ;;  %v7975_v18 = vpop.f32.mrb[64].mxu1  ;;  %v8489_v33 = vld [vmem:[%s8790_s16 + $0xc0] sm:$0xff]  }
 0x16b   : > { %10382 = vst [vmem:[#allocation23_spill] sm:$0xff] %v9266_v41  ;;  %v1291_v44 = vadd.f32 %v9182_v40, %v7843_v22  ;;  %v1282_v34 = vpop.f32.mrb[65].mxu0  ;;  %v2604_v42 = vadd.f32 %v9182_v40, %v7975_v18  ;;  %v2595_v31 = vpop.f32.mrb[65].mxu1 }
 0x16c   : > { %10383 = vst [vmem:[#allocation24_spill] sm:$0xff] %v9268_v23  ;;  %v1283_v52 = vadd.f32 %v9182_v40, %v1282_v34  ;;  %v7844_v28 = vpop.f32.mrb[66].mxu0  ;;  %v2596_v11 = vadd.f32 %v9182_v40, %v2595_v31  ;;  %v7976_v36 = vpop.f32.mrb[66].mxu1 }
 0x16d   : > { %v1603_v50 = vmax.f32 %v1291_v44, 0.0  ;;  %v1294_v8 = vadd.f32 %v9182_v40, %v7844_v28  ;;  %v1285_v30 = vpop.f32.mrb[67].mxu0  ;;  %v2916_v58 = vmax.f32 %v2604_v42, 0.0  ;;  %v2607_v23 = vadd.f32 %v9182_v40, %v7976_v36  ;;  %v2598_v41 = vpop.f32.mrb[67].mxu1 }
 0x16e   : > { %v1601_v22 = vmax.f32 %v1283_v52, 0.0  ;;  %v1286_v18 = vadd.f32 %v9182_v40, %v1285_v30  ;;  %v2914_v34 = vmax.f32 %v2596_v11, 0.0  ;;  %v2599_v26 = vadd.f32 %v9182_v40, %v2598_v41 }
 0x16f   : > { %v1604_v13 = vmax.f32 %v1294_v8, 0.0  ;;  %8086 = vmatmul.mubr.msk.bf16.gmra.mrb[172].mxu0 %vm792_vm2, %v8486_v4  ;;  %v9283_v44 = vmax.f32 %v1603_v50, %v2916_v58  ;;  %v2917_v31 = vmax.f32 %v2607_v23, 0.0  ;;  %8218 = vmatmul.mubr.msk.bf16.gmra.mrb[172].mxu1 %vm792_vm2, %v8487_v27  ;;  %v8490_v27 = vld [vmem:[%s8783_s13 + $0xc8] sm:$0xff]  }
 0x170   : > { %v1602_v28 = vmax.f32 %v1286_v18, 0.0  ;;  %8089 = vmatprep.mubr.msk.bf16.mxu0 %vm792_vm2, %v8488_v38  ;;  %v9287_v42 = vmax.f32 %v1601_v22, %v2914_v34  ;;  %v2915_v52 = vmax.f32 %v2599_v26, 0.0  ;;  %8221 = vmatprep.mubr.msk.bf16.mxu1 %vm792_vm2, %v8489_v33  ;;  %v8491_v26 = vld [vmem:[%s8790_s16 + $0xc8] sm:$0xff]   ;;  %v8492_v22 = vld [vmem:[%s8783_s13 + $0xd0] sm:$0xff]  }
 0x171   : > { %10384 = vst [vmem:[#allocation25_spill] sm:$0xff] %v9283_v44  ;;  %v9290_v11 = vmax.f32 %v1604_v13, %v2917_v31 }
 0x172   : > { %10385 = vst [vmem:[#allocation26_spill] sm:$0xff] %v9287_v42  ;;  %v7847_v41 = vpop.f32.mrb[68].mxu0  ;;  %v9292_v8 = vmax.f32 %v1602_v28, %v2915_v52  ;;  %v7979_v4 = vpop.f32.mrb[68].mxu1  ;;  %v8493_v28 = vld [vmem:[%s8790_s16 + $0xd0] sm:$0xff]  }
 0x173   : > { %10386 = vst [vmem:[#allocation27_spill] sm:$0xff] %v9290_v11  ;;  %v1307_v23 = vadd.f32 %v9182_v40, %v7847_v41  ;;  %v1298_v50 = vpop.f32.mrb[69].mxu0  ;;  %v2620_v36 = vadd.f32 %v9182_v40, %v7979_v4  ;;  %v2611_v30 = vpop.f32.mrb[69].mxu1 }
 0x174   : > { %10387 = vst [vmem:[#allocation28_spill] sm:$0xff] %v9292_v8  ;;  %v1299_v38 = vadd.f32 %v9182_v40, %v1298_v50  ;;  %v7848_v58 = vpop.f32.mrb[70].mxu0  ;;  %v2612_v13 = vadd.f32 %v9182_v40, %v2611_v30  ;;  %v7980_v34 = vpop.f32.mrb[70].mxu1 }
 0x175   : > { %v1607_v33 = vmax.f32 %v1307_v23, 0.0  ;;  %v1310_v18 = vadd.f32 %v9182_v40, %v7848_v58  ;;  %v1301_v31 = vpop.f32.mrb[71].mxu0  ;;  %v2920_v52 = vmax.f32 %v2620_v36, 0.0  ;;  %v2623_v8 = vadd.f32 %v9182_v40, %v7980_v34  ;;  %v2614_v11 = vpop.f32.mrb[71].mxu1 }
 0x176   : > { %v1605_v41 = vmax.f32 %v1299_v38, 0.0  ;;  %v1302_v4 = vadd.f32 %v9182_v40, %v1301_v31  ;;  %v2918_v50 = vmax.f32 %v2612_v13, 0.0  ;;  %v2615_v44 = vadd.f32 %v9182_v40, %v2614_v11 }
 0x177   : > { %v1608_v42 = vmax.f32 %v1310_v18, 0.0  ;;  %8090 = vmatmul.mubr.msk.bf16.gmra.mrb[176].mxu0 %vm792_vm2, %v8490_v27  ;;  %v9307_v23 = vmax.f32 %v1607_v33, %v2920_v52  ;;  %v2921_v30 = vmax.f32 %v2623_v8, 0.0  ;;  %8222 = vmatmul.mubr.msk.bf16.gmra.mrb[176].mxu1 %vm792_vm2, %v8491_v26  ;;  %v8494_v26 = vld [vmem:[%s8783_s13 + $0xd8] sm:$0xff]  }
 0x178   : > { %v1606_v58 = vmax.f32 %v1302_v4, 0.0  ;;  %8093 = vmatprep.mubr.msk.bf16.mxu0 %vm792_vm2, %v8492_v22  ;;  %v9311_v36 = vmax.f32 %v1605_v41, %v2918_v50  ;;  %v2919_v38 = vmax.f32 %v2615_v44, 0.0  ;;  %8225 = vmatprep.mubr.msk.bf16.mxu1 %vm792_vm2, %v8493_v28  ;;  %v8495_v44 = vld [vmem:[%s8790_s16 + $0xd8] sm:$0xff]   ;;  %v8496_v41 = vld [vmem:[%s8783_s13 + $0xe0] sm:$0xff]  }
 0x179   : > { %10388 = vst [vmem:[#allocation29_spill] sm:$0xff] %v9307_v23  ;;  %v9314_v13 = vmax.f32 %v1608_v42, %v2921_v30 }
 0x17a   : > { %10389 = vst [vmem:[#allocation30_spill] sm:$0xff] %v9311_v36  ;;  %v7851_v11 = vpop.f32.mrb[72].mxu0  ;;  %v9316_v18 = vmax.f32 %v1606_v58, %v2919_v38  ;;  %v7983_v27 = vpop.f32.mrb[72].mxu1  ;;  %v8497_v58 = vld [vmem:[%s8790_s16 + $0xe0] sm:$0xff]  }
 0x17b   : > { %10390 = vst [vmem:[#allocation31_spill] sm:$0xff] %v9314_v13  ;;  %v1323_v8 = vadd.f32 %v9182_v40, %v7851_v11  ;;  %v1314_v33 = vpop.f32.mrb[73].mxu0  ;;  %v2636_v34 = vadd.f32 %v9182_v40, %v7983_v27  ;;  %v2627_v31 = vpop.f32.mrb[73].mxu1 }
 0x17c   : > { %10391 = vst [vmem:[#allocation32_spill] sm:$0xff] %v9316_v18  ;;  %v1315_v22 = vadd.f32 %v9182_v40, %v1314_v33  ;;  %v7852_v52 = vpop.f32.mrb[74].mxu0  ;;  %v2628_v42 = vadd.f32 %v9182_v40, %v2627_v31  ;;  %v7984_v50 = vpop.f32.mrb[74].mxu1 }
 0x17d   : > { %v1611_v28 = vmax.f32 %v1323_v8, 0.0  ;;  %v1326_v4 = vadd.f32 %v9182_v40, %v7852_v52  ;;  %v1317_v30 = vpop.f32.mrb[75].mxu0  ;;  %v2924_v38 = vmax.f32 %v2636_v34, 0.0  ;;  %v2639_v18 = vadd.f32 %v9182_v40, %v7984_v50  ;;  %v2630_v13 = vpop.f32.mrb[75].mxu1 }
 0x17e   : > { %v1609_v11 = vmax.f32 %v1315_v22, 0.0  ;;  %v1318_v27 = vadd.f32 %v9182_v40, %v1317_v30  ;;  %v2922_v33 = vmax.f32 %v2628_v42, 0.0  ;;  %v2631_v23 = vadd.f32 %v9182_v40, %v2630_v13 }
 0x17f   : > { %v1612_v36 = vmax.f32 %v1326_v4, 0.0  ;;  %8094 = vmatmul.mubr.msk.bf16.gmra.mrb[180].mxu0 %vm792_vm2, %v8494_v26  ;;  %v9331_v8 = vmax.f32 %v1611_v28, %v2924_v38  ;;  %v2925_v31 = vmax.f32 %v2639_v18, 0.0  ;;  %8226 = vmatmul.mubr.msk.bf16.gmra.mrb[180].mxu1 %vm792_vm2, %v8495_v44  ;;  %v8498_v44 = vld [vmem:[%s8783_s13 + $0xe8] sm:$0xff]  }
 0x180   : > { %v1610_v52 = vmax.f32 %v1318_v27, 0.0  ;;  %8097 = vmatprep.mubr.msk.bf16.mxu0 %vm792_vm2, %v8496_v41  ;;  %v9335_v34 = vmax.f32 %v1609_v11, %v2922_v33  ;;  %v2923_v22 = vmax.f32 %v2631_v23, 0.0  ;;  %8229 = vmatprep.mubr.msk.bf16.mxu1 %vm792_vm2, %v8497_v58  ;;  %v8499_v23 = vld [vmem:[%s8790_s16 + $0xe8] sm:$0xff]   ;;  %v8500_v11 = vld [vmem:[%s8783_s13 + $0xf0] sm:$0xff]  }
 0x181   : > { %10392 = vst [vmem:[#allocation33_spill] sm:$0xff] %v9331_v8  ;;  %v9338_v42 = vmax.f32 %v1612_v36, %v2925_v31 }
 0x182   : > { %10393 = vst [vmem:[#allocation34_spill] sm:$0xff] %v9335_v34  ;;  %v7855_v13 = vpop.f32.mrb[76].mxu0  ;;  %v9340_v4 = vmax.f32 %v1610_v52, %v2923_v22  ;;  %v7987_v26 = vpop.f32.mrb[76].mxu1  ;;  %v8501_v52 = vld [vmem:[%s8790_s16 + $0xf0] sm:$0xff]  }
 0x183   : > { %10394 = vst [vmem:[#allocation35_spill] sm:$0xff] %v9338_v42  ;;  %v1339_v18 = vadd.f32 %v9182_v40, %v7855_v13  ;;  %v1330_v28 = vpop.f32.mrb[77].mxu0  ;;  %v2652_v50 = vadd.f32 %v9182_v40, %v7987_v26  ;;  %v2643_v30 = vpop.f32.mrb[77].mxu1 }
 0x184   : > { %10395 = vst [vmem:[#allocation36_spill] sm:$0xff] %v9340_v4  ;;  %v1331_v41 = vadd.f32 %v9182_v40, %v1330_v28  ;;  %v7856_v38 = vpop.f32.mrb[78].mxu0  ;;  %v2644_v36 = vadd.f32 %v9182_v40, %v2643_v30  ;;  %v7988_v33 = vpop.f32.mrb[78].mxu1 }
 0x185   : > { %v1615_v58 = vmax.f32 %v1339_v18, 0.0  ;;  %v1342_v27 = vadd.f32 %v9182_v40, %v7856_v38  ;;  %v1333_v31 = vpop.f32.mrb[79].mxu0  ;;  %v2928_v22 = vmax.f32 %v2652_v50, 0.0  ;;  %v2655_v4 = vadd.f32 %v9182_v40, %v7988_v33  ;;  %v2646_v42 = vpop.f32.mrb[79].mxu1 }
 0x186   : > { %v1613_v13 = vmax.f32 %v1331_v41, 0.0  ;;  %v1334_v26 = vadd.f32 %v9182_v40, %v1333_v31  ;;  %v2926_v28 = vmax.f32 %v2644_v36, 0.0  ;;  %v2647_v8 = vadd.f32 %v9182_v40, %v2646_v42 }
 0x187   : > { %v1616_v34 = vmax.f32 %v1342_v27, 0.0  ;;  %8098 = vmatmul.mubr.msk.bf16.gmra.mrb[184].mxu0 %vm792_vm2, %v8498_v44  ;;  %v9355_v18 = vmax.f32 %v1615_v58, %v2928_v22  ;;  %v2929_v30 = vmax.f32 %v2655_v4, 0.0  ;;  %8230 = vmatmul.mubr.msk.bf16.gmra.mrb[184].mxu1 %vm792_vm2, %v8499_v23  ;;  %v8502_v23 = vld [vmem:[%s8783_s13 + $0xf8] sm:$0xff]  }
 0x188   : > { %v1614_v38 = vmax.f32 %v1334_v26, 0.0  ;;  %8101 = vmatprep.mubr.msk.bf16.mxu0 %vm792_vm2, %v8500_v11  ;;  %v9359_v50 = vmax.f32 %v1613_v13, %v2926_v28  ;;  %v2927_v41 = vmax.f32 %v2647_v8, 0.0  ;;  %8233 = vmatprep.mubr.msk.bf16.mxu1 %vm792_vm2, %v8501_v52  ;;  %v8503_v8 = vld [vmem:[%s8790_s16 + $0xf8] sm:$0xff]   ;;  %v8504_v13 = vld [vmem:[%s8783_s13 + $0x100] sm:$0xff]  }
 0x189   : > { %10396 = vst [vmem:[#allocation37_spill] sm:$0xff] %v9355_v18  ;;  %v9362_v36 = vmax.f32 %v1616_v34, %v2929_v30 }
 0x18a   : > { %10397 = vst [vmem:[#allocation38_spill] sm:$0xff] %v9359_v50  ;;  %v7859_v42 = vpop.f32.mrb[80].mxu0  ;;  %v9364_v27 = vmax.f32 %v1614_v38, %v2927_v41  ;;  %v7991_v44 = vpop.f32.mrb[80].mxu1  ;;  %v8505_v38 = vld [vmem:[%s8790_s16 + $0x100] sm:$0xff]  }
 0x18b   : > { %10398 = vst [vmem:[#allocation39_spill] sm:$0xff] %v9362_v36  ;;  %v1355_v4 = vadd.f32 %v9182_v40, %v7859_v42  ;;  %v1346_v58 = vpop.f32.mrb[81].mxu0  ;;  %v2668_v33 = vadd.f32 %v9182_v40, %v7991_v44  ;;  %v2659_v31 = vpop.f32.mrb[81].mxu1 }
 0x18c   : > { %10399 = vst [vmem:[#allocation40_spill] sm:$0xff] %v9364_v27  ;;  %v1347_v11 = vadd.f32 %v9182_v40, %v1346_v58  ;;  %v7860_v22 = vpop.f32.mrb[82].mxu0  ;;  %v2660_v34 = vadd.f32 %v9182_v40, %v2659_v31  ;;  %v7992_v28 = vpop.f32.mrb[82].mxu1 }
 0x18d   : > { %v1619_v52 = vmax.f32 %v1355_v4, 0.0  ;;  %v1358_v26 = vadd.f32 %v9182_v40, %v7860_v22  ;;  %v1349_v30 = vpop.f32.mrb[83].mxu0  ;;  %v2932_v41 = vmax.f32 %v2668_v33, 0.0  ;;  %v2671_v27 = vadd.f32 %v9182_v40, %v7992_v28  ;;  %v2662_v36 = vpop.f32.mrb[83].mxu1 }
 0x18e   : > { %v1617_v42 = vmax.f32 %v1347_v11, 0.0  ;;  %v1350_v44 = vadd.f32 %v9182_v40, %v1349_v30  ;;  %v2930_v58 = vmax.f32 %v2660_v34, 0.0  ;;  %v2663_v18 = vadd.f32 %v9182_v40, %v2662_v36 }
 0x18f   : > { %v1620_v50 = vmax.f32 %v1358_v26, 0.0  ;;  %8102 = vmatmul.mubr.msk.bf16.gmra.mrb[188].mxu0 %vm792_vm2, %v8502_v23  ;;  %v9379_v4 = vmax.f32 %v1619_v52, %v2932_v41  ;;  %v2933_v31 = vmax.f32 %v2671_v27, 0.0  ;;  %8234 = vmatmul.mubr.msk.bf16.gmra.mrb[188].mxu1 %vm792_vm2, %v8503_v8  ;;  %v8506_v8 = vld [vmem:[%s8783_s13 + $0x108] sm:$0xff]  }
 0x190   : > { %v1618_v22 = vmax.f32 %v1350_v44, 0.0  ;;  %8105 = vmatprep.mubr.msk.bf16.mxu0 %vm792_vm2, %v8504_v13  ;;  %v9383_v33 = vmax.f32 %v1617_v42, %v2930_v58  ;;  %v2931_v11 = vmax.f32 %v2663_v18, 0.0  ;;  %8237 = vmatprep.mubr.msk.bf16.mxu1 %vm792_vm2, %v8505_v38  ;;  %v8507_v18 = vld [vmem:[%s8790_s16 + $0x108] sm:$0xff]   ;;  %v8508_v42 = vld [vmem:[%s8783_s13 + $0x110] sm:$0xff]  }
 0x191   : > { %10400 = vst [vmem:[#allocation41_spill] sm:$0xff] %v9379_v4  ;;  %v9386_v34 = vmax.f32 %v1620_v50, %v2933_v31 }
 0x192   : > { %10401 = vst [vmem:[#allocation42_spill] sm:$0xff] %v9383_v33  ;;  %v7863_v36 = vpop.f32.mrb[84].mxu0  ;;  %v9388_v26 = vmax.f32 %v1618_v22, %v2931_v11  ;;  %v7995_v23 = vpop.f32.mrb[84].mxu1  ;;  %v8509_v22 = vld [vmem:[%s8790_s16 + $0x110] sm:$0xff]  }
 0x193   : > { %10402 = vst [vmem:[#allocation43_spill] sm:$0xff] %v9386_v34  ;;  %v1371_v27 = vadd.f32 %v9182_v40, %v7863_v36  ;;  %v1362_v52 = vpop.f32.mrb[85].mxu0  ;;  %v2684_v28 = vadd.f32 %v9182_v40, %v7995_v23  ;;  %v2675_v30 = vpop.f32.mrb[85].mxu1 }
 0x194   : > { %10403 = vst [vmem:[#allocation44_spill] sm:$0xff] %v9388_v26  ;;  %v1363_v13 = vadd.f32 %v9182_v40, %v1362_v52  ;;  %v7864_v41 = vpop.f32.mrb[86].mxu0  ;;  %v2676_v50 = vadd.f32 %v9182_v40, %v2675_v30  ;;  %v7996_v58 = vpop.f32.mrb[86].mxu1 }
 0x195   : > { %v1623_v38 = vmax.f32 %v1371_v27, 0.0  ;;  %v1374_v44 = vadd.f32 %v9182_v40, %v7864_v41  ;;  %v1365_v31 = vpop.f32.mrb[87].mxu0  ;;  %v2936_v11 = vmax.f32 %v2684_v28, 0.0  ;;  %v2687_v26 = vadd.f32 %v9182_v40, %v7996_v58  ;;  %v2678_v34 = vpop.f32.mrb[87].mxu1 }
 0x196   : > { %v1621_v36 = vmax.f32 %v1363_v13, 0.0  ;;  %v1366_v23 = vadd.f32 %v9182_v40, %v1365_v31  ;;  %v2934_v52 = vmax.f32 %v2676_v50, 0.0  ;;  %v2679_v4 = vadd.f32 %v9182_v40, %v2678_v34 }
 0x197   : > { %v1624_v33 = vmax.f32 %v1374_v44, 0.0  ;;  %8106 = vmatmul.mubr.msk.bf16.gmra.mrb[192].mxu0 %vm792_vm2, %v8506_v8  ;;  %v9403_v27 = vmax.f32 %v1623_v38, %v2936_v11  ;;  %v2937_v30 = vmax.f32 %v2687_v26, 0.0  ;;  %8238 = vmatmul.mubr.msk.bf16.gmra.mrb[192].mxu1 %vm792_vm2, %v8507_v18  ;;  %v8510_v18 = vld [vmem:[%s8783_s13 + $0x118] sm:$0xff]  }
 0x198   : > { %v1622_v41 = vmax.f32 %v1366_v23, 0.0  ;;  %8109 = vmatprep.mubr.msk.bf16.mxu0 %vm792_vm2, %v8508_v42  ;;  %v9407_v28 = vmax.f32 %v1621_v36, %v2934_v52  ;;  %v2935_v13 = vmax.f32 %v2679_v4, 0.0  ;;  %8241 = vmatprep.mubr.msk.bf16.mxu1 %vm792_vm2, %v8509_v22  ;;  %v8511_v4 = vld [vmem:[%s8790_s16 + $0x118] sm:$0xff]   ;;  %v8512_v36 = vld [vmem:[%s8783_s13 + $0x120] sm:$0xff]  }
 0x199   : > { %10404 = vst [vmem:[#allocation45_spill] sm:$0xff] %v9403_v27  ;;  %v9410_v50 = vmax.f32 %v1624_v33, %v2937_v30 }
 0x19a   : > { %10405 = vst [vmem:[#allocation46_spill] sm:$0xff] %v9407_v28  ;;  %v7867_v34 = vpop.f32.mrb[88].mxu0  ;;  %v9412_v44 = vmax.f32 %v1622_v41, %v2935_v13  ;;  %v7999_v8 = vpop.f32.mrb[88].mxu1  ;;  %v8513_v41 = vld [vmem:[%s8790_s16 + $0x120] sm:$0xff]  }
 0x19b   : > { %10406 = vst [vmem:[#allocation47_spill] sm:$0xff] %v9410_v50  ;;  %v1387_v26 = vadd.f32 %v9182_v40, %v7867_v34  ;;  %v1378_v38 = vpop.f32.mrb[89].mxu0  ;;  %v2700_v58 = vadd.f32 %v9182_v40, %v7999_v8  ;;  %v2691_v31 = vpop.f32.mrb[89].mxu1 }
 0x19c   : > { %10407 = vst [vmem:[#allocation48_spill] sm:$0xff] %v9412_v44  ;;  %v1379_v42 = vadd.f32 %v9182_v40, %v1378_v38  ;;  %v7868_v11 = vpop.f32.mrb[90].mxu0  ;;  %v2692_v33 = vadd.f32 %v9182_v40, %v2691_v31  ;;  %v8000_v52 = vpop.f32.mrb[90].mxu1 }
 0x19d   : > { %v1627_v22 = vmax.f32 %v1387_v26, 0.0  ;;  %v1390_v23 = vadd.f32 %v9182_v40, %v7868_v11  ;;  %v1381_v30 = vpop.f32.mrb[91].mxu0  ;;  %v2940_v13 = vmax.f32 %v2700_v58, 0.0  ;;  %v2703_v44 = vadd.f32 %v9182_v40, %v8000_v52  ;;  %v2694_v50 = vpop.f32.mrb[91].mxu1 }
 0x19e   : > { %v1625_v34 = vmax.f32 %v1379_v42, 0.0  ;;  %v1382_v8 = vadd.f32 %v9182_v40, %v1381_v30  ;;  %v2938_v38 = vmax.f32 %v2692_v33, 0.0  ;;  %v2695_v27 = vadd.f32 %v9182_v40, %v2694_v50 }
 0x19f   : > { %v1628_v28 = vmax.f32 %v1390_v23, 0.0  ;;  %8110 = vmatmul.mubr.msk.bf16.gmra.mrb[196].mxu0 %vm792_vm2, %v8510_v18  ;;  %v9427_v26 = vmax.f32 %v1627_v22, %v2940_v13  ;;  %v2941_v31 = vmax.f32 %v2703_v44, 0.0  ;;  %8242 = vmatmul.mubr.msk.bf16.gmra.mrb[196].mxu1 %vm792_vm2, %v8511_v4  ;;  %v8514_v4 = vld [vmem:[%s8783_s13 + $0x128] sm:$0xff]  }
 0x1a0   : > { %v1626_v11 = vmax.f32 %v1382_v8, 0.0  ;;  %8113 = vmatprep.mubr.msk.bf16.mxu0 %vm792_vm2, %v8512_v36  ;;  %v9431_v58 = vmax.f32 %v1625_v34, %v2938_v38  ;;  %v2939_v42 = vmax.f32 %v2695_v27, 0.0  ;;  %8245 = vmatprep.mubr.msk.bf16.mxu1 %vm792_vm2, %v8513_v41  ;;  %v8515_v27 = vld [vmem:[%s8790_s16 + $0x128] sm:$0xff]   ;;  %v8516_v34 = vld [vmem:[%s8783_s13 + $0x130] sm:$0xff]  }
 0x1a1   : > { %10408 = vst [vmem:[#allocation49_spill] sm:$0xff] %v9427_v26  ;;  %v9434_v33 = vmax.f32 %v1628_v28, %v2941_v31 }
 0x1a2   : > { %10409 = vst [vmem:[#allocation50_spill] sm:$0xff] %v9431_v58  ;;  %v7871_v50 = vpop.f32.mrb[92].mxu0  ;;  %v9436_v23 = vmax.f32 %v1626_v11, %v2939_v42  ;;  %v8003_v18 = vpop.f32.mrb[92].mxu1  ;;  %v8517_v11 = vld [vmem:[%s8790_s16 + $0x130] sm:$0xff]  }
 0x1a3   : > { %10410 = vst [vmem:[#allocation51_spill] sm:$0xff] %v9434_v33  ;;  %v1403_v44 = vadd.f32 %v9182_v40, %v7871_v50  ;;  %v1394_v22 = vpop.f32.mrb[93].mxu0  ;;  %v2716_v52 = vadd.f32 %v9182_v40, %v8003_v18  ;;  %v2707_v30 = vpop.f32.mrb[93].mxu1 }
 0x1a4   : > { %10411 = vst [vmem:[#allocation52_spill] sm:$0xff] %v9436_v23  ;;  %v1395_v36 = vadd.f32 %v9182_v40, %v1394_v22  ;;  %v7872_v13 = vpop.f32.mrb[94].mxu0  ;;  %v2708_v28 = vadd.f32 %v9182_v40, %v2707_v30  ;;  %v8004_v38 = vpop.f32.mrb[94].mxu1 }
 0x1a5   : > { %v1631_v41 = vmax.f32 %v1403_v44, 0.0  ;;  %v1406_v8 = vadd.f32 %v9182_v40, %v7872_v13  ;;  %v1397_v31 = vpop.f32.mrb[95].mxu0  ;;  %v2944_v42 = vmax.f32 %v2716_v52, 0.0  ;;  %v2719_v23 = vadd.f32 %v9182_v40, %v8004_v38  ;;  %v2710_v33 = vpop.f32.mrb[95].mxu1 }
 0x1a6   : > { %v1629_v50 = vmax.f32 %v1395_v36, 0.0  ;;  %v1398_v18 = vadd.f32 %v9182_v40, %v1397_v31  ;;  %v2942_v22 = vmax.f32 %v2708_v28, 0.0  ;;  %v2711_v26 = vadd.f32 %v9182_v40, %v2710_v33 }
 0x1a7   : > { %v1632_v58 = vmax.f32 %v1406_v8, 0.0  ;;  %8114 = vmatmul.mubr.msk.bf16.gmra.mrb[200].mxu0 %vm792_vm2, %v8514_v4  ;;  %v9451_v44 = vmax.f32 %v1631_v41, %v2944_v42  ;;  %v2945_v30 = vmax.f32 %v2719_v23, 0.0  ;;  %8246 = vmatmul.mubr.msk.bf16.gmra.mrb[200].mxu1 %vm792_vm2, %v8515_v27  ;;  %v8518_v27 = vld [vmem:[%s8783_s13 + $0x138] sm:$0xff]  }
 0x1a8   : > { %v1630_v13 = vmax.f32 %v1398_v18, 0.0  ;;  %8117 = vmatprep.mubr.msk.bf16.mxu0 %vm792_vm2, %v8516_v34  ;;  %v9455_v52 = vmax.f32 %v1629_v50, %v2942_v22  ;;  %v2943_v36 = vmax.f32 %v2711_v26, 0.0  ;;  %8249 = vmatprep.mubr.msk.bf16.mxu1 %vm792_vm2, %v8517_v11  ;;  %v8519_v26 = vld [vmem:[%s8790_s16 + $0x138] sm:$0xff]   ;;  %v8520_v50 = vld [vmem:[%s8783_s13 + $0x140] sm:$0xff]  }
 0x1a9   : > { %10412 = vst [vmem:[#allocation53_spill] sm:$0xff] %v9451_v44  ;;  %v9458_v28 = vmax.f32 %v1632_v58, %v2945_v30 }
 0x1aa   : > { %10413 = vst [vmem:[#allocation54_spill] sm:$0xff] %v9455_v52  ;;  %v7875_v33 = vpop.f32.mrb[96].mxu0  ;;  %v9460_v8 = vmax.f32 %v1630_v13, %v2943_v36  ;;  %v8007_v4 = vpop.f32.mrb[96].mxu1  ;;  %v8521_v13 = vld [vmem:[%s8790_s16 + $0x140] sm:$0xff]  }
 0x1ab   : > { %10414 = vst [vmem:[#allocation55_spill] sm:$0xff] %v9458_v28  ;;  %v1419_v23 = vadd.f32 %v9182_v40, %v7875_v33  ;;  %v1410_v41 = vpop.f32.mrb[97].mxu0  ;;  %v2732_v38 = vadd.f32 %v9182_v40, %v8007_v4  ;;  %v2723_v31 = vpop.f32.mrb[97].mxu1 }
 0x1ac   : > { %10415 = vst [vmem:[#allocation56_spill] sm:$0xff] %v9460_v8  ;;  %v1411_v34 = vadd.f32 %v9182_v40, %v1410_v41  ;;  %v7876_v42 = vpop.f32.mrb[98].mxu0  ;;  %v2724_v58 = vadd.f32 %v9182_v40, %v2723_v31  ;;  %v8008_v22 = vpop.f32.mrb[98].mxu1 }
 0x1ad   : > { %v1635_v11 = vmax.f32 %v1419_v23, 0.0  ;;  %v1422_v18 = vadd.f32 %v9182_v40, %v7876_v42  ;;  %v1413_v30 = vpop.f32.mrb[99].mxu0  ;;  %v2948_v36 = vmax.f32 %v2732_v38, 0.0  ;;  %v2735_v8 = vadd.f32 %v9182_v40, %v8008_v22  ;;  %v2726_v28 = vpop.f32.mrb[99].mxu1 }
 0x1ae   : > { %v1633_v33 = vmax.f32 %v1411_v34, 0.0  ;;  %v1414_v4 = vadd.f32 %v9182_v40, %v1413_v30  ;;  %v2946_v41 = vmax.f32 %v2724_v58, 0.0  ;;  %v2727_v44 = vadd.f32 %v9182_v40, %v2726_v28 }
 0x1af   : > { %v1636_v52 = vmax.f32 %v1422_v18, 0.0  ;;  %8118 = vmatmul.mubr.msk.bf16.gmra.mrb[204].mxu0 %vm792_vm2, %v8518_v27  ;;  %v9475_v23 = vmax.f32 %v1635_v11, %v2948_v36  ;;  %v2949_v31 = vmax.f32 %v2735_v8, 0.0  ;;  %8250 = vmatmul.mubr.msk.bf16.gmra.mrb[204].mxu1 %vm792_vm2, %v8519_v26  ;;  %v8522_v26 = vld [vmem:[%s8783_s13 + $0x148] sm:$0xff]  }
 0x1b0   : > { %v1634_v42 = vmax.f32 %v1414_v4, 0.0  ;;  %8121 = vmatprep.mubr.msk.bf16.mxu0 %vm792_vm2, %v8520_v50  ;;  %v9479_v38 = vmax.f32 %v1633_v33, %v2946_v41  ;;  %v2947_v34 = vmax.f32 %v2727_v44, 0.0  ;;  %8253 = vmatprep.mubr.msk.bf16.mxu1 %vm792_vm2, %v8521_v13  ;;  %v8523_v44 = vld [vmem:[%s8790_s16 + $0x148] sm:$0xff]   ;;  %v8524_v33 = vld [vmem:[%s8783_s13 + $0x150] sm:$0xff]  }
 0x1b1   : > { %10416 = vst [vmem:[#allocation57_spill] sm:$0xff] %v9475_v23  ;;  %v9482_v58 = vmax.f32 %v1636_v52, %v2949_v31 }
 0x1b2   : > { %10417 = vst [vmem:[#allocation58_spill] sm:$0xff] %v9479_v38  ;;  %v7879_v28 = vpop.f32.mrb[100].mxu0  ;;  %v9484_v18 = vmax.f32 %v1634_v42, %v2947_v34  ;;  %v8011_v27 = vpop.f32.mrb[100].mxu1  ;;  %v8525_v42 = vld [vmem:[%s8790_s16 + $0x150] sm:$0xff]  }
 0x1b3   : > { %10418 = vst [vmem:[#allocation59_spill] sm:$0xff] %v9482_v58  ;;  %v1435_v8 = vadd.f32 %v9182_v40, %v7879_v28  ;;  %v1426_v11 = vpop.f32.mrb[101].mxu0  ;;  %v2748_v22 = vadd.f32 %v9182_v40, %v8011_v27  ;;  %v2739_v30 = vpop.f32.mrb[101].mxu1 }
 0x1b4   : > { %10419 = vst [vmem:[#allocation60_spill] sm:$0xff] %v9484_v18  ;;  %v1427_v50 = vadd.f32 %v9182_v40, %v1426_v11  ;;  %v7880_v36 = vpop.f32.mrb[102].mxu0  ;;  %v2740_v52 = vadd.f32 %v9182_v40, %v2739_v30  ;;  %v8012_v41 = vpop.f32.mrb[102].mxu1 }
 0x1b5   : > { %v1639_v13 = vmax.f32 %v1435_v8, 0.0  ;;  %v1438_v4 = vadd.f32 %v9182_v40, %v7880_v36  ;;  %v1429_v31 = vpop.f32.mrb[103].mxu0  ;;  %v2952_v34 = vmax.f32 %v2748_v22, 0.0  ;;  %v2751_v18 = vadd.f32 %v9182_v40, %v8012_v41  ;;  %v2742_v58 = vpop.f32.mrb[103].mxu1 }
 0x1b6   : > { %v1637_v28 = vmax.f32 %v1427_v50, 0.0  ;;  %v1430_v27 = vadd.f32 %v9182_v40, %v1429_v31  ;;  %v2950_v11 = vmax.f32 %v2740_v52, 0.0  ;;  %v2743_v23 = vadd.f32 %v9182_v40, %v2742_v58 }
 0x1b7   : > { %v1640_v38 = vmax.f32 %v1438_v4, 0.0  ;;  %8122 = vmatmul.mubr.msk.bf16.gmra.mrb[208].mxu0 %vm792_vm2, %v8522_v26  ;;  %v9499_v8 = vmax.f32 %v1639_v13, %v2952_v34  ;;  %v2953_v30 = vmax.f32 %v2751_v18, 0.0  ;;  %8254 = vmatmul.mubr.msk.bf16.gmra.mrb[208].mxu1 %vm792_vm2, %v8523_v44  ;;  %v8526_v44 = vld [vmem:[%s8783_s13 + $0x158] sm:$0xff]  }
 0x1b8   : > { %v1638_v36 = vmax.f32 %v1430_v27, 0.0  ;;  %8125 = vmatprep.mubr.msk.bf16.mxu0 %vm792_vm2, %v8524_v33  ;;  %v9503_v22 = vmax.f32 %v1637_v28, %v2950_v11  ;;  %v2951_v50 = vmax.f32 %v2743_v23, 0.0  ;;  %8257 = vmatprep.mubr.msk.bf16.mxu1 %vm792_vm2, %v8525_v42  ;;  %v8527_v23 = vld [vmem:[%s8790_s16 + $0x158] sm:$0xff]   ;;  %v8528_v28 = vld [vmem:[%s8783_s13 + $0x160] sm:$0xff]  }
 0x1b9   : > { %10420 = vst [vmem:[#allocation61_spill] sm:$0xff] %v9499_v8  ;;  %v9506_v52 = vmax.f32 %v1640_v38, %v2953_v30 }
 0x1ba   : > { %10421 = vst [vmem:[#allocation62_spill] sm:$0xff] %v9503_v22  ;;  %v7883_v58 = vpop.f32.mrb[104].mxu0  ;;  %v9508_v4 = vmax.f32 %v1638_v36, %v2951_v50  ;;  %v8015_v26 = vpop.f32.mrb[104].mxu1  ;;  %v8529_v36 = vld [vmem:[%s8790_s16 + $0x160] sm:$0xff]  }
 0x1bb   : > { %10422 = vst [vmem:[#allocation63_spill] sm:$0xff] %v9506_v52  ;;  %v1451_v18 = vadd.f32 %v9182_v40, %v7883_v58  ;;  %v1442_v13 = vpop.f32.mrb[105].mxu0  ;;  %v2764_v41 = vadd.f32 %v9182_v40, %v8015_v26  ;;  %v2755_v31 = vpop.f32.mrb[105].mxu1 }
 0x1bc   : > { %10423 = vst [vmem:[#allocation64_spill] sm:$0xff] %v9508_v4  ;;  %v1443_v33 = vadd.f32 %v9182_v40, %v1442_v13  ;;  %v7884_v34 = vpop.f32.mrb[106].mxu0  ;;  %v2756_v38 = vadd.f32 %v9182_v40, %v2755_v31  ;;  %v8016_v11 = vpop.f32.mrb[106].mxu1 }
 0x1bd   : > { %v1643_v42 = vmax.f32 %v1451_v18, 0.0  ;;  %v1454_v27 = vadd.f32 %v9182_v40, %v7884_v34  ;;  %v1445_v30 = vpop.f32.mrb[107].mxu0  ;;  %v2956_v50 = vmax.f32 %v2764_v41, 0.0  ;;  %v2767_v4 = vadd.f32 %v9182_v40, %v8016_v11  ;;  %v2758_v52 = vpop.f32.mrb[107].mxu1 }
 0x1be   : > { %v1641_v58 = vmax.f32 %v1443_v33, 0.0  ;;  %v1446_v26 = vadd.f32 %v9182_v40, %v1445_v30  ;;  %v2954_v13 = vmax.f32 %v2756_v38, 0.0  ;;  %v2759_v8 = vadd.f32 %v9182_v40, %v2758_v52  ;;  %v8531_v30 = vld [vmem:[%s8790_s16 + $0x168] sm:$0xff]  }
 0x1bf   : > { %v1644_v22 = vmax.f32 %v1454_v27, 0.0  ;;  %8126 = vmatmul.mubr.msk.bf16.gmra.mrb[212].mxu0 %vm792_vm2, %v8526_v44  ;;  %v9523_v18 = vmax.f32 %v1643_v42, %v2956_v50  ;;  %v2957_v31 = vmax.f32 %v2767_v4, 0.0  ;;  %8258 = vmatmul.mubr.msk.bf16.gmra.mrb[212].mxu1 %vm792_vm2, %v8527_v23  ;;  %v9537_v4 = vld [vmem:[%s10359_s5] ss:$0 sm:$0xff]  ;;  %v8530_v42 = vld [vmem:[%s8783_s13 + $0x168] sm:$0xff]  }
 0x1c0   : > { %v1642_v34 = vmax.f32 %v1446_v26, 0.0  ;;  %8129 = vmatprep.mubr.msk.bf16.mxu0 %vm792_vm2, %v8528_v28  ;;  %v9527_v41 = vmax.f32 %v1641_v58, %v2954_v13  ;;  %v2955_v33 = vmax.f32 %v2759_v8, 0.0  ;;  %8261 = vmatprep.mubr.msk.bf16.mxu1 %vm792_vm2, %v8529_v36  ;;  %v8532_v36 = vld [vmem:[%s8783_s13 + $0x170] sm:$0xff]  }
 0x1c1   : > { %10424 = vst [vmem:[#allocation65_spill] sm:$0xff] %v9523_v18  ;;  %v9530_v38 = vmax.f32 %v1644_v22, %v2957_v31 }
 0x1c2   : > { %10425 = vst [vmem:[#allocation66_spill] sm:$0xff] %v9527_v41  ;;  %v7887_v40 = vpop.f32.mrb[108].mxu0  ;;  %v9532_v52 = vmax.f32 %v1642_v34, %v2955_v33  ;;  %v8019_v23 = vpop.f32.mrb[108].mxu1  ;;  %v8533_v34 = vld [vmem:[%s8790_s16 + $0x170] sm:$0xff]  }
 0x1c3   : > { %10426 = vst [vmem:[#allocation67_spill] sm:$0xff] %v9530_v38  ;;  %v1467_v44 = vadd.f32 %v9537_v4, %v7887_v40  ;;  %v1458_v28 = vpop.f32.mrb[109].mxu0  ;;  %v2780_v8 = vadd.f32 %v9537_v4, %v8019_v23  ;;  %v2771_v22 = vpop.f32.mrb[109].mxu1 }
 0x1c4   : > { %10427 = vst [vmem:[#allocation68_spill] sm:$0xff] %v9532_v52  ;;  %v1459_v27 = vadd.f32 %v9537_v4, %v1458_v28  ;;  %v7888_v11 = vpop.f32.mrb[110].mxu0  ;;  %v2772_v58 = vadd.f32 %v9537_v4, %v2771_v22  ;;  %v8020_v13 = vpop.f32.mrb[110].mxu1 }
 0x1c5   : > { %v1647_v50 = vmax.f32 %v1467_v44, 0.0  ;;  %v1470_v26 = vadd.f32 %v9537_v4, %v7888_v11  ;;  %v1461_v31 = vpop.f32.mrb[111].mxu0  ;;  %v2960_v33 = vmax.f32 %v2780_v8, 0.0  ;;  %v2783_v52 = vadd.f32 %v9537_v4, %v8020_v13  ;;  %v2774_v38 = vpop.f32.mrb[111].mxu1 }
 0x1c6   : > { %v1645_v40 = vmax.f32 %v1459_v27, 0.0  ;;  %v1462_v23 = vadd.f32 %v9537_v4, %v1461_v31  ;;  %v2958_v28 = vmax.f32 %v2772_v58, 0.0  ;;  %v2775_v18 = vadd.f32 %v9537_v4, %v2774_v38 }
 0x1c7   : > { %v1648_v41 = vmax.f32 %v1470_v26, 0.0  ;;  %8130 = vmatmul.mubr.msk.bf16.gmra.mrb[216].mxu0 %vm792_vm2, %v8530_v42  ;;  %v9552_v44 = vmax.f32 %v1647_v50, %v2960_v33  ;;  %v2961_v22 = vmax.f32 %v2783_v52, 0.0  ;;  %8262 = vmatmul.mubr.msk.bf16.gmra.mrb[216].mxu1 %vm792_vm2, %v8531_v30  ;;  %v8534_v30 = vld [vmem:[%s8783_s13 + $0x178] sm:$0xff]  }
 0x1c8   : > { %v1646_v11 = vmax.f32 %v1462_v23, 0.0  ;;  %8133 = vmatprep.mubr.msk.bf16.mxu0 %vm792_vm2, %v8532_v36  ;;  %v9556_v8 = vmax.f32 %v1645_v40, %v2958_v28  ;;  %v2959_v27 = vmax.f32 %v2775_v18, 0.0  ;;  %8265 = vmatprep.mubr.msk.bf16.mxu1 %vm792_vm2, %v8533_v34  ;;  %v8535_v18 = vld [vmem:[%s8790_s16 + $0x178] sm:$0xff]   ;;  %v8536_v40 = vld [vmem:[%s8783_s13 + $0x180] sm:$0xff]  }
 0x1c9   : > { %10428 = vst [vmem:[#allocation69_spill] sm:$0xff] %v9552_v44  ;;  %v9559_v58 = vmax.f32 %v1648_v41, %v2961_v22 }
 0x1ca   : > { %10429 = vst [vmem:[#allocation70_spill] sm:$0xff] %v9556_v8  ;;  %v7891_v38 = vpop.f32.mrb[112].mxu0  ;;  %v9561_v26 = vmax.f32 %v1646_v11, %v2959_v27  ;;  %v8023_v42 = vpop.f32.mrb[112].mxu1  ;;  %v8537_v11 = vld [vmem:[%s8790_s16 + $0x180] sm:$0xff]  }
 0x1cb   : > { %10430 = vst [vmem:[#allocation71_spill] sm:$0xff] %v9559_v58  ;;  %v1483_v52 = vadd.f32 %v9537_v4, %v7891_v38  ;;  %v1474_v50 = vpop.f32.mrb[113].mxu0  ;;  %v2796_v13 = vadd.f32 %v9537_v4, %v8023_v42  ;;  %v2787_v31 = vpop.f32.mrb[113].mxu1 }
 0x1cc   : > { %10431 = vst [vmem:[#allocation72_spill] sm:$0xff] %v9561_v26  ;;  %v1475_v36 = vadd.f32 %v9537_v4, %v1474_v50  ;;  %v7892_v33 = vpop.f32.mrb[114].mxu0  ;;  %v2788_v41 = vadd.f32 %v9537_v4, %v2787_v31  ;;  %v8024_v28 = vpop.f32.mrb[114].mxu1 }
 0x1cd   : > { %v1651_v34 = vmax.f32 %v1483_v52, 0.0  ;;  %v1486_v23 = vadd.f32 %v9537_v4, %v7892_v33  ;;  %v1477_v22 = vpop.f32.mrb[115].mxu0  ;;  %v2964_v27 = vmax.f32 %v2796_v13, 0.0  ;;  %v2799_v26 = vadd.f32 %v9537_v4, %v8024_v28  ;;  %v2790_v58 = vpop.f32.mrb[115].mxu1 }
 0x1ce   : > { %v1649_v38 = vmax.f32 %v1475_v36, 0.0  ;;  %v1478_v42 = vadd.f32 %v9537_v4, %v1477_v22  ;;  %v2962_v50 = vmax.f32 %v2788_v41, 0.0  ;;  %v2791_v44 = vadd.f32 %v9537_v4, %v2790_v58 }
 0x1cf   : > { %v1652_v8 = vmax.f32 %v1486_v23, 0.0  ;;  %8134 = vmatmul.mubr.msk.bf16.gmra.mrb[220].mxu0 %vm792_vm2, %v8534_v30  ;;  %v9576_v52 = vmax.f32 %v1651_v34, %v2964_v27  ;;  %v2965_v31 = vmax.f32 %v2799_v26, 0.0  ;;  %8266 = vmatmul.mubr.msk.bf16.gmra.mrb[220].mxu1 %vm792_vm2, %v8535_v18  ;;  %v8538_v18 = vld [vmem:[%s8783_s13 + $0x188] sm:$0xff]  }
 0x1d0   : > { %v1650_v33 = vmax.f32 %v1478_v42, 0.0  ;;  %8137 = vmatprep.mubr.msk.bf16.mxu0 %vm792_vm2, %v8536_v40  ;;  %v9580_v13 = vmax.f32 %v1649_v38, %v2962_v50  ;;  %v2963_v36 = vmax.f32 %v2791_v44, 0.0  ;;  %8269 = vmatprep.mubr.msk.bf16.mxu1 %vm792_vm2, %v8537_v11  ;;  %v8539_v44 = vld [vmem:[%s8790_s16 + $0x188] sm:$0xff]   ;;  %v8540_v38 = vld [vmem:[%s8783_s13 + $0x190] sm:$0xff]  }
 0x1d1   : > { %10432 = vst [vmem:[#allocation73_spill] sm:$0xff] %v9576_v52  ;;  %v9583_v41 = vmax.f32 %v1652_v8, %v2965_v31 }
 0x1d2   : > { %10433 = vst [vmem:[#allocation74_spill] sm:$0xff] %v9580_v13  ;;  %v7895_v58 = vpop.f32.mrb[116].mxu0  ;;  %v9585_v23 = vmax.f32 %v1650_v33, %v2963_v36  ;;  %v8027_v30 = vpop.f32.mrb[116].mxu1  ;;  %v8541_v33 = vld [vmem:[%s8790_s16 + $0x190] sm:$0xff]  }
 0x1d3   : > { %10434 = vst [vmem:[#allocation75_spill] sm:$0xff] %v9583_v41  ;;  %v1499_v26 = vadd.f32 %v9537_v4, %v7895_v58  ;;  %v1490_v34 = vpop.f32.mrb[117].mxu0  ;;  %v2812_v28 = vadd.f32 %v9537_v4, %v8027_v30  ;;  %v2803_v22 = vpop.f32.mrb[117].mxu1 }
 0x1d4   : > { %10435 = vst [vmem:[#allocation76_spill] sm:$0xff] %v9585_v23  ;;  %v1491_v40 = vadd.f32 %v9537_v4, %v1490_v34  ;;  %v7896_v27 = vpop.f32.mrb[118].mxu0  ;;  %v2804_v8 = vadd.f32 %v9537_v4, %v2803_v22  ;;  %v8028_v50 = vpop.f32.mrb[118].mxu1 }
 0x1d5   : > { %v1655_v11 = vmax.f32 %v1499_v26, 0.0  ;;  %v1502_v42 = vadd.f32 %v9537_v4, %v7896_v27  ;;  %v1493_v31 = vpop.f32.mrb[119].mxu0  ;;  %v2968_v36 = vmax.f32 %v2812_v28, 0.0  ;;  %v2815_v23 = vadd.f32 %v9537_v4, %v8028_v50  ;;  %v2806_v41 = vpop.f32.mrb[119].mxu1 }
 0x1d6   : > { %v1653_v58 = vmax.f32 %v1491_v40, 0.0  ;;  %v1494_v30 = vadd.f32 %v9537_v4, %v1493_v31  ;;  %v2966_v34 = vmax.f32 %v2804_v8, 0.0  ;;  %v2807_v52 = vadd.f32 %v9537_v4, %v2806_v41 }
 0x1d7   : > { %v1656_v13 = vmax.f32 %v1502_v42, 0.0  ;;  %8138 = vmatmul.mubr.msk.bf16.gmra.mrb[224].mxu0 %vm792_vm2, %v8538_v18  ;;  %v9600_v26 = vmax.f32 %v1655_v11, %v2968_v36  ;;  %v2969_v22 = vmax.f32 %v2815_v23, 0.0  ;;  %8270 = vmatmul.mubr.msk.bf16.gmra.mrb[224].mxu1 %vm792_vm2, %v8539_v44  ;;  %v8542_v44 = vld [vmem:[%s8783_s13 + $0x198] sm:$0xff]  }
 0x1d8   : > { %v1654_v27 = vmax.f32 %v1494_v30, 0.0  ;;  %8141 = vmatprep.mubr.msk.bf16.mxu0 %vm792_vm2, %v8540_v38  ;;  %v9604_v28 = vmax.f32 %v1653_v58, %v2966_v34  ;;  %v2967_v40 = vmax.f32 %v2807_v52, 0.0  ;;  %8273 = vmatprep.mubr.msk.bf16.mxu1 %vm792_vm2, %v8541_v33  ;;  %v8543_v52 = vld [vmem:[%s8790_s16 + $0x198] sm:$0xff]   ;;  %v8544_v58 = vld [vmem:[%s8783_s13 + $0x1a0] sm:$0xff]  }
 0x1d9   : > { %10436 = vst [vmem:[#allocation77_spill] sm:$0xff] %v9600_v26  ;;  %v9607_v8 = vmax.f32 %v1656_v13, %v2969_v22 }
 0x1da   : > { %10437 = vst [vmem:[#allocation78_spill] sm:$0xff] %v9604_v28  ;;  %v7899_v41 = vpop.f32.mrb[120].mxu0  ;;  %v9609_v42 = vmax.f32 %v1654_v27, %v2967_v40  ;;  %v8031_v18 = vpop.f32.mrb[120].mxu1  ;;  %v8545_v27 = vld [vmem:[%s8790_s16 + $0x1a0] sm:$0xff]  }
 0x1db   : > { %10438 = vst [vmem:[#allocation79_spill] sm:$0xff] %v9607_v8  ;;  %v1515_v23 = vadd.f32 %v9537_v4, %v7899_v41  ;;  %v1506_v11 = vpop.f32.mrb[121].mxu0  ;;  %v2828_v50 = vadd.f32 %v9537_v4, %v8031_v18  ;;  %v2819_v31 = vpop.f32.mrb[121].mxu1 }
 0x1dc   : > { %10439 = vst [vmem:[#allocation80_spill] sm:$0xff] %v9609_v42  ;;  %v1507_v38 = vadd.f32 %v9537_v4, %v1506_v11  ;;  %v7900_v36 = vpop.f32.mrb[122].mxu0  ;;  %v2820_v13 = vadd.f32 %v9537_v4, %v2819_v31  ;;  %v8032_v34 = vpop.f32.mrb[122].mxu1 }
 0x1dd   : > { %v1659_v33 = vmax.f32 %v1515_v23, 0.0  ;;  %v1518_v30 = vadd.f32 %v9537_v4, %v7900_v36  ;;  %v1509_v22 = vpop.f32.mrb[123].mxu0  ;;  %v2972_v40 = vmax.f32 %v2828_v50, 0.0  ;;  %v2831_v42 = vadd.f32 %v9537_v4, %v8032_v34  ;;  %v2822_v8 = vpop.f32.mrb[123].mxu1 }
 0x1de   : > { %v1657_v41 = vmax.f32 %v1507_v38, 0.0  ;;  %v1510_v18 = vadd.f32 %v9537_v4, %v1509_v22  ;;  %v2970_v11 = vmax.f32 %v2820_v13, 0.0  ;;  %v2823_v26 = vadd.f32 %v9537_v4, %v2822_v8 }
 0x1df   : > { %v1660_v28 = vmax.f32 %v1518_v30, 0.0  ;;  %8142 = vmatmul.mubr.msk.bf16.gmra.mrb[228].mxu0 %vm792_vm2, %v8542_v44  ;;  %v9624_v23 = vmax.f32 %v1659_v33, %v2972_v40  ;;  %v2973_v31 = vmax.f32 %v2831_v42, 0.0  ;;  %8274 = vmatmul.mubr.msk.bf16.gmra.mrb[228].mxu1 %vm792_vm2, %v8543_v52  ;;  %v8546_v52 = vld [vmem:[%s8783_s13 + $0x1a8] sm:$0xff]  }
 0x1e0   : > { %v1658_v36 = vmax.f32 %v1510_v18, 0.0  ;;  %8145 = vmatprep.mubr.msk.bf16.mxu0 %vm792_vm2, %v8544_v58  ;;  %v9628_v50 = vmax.f32 %v1657_v41, %v2970_v11  ;;  %v2971_v38 = vmax.f32 %v2823_v26, 0.0  ;;  %8277 = vmatprep.mubr.msk.bf16.mxu1 %vm792_vm2, %v8545_v27  ;;  %v8547_v26 = vld [vmem:[%s8790_s16 + $0x1a8] sm:$0xff]   ;;  %v8548_v41 = vld [vmem:[%s8783_s13 + $0x1b0] sm:$0xff]  }
 0x1e1   : > { %10440 = vst [vmem:[#allocation81_spill] sm:$0xff] %v9624_v23  ;;  %v9631_v13 = vmax.f32 %v1660_v28, %v2973_v31 }
 0x1e2   : > { %10441 = vst [vmem:[#allocation82_spill] sm:$0xff] %v9628_v50  ;;  %v7903_v8 = vpop.f32.mrb[124].mxu0  ;;  %v9633_v30 = vmax.f32 %v1658_v36, %v2971_v38  ;;  %v8035_v44 = vpop.f32.mrb[124].mxu1  ;;  %v8549_v36 = vld [vmem:[%s8790_s16 + $0x1b0] sm:$0xff]  }
 0x1e3   : > { %10442 = vst [vmem:[#allocation83_spill] sm:$0xff] %v9631_v13  ;;  %v1531_v42 = vadd.f32 %v9537_v4, %v7903_v8  ;;  %v1522_v33 = vpop.f32.mrb[125].mxu0  ;;  %v2844_v34 = vadd.f32 %v9537_v4, %v8035_v44  ;;  %v2835_v22 = vpop.f32.mrb[125].mxu1 }
 0x1e4   : > { %10443 = vst [vmem:[#allocation84_spill] sm:$0xff] %v9633_v30  ;;  %v1523_v58 = vadd.f32 %v9537_v4, %v1522_v33  ;;  %v7904_v40 = vpop.f32.mrb[126].mxu0  ;;  %v2836_v28 = vadd.f32 %v9537_v4, %v2835_v22  ;;  %v8036_v11 = vpop.f32.mrb[126].mxu1 }
 0x1e5   : > { %v1663_v27 = vmax.f32 %v1531_v42, 0.0  ;;  %v1534_v18 = vadd.f32 %v9537_v4, %v7904_v40  ;;  %v1525_v31 = vpop.f32.mrb[127].mxu0  ;;  %v2976_v38 = vmax.f32 %v2844_v34, 0.0  ;;  %v2847_v30 = vadd.f32 %v9537_v4, %v8036_v11  ;;  %v2838_v13 = vpop.f32.mrb[127].mxu1 }
 0x1e6   : > { %v1661_v8 = vmax.f32 %v1523_v58, 0.0  ;;  %v1526_v44 = vadd.f32 %v9537_v4, %v1525_v31  ;;  %v2974_v33 = vmax.f32 %v2836_v28, 0.0  ;;  %v2839_v23 = vadd.f32 %v9537_v4, %v2838_v13 }
 0x1e7   : > { %v1664_v50 = vmax.f32 %v1534_v18, 0.0  ;;  %8146 = vmatmul.mubr.msk.bf16.gmra.mrb[232].mxu0 %vm792_vm2, %v8546_v52  ;;  %v9648_v42 = vmax.f32 %v1663_v27, %v2976_v38  ;;  %v2977_v22 = vmax.f32 %v2847_v30, 0.0  ;;  %8278 = vmatmul.mubr.msk.bf16.gmra.mrb[232].mxu1 %vm792_vm2, %v8547_v26  ;;  %v8550_v26 = vld [vmem:[%s8783_s13 + $0x1b8] sm:$0xff]  }
 0x1e8   : > { %v1662_v40 = vmax.f32 %v1526_v44, 0.0  ;;  %8149 = vmatprep.mubr.msk.bf16.mxu0 %vm792_vm2, %v8548_v41  ;;  %v9652_v34 = vmax.f32 %v1661_v8, %v2974_v33  ;;  %v2975_v58 = vmax.f32 %v2839_v23, 0.0  ;;  %8281 = vmatprep.mubr.msk.bf16.mxu1 %vm792_vm2, %v8549_v36  ;;  %v8551_v23 = vld [vmem:[%s8790_s16 + $0x1b8] sm:$0xff]   ;;  %v8552_v8 = vld [vmem:[%s8783_s13 + $0x1c0] sm:$0xff]  }
 0x1e9   : > { %10444 = vst [vmem:[#allocation85_spill] sm:$0xff] %v9648_v42  ;;  %v9655_v28 = vmax.f32 %v1664_v50, %v2977_v22 }
 0x1ea   : > { %10445 = vst [vmem:[#allocation86_spill] sm:$0xff] %v9652_v34  ;;  %v8043_v13 = vpop.f32.mrb[128].mxu0  ;;  %v9657_v18 = vmax.f32 %v1662_v40, %v2975_v58  ;;  %v8175_v52 = vpop.f32.mrb[128].mxu1  ;;  %v8553_v40 = vld [vmem:[%s8790_s16 + $0x1c0] sm:$0xff]  }
 0x1eb   : > { %10446 = vst [vmem:[#allocation87_spill] sm:$0xff] %v9655_v28  ;;  %v3789_v30 = vadd.f32 %v9537_v4, %v8043_v13  ;;  %v3780_v27 = vpop.f32.mrb[129].mxu0  ;;  %v5102_v11 = vadd.f32 %v9537_v4, %v8175_v52  ;;  %v5093_v31 = vpop.f32.mrb[129].mxu1 }
 0x1ec   : > { %10447 = vst [vmem:[#allocation88_spill] sm:$0xff] %v9657_v18  ;;  %v3781_v41 = vadd.f32 %v9537_v4, %v3780_v27  ;;  %v8044_v38 = vpop.f32.mrb[130].mxu0  ;;  %v5094_v50 = vadd.f32 %v9537_v4, %v5093_v31  ;;  %v8176_v33 = vpop.f32.mrb[130].mxu1 }
 0x1ed   : > { %v4293_v36 = vmax.f32 %v3789_v30, 0.0  ;;  %v3792_v44 = vadd.f32 %v9537_v4, %v8044_v38  ;;  %v3783_v22 = vpop.f32.mrb[131].mxu0  ;;  %v5606_v58 = vmax.f32 %v5102_v11, 0.0  ;;  %v5105_v18 = vadd.f32 %v9537_v4, %v8176_v33  ;;  %v5096_v28 = vpop.f32.mrb[131].mxu1 }
 0x1ee   : > { %v4291_v13 = vmax.f32 %v3781_v41, 0.0  ;;  %v3784_v52 = vadd.f32 %v9537_v4, %v3783_v22  ;;  %v5604_v27 = vmax.f32 %v5094_v50, 0.0  ;;  %v5097_v42 = vadd.f32 %v9537_v4, %v5096_v28 }
 0x1ef   : > { %v4294_v34 = vmax.f32 %v3792_v44, 0.0  ;;  %8150 = vmatmul.mubr.msk.bf16.gmra.mrb[236].mxu0 %vm792_vm2, %v8550_v26  ;;  %v5734_v30 = vmax.f32 %v4293_v36, %v5606_v58  ;;  %v5607_v31 = vmax.f32 %v5105_v18, 0.0  ;;  %8282 = vmatmul.mubr.msk.bf16.gmra.mrb[236].mxu1 %vm792_vm2, %v8551_v23 }
 0x1f0   : > { %v4292_v38 = vmax.f32 %v3784_v52, 0.0  ;;  %8153 = vmatprep.mubr.msk.bf16.mxu0 %vm792_vm2, %v8552_v8  ;;  %v5732_v11 = vmax.f32 %v4291_v13, %v5604_v27  ;;  %v5605_v41 = vmax.f32 %v5097_v42, 0.0  ;;  %8285 = vmatprep.mubr.msk.bf16.mxu1 %vm792_vm2, %v8553_v40  ;;  %v8554_v8 = vld [vmem:[%s8783_s13 + $0x1c8] sm:$0xff]  }
 0x1f1   : > { %v5862_v33 = vmax.f32 %v8894_v14, %v5734_v30  ;;  %v5735_v50 = vmax.f32 %v4294_v34, %v5607_v31  ;;  %v8555_v13 = vld [vmem:[%s8790_s16 + $0x1c8] sm:$0xff]  }
 0x1f2   : > { %v8047_v44 = vpop.f32.mrb[132].mxu0  ;;  %v5860_v28 = vmax.f32 %v8898_v17, %v5732_v11  ;;  %v5733_v18 = vmax.f32 %v4292_v38, %v5605_v41  ;;  %v8179_v42 = vpop.f32.mrb[132].mxu1  ;;  %v8556_v17 = vld [vmem:[%s8783_s13 + $0x1d0] sm:$0xff]  }
 0x1f3   : > { %v3805_v26 = vadd.f32 %v9537_v4, %v8047_v44  ;;  %v3796_v23 = vpop.f32.mrb[133].mxu0  ;;  %v7383_v14 = vpack.c.bf16 %v5862_v33, %v5862_v33  ;;  %v5863_v34 = vmax.f32 %v8902_v20, %v5735_v50  ;;  %v5118_v36 = vadd.f32 %v9537_v4, %v8179_v42  ;;  %v5109_v40 = vpop.f32.mrb[133].mxu1  ;;  %v8557_v41 = vld [vmem:[%s8790_s16 + $0x1d0] sm:$0xff]  }
 0x1f4   : > { %v3797_v22 = vadd.f32 %v9537_v4, %v3796_v23  ;;  %v8048_v58 = vpop.f32.mrb[134].mxu0  ;;  %v7381_v52 = vpack.c.bf16 %v5860_v28, %v5860_v28  ;;  %v5861_v27 = vmax.f32 %v8906_v24, %v5733_v18  ;;  %v5110_v31 = vadd.f32 %v9537_v4, %v5109_v40  ;;  %v8180_v38 = vpop.f32.mrb[134].mxu1 }
 0x1f5   : > { %v4297_v30 = vmax.f32 %v3805_v26, 0.0  ;;  %v3799_v11 = vpop.f32.mrb[135].mxu0  ;;  %6503 = vst.msk [vmem:[%s9680_s26 + $0x8] sm:$0xf] %vm6500_vm3, %v7383_v14  ;;  %v7384_v20 = vpack.c.bf16 %v5863_v34, %v5863_v34  ;;  %v5610_v33 = vmax.f32 %v5118_v36, 0.0  ;;  %v3808_v44 = vadd.f32 %v9537_v4, %v8048_v58  ;;  %v5112_v42 = vpop.f32.mrb[135].mxu1 }
 0x1f6   : > { %v4295_v50 = vmax.f32 %v3797_v22, 0.0  ;;  %6501 = vst.msk [vmem:[%s9680_s26] sm:$0xf] %vm6500_vm3, %v7381_v52  ;;  %v7382_v28 = vpack.c.bf16 %v5861_v27, %v5861_v27  ;;  %v5608_v24 = vmax.f32 %v5110_v31, 0.0  ;;  %v5121_v18 = vadd.f32 %v9537_v4, %v8180_v38  ;;  %v8558_v38 = vld [vmem:[%s8783_s13 + $0x1d8] sm:$0xff]  }
 0x1f7   : > { %v3800_v26 = vadd.f32 %v9537_v4, %v3799_v11  ;;  %8154 = vmatmul.mubr.msk.bf16.gmra.mrb[240].mxu0 %vm792_vm2, %v8554_v8  ;;  %6504 = vst.msk [vmem:[%s9680_s26 + $0xc] sm:$0xf] %vm6500_vm3, %v7384_v20  ;;  %v5738_v23 = vmax.f32 %v4297_v30, %v5610_v33  ;;  %v4298_v14 = vmax.f32 %v3808_v44, 0.0  ;;  %v5113_v34 = vadd.f32 %v9537_v4, %v5112_v42  ;;  %v8559_v44 = vld [vmem:[%s8790_s16 + $0x1d8] sm:$0xff]   ;;  %v8560_v42 = vld [vmem:[%s8783_s13 + $0x1e0] sm:$0xff]  }
 0x1f8   : > { %8286 = vmatmul.mubr.msk.bf16.gmra.mrb[240].mxu1 %vm792_vm2, %v8555_v13  ;;  %8157 = vmatprep.mubr.msk.bf16.mxu0 %vm792_vm2, %v8556_v17  ;;  %6502 = vst.msk [vmem:[%s9680_s26 + $0x4] sm:$0xf] %vm6500_vm3, %v7382_v28  ;;  %v5736_v36 = vmax.f32 %v4295_v50, %v5608_v24  ;;  %v5611_v22 = vmax.f32 %v5121_v18, 0.0 }
 0x1f9   : > { %v4296_v40 = vmax.f32 %v3800_v26, 0.0  ;;  %8289 = vmatprep.mubr.msk.bf16.mxu1 %vm792_vm2, %v8557_v41  ;;  %v5866_v8 = vmax.f32 %v8918_v46, %v5738_v23  ;;  %v5609_v58 = vmax.f32 %v5113_v34, 0.0 }
 0x1fa   : > { %v8051_v52 = vpop.f32.mrb[136].mxu0  ;;  %v5864_v27 = vmax.f32 %v8922_v49, %v5736_v36  ;;  %v5739_v30 = vmax.f32 %v4298_v14, %v5611_v22  ;;  %v8183_v31 = vpop.f32.mrb[136].mxu1  ;;  %v8561_v14 = vld [vmem:[%s8790_s16 + $0x1e0] sm:$0xff]  }
 0x1fb   : > { %v3821_v13 = vadd.f32 %v9537_v4, %v8051_v52  ;;  %v3812_v17 = vpop.f32.mrb[137].mxu0  ;;  %v7387_v11 = vpack.c.bf16 %v5866_v8, %v5866_v8  ;;  %v5737_v20 = vmax.f32 %v4296_v40, %v5609_v58  ;;  %v5134_v41 = vadd.f32 %v9537_v4, %v8183_v31  ;;  %v5125_v46 = vpop.f32.mrb[137].mxu1 }
 0x1fc   : > { %v3813_v33 = vadd.f32 %v9537_v4, %v3812_v17  ;;  %v8052_v50 = vpop.f32.mrb[138].mxu0  ;;  %v7385_v49 = vpack.c.bf16 %v5864_v27, %v5864_v27  ;;  %v5867_v28 = vmax.f32 %v8926_v53, %v5739_v30  ;;  %v5126_v18 = vadd.f32 %v9537_v4, %v5125_v46  ;;  %v8184_v26 = vpop.f32.mrb[138].mxu1 }
 0x1fd   : > { %v4301_v24 = vmax.f32 %v3821_v13, 0.0  ;;  %v3815_v23 = vpop.f32.mrb[139].mxu0  ;;  %6507 = vst.msk [vmem:[%s9680_s26 + $0x18] sm:$0xf] %vm6500_vm3, %v7387_v11  ;;  %v5865_v34 = vmax.f32 %v8930_v57, %v5737_v20  ;;  %v5614_v36 = vmax.f32 %v5134_v41, 0.0  ;;  %v3824_v40 = vadd.f32 %v9537_v4, %v8052_v50  ;;  %v5128_v8 = vpop.f32.mrb[139].mxu1 }
 0x1fe   : > { %v4299_v22 = vmax.f32 %v3813_v33, 0.0  ;;  %6505 = vst.msk [vmem:[%s9680_s26 + $0x10] sm:$0xf] %vm6500_vm3, %v7385_v49  ;;  %v7388_v58 = vpack.c.bf16 %v5867_v28, %v5867_v28  ;;  %v5612_v53 = vmax.f32 %v5126_v18, 0.0  ;;  %v5137_v52 = vadd.f32 %v9537_v4, %v8184_v26  ;;  %v8562_v28 = vld [vmem:[%s8783_s13 + $0x1e8] sm:$0xff]  }
 0x1ff   : > { %v3816_v27 = vadd.f32 %v9537_v4, %v3815_v23  ;;  %8158 = vmatmul.mubr.msk.bf16.gmra.mrb[244].mxu0 %vm792_vm2, %v8558_v38  ;;  %v7386_v30 = vpack.c.bf16 %v5865_v34, %v5865_v34  ;;  %v5742_v13 = vmax.f32 %v4301_v24, %v5614_v36  ;;  %v4302_v57 = vmax.f32 %v3824_v40, 0.0  ;;  %v8563_v34 = vld [vmem:[%s8790_s16 + $0x1e8] sm:$0xff]   ;;  %v8564_v36 = vld [vmem:[%s8783_s13 + $0x1f0] sm:$0xff]  }
 0x200   : > { %v5129_v31 = vadd.f32 %v9537_v4, %v5128_v8  ;;  %8290 = vmatmul.mubr.msk.bf16.gmra.mrb[244].mxu1 %vm792_vm2, %v8559_v44  ;;  %8161 = vmatprep.mubr.msk.bf16.mxu0 %vm792_vm2, %v8560_v42  ;;  %6508 = vst.msk [vmem:[%s9680_s26 + $0x1c] sm:$0xf] %vm6500_vm3, %v7388_v58  ;;  %v5740_v17 = vmax.f32 %v4299_v22, %v5612_v53  ;;  %v5615_v11 = vmax.f32 %v5137_v52, 0.0  ;;  %v8565_v52 = vld [vmem:[%s8790_s16 + $0x1f0] sm:$0xff]  }
 0x201   : > { %v4300_v20 = vmax.f32 %v3816_v27, 0.0  ;;  %8293 = vmatprep.mubr.msk.bf16.mxu1 %vm792_vm2, %v8561_v14  ;;  %6506 = vst.msk [vmem:[%s9680_s26 + $0x14] sm:$0xf] %vm6500_vm3, %v7386_v30  ;;  %v5870_v38 = vmax.f32 %v8942_v16, %v5742_v13 }
 0x202   : > { %v5613_v41 = vmax.f32 %v5129_v31, 0.0  ;;  %v8055_v33 = vpop.f32.mrb[140].mxu0  ;;  %v5868_v46 = vmax.f32 %v8946_v21, %v5740_v17  ;;  %v5743_v50 = vmax.f32 %v4302_v57, %v5615_v11  ;;  %v8187_v42 = vpop.f32.mrb[140].mxu1 }
 0x203   : > { %v3837_v44 = vadd.f32 %v9537_v4, %v8055_v33  ;;  %v3828_v49 = vpop.f32.mrb[141].mxu0  ;;  %v7391_v24 = vpack.c.bf16 %v5870_v38, %v5870_v38  ;;  %v5150_v26 = vadd.f32 %v9537_v4, %v8187_v42  ;;  %v5141_v16 = vpop.f32.mrb[141].mxu1 }
 0x204   : > { %v5741_v18 = vmax.f32 %v4300_v20, %v5613_v41  ;;  %v3829_v23 = vadd.f32 %v9537_v4, %v3828_v49  ;;  %v8056_v14 = vpop.f32.mrb[142].mxu0  ;;  %v7389_v21 = vpack.c.bf16 %v5868_v46, %v5868_v46  ;;  %v5871_v22 = vmax.f32 %v8950_v25, %v5743_v50  ;;  %v8188_v58 = vpop.f32.mrb[142].mxu1 }
 0x205   : > { %v4305_v40 = vmax.f32 %v3837_v44, 0.0  ;;  %v5142_v8 = vadd.f32 %v9537_v4, %v5141_v16  ;;  %v3831_v53 = vpop.f32.mrb[143].mxu0  ;;  %6511 = vst.msk [vmem:[%s9680_s26 + $0x28] sm:$0xf] %vm6500_vm3, %v7391_v24  ;;  %v5618_v30 = vmax.f32 %v5150_v26, 0.0  ;;  %v3840_v57 = vadd.f32 %v9537_v4, %v8056_v14  ;;  %v5144_v31 = vpop.f32.mrb[143].mxu1 }
 0x206   : > { %v5869_v27 = vmax.f32 %v8954_v29, %v5741_v18  ;;  %v4303_v13 = vmax.f32 %v3829_v23, 0.0  ;;  %6509 = vst.msk [vmem:[%s9680_s26 + $0x20] sm:$0xf] %vm6500_vm3, %v7389_v21  ;;  %v7392_v17 = vpack.c.bf16 %v5871_v22, %v5871_v22  ;;  %v5153_v11 = vadd.f32 %v9537_v4, %v8188_v58  ;;  %v8566_v14 = vld [vmem:[%s8783_s13 + $0x1f8] sm:$0xff]  }
 0x207   : > { %v5616_v25 = vmax.f32 %v5142_v8, 0.0  ;;  %v3832_v20 = vadd.f32 %v9537_v4, %v3831_v53  ;;  %8162 = vmatmul.mubr.msk.bf16.gmra.mrb[248].mxu0 %vm792_vm2, %v8562_v28  ;;  %v5746_v41 = vmax.f32 %v4305_v40, %v5618_v30  ;;  %v4306_v29 = vmax.f32 %v3840_v57, 0.0  ;;  %v8567_v8 = vld [vmem:[%s8790_s16 + $0x1f8] sm:$0xff]  }
 0x208   : > { %v7390_v38 = vpack.c.bf16 %v5869_v27, %v5869_v27  ;;  %v5145_v33 = vadd.f32 %v9537_v4, %v5144_v31  ;;  %8294 = vmatmul.mubr.msk.bf16.gmra.mrb[248].mxu1 %vm792_vm2, %v8563_v34  ;;  %8165 = vmatprep.mubr.msk.bf16.mxu0 %vm792_vm2, %v8564_v36  ;;  %6512 = vst.msk [vmem:[%s9680_s26 + $0x2c] sm:$0xf] %vm6500_vm3, %v7392_v17  ;;  %v5619_v50 = vmax.f32 %v5153_v11, 0.0 }
 0x209   : > { %v5744_v46 = vmax.f32 %v4303_v13, %v5616_v25  ;;  %v4304_v44 = vmax.f32 %v3832_v20, 0.0  ;;  %8297 = vmatprep.mubr.msk.bf16.mxu1 %vm792_vm2, %v8565_v52  ;;  %v5874_v42 = vmax.f32 %v8966_v55, %v5746_v41 }
 0x20a   : > { %6510 = vst.msk [vmem:[%s9680_s26 + $0x24] sm:$0xf] %vm6500_vm3, %v7390_v38  ;;  %v5617_v49 = vmax.f32 %v5145_v33, 0.0  ;;  %v8059_v28 = vpop.f32.mrb[144].mxu0  ;;  %v5747_v18 = vmax.f32 %v4306_v29, %v5619_v50  ;;  %v8191_v23 = vpop.f32.mrb[144].mxu1 }
 0x20b   : > { %v5872_v24 = vmax.f32 %v8970_v59, %v5744_v46  ;;  %v3853_v26 = vadd.f32 %v9537_v4, %v8059_v28  ;;  %v3844_v16 = vpop.f32.mrb[145].mxu0  ;;  %v7395_v34 = vpack.c.bf16 %v5874_v42, %v5874_v42  ;;  %v5166_v21 = vadd.f32 %v9537_v4, %v8191_v23  ;;  %v5157_v40 = vpop.f32.mrb[145].mxu1 }
 0x20c   : > { %v5745_v36 = vmax.f32 %v4304_v44, %v5617_v49  ;;  %v3845_v22 = vadd.f32 %v9537_v4, %v3844_v16  ;;  %v8060_v55 = vpop.f32.mrb[146].mxu0  ;;  %v5875_v59 = vmax.f32 %v8973_v61, %v5747_v18  ;;  %v5158_v52 = vadd.f32 %v9537_v4, %v5157_v40  ;;  %v8192_v27 = vpop.f32.mrb[146].mxu1 }
 0x20d   : > { %v7393_v58 = vpack.c.bf16 %v5872_v24, %v5872_v24  ;;  %v4309_v53 = vmax.f32 %v3853_v26, 0.0  ;;  %v3847_v30 = vpop.f32.mrb[147].mxu0  ;;  %6515 = vst.msk [vmem:[%s9680_s26 + $0x38] sm:$0xf] %vm6500_vm3, %v7395_v34  ;;  %v5622_v57 = vmax.f32 %v5166_v21, 0.0  ;;  %v3856_v17 = vadd.f32 %v9537_v4, %v8060_v55  ;;  %v5160_v25 = vpop.f32.mrb[147].mxu1 }
 0x20e   : > { %v5873_v13 = vmax.f32 %v8975_v63, %v5745_v36  ;;  %v4307_v31 = vmax.f32 %v3845_v22, 0.0  ;;  %v7396_v11 = vpack.c.bf16 %v5875_v59, %v5875_v59  ;;  %v5620_v61 = vmax.f32 %v5158_v52, 0.0 }
 0x20f   : > { %6513 = vst.msk [vmem:[%s9680_s26 + $0x30] sm:$0xf] %vm6500_vm3, %v7393_v58  ;;  %v5169_v20 = vadd.f32 %v9537_v4, %v8192_v27  ;;  %v3848_v38 = vadd.f32 %v9537_v4, %v3847_v30  ;;  %8166 = vmatmul.mubr.msk.bf16.gmra.mrb[252].mxu0 %vm792_vm2, %v8566_v14  ;;  %v5750_v29 = vmax.f32 %v4309_v53, %v5622_v57  ;;  %v4310_v63 = vmax.f32 %v3856_v17, 0.0 }
 0x210   : > { %v7394_v41 = vpack.c.bf16 %v5873_v13, %v5873_v13  ;;  %v5161_v33 = vadd.f32 %v9537_v4, %v5160_v25  ;;  %8298 = vmatmul.mubr.msk.bf16.gmra.mrb[252].mxu1 %vm792_vm2, %v8567_v8  ;;  %6516 = vst.msk [vmem:[%s9680_s26 + $0x3c] sm:$0xf] %vm6500_vm3, %v7396_v11  ;;  %v5748_v46 = vmax.f32 %v4307_v31, %v5620_v61 }
 0x211   : > { %v5623_v50 = vmax.f32 %v5169_v20, 0.0  ;;  %v4308_v44 = vmax.f32 %v3848_v38, 0.0  ;;  %v5878_v42 = vmax.f32 %v8990_v32, %v5750_v29 }
 0x212   : > { %6514 = vst.msk [vmem:[%s9680_s26 + $0x34] sm:$0xf] %vm6500_vm3, %v7394_v41  ;;  %v5621_v49 = vmax.f32 %v5161_v33, 0.0  ;;  %v8063_v28 = vpop.f32.mrb[148].mxu0  ;;  %v5876_v24 = vmax.f32 %v8994_v35, %v5748_v46  ;;  %v8195_v23 = vpop.f32.mrb[148].mxu1 }
 0x213   : > { %v5751_v18 = vmax.f32 %v4310_v63, %v5623_v50  ;;  %v3869_v26 = vadd.f32 %v9537_v4, %v8063_v28  ;;  %v3860_v16 = vpop.f32.mrb[149].mxu0  ;;  %v7399_v14 = vpack.c.bf16 %v5878_v42, %v5878_v42  ;;  %v5182_v36 = vadd.f32 %v9537_v4, %v8195_v23  ;;  %v5173_v22 = vpop.f32.mrb[149].mxu1 }
 0x214   : > { %v5749_v34 = vmax.f32 %v4308_v44, %v5621_v49  ;;  %v3861_v21 = vadd.f32 %v9537_v4, %v3860_v16  ;;  %v8064_v40 = vpop.f32.mrb[150].mxu0  ;;  %v7397_v32 = vpack.c.bf16 %v5876_v24, %v5876_v24  ;;  %v5174_v35 = vadd.f32 %v9537_v4, %v5173_v22  ;;  %v8196_v58 = vpop.f32.mrb[150].mxu1 }
 0x215   : > { %v5879_v55 = vmax.f32 %v8997_v37, %v5751_v18  ;;  %v4313_v8 = vmax.f32 %v3869_v26, 0.0  ;;  %v3863_v59 = vpop.f32.mrb[151].mxu0  ;;  %6519 = vst.msk [vmem:[%s9680_s26 + $0x48] sm:$0xf] %vm6500_vm3, %v7399_v14  ;;  %v5626_v52 = vmax.f32 %v5182_v36, 0.0  ;;  %v3872_v30 = vadd.f32 %v9537_v4, %v8064_v40  ;;  %v5176_v13 = vpop.f32.mrb[151].mxu1 }
 0x216   : > { %v5877_v53 = vmax.f32 %v8999_v39, %v5749_v34  ;;  %v4311_v27 = vmax.f32 %v3861_v21, 0.0  ;;  %6517 = vst.msk [vmem:[%s9680_s26 + $0x40] sm:$0xf] %vm6500_vm3, %v7397_v32  ;;  %v5624_v37 = vmax.f32 %v5174_v35, 0.0  ;;  %v5185_v31 = vadd.f32 %v9537_v4, %v8196_v58 }
 0x217   : > { %v7400_v57 = vpack.c.bf16 %v5879_v55, %v5879_v55  ;;  %v3864_v17 = vadd.f32 %v9537_v4, %v3863_v59  ;;  %v5754_v11 = vmax.f32 %v4313_v8, %v5626_v52  ;;  %v4314_v61 = vmax.f32 %v3872_v30, 0.0 }
 0x218   : > { %v7398_v25 = vpack.c.bf16 %v5877_v53, %v5877_v53  ;;  %v5177_v20 = vadd.f32 %v9537_v4, %v5176_v13  ;;  %v5752_v39 = vmax.f32 %v4311_v27, %v5624_v37  ;;  %v5627_v38 = vmax.f32 %v5185_v31, 0.0 }
 0x219   : > { %6520 = vst.msk [vmem:[%s9680_s26 + $0x4c] sm:$0xf] %vm6500_vm3, %v7400_v57  ;;  %v4312_v41 = vmax.f32 %v3864_v17, 0.0  ;;  %v5882_v29 = vmax.f32 %v9014_v9, %v5754_v11 }
 0x21a   : > { %6518 = vst.msk [vmem:[%s9680_s26 + $0x44] sm:$0xf] %vm6500_vm3, %v7398_v25  ;;  %v5625_v63 = vmax.f32 %v5177_v20, 0.0  ;;  %v8067_v33 = vpop.f32.mrb[152].mxu0  ;;  %v5880_v46 = vmax.f32 %v9018_v12, %v5752_v39  ;;  %v5755_v50 = vmax.f32 %v4314_v61, %v5627_v38  ;;  %v8199_v42 = vpop.f32.mrb[152].mxu1 }
 0x21b   : > { %v3885_v44 = vadd.f32 %v9537_v4, %v8067_v33  ;;  %v3876_v49 = vpop.f32.mrb[153].mxu0  ;;  %v7403_v28 = vpack.c.bf16 %v5882_v29, %v5882_v29  ;;  %v5198_v18 = vadd.f32 %v9537_v4, %v8199_v42  ;;  %v5189_v23 = vpop.f32.mrb[153].mxu1 }
 0x21c   : > { %v5753_v24 = vmax.f32 %v4312_v41, %v5625_v63  ;;  %v3877_v26 = vadd.f32 %v9537_v4, %v3876_v49  ;;  %v8068_v16 = vpop.f32.mrb[154].mxu0  ;;  %v7401_v9 = vpack.c.bf16 %v5880_v46, %v5880_v46  ;;  %v5883_v14 = vmax.f32 %v9021_v15, %v5755_v50  ;;  %v8200_v36 = vpop.f32.mrb[154].mxu1 }
 0x21d   : > { %v4317_v34 = vmax.f32 %v3885_v44, 0.0  ;;  %v5190_v12 = vadd.f32 %v9537_v4, %v5189_v23  ;;  %v3879_v21 = vpop.f32.mrb[155].mxu0  ;;  %6523 = vst.msk [vmem:[%s9680_s26 + $0x58] sm:$0xf] %vm6500_vm3, %v7403_v28  ;;  %v5630_v40 = vmax.f32 %v5198_v18, 0.0  ;;  %v3888_v55 = vadd.f32 %v9537_v4, %v8068_v16  ;;  %v5192_v8 = vpop.f32.mrb[155].mxu1 }
 0x21e   : > { %v5881_v22 = vmax.f32 %v9023_v19, %v5753_v24  ;;  %v4315_v32 = vmax.f32 %v3877_v26, 0.0  ;;  %6521 = vst.msk [vmem:[%s9680_s26 + $0x50] sm:$0xf] %vm6500_vm3, %v7401_v9  ;;  %v7404_v35 = vpack.c.bf16 %v5883_v14, %v5883_v14  ;;  %v5201_v58 = vadd.f32 %v9537_v4, %v8200_v36  ;;  %v9846_v14 = vld [vmem:[%s10359_s5] ss:$0 sm:$0xff] }
 0x21f   : > { %v5628_v15 = vmax.f32 %v5190_v12, 0.0  ;;  %v3880_v59 = vadd.f32 %v9537_v4, %v3879_v21  ;;  %v5758_v52 = vmax.f32 %v4317_v34, %v5630_v40  ;;  %v4318_v27 = vmax.f32 %v3888_v55, 0.0 }
 0x220   : > { %v7402_v53 = vpack.c.bf16 %v5881_v22, %v5881_v22  ;;  %v5193_v30 = vadd.f32 %v9537_v4, %v5192_v8  ;;  %6524 = vst.msk [vmem:[%s9680_s26 + $0x5c] sm:$0xf] %vm6500_vm3, %v7404_v35  ;;  %v5631_v13 = vmax.f32 %v5201_v58, 0.0 }
 0x221   : > { %v5756_v19 = vmax.f32 %v4315_v32, %v5628_v15  ;;  %v4316_v57 = vmax.f32 %v3880_v59, 0.0  ;;  %v5886_v37 = vmax.f32 %v9038_v60, %v5758_v52 }
 0x222   : > { %6522 = vst.msk [vmem:[%s9680_s26 + $0x54] sm:$0xf] %vm6500_vm3, %v7402_v53  ;;  %v5629_v31 = vmax.f32 %v5193_v30, 0.0  ;;  %v8071_v17 = vpop.f32.mrb[156].mxu0  ;;  %v5759_v11 = vmax.f32 %v4318_v27, %v5631_v13  ;;  %v8203_v20 = vpop.f32.mrb[156].mxu1 }
 0x223   : > { %v5884_v25 = vmax.f32 %v9042_v1, %v5756_v19  ;;  %v3901_v61 = vadd.f32 %v9537_v4, %v8071_v17  ;;  %v3892_v39 = vpop.f32.mrb[157].mxu0  ;;  %v7407_v38 = vpack.c.bf16 %v5886_v37, %v5886_v37  ;;  %v5214_v29 = vadd.f32 %v9537_v4, %v8203_v20  ;;  %v5205_v33 = vpop.f32.mrb[157].mxu1 }
 0x224   : > { %v5757_v41 = vmax.f32 %v4316_v57, %v5629_v31  ;;  %v3893_v63 = vadd.f32 %v9537_v4, %v3892_v39  ;;  %v8072_v46 = vpop.f32.mrb[158].mxu0  ;;  %v5887_v50 = vmax.f32 %v9045_v3, %v5759_v11  ;;  %v5206_v1 = vadd.f32 %v9537_v4, %v5205_v33  ;;  %v8204_v42 = vpop.f32.mrb[158].mxu1 }
 0x225   : > { %v7405_v60 = vpack.c.bf16 %v5884_v25, %v5884_v25  ;;  %v4321_v44 = vmax.f32 %v3901_v61, 0.0  ;;  %v3895_v49 = vpop.f32.mrb[159].mxu0  ;;  %6527 = vst.msk [vmem:[%s9680_s26 + $0x68] sm:$0xf] %vm6500_vm3, %v7407_v38  ;;  %v5634_v24 = vmax.f32 %v5214_v29, 0.0  ;;  %v3904_v26 = vadd.f32 %v9537_v4, %v8072_v46  ;;  %v5208_v23 = vpop.f32.mrb[159].mxu1 }
 0x226   : > { %v5885_v28 = vmax.f32 %v9047_v5, %v5757_v41  ;;  %v4319_v18 = vmax.f32 %v3893_v63, 0.0  ;;  %v7408_v16 = vpack.c.bf16 %v5887_v50, %v5887_v50  ;;  %v5632_v3 = vmax.f32 %v5206_v1, 0.0 }
 0x227   : > { %6525 = vst.msk [vmem:[%s9680_s26 + $0x60] sm:$0xf] %vm6500_vm3, %v7405_v60  ;;  %v5217_v9 = vadd.f32 %v9537_v4, %v8204_v42  ;;  %v3896_v34 = vadd.f32 %v9846_v14, %v3895_v49  ;;  %v5762_v12 = vmax.f32 %v4321_v44, %v5634_v24  ;;  %v4322_v36 = vmax.f32 %v3904_v26, 0.0 }
 0x228   : > { %v7406_v5 = vpack.c.bf16 %v5885_v28, %v5885_v28  ;;  %v5209_v21 = vadd.f32 %v9846_v14, %v5208_v23  ;;  %6528 = vst.msk [vmem:[%s9680_s26 + $0x6c] sm:$0xf] %vm6500_vm3, %v7408_v16  ;;  %v5760_v22 = vmax.f32 %v4319_v18, %v5632_v3 }
 0x229   : > { %v5635_v40 = vmax.f32 %v5217_v9, 0.0  ;;  %v4320_v32 = vmax.f32 %v3896_v34, 0.0  ;;  %v5890_v4 = vmax.f32 %v9062_v47, %v5762_v12 }
 0x22a   : > { %6526 = vst.msk [vmem:[%s9680_s26 + $0x64] sm:$0xf] %vm6500_vm3, %v7406_v5  ;;  %v5633_v55 = vmax.f32 %v5209_v21, 0.0  ;;  %v8075_v8 = vpop.f32.mrb[160].mxu0  ;;  %v5888_v35 = vmax.f32 %v9066_v51, %v5760_v22  ;;  %v8207_v59 = vpop.f32.mrb[160].mxu1 }
 0x22b   : > { %v5763_v15 = vmax.f32 %v4322_v36, %v5635_v40  ;;  %v3917_v58 = vadd.f32 %v9846_v14, %v8075_v8  ;;  %v3908_v53 = vpop.f32.mrb[161].mxu0  ;;  %v7411_v52 = vpack.c.bf16 %v5890_v4, %v5890_v4  ;;  %v5230_v30 = vadd.f32 %v9846_v14, %v8207_v59  ;;  %v5221_v13 = vpop.f32.mrb[161].mxu1 }
 0x22c   : > { %v5761_v27 = vmax.f32 %v4320_v32, %v5633_v55  ;;  %v3909_v19 = vadd.f32 %v9846_v14, %v3908_v53  ;;  %v8076_v57 = vpop.f32.mrb[162].mxu0  ;;  %v7409_v47 = vpack.c.bf16 %v5888_v35, %v5888_v35  ;;  %v5222_v51 = vadd.f32 %v9846_v14, %v5221_v13  ;;  %v8208_v17 = vpop.f32.mrb[162].mxu1 }
 0x22d   : > { %v5891_v37 = vmax.f32 %v9069_v56, %v5763_v15  ;;  %v4325_v31 = vmax.f32 %v3917_v58, 0.0  ;;  %v3911_v25 = vpop.f32.mrb[163].mxu0  ;;  %6531 = vst.msk [vmem:[%s9680_s26 + $0x78] sm:$0xf] %vm6500_vm3, %v7411_v52  ;;  %v5638_v61 = vmax.f32 %v5230_v30, 0.0  ;;  %v3920_v39 = vadd.f32 %v9846_v14, %v8076_v57  ;;  %v5224_v38 = vpop.f32.mrb[163].mxu1 }
 0x22e   : > { %v5889_v11 = vmax.f32 %v9071_v62, %v5761_v27  ;;  %v4323_v20 = vmax.f32 %v3909_v19, 0.0  ;;  %6529 = vst.msk [vmem:[%s9680_s26 + $0x70] sm:$0xf] %vm6500_vm3, %v7409_v47  ;;  %v5636_v56 = vmax.f32 %v5222_v51, 0.0  ;;  %v5233_v29 = vadd.f32 %v9846_v14, %v8208_v17 }
 0x22f   : > { %v7412_v41 = vpack.c.bf16 %v5891_v37, %v5891_v37  ;;  %v3912_v63 = vadd.f32 %v9846_v14, %v3911_v25  ;;  %v5766_v46 = vmax.f32 %v4325_v31, %v5638_v61  ;;  %v4326_v60 = vmax.f32 %v3920_v39, 0.0 }
 0x230   : > { %v7410_v33 = vpack.c.bf16 %v5889_v11, %v5889_v11  ;;  %v5225_v50 = vadd.f32 %v9846_v14, %v5224_v38  ;;  %v5764_v62 = vmax.f32 %v4323_v20, %v5636_v56  ;;  %v5639_v44 = vmax.f32 %v5233_v29, 0.0 }
 0x231   : > { %6532 = vst.msk [vmem:[%s9680_s26 + $0x7c] sm:$0xf] %vm6500_vm3, %v7412_v41  ;;  %v4324_v1 = vmax.f32 %v3912_v63, 0.0  ;;  %v5894_v42 = vmax.f32 %v9086_v43, %v5766_v46 }
 0x232   : > { %6530 = vst.msk [vmem:[%s9680_s26 + $0x74] sm:$0xf] %vm6500_vm3, %v7410_v33  ;;  %v5637_v49 = vmax.f32 %v5225_v50, 0.0  ;;  %v8079_v28 = vpop.f32.mrb[164].mxu0  ;;  %v5892_v24 = vmax.f32 %v9090_v48, %v5764_v62  ;;  %v5767_v18 = vmax.f32 %v4326_v60, %v5639_v44  ;;  %v8211_v23 = vpop.f32.mrb[164].mxu1 }
 0x233   : > { %v3933_v26 = vadd.f32 %v9846_v14, %v8079_v28  ;;  %v3924_v16 = vpop.f32.mrb[165].mxu0  ;;  %v7415_v3 = vpack.c.bf16 %v5894_v42, %v5894_v42  ;;  %v5246_v34 = vadd.f32 %v9846_v14, %v8211_v23  ;;  %v5237_v12 = vpop.f32.mrb[165].mxu1 }
 0x234   : > { %v5765_v9 = vmax.f32 %v4324_v1, %v5637_v49  ;;  %v3925_v5 = vadd.f32 %v9846_v14, %v3924_v16  ;;  %v8080_v36 = vpop.f32.mrb[166].mxu0  ;;  %v7413_v43 = vpack.c.bf16 %v5892_v24, %v5892_v24  ;;  %v5895_v21 = vmax.f32 %v9093_v54, %v5767_v18  ;;  %v8212_v40 = vpop.f32.mrb[166].mxu1 }
 0x235   : > { %v4329_v22 = vmax.f32 %v3933_v26, 0.0  ;;  %v5238_v48 = vadd.f32 %v9846_v14, %v5237_v12  ;;  %v3927_v32 = vpop.f32.mrb[167].mxu0  ;;  %6535 = vst.msk [vmem:[%s9680_s26 + $0x88] sm:$0xf] %vm6500_vm3, %v7415_v3  ;;  %v5642_v55 = vmax.f32 %v5246_v34, 0.0  ;;  %v3936_v35 = vadd.f32 %v9846_v14, %v8080_v36  ;;  %v5240_v15 = vpop.f32.mrb[167].mxu1 }
 0x236   : > { %v5893_v4 = vmax.f32 %v9095_v0, %v5765_v9  ;;  %v4327_v8 = vmax.f32 %v3925_v5, 0.0  ;;  %6533 = vst.msk [vmem:[%s9680_s26 + $0x80] sm:$0xf] %vm6500_vm3, %v7413_v43  ;;  %v7416_v58 = vpack.c.bf16 %v5895_v21, %v5895_v21  ;;  %v5249_v59 = vadd.f32 %v9846_v14, %v8212_v40  ;;  %v10448_v36 = vld [vmem:[#allocation2_spill] sm:$0xff] }
 0x237   : > { %v5640_v54 = vmax.f32 %v5238_v48, 0.0  ;;  %v3928_v53 = vadd.f32 %v9846_v14, %v3927_v32  ;;  %v5770_v27 = vmax.f32 %v4329_v22, %v5642_v55  ;;  %v4330_v30 = vmax.f32 %v3936_v35, 0.0 }
 0x238   : > { %v7414_v52 = vpack.c.bf16 %v5893_v4, %v5893_v4  ;;  %v5241_v19 = vadd.f32 %v9846_v14, %v5240_v15  ;;  %6536 = vst.msk [vmem:[%s9680_s26 + $0x8c] sm:$0xf] %vm6500_vm3, %v7416_v58  ;;  %v5643_v13 = vmax.f32 %v5249_v59, 0.0  ;;  %v10449_v58 = vld [vmem:[#allocation3_spill] sm:$0xff] }
 0x239   : > { %v5768_v0 = vmax.f32 %v4327_v8, %v5640_v54  ;;  %v4328_v57 = vmax.f32 %v3928_v53, 0.0  ;;  %v5898_v47 = vmax.f32 %v9110_v45, %v5770_v27 }
 0x23a   : > { %6534 = vst.msk [vmem:[%s9680_s26 + $0x84] sm:$0xf] %vm6500_vm3, %v7414_v52  ;;  %v5641_v37 = vmax.f32 %v5241_v19, 0.0  ;;  %v8083_v31 = vpop.f32.mrb[168].mxu0  ;;  %v5771_v17 = vmax.f32 %v4330_v30, %v5643_v13  ;;  %v8215_v11 = vpop.f32.mrb[168].mxu1  ;;  %v10450_v30 = vld [vmem:[#allocation4_spill] sm:$0xff] }
 0x23b   : > { %v5896_v51 = vmax.f32 %v9114_v2, %v5768_v0  ;;  %v3949_v25 = vadd.f32 %v9846_v14, %v8083_v31  ;;  %v3940_v61 = vpop.f32.mrb[169].mxu0  ;;  %v7419_v20 = vpack.c.bf16 %v5898_v47, %v5898_v47  ;;  %v5262_v38 = vadd.f32 %v9846_v14, %v8215_v11  ;;  %v5253_v56 = vpop.f32.mrb[169].mxu1 }
 0x23c   : > { %v5769_v39 = vmax.f32 %v4328_v57, %v5641_v37  ;;  %v3941_v41 = vadd.f32 %v9846_v14, %v3940_v61  ;;  %v8084_v29 = vpop.f32.mrb[170].mxu0  ;;  %v5899_v63 = vmax.f32 %v9117_v6, %v5771_v17  ;;  %v5254_v2 = vadd.f32 %v9846_v14, %v5253_v56  ;;  %v8216_v46 = vpop.f32.mrb[170].mxu1  ;;  %v10451_v56 = vld [vmem:[#allocation5_spill] sm:$0xff] }
 0x23d   : > { %v7417_v45 = vpack.c.bf16 %v5896_v51, %v5896_v51  ;;  %v4333_v33 = vmax.f32 %v3949_v25, 0.0  ;;  %v3943_v60 = vpop.f32.mrb[171].mxu0  ;;  %6539 = vst.msk [vmem:[%s9680_s26 + $0x98] sm:$0xf] %vm6500_vm3, %v7419_v20  ;;  %v5646_v62 = vmax.f32 %v5262_v38, 0.0  ;;  %v3952_v1 = vadd.f32 %v9846_v14, %v8084_v29  ;;  %v5256_v42 = vpop.f32.mrb[171].mxu1 }
 0x23e   : > { %v5897_v50 = vmax.f32 %v9119_v10, %v5769_v39  ;;  %v4331_v44 = vmax.f32 %v3941_v41, 0.0  ;;  %v7420_v49 = vpack.c.bf16 %v5899_v63, %v5899_v63  ;;  %v5644_v6 = vmax.f32 %v5254_v2, 0.0 }
 0x23f   : > { %6537 = vst.msk [vmem:[%s9680_s26 + $0x90] sm:$0xf] %vm6500_vm3, %v7417_v45  ;;  %v5265_v28 = vadd.f32 %v9846_v14, %v8216_v46  ;;  %v3944_v24 = vadd.f32 %v9846_v14, %v3943_v60  ;;  %v5774_v26 = vmax.f32 %v4333_v33, %v5646_v62  ;;  %v4334_v23 = vmax.f32 %v3952_v1, 0.0  ;;  %v10452_v33 = vld [vmem:[#allocation6_spill] sm:$0xff] }
 0x240   : > { %v7418_v18 = vpack.c.bf16 %v5897_v50, %v5897_v50  ;;  %v5257_v16 = vadd.f32 %v9846_v14, %v5256_v42  ;;  %6540 = vst.msk [vmem:[%s9680_s26 + $0x9c] sm:$0xf] %vm6500_vm3, %v7420_v49  ;;  %v5772_v10 = vmax.f32 %v4331_v44, %v5644_v6 }
 0x241   : > { %v5647_v3 = vmax.f32 %v5265_v28, 0.0  ;;  %v4332_v9 = vmax.f32 %v3944_v24, 0.0  ;;  %v5902_v34 = vmax.f32 %v9134_v7, %v5774_v26 }
 0x242   : > { %6538 = vst.msk [vmem:[%s9680_s26 + $0x94] sm:$0xf] %vm6500_vm3, %v7418_v18  ;;  %v5645_v5 = vmax.f32 %v5257_v16, 0.0  ;;  %v8087_v12 = vpop.f32.mrb[172].mxu0  ;;  %v5900_v43 = vmax.f32 %v10448_v36, %v5772_v10  ;;  %v8219_v48 = vpop.f32.mrb[172].mxu1  ;;  %v10453_v18 = vld [vmem:[#allocation7_spill] sm:$0xff] }
 0x243   : > { %v5775_v21 = vmax.f32 %v4334_v23, %v5647_v3  ;;  %v3965_v22 = vadd.f32 %v9846_v14, %v8087_v12  ;;  %v3956_v40 = vpop.f32.mrb[173].mxu0  ;;  %v7423_v32 = vpack.c.bf16 %v5902_v34, %v5902_v34  ;;  %v5278_v55 = vadd.f32 %v9846_v14, %v8219_v48  ;;  %v5269_v35 = vpop.f32.mrb[173].mxu1 }
 0x244   : > { %v5773_v4 = vmax.f32 %v4332_v9, %v5645_v5  ;;  %v3957_v8 = vadd.f32 %v9846_v14, %v3956_v40  ;;  %v8088_v15 = vpop.f32.mrb[174].mxu0  ;;  %v7421_v7 = vpack.c.bf16 %v5900_v43, %v5900_v43  ;;  %v5270_v53 = vadd.f32 %v9846_v14, %v5269_v35  ;;  %v8220_v52 = vpop.f32.mrb[174].mxu1  ;;  %v10454_v9 = vld [vmem:[#allocation8_spill] sm:$0xff] }
 0x245   : > { %v5903_v54 = vmax.f32 %v10449_v58, %v5775_v21  ;;  %v4337_v59 = vmax.f32 %v3965_v22, 0.0  ;;  %v3959_v27 = vpop.f32.mrb[175].mxu0  ;;  %6543 = vst.msk [vmem:[%s9680_s26 + $0xa8] sm:$0xf] %vm6500_vm3, %v7423_v32  ;;  %v5650_v0 = vmax.f32 %v5278_v55, 0.0  ;;  %v3968_v57 = vadd.f32 %v9846_v14, %v8088_v15  ;;  %v5272_v47 = vpop.f32.mrb[175].mxu1 }
 0x246   : > { %v5901_v19 = vmax.f32 %v10450_v30, %v5773_v4  ;;  %v4335_v13 = vmax.f32 %v3957_v8, 0.0  ;;  %6541 = vst.msk [vmem:[%s9680_s26 + $0xa0] sm:$0xf] %vm6500_vm3, %v7421_v7  ;;  %v5648_v31 = vmax.f32 %v5270_v53, 0.0  ;;  %v5281_v51 = vadd.f32 %v9846_v14, %v8220_v52  ;;  %v10455_v58 = vld [vmem:[#allocation9_spill] sm:$0xff]  ;;  %v10456_v52 = vld [vmem:[#allocation10_spill] sm:$0xff] }
 0x247   : > { %v7424_v37 = vpack.c.bf16 %v5903_v54, %v5903_v54  ;;  %v3960_v17 = vadd.f32 %v9846_v14, %v3959_v27  ;;  %v5778_v11 = vmax.f32 %v4337_v59, %v5650_v0  ;;  %v4338_v61 = vmax.f32 %v3968_v57, 0.0 }
 0x248   : > { %v7422_v25 = vpack.c.bf16 %v5901_v19, %v5901_v19  ;;  %v5273_v20 = vadd.f32 %v9846_v14, %v5272_v47  ;;  %v5776_v39 = vmax.f32 %v4335_v13, %v5648_v31  ;;  %v5651_v38 = vmax.f32 %v5281_v51, 0.0 }
 0x249   : > { %6544 = vst.msk [vmem:[%s9680_s26 + $0xac] sm:$0xf] %vm6500_vm3, %v7424_v37  ;;  %v4336_v41 = vmax.f32 %v3960_v17, 0.0  ;;  %v5906_v29 = vmax.f32 %v10451_v56, %v5778_v11  ;;  %v10457_v11 = vld [vmem:[#allocation11_spill] sm:$0xff]  ;;  %v10458_v56 = vld [vmem:[#allocation12_spill] sm:$0xff] }
 0x24a   : > { %6542 = vst.msk [vmem:[%s9680_s26 + $0xa4] sm:$0xf] %vm6500_vm3, %v7422_v25  ;;  %v5649_v45 = vmax.f32 %v5273_v20, 0.0  ;;  %v8091_v63 = vpop.f32.mrb[176].mxu0  ;;  %v5904_v2 = vmax.f32 %v10452_v33, %v5776_v39  ;;  %v5779_v46 = vmax.f32 %v4338_v61, %v5651_v38  ;;  %v8223_v50 = vpop.f32.mrb[176].mxu1 }
 0x24b   : > { %v3981_v60 = vadd.f32 %v9846_v14, %v8091_v63  ;;  %v3972_v62 = vpop.f32.mrb[177].mxu0  ;;  %v7427_v44 = vpack.c.bf16 %v5906_v29, %v5906_v29  ;;  %v5294_v42 = vadd.f32 %v9846_v14, %v8223_v50  ;;  %v5285_v6 = vpop.f32.mrb[177].mxu1 }
 0x24c   : > { %v5777_v1 = vmax.f32 %v4336_v41, %v5649_v45  ;;  %v3973_v49 = vadd.f32 %v9846_v14, %v3972_v62  ;;  %v8092_v28 = vpop.f32.mrb[178].mxu0  ;;  %v7425_v24 = vpack.c.bf16 %v5904_v2, %v5904_v2  ;;  %v5907_v26 = vmax.f32 %v10453_v18, %v5779_v46  ;;  %v8224_v10 = vpop.f32.mrb[178].mxu1  ;;  %v10459_v18 = vld [vmem:[#allocation13_spill] sm:$0xff] }
 0x24d   : > { %v4341_v23 = vmax.f32 %v3981_v60, 0.0  ;;  %v5286_v16 = vadd.f32 %v9846_v14, %v5285_v6  ;;  %v3975_v3 = vpop.f32.mrb[179].mxu0  ;;  %6547 = vst.msk [vmem:[%s9680_s26 + $0xb8] sm:$0xf] %vm6500_vm3, %v7427_v44  ;;  %v5654_v5 = vmax.f32 %v5294_v42, 0.0  ;;  %v3984_v36 = vadd.f32 %v9846_v14, %v8092_v28  ;;  %v5288_v43 = vpop.f32.mrb[179].mxu1 }
 0x24e   : > { %v5905_v34 = vmax.f32 %v10454_v9, %v5777_v1  ;;  %v4339_v12 = vmax.f32 %v3973_v49, 0.0  ;;  %6545 = vst.msk [vmem:[%s9680_s26 + $0xb0] sm:$0xf] %vm6500_vm3, %v7425_v24  ;;  %v7428_v21 = vpack.c.bf16 %v5907_v26, %v5907_v26  ;;  %v5297_v48 = vadd.f32 %v9846_v14, %v8224_v10  ;;  %v10460_v10 = vld [vmem:[#allocation14_spill] sm:$0xff] }
 0x24f   : > { %v5652_v22 = vmax.f32 %v5286_v16, 0.0  ;;  %v3976_v40 = vadd.f32 %v9846_v14, %v3975_v3  ;;  %v5782_v4 = vmax.f32 %v4341_v23, %v5654_v5  ;;  %v4342_v55 = vmax.f32 %v3984_v36, 0.0 }
 0x250   : > { %v7426_v32 = vpack.c.bf16 %v5905_v34, %v5905_v34  ;;  %v5289_v8 = vadd.f32 %v9846_v14, %v5288_v43  ;;  %6548 = vst.msk [vmem:[%s9680_s26 + $0xbc] sm:$0xf] %vm6500_vm3, %v7428_v21  ;;  %v5655_v15 = vmax.f32 %v5297_v48, 0.0 }
 0x251   : > { %v5780_v35 = vmax.f32 %v4339_v12, %v5652_v22  ;;  %v4340_v7 = vmax.f32 %v3976_v40, 0.0  ;;  %v5910_v54 = vmax.f32 %v10455_v58, %v5782_v4  ;;  %v10461_v4 = vld [vmem:[#allocation15_spill] sm:$0xff]  ;;  %v10462_v58 = vld [vmem:[#allocation16_spill] sm:$0xff] }
 0x252   : > { %6546 = vst.msk [vmem:[%s9680_s26 + $0xb4] sm:$0xf] %vm6500_vm3, %v7426_v32  ;;  %v5653_v59 = vmax.f32 %v5289_v8, 0.0  ;;  %v8095_v53 = vpop.f32.mrb[180].mxu0  ;;  %v5783_v30 = vmax.f32 %v4342_v55, %v5655_v15  ;;  %v8227_v0 = vpop.f32.mrb[180].mxu1 }
 0x253   : > { %v5908_v27 = vmax.f32 %v10456_v52, %v5780_v35  ;;  %v3997_v19 = vadd.f32 %v9846_v14, %v8095_v53  ;;  %v3988_v13 = vpop.f32.mrb[181].mxu0  ;;  %v7431_v57 = vpack.c.bf16 %v5910_v54, %v5910_v54  ;;  %v5310_v37 = vadd.f32 %v9846_v14, %v8227_v0  ;;  %v5301_v51 = vpop.f32.mrb[181].mxu1 }
 0x254   : > { %v5781_v47 = vmax.f32 %v4340_v7, %v5653_v59  ;;  %v3989_v31 = vadd.f32 %v9846_v14, %v3988_v13  ;;  %v8096_v17 = vpop.f32.mrb[182].mxu0  ;;  %v5911_v61 = vmax.f32 %v10457_v11, %v5783_v30  ;;  %v5302_v39 = vadd.f32 %v9846_v14, %v5301_v51  ;;  %v8228_v38 = vpop.f32.mrb[182].mxu1  ;;  %v10463_v11 = vld [vmem:[#allocation17_spill] sm:$0xff] }
 0x255   : > { %v7429_v25 = vpack.c.bf16 %v5908_v27, %v5908_v27  ;;  %v4345_v20 = vmax.f32 %v3997_v19, 0.0  ;;  %v3991_v41 = vpop.f32.mrb[183].mxu0  ;;  %6551 = vst.msk [vmem:[%s9680_s26 + $0xc8] sm:$0xf] %vm6500_vm3, %v7431_v57  ;;  %v5658_v45 = vmax.f32 %v5310_v37, 0.0  ;;  %v4000_v33 = vadd.f32 %v9846_v14, %v8096_v17  ;;  %v5304_v2 = vpop.f32.mrb[183].mxu1 }
 0x256   : > { %v5909_v29 = vmax.f32 %v10458_v56, %v5781_v47  ;;  %v4343_v63 = vmax.f32 %v3989_v31, 0.0  ;;  %v7432_v46 = vpack.c.bf16 %v5911_v61, %v5911_v61  ;;  %v5656_v60 = vmax.f32 %v5302_v39, 0.0 }
 0x257   : > { %6549 = vst.msk [vmem:[%s9680_s26 + $0xc0] sm:$0xf] %vm6500_vm3, %v7429_v25  ;;  %v5313_v50 = vadd.f32 %v9846_v14, %v8228_v38  ;;  %v3992_v62 = vadd.f32 %v9846_v14, %v3991_v41  ;;  %v5786_v1 = vmax.f32 %v4345_v20, %v5658_v45  ;;  %v4346_v42 = vmax.f32 %v4000_v33, 0.0  ;;  %v10464_v38 = vld [vmem:[#allocation18_spill] sm:$0xff] }
 0x258   : > { %v7430_v44 = vpack.c.bf16 %v5909_v29, %v5909_v29  ;;  %v5305_v49 = vadd.f32 %v9846_v14, %v5304_v2  ;;  %6552 = vst.msk [vmem:[%s9680_s26 + $0xcc] sm:$0xf] %vm6500_vm3, %v7432_v46  ;;  %v5784_v6 = vmax.f32 %v4343_v63, %v5656_v60 }
 0x259   : > { %v5659_v28 = vmax.f32 %v5313_v50, 0.0  ;;  %v4344_v24 = vmax.f32 %v3992_v62, 0.0  ;;  %v5914_v26 = vmax.f32 %v10459_v18, %v5786_v1  ;;  %v10465_v1 = vld [vmem:[#allocation19_spill] sm:$0xff]  ;;  %v10466_v18 = vld [vmem:[#allocation20_spill] sm:$0xff] }
 0x25a   : > { %6550 = vst.msk [vmem:[%s9680_s26 + $0xc4] sm:$0xf] %vm6500_vm3, %v7430_v44  ;;  %v5657_v23 = vmax.f32 %v5305_v49, 0.0  ;;  %v8099_v16 = vpop.f32.mrb[184].mxu0  ;;  %v5912_v3 = vmax.f32 %v10460_v10, %v5784_v6  ;;  %v8231_v5 = vpop.f32.mrb[184].mxu1 }
 0x25b   : > { %v5787_v9 = vmax.f32 %v4346_v42, %v5659_v28  ;;  %v4013_v34 = vadd.f32 %v9846_v14, %v8099_v16  ;;  %v4004_v12 = vpop.f32.mrb[185].mxu0  ;;  %v7435_v36 = vpack.c.bf16 %v5914_v26, %v5914_v26  ;;  %v5326_v21 = vadd.f32 %v9846_v14, %v8231_v5  ;;  %v5317_v48 = vpop.f32.mrb[185].mxu1 }
 0x25c   : > { %v5785_v43 = vmax.f32 %v4344_v24, %v5657_v23  ;;  %v4005_v22 = vadd.f32 %v9846_v14, %v4004_v12  ;;  %v8100_v40 = vpop.f32.mrb[186].mxu0  ;;  %v7433_v32 = vpack.c.bf16 %v5912_v3, %v5912_v3  ;;  %v5318_v35 = vadd.f32 %v9846_v14, %v5317_v48  ;;  %v8232_v15 = vpop.f32.mrb[186].mxu1 }
 0x25d   : > { %v5915_v55 = vmax.f32 %v10461_v4, %v5787_v9  ;;  %v4349_v8 = vmax.f32 %v4013_v34, 0.0  ;;  %v4007_v7 = vpop.f32.mrb[187].mxu0  ;;  %6555 = vst.msk [vmem:[%s9680_s26 + $0xd8] sm:$0xf] %vm6500_vm3, %v7435_v36  ;;  %v5662_v59 = vmax.f32 %v5326_v21, 0.0  ;;  %v4016_v52 = vadd.f32 %v9846_v14, %v8100_v40  ;;  %v5320_v27 = vpop.f32.mrb[187].mxu1 }
 0x25e   : > { %v5913_v54 = vmax.f32 %v10462_v58, %v5785_v43  ;;  %v4347_v53 = vmax.f32 %v4005_v22, 0.0  ;;  %6553 = vst.msk [vmem:[%s9680_s26 + $0xd0] sm:$0xf] %vm6500_vm3, %v7433_v32  ;;  %v5660_v19 = vmax.f32 %v5318_v35, 0.0  ;;  %v5329_v0 = vadd.f32 %v9846_v14, %v8232_v15  ;;  %v10467_v4 = vld [vmem:[#allocation21_spill] sm:$0xff]  ;;  %v10468_v15 = vld [vmem:[#allocation22_spill] sm:$0xff] }
 0x25f   : > { %v7436_v30 = vpack.c.bf16 %v5915_v55, %v5915_v55  ;;  %v4008_v13 = vadd.f32 %v9846_v14, %v4007_v7  ;;  %v5790_v47 = vmax.f32 %v4349_v8, %v5662_v59  ;;  %v4350_v37 = vmax.f32 %v4016_v52, 0.0 }
 0x260   : > { %v7434_v57 = vpack.c.bf16 %v5913_v54, %v5913_v54  ;;  %v5321_v31 = vadd.f32 %v9846_v14, %v5320_v27  ;;  %v5788_v51 = vmax.f32 %v4347_v53, %v5660_v19  ;;  %v5663_v17 = vmax.f32 %v5329_v0, 0.0 }
 0x261   : > { %6556 = vst.msk [vmem:[%s9680_s26 + $0xdc] sm:$0xf] %vm6500_vm3, %v7436_v30  ;;  %v4348_v25 = vmax.f32 %v4008_v13, 0.0  ;;  %v5918_v61 = vmax.f32 %v10463_v11, %v5790_v47  ;;  %v10469_v47 = vld [vmem:[#allocation23_spill] sm:$0xff]  ;;  %v10470_v11 = vld [vmem:[#allocation24_spill] sm:$0xff] }
 0x262   : > { %6554 = vst.msk [vmem:[%s9680_s26 + $0xd4] sm:$0xf] %vm6500_vm3, %v7434_v57  ;;  %v5661_v20 = vmax.f32 %v5321_v31, 0.0  ;;  %v8103_v39 = vpop.f32.mrb[188].mxu0  ;;  %v5916_v41 = vmax.f32 %v10464_v38, %v5788_v51  ;;  %v5791_v56 = vmax.f32 %v4350_v37, %v5663_v17  ;;  %v8235_v45 = vpop.f32.mrb[188].mxu1 }
 0x263   : > { %v4029_v29 = vadd.f32 %v9846_v14, %v8103_v39  ;;  %v4020_v63 = vpop.f32.mrb[189].mxu0  ;;  %v7439_v33 = vpack.c.bf16 %v5918_v61, %v5918_v61  ;;  %v5342_v46 = vadd.f32 %v9846_v14, %v8235_v45  ;;  %v5333_v50 = vpop.f32.mrb[189].mxu1 }
 0x264   : > { %v5789_v2 = vmax.f32 %v4348_v25, %v5661_v20  ;;  %v4021_v60 = vadd.f32 %v9846_v14, %v4020_v63  ;;  %v8104_v62 = vpop.f32.mrb[190].mxu0  ;;  %v7437_v44 = vpack.c.bf16 %v5916_v41, %v5916_v41  ;;  %v5919_v42 = vmax.f32 %v10465_v1, %v5791_v56  ;;  %v8236_v28 = vpop.f32.mrb[190].mxu1  ;;  %v10471_v1 = vld [vmem:[#allocation25_spill] sm:$0xff] }
 0x265   : > { %v4353_v49 = vmax.f32 %v4029_v29, 0.0  ;;  %v5334_v6 = vadd.f32 %v9846_v14, %v5333_v50  ;;  %v4023_v24 = vpop.f32.mrb[191].mxu0  ;;  %6559 = vst.msk [vmem:[%s9680_s26 + $0xe8] sm:$0xf] %vm6500_vm3, %v7439_v33  ;;  %v5666_v23 = vmax.f32 %v5342_v46, 0.0  ;;  %v4032_v10 = vadd.f32 %v9846_v14, %v8104_v62  ;;  %v5336_v3 = vpop.f32.mrb[191].mxu1 }
 0x266   : > { %v5917_v26 = vmax.f32 %v10466_v18, %v5789_v2  ;;  %v4351_v16 = vmax.f32 %v4021_v60, 0.0  ;;  %6557 = vst.msk [vmem:[%s9680_s26 + $0xe0] sm:$0xf] %vm6500_vm3, %v7437_v44  ;;  %v7440_v9 = vpack.c.bf16 %v5919_v42, %v5919_v42  ;;  %v5345_v5 = vadd.f32 %v9846_v14, %v8236_v28  ;;  %v10472_v28 = vld [vmem:[#allocation26_spill] sm:$0xff] }
 0x267   : > { %v5664_v34 = vmax.f32 %v5334_v6, 0.0  ;;  %v4024_v12 = vadd.f32 %v9846_v14, %v4023_v24  ;;  %v5794_v43 = vmax.f32 %v4353_v49, %v5666_v23  ;;  %v4354_v21 = vmax.f32 %v4032_v10, 0.0 }
 0x268   : > { %v7438_v36 = vpack.c.bf16 %v5917_v26, %v5917_v26  ;;  %v5337_v22 = vadd.f32 %v9846_v14, %v5336_v3  ;;  %6560 = vst.msk [vmem:[%s9680_s26 + $0xec] sm:$0xf] %vm6500_vm3, %v7440_v9  ;;  %v5667_v40 = vmax.f32 %v5345_v5, 0.0 }
 0x269   : > { %v5792_v48 = vmax.f32 %v4351_v16, %v5664_v34  ;;  %v4352_v32 = vmax.f32 %v4024_v12, 0.0  ;;  %v5922_v55 = vmax.f32 %v10467_v4, %v5794_v43  ;;  %v10473_v43 = vld [vmem:[#allocation27_spill] sm:$0xff]  ;;  %v10474_v4 = vld [vmem:[#allocation28_spill] sm:$0xff] }
 0x26a   : > { %6558 = vst.msk [vmem:[%s9680_s26 + $0xe4] sm:$0xf] %vm6500_vm3, %v7438_v36  ;;  %v5665_v8 = vmax.f32 %v5337_v22, 0.0  ;;  %v8107_v35 = vpop.f32.mrb[192].mxu0  ;;  %v5795_v58 = vmax.f32 %v4354_v21, %v5667_v40  ;;  %v8239_v59 = vpop.f32.mrb[192].mxu1 }
 0x26b   : > { %v5920_v7 = vmax.f32 %v10468_v15, %v5792_v48  ;;  %v4045_v54 = vadd.f32 %v9846_v14, %v8107_v35  ;;  %v4036_v53 = vpop.f32.mrb[193].mxu0  ;;  %v7443_v52 = vpack.c.bf16 %v5922_v55, %v5922_v55  ;;  %v5358_v30 = vadd.f32 %v9846_v14, %v8239_v59  ;;  %v5349_v0 = vpop.f32.mrb[193].mxu1 }
 0x26c   : > { %v5793_v27 = vmax.f32 %v4352_v32, %v5665_v8  ;;  %v4037_v19 = vadd.f32 %v9846_v14, %v4036_v53  ;;  %v8108_v13 = vpop.f32.mrb[194].mxu0  ;;  %v5923_v37 = vmax.f32 %v10469_v47, %v5795_v58  ;;  %v5350_v51 = vadd.f32 %v9846_v14, %v5349_v0  ;;  %v8240_v17 = vpop.f32.mrb[194].mxu1  ;;  %v10475_v47 = vld [vmem:[#allocation29_spill] sm:$0xff] }
 0x26d   : > { %v7441_v57 = vpack.c.bf16 %v5920_v7, %v5920_v7  ;;  %v4357_v31 = vmax.f32 %v4045_v54, 0.0  ;;  %v4039_v25 = vpop.f32.mrb[195].mxu0  ;;  %6563 = vst.msk [vmem:[%s9680_s26 + $0xf8] sm:$0xf] %vm6500_vm3, %v7443_v52  ;;  %v5670_v20 = vmax.f32 %v5358_v30, 0.0  ;;  %v4048_v38 = vadd.f32 %v9846_v14, %v8108_v13  ;;  %v5352_v41 = vpop.f32.mrb[195].mxu1 }
 0x26e   : > { %v5921_v61 = vmax.f32 %v10470_v11, %v5793_v27  ;;  %v4355_v39 = vmax.f32 %v4037_v19, 0.0  ;;  %v7444_v56 = vpack.c.bf16 %v5923_v37, %v5923_v37  ;;  %v5668_v29 = vmax.f32 %v5350_v51, 0.0 }
 0x26f   : > { %6561 = vst.msk [vmem:[%s9680_s26 + $0xf0] sm:$0xf] %vm6500_vm3, %v7441_v57  ;;  %v5361_v45 = vadd.f32 %v9846_v14, %v8240_v17  ;;  %v4040_v63 = vadd.f32 %v9846_v14, %v4039_v25  ;;  %v5798_v2 = vmax.f32 %v4357_v31, %v5670_v20  ;;  %v4358_v46 = vmax.f32 %v4048_v38, 0.0  ;;  %v10476_v17 = vld [vmem:[#allocation30_spill] sm:$0xff] }
 0x270   : > { %v7442_v33 = vpack.c.bf16 %v5921_v61, %v5921_v61  ;;  %v5353_v60 = vadd.f32 %v9846_v14, %v5352_v41  ;;  %6564 = vst.msk [vmem:[%s9680_s26 + $0xfc] sm:$0xf] %vm6500_vm3, %v7444_v56  ;;  %v5796_v50 = vmax.f32 %v4355_v39, %v5668_v29 }
 0x271   : > { %v5671_v62 = vmax.f32 %v5361_v45, 0.0  ;;  %v4356_v44 = vmax.f32 %v4040_v63, 0.0  ;;  %v5926_v42 = vmax.f32 %v10471_v1, %v5798_v2  ;;  %v10477_v2 = vld [vmem:[#allocation31_spill] sm:$0xff]  ;;  %v10478_v1 = vld [vmem:[#allocation32_spill] sm:$0xff] }
 0x272   : > { %6562 = vst.msk [vmem:[%s9680_s26 + $0xf4] sm:$0xf] %vm6500_vm3, %v7442_v33  ;;  %v5669_v49 = vmax.f32 %v5353_v60, 0.0  ;;  %v8111_v6 = vpop.f32.mrb[196].mxu0  ;;  %v5924_v24 = vmax.f32 %v10472_v28, %v5796_v50  ;;  %v8243_v23 = vpop.f32.mrb[196].mxu1 }
 0x273   : > { %v5799_v18 = vmax.f32 %v4358_v46, %v5671_v62  ;;  %v4061_v26 = vadd.f32 %v9846_v14, %v8111_v6  ;;  %v4052_v16 = vpop.f32.mrb[197].mxu0  ;;  %v7447_v10 = vpack.c.bf16 %v5926_v42, %v5926_v42  ;;  %v5374_v9 = vadd.f32 %v9846_v14, %v8243_v23  ;;  %v5365_v5 = vpop.f32.mrb[197].mxu1 }
 0x274   : > { %v5797_v3 = vmax.f32 %v4356_v44, %v5669_v49  ;;  %v4053_v34 = vadd.f32 %v9846_v14, %v4052_v16  ;;  %v8112_v12 = vpop.f32.mrb[198].mxu0  ;;  %v7445_v36 = vpack.c.bf16 %v5924_v24, %v5924_v24  ;;  %v5366_v48 = vadd.f32 %v9846_v14, %v5365_v5  ;;  %v8244_v40 = vpop.f32.mrb[198].mxu1 }
 0x275   : > { %v5927_v21 = vmax.f32 %v10473_v43, %v5799_v18  ;;  %v4361_v22 = vmax.f32 %v4061_v26, 0.0  ;;  %v4055_v32 = vpop.f32.mrb[199].mxu0  ;;  %6567 = vst.msk [vmem:[%s9680_s26 + $0x108] sm:$0xf] %vm6500_vm3, %v7447_v10  ;;  %v5674_v8 = vmax.f32 %v5374_v9, 0.0  ;;  %v4064_v15 = vadd.f32 %v9846_v14, %v8112_v12  ;;  %v5368_v7 = vpop.f32.mrb[199].mxu1 }
 0x276   : > { %v5925_v55 = vmax.f32 %v10474_v4, %v5797_v3  ;;  %v4359_v35 = vmax.f32 %v4053_v34, 0.0  ;;  %6565 = vst.msk [vmem:[%s9680_s26 + $0x100] sm:$0xf] %vm6500_vm3, %v7445_v36  ;;  %v5672_v54 = vmax.f32 %v5366_v48, 0.0  ;;  %v5377_v59 = vadd.f32 %v9846_v14, %v8244_v40  ;;  %v10479_v43 = vld [vmem:[#allocation33_spill] sm:$0xff]  ;;  %v10480_v40 = vld [vmem:[#allocation34_spill] sm:$0xff] }
 0x277   : > { %v7448_v58 = vpack.c.bf16 %v5927_v21, %v5927_v21  ;;  %v4056_v53 = vadd.f32 %v9846_v14, %v4055_v32  ;;  %v5802_v27 = vmax.f32 %v4361_v22, %v5674_v8  ;;  %v4362_v30 = vmax.f32 %v4064_v15, 0.0 }
 0x278   : > { %v7446_v52 = vpack.c.bf16 %v5925_v55, %v5925_v55  ;;  %v5369_v19 = vadd.f32 %v9846_v14, %v5368_v7  ;;  %v5800_v0 = vmax.f32 %v4359_v35, %v5672_v54  ;;  %v5675_v13 = vmax.f32 %v5377_v59, 0.0 }
 0x279   : > { %6568 = vst.msk [vmem:[%s9680_s26 + $0x10c] sm:$0xf] %vm6500_vm3, %v7448_v58  ;;  %v4360_v57 = vmax.f32 %v4056_v53, 0.0  ;;  %v5930_v37 = vmax.f32 %v10475_v47, %v5802_v27  ;;  %v10481_v27 = vld [vmem:[#allocation35_spill] sm:$0xff]  ;;  %v10482_v47 = vld [vmem:[#allocation36_spill] sm:$0xff] }
 0x27a   : > { %6566 = vst.msk [vmem:[%s9680_s26 + $0x104] sm:$0xf] %vm6500_vm3, %v7446_v52  ;;  %v5673_v31 = vmax.f32 %v5369_v19, 0.0  ;;  %v8115_v51 = vpop.f32.mrb[200].mxu0  ;;  %v5928_v25 = vmax.f32 %v10476_v17, %v5800_v0  ;;  %v5803_v11 = vmax.f32 %v4362_v30, %v5675_v13  ;;  %v8247_v20 = vpop.f32.mrb[200].mxu1 }
 0x27b   : > { %v4077_v61 = vadd.f32 %v9846_v14, %v8115_v51  ;;  %v4068_v39 = vpop.f32.mrb[201].mxu0  ;;  %v7451_v38 = vpack.c.bf16 %v5930_v37, %v5930_v37  ;;  %v5390_v56 = vadd.f32 %v9846_v14, %v8247_v20  ;;  %v5381_v45 = vpop.f32.mrb[201].mxu1 }
 0x27c   : > { %v5801_v41 = vmax.f32 %v4360_v57, %v5673_v31  ;;  %v4069_v29 = vadd.f32 %v9846_v14, %v4068_v39  ;;  %v8116_v63 = vpop.f32.mrb[202].mxu0  ;;  %v7449_v33 = vpack.c.bf16 %v5928_v25, %v5928_v25  ;;  %v5931_v46 = vmax.f32 %v10477_v2, %v5803_v11  ;;  %v8248_v62 = vpop.f32.mrb[202].mxu1  ;;  %v10483_v2 = vld [vmem:[#allocation37_spill] sm:$0xff] }
 0x27d   : > { %v4365_v60 = vmax.f32 %v4077_v61, 0.0  ;;  %v5382_v50 = vadd.f32 %v9846_v14, %v5381_v45  ;;  %v4071_v44 = vpop.f32.mrb[203].mxu0  ;;  %6571 = vst.msk [vmem:[%s9680_s26 + $0x118] sm:$0xf] %vm6500_vm3, %v7451_v38  ;;  %v5678_v49 = vmax.f32 %v5390_v56, 0.0  ;;  %v4080_v28 = vadd.f32 %v9846_v14, %v8116_v63  ;;  %v5384_v24 = vpop.f32.mrb[203].mxu1 }
 0x27e   : > { %v5929_v42 = vmax.f32 %v10478_v1, %v5801_v41  ;;  %v4363_v6 = vmax.f32 %v4069_v29, 0.0  ;;  %6569 = vst.msk [vmem:[%s9680_s26 + $0x110] sm:$0xf] %vm6500_vm3, %v7449_v33  ;;  %v7452_v18 = vpack.c.bf16 %v5931_v46, %v5931_v46  ;;  %v5393_v23 = vadd.f32 %v9846_v14, %v8248_v62  ;;  %v10484_v62 = vld [vmem:[#allocation38_spill] sm:$0xff] }
 0x27f   : > { %v5676_v26 = vmax.f32 %v5382_v50, 0.0  ;;  %v4072_v16 = vadd.f32 %v9846_v14, %v4071_v44  ;;  %v5806_v3 = vmax.f32 %v4365_v60, %v5678_v49  ;;  %v4366_v9 = vmax.f32 %v4080_v28, 0.0 }
 0x280   : > { %v7450_v10 = vpack.c.bf16 %v5929_v42, %v5929_v42  ;;  %v5385_v34 = vadd.f32 %v9846_v14, %v5384_v24  ;;  %6572 = vst.msk [vmem:[%s9680_s26 + $0x11c] sm:$0xf] %vm6500_vm3, %v7452_v18  ;;  %v5679_v12 = vmax.f32 %v5393_v23, 0.0 }
 0x281   : > { %v5804_v5 = vmax.f32 %v4363_v6, %v5676_v26  ;;  %v4364_v36 = vmax.f32 %v4072_v16, 0.0  ;;  %v5934_v21 = vmax.f32 %v10479_v43, %v5806_v3  ;;  %v10485_v3 = vld [vmem:[#allocation39_spill] sm:$0xff]  ;;  %v10486_v43 = vld [vmem:[#allocation40_spill] sm:$0xff] }
 0x282   : > { %6570 = vst.msk [vmem:[%s9680_s26 + $0x114] sm:$0xf] %vm6500_vm3, %v7450_v10  ;;  %v5677_v22 = vmax.f32 %v5385_v34, 0.0  ;;  %v8119_v48 = vpop.f32.mrb[204].mxu0  ;;  %v5807_v4 = vmax.f32 %v4366_v9, %v5679_v12  ;;  %v8251_v8 = vpop.f32.mrb[204].mxu1 }
 0x283   : > { %v5932_v32 = vmax.f32 %v10480_v40, %v5804_v5  ;;  %v4093_v55 = vadd.f32 %v9846_v14, %v8119_v48  ;;  %v4084_v35 = vpop.f32.mrb[205].mxu0  ;;  %v7455_v15 = vpack.c.bf16 %v5934_v21, %v5934_v21  ;;  %v5406_v58 = vadd.f32 %v9846_v14, %v8251_v8  ;;  %v5397_v59 = vpop.f32.mrb[205].mxu1  ;;  %v10107_v40 = vld [vmem:[%s10359_s5] ss:$0 sm:$0xff] }
 0x284   : > { %v5805_v7 = vmax.f32 %v4364_v36, %v5677_v22  ;;  %v4085_v54 = vadd.f32 %v9846_v14, %v4084_v35  ;;  %v8120_v53 = vpop.f32.mrb[206].mxu0  ;;  %v5935_v30 = vmax.f32 %v10481_v27, %v5807_v4  ;;  %v5398_v0 = vadd.f32 %v9846_v14, %v5397_v59  ;;  %v8252_v13 = vpop.f32.mrb[206].mxu1  ;;  %v10487_v27 = vld [vmem:[#allocation41_spill] sm:$0xff] }
 0x285   : > { %v7453_v52 = vpack.c.bf16 %v5932_v32, %v5932_v32  ;;  %v4369_v19 = vmax.f32 %v4093_v55, 0.0  ;;  %v4087_v57 = vpop.f32.mrb[207].mxu0  ;;  %6575 = vst.msk [vmem:[%s9680_s26 + $0x128] sm:$0xf] %vm6500_vm3, %v7455_v15  ;;  %v5682_v31 = vmax.f32 %v5406_v58, 0.0  ;;  %v4096_v17 = vadd.f32 %v9846_v14, %v8120_v53  ;;  %v5400_v25 = vpop.f32.mrb[207].mxu1 }
 0x286   : > { %v5933_v37 = vmax.f32 %v10482_v47, %v5805_v7  ;;  %v4367_v51 = vmax.f32 %v4085_v54, 0.0  ;;  %v7456_v11 = vpack.c.bf16 %v5935_v30, %v5935_v30  ;;  %v5680_v61 = vmax.f32 %v5398_v0, 0.0 }
 0x287   : > { %6573 = vst.msk [vmem:[%s9680_s26 + $0x120] sm:$0xf] %vm6500_vm3, %v7453_v52  ;;  %v5409_v20 = vadd.f32 %v9846_v14, %v8252_v13  ;;  %v4088_v39 = vadd.f32 %v9846_v14, %v4087_v57  ;;  %v5810_v41 = vmax.f32 %v4369_v19, %v5682_v31  ;;  %v4370_v56 = vmax.f32 %v4096_v17, 0.0  ;;  %v10488_v13 = vld [vmem:[#allocation42_spill] sm:$0xff] }
 0x288   : > { %v7454_v38 = vpack.c.bf16 %v5933_v37, %v5933_v37  ;;  %v5401_v29 = vadd.f32 %v9846_v14, %v5400_v25  ;;  %6576 = vst.msk [vmem:[%s9680_s26 + $0x12c] sm:$0xf] %vm6500_vm3, %v7456_v11  ;;  %v5808_v45 = vmax.f32 %v4367_v51, %v5680_v61 }
 0x289   : > { %v5683_v63 = vmax.f32 %v5409_v20, 0.0  ;;  %v4368_v33 = vmax.f32 %v4088_v39, 0.0  ;;  %v5938_v46 = vmax.f32 %v10483_v2, %v5810_v41  ;;  %v10489_v41 = vld [vmem:[#allocation43_spill] sm:$0xff]  ;;  %v10490_v2 = vld [vmem:[#allocation44_spill] sm:$0xff] }
 0x28a   : > { %6574 = vst.msk [vmem:[%s9680_s26 + $0x124] sm:$0xf] %vm6500_vm3, %v7454_v38  ;;  %v5681_v60 = vmax.f32 %v5401_v29, 0.0  ;;  %v8123_v50 = vpop.f32.mrb[208].mxu0  ;;  %v5936_v44 = vmax.f32 %v10484_v62, %v5808_v45  ;;  %v8255_v49 = vpop.f32.mrb[208].mxu1 }
 0x28b   : > { %v5811_v1 = vmax.f32 %v4370_v56, %v5683_v63  ;;  %v4109_v42 = vadd.f32 %v9846_v14, %v8123_v50  ;;  %v4100_v6 = vpop.f32.mrb[209].mxu0  ;;  %v7459_v28 = vpack.c.bf16 %v5938_v46, %v5938_v46  ;;  %v5422_v18 = vadd.f32 %v9846_v14, %v8255_v49  ;;  %v5413_v23 = vpop.f32.mrb[209].mxu1 }
 0x28c   : > { %v5809_v24 = vmax.f32 %v4368_v33, %v5681_v60  ;;  %v4101_v26 = vadd.f32 %v9846_v14, %v4100_v6  ;;  %v8124_v16 = vpop.f32.mrb[210].mxu0  ;;  %v7457_v10 = vpack.c.bf16 %v5936_v44, %v5936_v44  ;;  %v5414_v5 = vadd.f32 %v9846_v14, %v5413_v23  ;;  %v8256_v12 = vpop.f32.mrb[210].mxu1 }
 0x28d   : > { %v5939_v9 = vmax.f32 %v10485_v3, %v5811_v1  ;;  %v4373_v34 = vmax.f32 %v4109_v42, 0.0  ;;  %v4103_v36 = vpop.f32.mrb[211].mxu0  ;;  %6579 = vst.msk [vmem:[%s9680_s26 + $0x138] sm:$0xf] %vm6500_vm3, %v7459_v28  ;;  %v5686_v22 = vmax.f32 %v5422_v18, 0.0  ;;  %v4112_v32 = vadd.f32 %v10107_v40, %v8124_v16  ;;  %v5416_v4 = vpop.f32.mrb[211].mxu1 }
 0x28e   : > { %v5937_v21 = vmax.f32 %v10486_v43, %v5809_v24  ;;  %v4371_v48 = vmax.f32 %v4101_v26, 0.0  ;;  %6577 = vst.msk [vmem:[%s9680_s26 + $0x130] sm:$0xf] %vm6500_vm3, %v7457_v10  ;;  %v5684_v55 = vmax.f32 %v5414_v5, 0.0  ;;  %v5425_v8 = vadd.f32 %v10107_v40, %v8256_v12  ;;  %v10491_v3 = vld [vmem:[#allocation45_spill] sm:$0xff]  ;;  %v10492_v12 = vld [vmem:[#allocation46_spill] sm:$0xff] }
 0x28f   : > { %v7460_v14 = vpack.c.bf16 %v5939_v9, %v5939_v9  ;;  %v4104_v35 = vadd.f32 %v10107_v40, %v4103_v36  ;;  %v5814_v7 = vmax.f32 %v4373_v34, %v5686_v22  ;;  %v4374_v58 = vmax.f32 %v4112_v32, 0.0 }
 0x290   : > { %v7458_v15 = vpack.c.bf16 %v5937_v21, %v5937_v21  ;;  %v5417_v54 = vadd.f32 %v10107_v40, %v5416_v4  ;;  %v5812_v59 = vmax.f32 %v4371_v48, %v5684_v55  ;;  %v5687_v53 = vmax.f32 %v5425_v8, 0.0 }
 0x291   : > { %6580 = vst.msk [vmem:[%s9680_s26 + $0x13c] sm:$0xf] %vm6500_vm3, %v7460_v14  ;;  %v4372_v52 = vmax.f32 %v4104_v35, 0.0  ;;  %v5942_v30 = vmax.f32 %v10487_v27, %v5814_v7  ;;  %v10493_v7 = vld [vmem:[#allocation47_spill] sm:$0xff]  ;;  %v10494_v27 = vld [vmem:[#allocation48_spill] sm:$0xff] }
 0x292   : > { %6578 = vst.msk [vmem:[%s9680_s26 + $0x134] sm:$0xf] %vm6500_vm3, %v7458_v15  ;;  %v5685_v19 = vmax.f32 %v5417_v54, 0.0  ;;  %v8127_v0 = vpop.f32.mrb[212].mxu0  ;;  %v5940_v57 = vmax.f32 %v10488_v13, %v5812_v59  ;;  %v5815_v47 = vmax.f32 %v4374_v58, %v5687_v53  ;;  %v8259_v31 = vpop.f32.mrb[212].mxu1 }
 0x293   : > { %v4125_v37 = vadd.f32 %v10107_v40, %v8127_v0  ;;  %v4116_v51 = vpop.f32.mrb[213].mxu0  ;;  %v7463_v17 = vpack.c.bf16 %v5942_v30, %v5942_v30  ;;  %v5438_v11 = vadd.f32 %v10107_v40, %v8259_v31  ;;  %v5429_v20 = vpop.f32.mrb[213].mxu1 }
 0x294   : > { %v5813_v25 = vmax.f32 %v4372_v52, %v5685_v19  ;;  %v4117_v61 = vadd.f32 %v10107_v40, %v4116_v51  ;;  %v8128_v39 = vpop.f32.mrb[214].mxu0  ;;  %v7461_v38 = vpack.c.bf16 %v5940_v57, %v5940_v57  ;;  %v5943_v56 = vmax.f32 %v10489_v41, %v5815_v47  ;;  %v8260_v63 = vpop.f32.mrb[214].mxu1  ;;  %v10495_v41 = vld [vmem:[#allocation49_spill] sm:$0xff] }
 0x295   : > { %v4377_v29 = vmax.f32 %v4125_v37, 0.0  ;;  %v5430_v45 = vadd.f32 %v10107_v40, %v5429_v20  ;;  %v4119_v33 = vpop.f32.mrb[215].mxu0  ;;  %6583 = vst.msk [vmem:[%s9680_s26 + $0x148] sm:$0xf] %vm6500_vm3, %v7463_v17  ;;  %v5690_v60 = vmax.f32 %v5438_v11, 0.0  ;;  %v4128_v62 = vadd.f32 %v10107_v40, %v8128_v39  ;;  %v5432_v44 = vpop.f32.mrb[215].mxu1 }
 0x296   : > { %v5941_v46 = vmax.f32 %v10490_v2, %v5813_v25  ;;  %v4375_v50 = vmax.f32 %v4117_v61, 0.0  ;;  %6581 = vst.msk [vmem:[%s9680_s26 + $0x140] sm:$0xf] %vm6500_vm3, %v7461_v38  ;;  %v7464_v1 = vpack.c.bf16 %v5943_v56, %v5943_v56  ;;  %v5441_v49 = vadd.f32 %v10107_v40, %v8260_v63  ;;  %v10496_v63 = vld [vmem:[#allocation50_spill] sm:$0xff] }
 0x297   : > { %v5688_v42 = vmax.f32 %v5430_v45, 0.0  ;;  %v4120_v6 = vadd.f32 %v10107_v40, %v4119_v33  ;;  %v5818_v24 = vmax.f32 %v4377_v29, %v5690_v60  ;;  %v4378_v18 = vmax.f32 %v4128_v62, 0.0 }
 0x298   : > { %v7462_v28 = vpack.c.bf16 %v5941_v46, %v5941_v46  ;;  %v5433_v26 = vadd.f32 %v10107_v40, %v5432_v44  ;;  %6584 = vst.msk [vmem:[%s9680_s26 + $0x14c] sm:$0xf] %vm6500_vm3, %v7464_v1  ;;  %v5691_v16 = vmax.f32 %v5441_v49, 0.0 }
 0x299   : > { %v5816_v23 = vmax.f32 %v4375_v50, %v5688_v42  ;;  %v4376_v10 = vmax.f32 %v4120_v6, 0.0  ;;  %v5946_v9 = vmax.f32 %v10491_v3, %v5818_v24  ;;  %v10497_v24 = vld [vmem:[#allocation51_spill] sm:$0xff]  ;;  %v10498_v3 = vld [vmem:[#allocation52_spill] sm:$0xff] }
 0x29a   : > { %6582 = vst.msk [vmem:[%s9680_s26 + $0x144] sm:$0xf] %vm6500_vm3, %v7462_v28  ;;  %v5689_v34 = vmax.f32 %v5433_v26, 0.0  ;;  %v8131_v5 = vpop.f32.mrb[216].mxu0  ;;  %v5819_v43 = vmax.f32 %v4378_v18, %v5691_v16  ;;  %v8263_v22 = vpop.f32.mrb[216].mxu1 }
 0x29b   : > { %v5944_v36 = vmax.f32 %v10492_v12, %v5816_v23  ;;  %v4141_v21 = vadd.f32 %v10107_v40, %v8131_v5  ;;  %v4132_v48 = vpop.f32.mrb[217].mxu0  ;;  %v7467_v32 = vpack.c.bf16 %v5946_v9, %v5946_v9  ;;  %v5454_v14 = vadd.f32 %v10107_v40, %v8263_v22  ;;  %v5445_v8 = vpop.f32.mrb[217].mxu1 }
 0x29c   : > { %v5817_v4 = vmax.f32 %v4376_v10, %v5689_v34  ;;  %v4133_v55 = vadd.f32 %v10107_v40, %v4132_v48  ;;  %v8132_v35 = vpop.f32.mrb[218].mxu0  ;;  %v5947_v58 = vmax.f32 %v10493_v7, %v5819_v43  ;;  %v5446_v59 = vadd.f32 %v10107_v40, %v5445_v8  ;;  %v8264_v53 = vpop.f32.mrb[218].mxu1  ;;  %v10499_v7 = vld [vmem:[#allocation53_spill] sm:$0xff] }
 0x29d   : > { %v7465_v15 = vpack.c.bf16 %v5944_v36, %v5944_v36  ;;  %v4381_v54 = vmax.f32 %v4141_v21, 0.0  ;;  %v4135_v52 = vpop.f32.mrb[219].mxu0  ;;  %6587 = vst.msk [vmem:[%s9680_s26 + $0x158] sm:$0xf] %vm6500_vm3, %v7467_v32  ;;  %v5694_v19 = vmax.f32 %v5454_v14, 0.0  ;;  %v4144_v13 = vadd.f32 %v10107_v40, %v8132_v35  ;;  %v5448_v57 = vpop.f32.mrb[219].mxu1 }
 0x29e   : > { %v5945_v30 = vmax.f32 %v10494_v27, %v5817_v4  ;;  %v4379_v0 = vmax.f32 %v4133_v55, 0.0  ;;  %v7468_v47 = vpack.c.bf16 %v5947_v58, %v5947_v58  ;;  %v5692_v37 = vmax.f32 %v5446_v59, 0.0 }
 0x29f   : > { %6585 = vst.msk [vmem:[%s9680_s26 + $0x150] sm:$0xf] %vm6500_vm3, %v7465_v15  ;;  %v5457_v31 = vadd.f32 %v10107_v40, %v8264_v53  ;;  %v4136_v51 = vadd.f32 %v10107_v40, %v4135_v52  ;;  %v5822_v25 = vmax.f32 %v4381_v54, %v5694_v19  ;;  %v4382_v11 = vmax.f32 %v4144_v13, 0.0  ;;  %v10500_v53 = vld [vmem:[#allocation54_spill] sm:$0xff] }
 0x2a0   : > { %v7466_v17 = vpack.c.bf16 %v5945_v30, %v5945_v30  ;;  %v5449_v61 = vadd.f32 %v10107_v40, %v5448_v57  ;;  %6588 = vst.msk [vmem:[%s9680_s26 + $0x15c] sm:$0xf] %vm6500_vm3, %v7468_v47  ;;  %v5820_v20 = vmax.f32 %v4379_v0, %v5692_v37 }
 0x2a1   : > { %v5695_v39 = vmax.f32 %v5457_v31, 0.0  ;;  %v4380_v38 = vmax.f32 %v4136_v51, 0.0  ;;  %v5950_v56 = vmax.f32 %v10495_v41, %v5822_v25  ;;  %v10501_v25 = vld [vmem:[#allocation55_spill] sm:$0xff]  ;;  %v10502_v41 = vld [vmem:[#allocation56_spill] sm:$0xff] }
 0x2a2   : > { %6586 = vst.msk [vmem:[%s9680_s26 + $0x154] sm:$0xf] %vm6500_vm3, %v7466_v17  ;;  %v5693_v29 = vmax.f32 %v5449_v61, 0.0  ;;  %v8135_v45 = vpop.f32.mrb[220].mxu0  ;;  %v5948_v33 = vmax.f32 %v10496_v63, %v5820_v20  ;;  %v8267_v60 = vpop.f32.mrb[220].mxu1 }
 0x2a3   : > { %v5823_v2 = vmax.f32 %v4382_v11, %v5695_v39  ;;  %v4157_v46 = vadd.f32 %v10107_v40, %v8135_v45  ;;  %v4148_v50 = vpop.f32.mrb[221].mxu0  ;;  %v7471_v62 = vpack.c.bf16 %v5950_v56, %v5950_v56  ;;  %v5470_v1 = vadd.f32 %v10107_v40, %v8267_v60  ;;  %v5461_v49 = vpop.f32.mrb[221].mxu1 }
 0x2a4   : > { %v5821_v44 = vmax.f32 %v4380_v38, %v5693_v29  ;;  %v4149_v42 = vadd.f32 %v10107_v40, %v4148_v50  ;;  %v8136_v6 = vpop.f32.mrb[222].mxu0  ;;  %v7469_v28 = vpack.c.bf16 %v5948_v33, %v5948_v33  ;;  %v5462_v23 = vadd.f32 %v10107_v40, %v5461_v49  ;;  %v8268_v16 = vpop.f32.mrb[222].mxu1 }
 0x2a5   : > { %v5951_v18 = vmax.f32 %v10497_v24, %v5823_v2  ;;  %v4385_v26 = vmax.f32 %v4157_v46, 0.0  ;;  %v4151_v10 = vpop.f32.mrb[223].mxu0  ;;  %6591 = vst.msk [vmem:[%s9680_s26 + $0x168] sm:$0xf] %vm6500_vm3, %v7471_v62  ;;  %v5698_v34 = vmax.f32 %v5470_v1, 0.0  ;;  %v4160_v12 = vadd.f32 %v10107_v40, %v8136_v6  ;;  %v5464_v36 = vpop.f32.mrb[223].mxu1 }
 0x2a6   : > { %v5949_v9 = vmax.f32 %v10498_v3, %v5821_v44  ;;  %v4383_v5 = vmax.f32 %v4149_v42, 0.0  ;;  %6589 = vst.msk [vmem:[%s9680_s26 + $0x160] sm:$0xf] %vm6500_vm3, %v7469_v28  ;;  %v5696_v21 = vmax.f32 %v5462_v23, 0.0  ;;  %v5473_v22 = vadd.f32 %v10107_v40, %v8268_v16  ;;  %v10503_v24 = vld [vmem:[#allocation57_spill] sm:$0xff]  ;;  %v10504_v16 = vld [vmem:[#allocation58_spill] sm:$0xff] }
 0x2a7   : > { %v7472_v43 = vpack.c.bf16 %v5951_v18, %v5951_v18  ;;  %v4152_v48 = vadd.f32 %v10107_v40, %v4151_v10  ;;  %v5826_v4 = vmax.f32 %v4385_v26, %v5698_v34  ;;  %v4386_v14 = vmax.f32 %v4160_v12, 0.0 }
 0x2a8   : > { %v7470_v32 = vpack.c.bf16 %v5949_v9, %v5949_v9  ;;  %v5465_v55 = vadd.f32 %v10107_v40, %v5464_v36  ;;  %v5824_v8 = vmax.f32 %v4383_v5, %v5696_v21  ;;  %v5699_v35 = vmax.f32 %v5473_v22, 0.0 }
 0x2a9   : > { %6592 = vst.msk [vmem:[%s9680_s26 + $0x16c] sm:$0xf] %vm6500_vm3, %v7472_v43  ;;  %v4384_v15 = vmax.f32 %v4152_v48, 0.0  ;;  %v5954_v58 = vmax.f32 %v10499_v7, %v5826_v4  ;;  %v10505_v4 = vld [vmem:[#allocation59_spill] sm:$0xff]  ;;  %v10506_v7 = vld [vmem:[#allocation60_spill] sm:$0xff] }
 0x2aa   : > { %6590 = vst.msk [vmem:[%s9680_s26 + $0x164] sm:$0xf] %vm6500_vm3, %v7470_v32  ;;  %v5697_v54 = vmax.f32 %v5465_v55, 0.0  ;;  %v8139_v59 = vpop.f32.mrb[224].mxu0  ;;  %v5952_v52 = vmax.f32 %v10500_v53, %v5824_v8  ;;  %v5827_v27 = vmax.f32 %v4386_v14, %v5699_v35  ;;  %v8271_v19 = vpop.f32.mrb[224].mxu1 }
 0x2ab   : > { %v4173_v30 = vadd.f32 %v10107_v40, %v8139_v59  ;;  %v4164_v0 = vpop.f32.mrb[225].mxu0  ;;  %v7475_v13 = vpack.c.bf16 %v5954_v58, %v5954_v58  ;;  %v5486_v47 = vadd.f32 %v10107_v40, %v8271_v19  ;;  %v5477_v31 = vpop.f32.mrb[225].mxu1 }
 0x2ac   : > { %v5825_v57 = vmax.f32 %v4384_v15, %v5697_v54  ;;  %v4165_v37 = vadd.f32 %v10107_v40, %v4164_v0  ;;  %v8140_v51 = vpop.f32.mrb[226].mxu0  ;;  %v7473_v17 = vpack.c.bf16 %v5952_v52, %v5952_v52  ;;  %v5955_v11 = vmax.f32 %v10501_v25, %v5827_v27  ;;  %v8272_v39 = vpop.f32.mrb[226].mxu1  ;;  %v10507_v25 = vld [vmem:[#allocation61_spill] sm:$0xff] }
 0x2ad   : > { %v4389_v61 = vmax.f32 %v4173_v30, 0.0  ;;  %v5478_v20 = vadd.f32 %v10107_v40, %v5477_v31  ;;  %v4167_v38 = vpop.f32.mrb[227].mxu0  ;;  %6595 = vst.msk [vmem:[%s9680_s26 + $0x178] sm:$0xf] %vm6500_vm3, %v7475_v13  ;;  %v5702_v29 = vmax.f32 %v5486_v47, 0.0  ;;  %v4176_v63 = vadd.f32 %v10107_v40, %v8140_v51  ;;  %v5480_v33 = vpop.f32.mrb[227].mxu1 }
 0x2ae   : > { %v5953_v56 = vmax.f32 %v10502_v41, %v5825_v57  ;;  %v4387_v45 = vmax.f32 %v4165_v37, 0.0  ;;  %6593 = vst.msk [vmem:[%s9680_s26 + $0x170] sm:$0xf] %vm6500_vm3, %v7473_v17  ;;  %v7476_v2 = vpack.c.bf16 %v5955_v11, %v5955_v11  ;;  %v5489_v60 = vadd.f32 %v10107_v40, %v8272_v39  ;;  %v10508_v39 = vld [vmem:[#allocation62_spill] sm:$0xff] }
 0x2af   : > { %v5700_v46 = vmax.f32 %v5478_v20, 0.0  ;;  %v4168_v50 = vadd.f32 %v10107_v40, %v4167_v38  ;;  %v5830_v44 = vmax.f32 %v4389_v61, %v5702_v29  ;;  %v4390_v1 = vmax.f32 %v4176_v63, 0.0 }
 0x2b0   : > { %v7474_v62 = vpack.c.bf16 %v5953_v56, %v5953_v56  ;;  %v5481_v42 = vadd.f32 %v10107_v40, %v5480_v33  ;;  %6596 = vst.msk [vmem:[%s9680_s26 + $0x17c] sm:$0xf] %vm6500_vm3, %v7476_v2  ;;  %v5703_v6 = vmax.f32 %v5489_v60, 0.0 }
 0x2b1   : > { %v5828_v49 = vmax.f32 %v4387_v45, %v5700_v46  ;;  %v4388_v28 = vmax.f32 %v4168_v50, 0.0  ;;  %v5958_v18 = vmax.f32 %v10503_v24, %v5830_v44  ;;  %v10509_v44 = vld [vmem:[#allocation63_spill] sm:$0xff]  ;;  %v10510_v24 = vld [vmem:[#allocation64_spill] sm:$0xff] }
 0x2b2   : > { %6594 = vst.msk [vmem:[%s9680_s26 + $0x174] sm:$0xf] %vm6500_vm3, %v7474_v62  ;;  %v5701_v26 = vmax.f32 %v5481_v42, 0.0  ;;  %v8143_v23 = vpop.f32.mrb[228].mxu0  ;;  %v5831_v3 = vmax.f32 %v4390_v1, %v5703_v6  ;;  %v8275_v34 = vpop.f32.mrb[228].mxu1 }
 0x2b3   : > { %v5956_v10 = vmax.f32 %v10504_v16, %v5828_v49  ;;  %v4189_v9 = vadd.f32 %v10107_v40, %v8143_v23  ;;  %v4180_v5 = vpop.f32.mrb[229].mxu0  ;;  %v7479_v12 = vpack.c.bf16 %v5958_v18, %v5958_v18  ;;  %v5502_v43 = vadd.f32 %v10107_v40, %v8275_v34  ;;  %v5493_v22 = vpop.f32.mrb[229].mxu1 }
 0x2b4   : > { %v5829_v36 = vmax.f32 %v4388_v28, %v5701_v26  ;;  %v4181_v21 = vadd.f32 %v10107_v40, %v4180_v5  ;;  %v8144_v48 = vpop.f32.mrb[230].mxu0  ;;  %v5959_v14 = vmax.f32 %v10505_v4, %v5831_v3  ;;  %v5494_v8 = vadd.f32 %v10107_v40, %v5493_v22  ;;  %v8276_v35 = vpop.f32.mrb[230].mxu1  ;;  %v10511_v4 = vld [vmem:[#allocation65_spill] sm:$0xff] }
 0x2b5   : > { %v7477_v32 = vpack.c.bf16 %v5956_v10, %v5956_v10  ;;  %v4393_v55 = vmax.f32 %v4189_v9, 0.0  ;;  %v4183_v15 = vpop.f32.mrb[231].mxu0  ;;  %6599 = vst.msk [vmem:[%s9680_s26 + $0x188] sm:$0xf] %vm6500_vm3, %v7479_v12  ;;  %v5706_v54 = vmax.f32 %v5502_v43, 0.0  ;;  %v4192_v53 = vadd.f32 %v10107_v40, %v8144_v48  ;;  %v5496_v52 = vpop.f32.mrb[231].mxu1 }
 0x2b6   : > { %v5957_v58 = vmax.f32 %v10506_v7, %v5829_v36  ;;  %v4391_v59 = vmax.f32 %v4181_v21, 0.0  ;;  %v7480_v27 = vpack.c.bf16 %v5959_v14, %v5959_v14  ;;  %v5704_v30 = vmax.f32 %v5494_v8, 0.0 }
 0x2b7   : > { %6597 = vst.msk [vmem:[%s9680_s26 + $0x180] sm:$0xf] %vm6500_vm3, %v7477_v32  ;;  %v5505_v19 = vadd.f32 %v10107_v40, %v8276_v35  ;;  %v4184_v0 = vadd.f32 %v10107_v40, %v4183_v15  ;;  %v5834_v57 = vmax.f32 %v4393_v55, %v5706_v54  ;;  %v4394_v47 = vmax.f32 %v4192_v53, 0.0  ;;  %v10512_v35 = vld [vmem:[#allocation66_spill] sm:$0xff] }
 0x2b8   : > { %v7478_v13 = vpack.c.bf16 %v5957_v58, %v5957_v58  ;;  %v5497_v37 = vadd.f32 %v10107_v40, %v5496_v52  ;;  %6600 = vst.msk [vmem:[%s9680_s26 + $0x18c] sm:$0xf] %vm6500_vm3, %v7480_v27  ;;  %v5832_v31 = vmax.f32 %v4391_v59, %v5704_v30 }
 0x2b9   : > { %v5707_v51 = vmax.f32 %v5505_v19, 0.0  ;;  %v4392_v17 = vmax.f32 %v4184_v0, 0.0  ;;  %v5962_v11 = vmax.f32 %v10507_v25, %v5834_v57  ;;  %v10513_v57 = vld [vmem:[#allocation67_spill] sm:$0xff]  ;;  %v10514_v25 = vld [vmem:[#allocation68_spill] sm:$0xff] }
 0x2ba   : > { %6598 = vst.msk [vmem:[%s9680_s26 + $0x184] sm:$0xf] %vm6500_vm3, %v7478_v13  ;;  %v5705_v61 = vmax.f32 %v5497_v37, 0.0  ;;  %v8147_v20 = vpop.f32.mrb[232].mxu0  ;;  %v5960_v38 = vmax.f32 %v10508_v39, %v5832_v31  ;;  %v8279_v29 = vpop.f32.mrb[232].mxu1 }
 0x2bb   : > { %v5835_v41 = vmax.f32 %v4394_v47, %v5707_v51  ;;  %v4205_v56 = vadd.f32 %v10107_v40, %v8147_v20  ;;  %v4196_v45 = vpop.f32.mrb[233].mxu0  ;;  %v7483_v63 = vpack.c.bf16 %v5962_v11, %v5962_v11  ;;  %v5518_v2 = vadd.f32 %v10107_v40, %v8279_v29  ;;  %v5509_v60 = vpop.f32.mrb[233].mxu1 }
 0x2bc   : > { %v5833_v33 = vmax.f32 %v4392_v17, %v5705_v61  ;;  %v4197_v46 = vadd.f32 %v10107_v40, %v4196_v45  ;;  %v8148_v50 = vpop.f32.mrb[234].mxu0  ;;  %v7481_v62 = vpack.c.bf16 %v5960_v38, %v5960_v38  ;;  %v5510_v49 = vadd.f32 %v10107_v40, %v5509_v60  ;;  %v8280_v6 = vpop.f32.mrb[234].mxu1 }
 0x2bd   : > { %v5963_v1 = vmax.f32 %v10509_v44, %v5835_v41  ;;  %v4397_v42 = vmax.f32 %v4205_v56, 0.0  ;;  %v4199_v28 = vpop.f32.mrb[235].mxu0  ;;  %6603 = vst.msk [vmem:[%s9680_s26 + $0x198] sm:$0xf] %vm6500_vm3, %v7483_v63  ;;  %v5710_v26 = vmax.f32 %v5518_v2, 0.0  ;;  %v4208_v16 = vadd.f32 %v10107_v40, %v8148_v50  ;;  %v5512_v10 = vpop.f32.mrb[235].mxu1 }
 0x2be   : > { %v5961_v18 = vmax.f32 %v10510_v24, %v5833_v33  ;;  %v4395_v23 = vmax.f32 %v4197_v46, 0.0  ;;  %6601 = vst.msk [vmem:[%s9680_s26 + $0x190] sm:$0xf] %vm6500_vm3, %v7481_v62  ;;  %v5708_v9 = vmax.f32 %v5510_v49, 0.0  ;;  %v5521_v34 = vadd.f32 %v10107_v40, %v8280_v6  ;;  %v10515_v44 = vld [vmem:[#allocation69_spill] sm:$0xff]  ;;  %v10516_v6 = vld [vmem:[#allocation70_spill] sm:$0xff] }
 0x2bf   : > { %v7484_v3 = vpack.c.bf16 %v5963_v1, %v5963_v1  ;;  %v4200_v5 = vadd.f32 %v10107_v40, %v4199_v28  ;;  %v5838_v36 = vmax.f32 %v4397_v42, %v5710_v26  ;;  %v4398_v43 = vmax.f32 %v4208_v16, 0.0 }
 0x2c0   : > { %v7482_v12 = vpack.c.bf16 %v5961_v18, %v5961_v18  ;;  %v5513_v21 = vadd.f32 %v10107_v40, %v5512_v10  ;;  %v5836_v22 = vmax.f32 %v4395_v23, %v5708_v9  ;;  %v5711_v48 = vmax.f32 %v5521_v34, 0.0 }
 0x2c1   : > { %6604 = vst.msk [vmem:[%s9680_s26 + $0x19c] sm:$0xf] %vm6500_vm3, %v7484_v3  ;;  %v4396_v32 = vmax.f32 %v4200_v5, 0.0  ;;  %v5966_v14 = vmax.f32 %v10511_v4, %v5838_v36  ;;  %v10517_v36 = vld [vmem:[#allocation71_spill] sm:$0xff]  ;;  %v10518_v4 = vld [vmem:[#allocation72_spill] sm:$0xff] }
 0x2c2   : > { %6602 = vst.msk [vmem:[%s9680_s26 + $0x194] sm:$0xf] %vm6500_vm3, %v7482_v12  ;;  %v5709_v55 = vmax.f32 %v5513_v21, 0.0  ;;  %v8151_v8 = vpop.f32.mrb[236].mxu0  ;;  %v5964_v15 = vmax.f32 %v10512_v35, %v5836_v22  ;;  %v5839_v7 = vmax.f32 %v4398_v43, %v5711_v48  ;;  %v8283_v54 = vpop.f32.mrb[236].mxu1 }
 0x2c3   : > { %v4221_v58 = vadd.f32 %v10107_v40, %v8151_v8  ;;  %v4212_v59 = vpop.f32.mrb[237].mxu0  ;;  %v7487_v53 = vpack.c.bf16 %v5966_v14, %v5966_v14  ;;  %v5534_v27 = vadd.f32 %v10107_v40, %v8283_v54  ;;  %v5525_v19 = vpop.f32.mrb[237].mxu1 }
 0x2c4   : > { %v5837_v52 = vmax.f32 %v4396_v32, %v5709_v55  ;;  %v4213_v30 = vadd.f32 %v10107_v40, %v4212_v59  ;;  %v8152_v0 = vpop.f32.mrb[238].mxu0  ;;  %v7485_v13 = vpack.c.bf16 %v5964_v15, %v5964_v15  ;;  %v5967_v47 = vmax.f32 %v10513_v57, %v5839_v7  ;;  %v8284_v51 = vpop.f32.mrb[238].mxu1  ;;  %v10519_v57 = vld [vmem:[#allocation73_spill] sm:$0xff] }
 0x2c5   : > { %v4401_v37 = vmax.f32 %v4221_v58, 0.0  ;;  %v5526_v31 = vadd.f32 %v10107_v40, %v5525_v19  ;;  %v4215_v17 = vpop.f32.mrb[239].mxu0  ;;  %6607 = vst.msk [vmem:[%s9680_s26 + $0x1a8] sm:$0xf] %vm6500_vm3, %v7487_v53  ;;  %v5714_v61 = vmax.f32 %v5534_v27, 0.0  ;;  %v4224_v39 = vadd.f32 %v10107_v40, %v8152_v0  ;;  %v5528_v38 = vpop.f32.mrb[239].mxu1 }
 0x2c6   : > { %v5965_v11 = vmax.f32 %v10514_v25, %v5837_v52  ;;  %v4399_v20 = vmax.f32 %v4213_v30, 0.0  ;;  %6605 = vst.msk [vmem:[%s9680_s26 + $0x1a0] sm:$0xf] %vm6500_vm3, %v7485_v13  ;;  %v7488_v41 = vpack.c.bf16 %v5967_v47, %v5967_v47  ;;  %v5537_v29 = vadd.f32 %v10107_v40, %v8284_v51  ;;  %v10520_v51 = vld [vmem:[#allocation74_spill] sm:$0xff] }
 0x2c7   : > { %v5712_v56 = vmax.f32 %v5526_v31, 0.0  ;;  %v4216_v45 = vadd.f32 %v10107_v40, %v4215_v17  ;;  %v5842_v33 = vmax.f32 %v4401_v37, %v5714_v61  ;;  %v4402_v2 = vmax.f32 %v4224_v39, 0.0 }
 0x2c8   : > { %v7486_v63 = vpack.c.bf16 %v5965_v11, %v5965_v11  ;;  %v5529_v46 = vadd.f32 %v10107_v40, %v5528_v38  ;;  %6608 = vst.msk [vmem:[%s9680_s26 + $0x1ac] sm:$0xf] %vm6500_vm3, %v7488_v41  ;;  %v5715_v50 = vmax.f32 %v5537_v29, 0.0 }
 0x2c9   : > { %v5840_v60 = vmax.f32 %v4399_v20, %v5712_v56  ;;  %v4400_v62 = vmax.f32 %v4216_v45, 0.0  ;;  %v5970_v1 = vmax.f32 %v10515_v44, %v5842_v33  ;;  %v10521_v33 = vld [vmem:[#allocation75_spill] sm:$0xff]  ;;  %v10522_v44 = vld [vmem:[#allocation76_spill] sm:$0xff] }
 0x2ca   : > { %6606 = vst.msk [vmem:[%s9680_s26 + $0x1a4] sm:$0xf] %vm6500_vm3, %v7486_v63  ;;  %v5713_v42 = vmax.f32 %v5529_v46, 0.0  ;;  %v8155_v49 = vpop.f32.mrb[240].mxu0  ;;  %v5843_v24 = vmax.f32 %v4402_v2, %v5715_v50 }
 0x2cb   : > { %v5968_v28 = vmax.f32 %v10516_v6, %v5840_v60  ;;  %v4237_v18 = vadd.f32 %v10107_v40, %v8155_v49  ;;  %v8287_v26 = vpop.f32.mrb[240].mxu1  ;;  %v4228_v23 = vpop.f32.mrb[241].mxu0  ;;  %v7491_v16 = vpack.c.bf16 %v5970_v1, %v5970_v1 }
 0x2cc   : > { %v5841_v10 = vmax.f32 %v4400_v62, %v5713_v42  ;;  %v5550_v3 = vadd.f32 %v10107_v40, %v8287_v26  ;;  %v4229_v9 = vadd.f32 %v10107_v40, %v4228_v23  ;;  %v5541_v34 = vpop.f32.mrb[241].mxu1  ;;  %v8156_v5 = vpop.f32.mrb[242].mxu0  ;;  %v5971_v43 = vmax.f32 %v10517_v36, %v5843_v24  ;;  %v10523_v36 = vld [vmem:[#allocation77_spill] sm:$0xff] }
 0x2cd   : > { %v7489_v12 = vpack.c.bf16 %v5968_v28, %v5968_v28  ;;  %v4405_v21 = vmax.f32 %v4237_v18, 0.0  ;;  %v5542_v22 = vadd.f32 %v10107_v40, %v5541_v34  ;;  %v8288_v48 = vpop.f32.mrb[242].mxu1  ;;  %v4231_v32 = vpop.f32.mrb[243].mxu0  ;;  %6611 = vst.msk [vmem:[%s9680_s26 + $0x1b8] sm:$0xf] %vm6500_vm3, %v7491_v16  ;;  %v4240_v35 = vadd.f32 %v10107_v40, %v8156_v5 }
 0x2ce   : > { %v5969_v14 = vmax.f32 %v10518_v4, %v5841_v10  ;;  %v5718_v55 = vmax.f32 %v5550_v3, 0.0  ;;  %v4403_v8 = vmax.f32 %v4229_v9, 0.0  ;;  %v5544_v15 = vpop.f32.mrb[243].mxu1  ;;  %v7492_v7 = vpack.c.bf16 %v5971_v43, %v5971_v43 }
 0x2cf   : > { %6609 = vst.msk [vmem:[%s9680_s26 + $0x1b0] sm:$0xf] %vm6500_vm3, %v7489_v12  ;;  %v5716_v58 = vmax.f32 %v5542_v22, 0.0  ;;  %v5553_v54 = vadd.f32 %v10107_v40, %v8288_v48  ;;  %v4232_v59 = vadd.f32 %v10107_v40, %v4231_v32  ;;  %v4406_v27 = vmax.f32 %v4240_v35, 0.0  ;;  %v10524_v48 = vld [vmem:[#allocation78_spill] sm:$0xff] }
 0x2d0   : > { %v7490_v53 = vpack.c.bf16 %v5969_v14, %v5969_v14  ;;  %v5846_v52 = vmax.f32 %v4405_v21, %v5718_v55  ;;  %v5545_v30 = vadd.f32 %v10107_v40, %v5544_v15  ;;  %6612 = vst.msk [vmem:[%s9680_s26 + $0x1bc] sm:$0xf] %vm6500_vm3, %v7492_v7 }
 0x2d1   : > { %v5844_v19 = vmax.f32 %v4403_v8, %v5716_v58  ;;  %v5719_v0 = vmax.f32 %v5553_v54, 0.0  ;;  %v4404_v13 = vmax.f32 %v4232_v59, 0.0 }
 0x2d2   : > { %6610 = vst.msk [vmem:[%s9680_s26 + $0x1b4] sm:$0xf] %vm6500_vm3, %v7490_v53  ;;  %v5974_v47 = vmax.f32 %v10519_v57, %v5846_v52  ;;  %v5717_v37 = vmax.f32 %v5545_v30, 0.0  ;;  %v8159_v31 = vpop.f32.mrb[244].mxu0  ;;  %v10525_v52 = vld [vmem:[#allocation79_spill] sm:$0xff]  ;;  %v10526_v57 = vld [vmem:[#allocation80_spill] sm:$0xff] }
 0x2d3   : > { %v5972_v17 = vmax.f32 %v10520_v51, %v5844_v19  ;;  %v5847_v25 = vmax.f32 %v4406_v27, %v5719_v0  ;;  %v4253_v11 = vadd.f32 %v10107_v40, %v8159_v31  ;;  %v8291_v61 = vpop.f32.mrb[244].mxu1  ;;  %v4244_v20 = vpop.f32.mrb[245].mxu0 }
 0x2d4   : > { %v7495_v39 = vpack.c.bf16 %v5974_v47, %v5974_v47  ;;  %v5845_v38 = vmax.f32 %v4404_v13, %v5717_v37  ;;  %v5566_v41 = vadd.f32 %v10107_v40, %v8291_v61  ;;  %v4245_v56 = vadd.f32 %v10107_v40, %v4244_v20  ;;  %v5557_v29 = vpop.f32.mrb[245].mxu1  ;;  %v8160_v45 = vpop.f32.mrb[246].mxu0 }
 0x2d5   : > { %v7493_v63 = vpack.c.bf16 %v5972_v17, %v5972_v17  ;;  %v5975_v2 = vmax.f32 %v10521_v33, %v5847_v25  ;;  %v4409_v46 = vmax.f32 %v4253_v11, 0.0  ;;  %v5558_v60 = vadd.f32 %v10107_v40, %v5557_v29  ;;  %v8292_v50 = vpop.f32.mrb[246].mxu1  ;;  %v4247_v62 = vpop.f32.mrb[247].mxu0  ;;  %v10527_v33 = vld [vmem:[#allocation81_spill] sm:$0xff] }
 0x2d6   : > { %6615 = vst.msk [vmem:[%s9680_s26 + $0x1c8] sm:$0xf] %vm6500_vm3, %v7495_v39  ;;  %v5973_v1 = vmax.f32 %v10522_v44, %v5845_v38  ;;  %v5722_v42 = vmax.f32 %v5566_v41, 0.0  ;;  %v4407_v49 = vmax.f32 %v4245_v56, 0.0  ;;  %v4256_v6 = vadd.f32 %v10107_v40, %v8160_v45  ;;  %v5560_v28 = vpop.f32.mrb[247].mxu1 }
 0x2d7   : > { %6613 = vst.msk [vmem:[%s9680_s26 + $0x1c0] sm:$0xf] %vm6500_vm3, %v7493_v63  ;;  %v7496_v24 = vpack.c.bf16 %v5975_v2, %v5975_v2  ;;  %v5720_v18 = vmax.f32 %v5558_v60, 0.0  ;;  %v5569_v26 = vadd.f32 %v10107_v40, %v8292_v50  ;;  %v4248_v23 = vadd.f32 %v10107_v40, %v4247_v62  ;;  %v10528_v50 = vld [vmem:[#allocation82_spill] sm:$0xff] }
 0x2d8   : > { %v7494_v16 = vpack.c.bf16 %v5973_v1, %v5973_v1  ;;  %v5850_v10 = vmax.f32 %v4409_v46, %v5722_v42  ;;  %v4410_v3 = vmax.f32 %v4256_v6, 0.0  ;;  %v5561_v9 = vadd.f32 %v10107_v40, %v5560_v28 }
 0x2d9   : > { %6616 = vst.msk [vmem:[%s9680_s26 + $0x1cc] sm:$0xf] %vm6500_vm3, %v7496_v24  ;;  %v5848_v34 = vmax.f32 %v4407_v49, %v5720_v18  ;;  %v5723_v5 = vmax.f32 %v5569_v26, 0.0  ;;  %v4408_v12 = vmax.f32 %v4248_v23, 0.0 }
 0x2da   : > { %6614 = vst.msk [vmem:[%s9680_s26 + $0x1c4] sm:$0xf] %vm6500_vm3, %v7494_v16  ;;  %v5978_v43 = vmax.f32 %v10523_v36, %v5850_v10  ;;  %v5721_v21 = vmax.f32 %v5561_v9, 0.0  ;;  %v8163_v22 = vpop.f32.mrb[248].mxu0  ;;  %v10529_v10 = vld [vmem:[#allocation83_spill] sm:$0xff]  ;;  %v10530_v36 = vld [vmem:[#allocation84_spill] sm:$0xff] }
 0x2db   : > { %v5976_v32 = vmax.f32 %v10524_v48, %v5848_v34  ;;  %v5851_v4 = vmax.f32 %v4410_v3, %v5723_v5  ;;  %v4269_v14 = vadd.f32 %v10107_v40, %v8163_v22  ;;  %v8295_v55 = vpop.f32.mrb[248].mxu1  ;;  %v4260_v8 = vpop.f32.mrb[249].mxu0 }
 0x2dc   : > { %v7499_v35 = vpack.c.bf16 %v5978_v43, %v5978_v43  ;;  %v5849_v15 = vmax.f32 %v4408_v12, %v5721_v21  ;;  %v5582_v7 = vadd.f32 %v10107_v40, %v8295_v55  ;;  %v4261_v58 = vadd.f32 %v10107_v40, %v4260_v8  ;;  %v5573_v54 = vpop.f32.mrb[249].mxu1  ;;  %v8164_v59 = vpop.f32.mrb[250].mxu0 }
 0x2dd   : > { %v7497_v53 = vpack.c.bf16 %v5976_v32, %v5976_v32  ;;  %v5979_v27 = vmax.f32 %v10525_v52, %v5851_v4  ;;  %v4413_v30 = vmax.f32 %v4269_v14, 0.0  ;;  %v5574_v19 = vadd.f32 %v10107_v40, %v5573_v54  ;;  %v8296_v0 = vpop.f32.mrb[250].mxu1  ;;  %v4263_v13 = vpop.f32.mrb[251].mxu0  ;;  %v10531_v52 = vld [vmem:[#allocation85_spill] sm:$0xff] }
 0x2de   : > { %6619 = vst.msk [vmem:[%s9680_s26 + $0x1d8] sm:$0xf] %vm6500_vm3, %v7499_v35  ;;  %v5977_v47 = vmax.f32 %v10526_v57, %v5849_v15  ;;  %v5726_v37 = vmax.f32 %v5582_v7, 0.0  ;;  %v4411_v31 = vmax.f32 %v4261_v58, 0.0  ;;  %v4272_v51 = vadd.f32 %v10107_v40, %v8164_v59  ;;  %v5576_v17 = vpop.f32.mrb[251].mxu1 }
 0x2df   : > { %6617 = vst.msk [vmem:[%s9680_s26 + $0x1d0] sm:$0xf] %vm6500_vm3, %v7497_v53  ;;  %v7500_v25 = vpack.c.bf16 %v5979_v27, %v5979_v27  ;;  %v5724_v11 = vmax.f32 %v5574_v19, 0.0  ;;  %v5585_v61 = vadd.f32 %v10107_v40, %v8296_v0  ;;  %v4264_v20 = vadd.f32 %v10107_v40, %v4263_v13  ;;  %v10532_v19 = vld [vmem:[#allocation86_spill] sm:$0xff] }
 0x2e0   : > { %v7498_v39 = vpack.c.bf16 %v5977_v47, %v5977_v47  ;;  %v5854_v38 = vmax.f32 %v4413_v30, %v5726_v37  ;;  %v4414_v41 = vmax.f32 %v4272_v51, 0.0  ;;  %v5577_v56 = vadd.f32 %v10107_v40, %v5576_v17  ;;  %v10534_v51 = vld [vmem:[#allocation88_spill] sm:$0xff] }
 0x2e1   : > { %6620 = vst.msk [vmem:[%s9680_s26 + $0x1dc] sm:$0xf] %vm6500_vm3, %v7500_v25  ;;  %v5852_v29 = vmax.f32 %v4411_v31, %v5724_v11  ;;  %v5727_v45 = vmax.f32 %v5585_v61, 0.0  ;;  %v4412_v63 = vmax.f32 %v4264_v20, 0.0 }
 0x2e2   : > { %6618 = vst.msk [vmem:[%s9680_s26 + $0x1d4] sm:$0xf] %vm6500_vm3, %v7498_v39  ;;  %v5982_v2 = vmax.f32 %v10527_v33, %v5854_v38  ;;  %v5725_v46 = vmax.f32 %v5577_v56, 0.0  ;;  %v8167_v60 = vpop.f32.mrb[252].mxu0 }
 0x2e3   : > { %v5980_v62 = vmax.f32 %v10528_v50, %v5852_v29  ;;  %v5855_v44 = vmax.f32 %v4414_v41, %v5727_v45  ;;  %v4285_v1 = vadd.f32 %v10107_v40, %v8167_v60  ;;  %v8299_v42 = vpop.f32.mrb[252].mxu1  ;;  %v4276_v49 = vpop.f32.mrb[253].mxu0 }
 0x2e4   : > { %v7503_v6 = vpack.c.bf16 %v5982_v2, %v5982_v2  ;;  %v5853_v28 = vmax.f32 %v4412_v63, %v5725_v46  ;;  %v5598_v24 = vadd.f32 %v10107_v40, %v8299_v42  ;;  %v4277_v18 = vadd.f32 %v10107_v40, %v4276_v49  ;;  %v5589_v26 = vpop.f32.mrb[253].mxu1  ;;  %v8168_v23 = vpop.f32.mrb[254].mxu0 }
 0x2e5   : > { %v7501_v16 = vpack.c.bf16 %v5980_v62, %v5980_v62  ;;  %v5983_v3 = vmax.f32 %v10529_v10, %v5855_v44  ;;  %v4417_v9 = vmax.f32 %v4285_v1, 0.0  ;;  %v5590_v34 = vadd.f32 %v10107_v40, %v5589_v26  ;;  %v8300_v5 = vpop.f32.mrb[254].mxu1  ;;  %v4279_v12 = vpop.f32.mrb[255].mxu0 }
 0x2e6   : > { %6623 = vst.msk [vmem:[%s9680_s26 + $0x1e8] sm:$0xf] %vm6500_vm3, %v7503_v6  ;;  %v5981_v43 = vmax.f32 %v10530_v36, %v5853_v28  ;;  %v5730_v21 = vmax.f32 %v5598_v24, 0.0  ;;  %v4415_v22 = vmax.f32 %v4277_v18, 0.0  ;;  %v4288_v48 = vadd.f32 %v10107_v40, %v8168_v23  ;;  %v5592_v32 = vpop.f32.mrb[255].mxu1 }
 0x2e7   : > { %6621 = vst.msk [vmem:[%s9680_s26 + $0x1e0] sm:$0xf] %vm6500_vm3, %v7501_v16  ;;  %v7504_v4 = vpack.c.bf16 %v5983_v3, %v5983_v3  ;;  %v5728_v14 = vmax.f32 %v5590_v34, 0.0  ;;  %v5601_v55 = vadd.f32 %v10107_v40, %v8300_v5  ;;  %v4280_v8 = vadd.f32 %v10107_v40, %v4279_v12 }
 0x2e8   : > { %v7502_v35 = vpack.c.bf16 %v5981_v43, %v5981_v43  ;;  %v5858_v15 = vmax.f32 %v4417_v9, %v5730_v21  ;;  %v4418_v7 = vmax.f32 %v4288_v48, 0.0  ;;  %v5593_v58 = vadd.f32 %v10107_v40, %v5592_v32  ;;  %v10533_v40 = vld [vmem:[#allocation87_spill] sm:$0xff] }
 0x2e9   : > { %6624 = vst.msk [vmem:[%s9680_s26 + $0x1ec] sm:$0xf] %vm6500_vm3, %v7504_v4  ;;  %v5856_v54 = vmax.f32 %v4415_v22, %v5728_v14  ;;  %v5731_v59 = vmax.f32 %v5601_v55, 0.0  ;;  %v4416_v53 = vmax.f32 %v4280_v8, 0.0 }
 0x2ea   : > { %6622 = vst.msk [vmem:[%s9680_s26 + $0x1e4] sm:$0xf] %vm6500_vm3, %v7502_v35  ;;  %v5986_v27 = vmax.f32 %v10531_v52, %v5858_v15  ;;  %v5729_v30 = vmax.f32 %v5593_v58, 0.0 }
 0x2eb   : > { %v5984_v0 = vmax.f32 %v10532_v19, %v5856_v54  ;;  %v5859_v13 = vmax.f32 %v4418_v7, %v5731_v59 }
 0x2ec   : > { %v7507_v57 = vpack.c.bf16 %v5986_v27, %v5986_v27  ;;  %v5857_v47 = vmax.f32 %v4416_v53, %v5729_v30 }
 0x2ed   : > { %v7505_v37 = vpack.c.bf16 %v5984_v0, %v5984_v0  ;;  %v5987_v31 = vmax.f32 %v10533_v40, %v5859_v13 }
 0x2ee   : > { %6627 = vst.msk [vmem:[%s9680_s26 + $0x1f8] sm:$0xf] %vm6500_vm3, %v7507_v57  ;;  %v5985_v17 = vmax.f32 %v10534_v51, %v5857_v47 }
 0x2ef   : > { %6625 = vst.msk [vmem:[%s9680_s26 + $0x1f0] sm:$0xf] %vm6500_vm3, %v7505_v37  ;;  %v7508_v25 = vpack.c.bf16 %v5987_v31, %v5987_v31 }
 0x2f0   : > { %v7506_v11 = vpack.c.bf16 %v5985_v17, %v5985_v17 }
 0x2f1   : > { %6628 = vst.msk [vmem:[%s9680_s26 + $0x1fc] sm:$0xf] %vm6500_vm3, %v7508_v25 }
 0x2f2   : > { %6626 = vst.msk [vmem:[%s9680_s26 + $0x1f4] sm:$0xf] %vm6500_vm3, %v7506_v11 }
 0x2f3 PF: > { %s16_s21 = sadd.s32 1, %s8578_s21  }
 0x2f4   : > { %p13_p4 = scmp.ge.s32.totalorder %s16_s21, 4  }
 0x2f6   :  { %15 = sbr.rel (!%p13_p4) target bundleno = 1 (0x1), region = 83 }

// kernel: cnn_forward.4
= control target key start
LH: loop header
LB: loop body
LE: loop exit
PB: predicated region body
PF: predicated region fallthrough
CT: control target
= control target key end

     0   :  { %s2977_s21 = smov 0   ;;  %s3630_s0 = inlined_call_operand.vmem [shape: bf16[512,144], index: 0, kind: input, shape index: {}]   ;;  %s3631_s1 = inlined_call_operand.vmem [shape: bf16[512,144], index: 1, kind: input, shape index: {}]   ;;  %s3632_s2 = inlined_call_operand.vmem [shape: bf16[512,144], index: 2, kind: input, shape index: {}]   ;;  %s3633_s3 = inlined_call_operand.vmem [shape: bf16[512,144], index: 3, kind: input, shape index: {}]   ;;  %s3634_s4 = inlined_call_operand.vmem [shape: bf16[144,32], index: 4, kind: input, shape index: {}]   ;;  %s3635_s5 = inlined_call_operand.vmem [shape: f32[1,32], index: 5, kind: input, shape index: {}]   ;;  %s3636_s6 = inlined_call_operand.vmem [shape: bf16[512,32], index: 6, kind: output, shape index: {}]  }
   0x1 LB: > { %s2431_s22 = sadd.s32 4294967295, %s2939_s21   ;;  %p2435_p0 = scmp.ge.s32.totalorder %s2939_s21, 1  ;;  %s2939_s21 = sphi %s2977_s21, %s16_s21  }
   0x2   : > { %p250_p1 = scmp.lt.s32.totalorder %s2939_s21, 3 }
   0x4   : > { %p251_p2 = pnand %p2435_p0, %p250_p1 }
   0x5   : > { %v2988_v0 = vld [vmem:[%s3634_s4] sm:$0xff] (!%p251_p2)   ;;  %v2941_v1 = vmov (!%p251_p2), 0   ;;  %s2436_s25 = sshll.u32 (!%p251_p2), %s2431_s22, 5  ;;  %v2997_v2 = vld [vmem:[%s3634_s4 + $0x8] sm:$0xff] (!%p251_p2)   ;;  %v3008_v3 = vld [vmem:[%s3634_s4 + $0x10] sm:$0xff] (!%p251_p2)   ;;  %vm589_vm0 = vcmask (!%p251_p2), 130048  }
   0x6   : > { %254 = sbr.rel (%p251_p2) target bundleno = 516 (0x204), region = 44  ;;  %638 = vmatprep.subr.bf16.mxu0 (!%p251_p2), %v2941_v1  ;;  %1055 = vmatprep.subr.bf16.mxu1 (!%p251_p2), %v2941_v1  ;;  %p300_p3 = scmp.lt.s32.totalorder (!%p251_p2), %s2436_s25, 63  ;;  %v3030_v4 = vld [vmem:[%s3634_s4 + $0x18] sm:$0xff] (!%p251_p2)   ;;  %v3045_v7 = vld [vmem:[%s3634_s4 + $0x20] sm:$0xff] (!%p251_p2)   ;;  %v3054_v8 = vld [vmem:[%s3634_s4 + $0x28] sm:$0xff] (!%p251_p2)   ;;  %vm2306_vm1 = vcmask (!%p251_p2), 257024  }
   0x7   : > { %639 = vmatpush1.bf16.msra.mxu0 (!%p251_p2), %v2988_v0  ;;  %1056 = vmatpush1.bf16.msra.mxu1 (!%p251_p2), %v2988_v0  ;;  %v3063_v9 = vld [vmem:[%s3634_s4 + $0x30] sm:$0xff] (!%p251_p2)   ;;  %v3072_v10 = vld [vmem:[%s3634_s4 + $0x38] sm:$0xff] (!%p251_p2)   ;;  %v3081_v11 = vld [vmem:[%s3634_s4 + $0x40] sm:$0xff] (!%p251_p2)  }
   0x8   : > { %640 = vmatprep.subr.bf16.mxu0 (!%p251_p2), %v2941_v1  ;;  %1057 = vmatprep.subr.bf16.mxu1 (!%p251_p2), %v2941_v1 }
   0xb   : > { %641 = vmatpush1.bf16.msra.mxu0 (!%p251_p2), %v2997_v2  ;;  %1058 = vmatpush1.bf16.msra.mxu1 (!%p251_p2), %v2997_v2 }
   0xc   : > { %642 = vmatprep.subr.bf16.mxu0 (!%p251_p2), %v2941_v1  ;;  %1059 = vmatprep.subr.bf16.mxu1 (!%p251_p2), %v2941_v1 }
   0xd   : > { %s3638_s25 = smov (!%p300_p3, %s2436_s25), 63 }
   0xe   : > { %s3011_s30 = sshll.u32 %s3638_s25, 3  ;;  %s2449_s11 = sshll.u32 %s3638_s25, 2 }
   0xf   : > { %s3019_s9 = scalar_lea.vmem %s3630_s0, %s3011_s30  ;;  %s3025_s12 = scalar_lea.vmem %s3631_s1, %s3011_s30  ;;  %643 = vmatpush1.bf16.msra.mxu0 %v3008_v3  ;;  %1060 = vmatpush1.bf16.msra.mxu1 %v3008_v3 }
  0x10   : > { %v2742_v5 = vld [vmem:[%s3019_s9 + $0x4] ss:$8 sps:$4 sm:$0xff]   ;;  %644 = vmatprep.subr.bf16.mxu0 %v2941_v1  ;;  %1061 = vmatprep.subr.bf16.mxu1 %v2941_v1  ;;  %v2740_v12 = vld [vmem:[%s3019_s9] ss:$8 sps:$4 sm:$0xff]   ;;  %v2746_v14 = vld [vmem:[%s3019_s9 + $0x14] ss:$8 sps:$4 sm:$0xff]   ;;  %s3121_s29 = scalar_lea.vmem %s3632_s2, %s3011_s30  ;;  %s3131_s10 = scalar_lea.vmem %s3633_s3, %s3011_s30 }
  0x11   : > { %v2745_v6 = vld [vmem:[%s3025_s12 + $0x4] ss:$8 sps:$4 sm:$0xff]   ;;  %2492 = vmatprep.mubr.msk.bf16.mxu0 %vm589_vm0, %v2742_v5  ;;  %v2743_v13 = vld [vmem:[%s3025_s12] ss:$8 sps:$4 sm:$0xff]   ;;  %v2748_v15 = vld [vmem:[%s3025_s12 + $0x14] ss:$8 sps:$4 sm:$0xff]   ;;  %s3465_s14 = scalar_lea.vmem %s3636_s6, %s2449_s11 }
  0x12   : > { %2540 = vmatprep.mubr.msk.bf16.mxu1 %vm589_vm0, %v2745_v6  ;;  %v2750_v16 = vld [vmem:[%s3019_s9 + $0x10] ss:$8 sps:$4 sm:$0xff]   ;;  %v2752_v18 = vld [vmem:[%s3019_s9 + $0x24] ss:$8 sps:$4 sm:$0xff]   ;;  %v2756_v20 = vld [vmem:[%s3019_s9 + $0x20] ss:$8 sps:$4 sm:$0xff]  }
  0x13   : > { %645 = vmatpush1.bf16.msra.mxu0 %v3030_v4  ;;  %1062 = vmatpush1.bf16.msra.mxu1 %v3030_v4  ;;  %v2751_v17 = vld [vmem:[%s3025_s12 + $0x10] ss:$8 sps:$4 sm:$0xff]   ;;  %v2754_v19 = vld [vmem:[%s3025_s12 + $0x24] ss:$8 sps:$4 sm:$0xff]   ;;  %v2757_v21 = vld [vmem:[%s3025_s12 + $0x20] ss:$8 sps:$4 sm:$0xff]  }
  0x14   : > { %646 = vmatprep.subr.bf16.mxu0 %v2941_v1  ;;  %1063 = vmatprep.subr.bf16.mxu1 %v2941_v1  ;;  %v2758_v22 = vld [vmem:[%s3019_s9 + $0x34] ss:$8 sps:$4 sm:$0xff]   ;;  %v2762_v24 = vld [vmem:[%s3019_s9 + $0x30] ss:$8 sps:$4 sm:$0xff]   ;;  %v2764_v26 = vld [vmem:[%s3019_s9 + $0x44] ss:$8 sps:$4 sm:$0xff]  }
  0x15   : > { %v2760_v23 = vld [vmem:[%s3025_s12 + $0x34] ss:$8 sps:$4 sm:$0xff]   ;;  %v2763_v25 = vld [vmem:[%s3025_s12 + $0x30] ss:$8 sps:$4 sm:$0xff]   ;;  %v2766_v27 = vld [vmem:[%s3025_s12 + $0x44] ss:$8 sps:$4 sm:$0xff]  }
  0x16   : > { %v2768_v28 = vld [vmem:[%s3019_s9 + $0x40] ss:$8 sps:$4 sm:$0xff]   ;;  %v2770_v30 = vld [vmem:[%s3019_s9 + $0x54] ss:$8 sps:$4 sm:$0xff]   ;;  %v2774_v32 = vld [vmem:[%s3019_s9 + $0x50] ss:$8 sps:$4 sm:$0xff]  }
  0x17   : > { %647 = vmatpush1.bf16.msra.mxu0 %v3045_v7  ;;  %1064 = vmatpush1.bf16.msra.mxu1 %v3045_v7  ;;  %v2769_v29 = vld [vmem:[%s3025_s12 + $0x40] ss:$8 sps:$4 sm:$0xff]   ;;  %v2772_v31 = vld [vmem:[%s3025_s12 + $0x54] ss:$8 sps:$4 sm:$0xff]   ;;  %v2775_v33 = vld [vmem:[%s3025_s12 + $0x50] ss:$8 sps:$4 sm:$0xff]  }
  0x18   : > { %648 = vmatprep.subr.bf16.mxu0 %v2941_v1  ;;  %1065 = vmatprep.subr.bf16.mxu1 %v2941_v1  ;;  %v2776_v34 = vld [vmem:[%s3019_s9 + $0x64] ss:$8 sps:$4 sm:$0xff]   ;;  %v2780_v36 = vld [vmem:[%s3019_s9 + $0x60] ss:$8 sps:$4 sm:$0xff]   ;;  %v2782_v38 = vld [vmem:[%s3019_s9 + $0x74] ss:$8 sps:$4 sm:$0xff]  }
  0x19   : > { %v2778_v35 = vld [vmem:[%s3025_s12 + $0x64] ss:$8 sps:$4 sm:$0xff]   ;;  %v2781_v37 = vld [vmem:[%s3025_s12 + $0x60] ss:$8 sps:$4 sm:$0xff]   ;;  %v2784_v39 = vld [vmem:[%s3025_s12 + $0x74] ss:$8 sps:$4 sm:$0xff]  }
  0x1a   : > { %v2786_v40 = vld [vmem:[%s3019_s9 + $0x70] ss:$8 sps:$4 sm:$0xff]   ;;  %v2788_v42 = vld [vmem:[%s3019_s9 + $0x84] ss:$8 sps:$4 sm:$0xff]   ;;  %v2792_v44 = vld [vmem:[%s3019_s9 + $0x80] ss:$8 sps:$4 sm:$0xff]  }
  0x1b   : > { %649 = vmatpush1.bf16.msra.mxu0 %v3054_v8  ;;  %1066 = vmatpush1.bf16.msra.mxu1 %v3054_v8  ;;  %v2787_v41 = vld [vmem:[%s3025_s12 + $0x70] ss:$8 sps:$4 sm:$0xff]   ;;  %v2790_v43 = vld [vmem:[%s3025_s12 + $0x84] ss:$8 sps:$4 sm:$0xff]   ;;  %v2793_v45 = vld [vmem:[%s3025_s12 + $0x80] ss:$8 sps:$4 sm:$0xff]  }
  0x1c   : > { %650 = vmatprep.subr.bf16.mxu0 %v2941_v1  ;;  %1067 = vmatprep.subr.bf16.mxu1 %v2941_v1  ;;  %v2794_v46 = vld [vmem:[%s3019_s9 + $0x94] ss:$8 sps:$4 sm:$0xff]   ;;  %v2798_v48 = vld [vmem:[%s3019_s9 + $0x90] ss:$8 sps:$4 sm:$0xff]   ;;  %v2800_v50 = vld [vmem:[%s3019_s9 + $0xa4] ss:$8 sps:$4 sm:$0xff]  }
  0x1d   : > { %v2796_v47 = vld [vmem:[%s3025_s12 + $0x94] ss:$8 sps:$4 sm:$0xff]   ;;  %v2799_v49 = vld [vmem:[%s3025_s12 + $0x90] ss:$8 sps:$4 sm:$0xff]   ;;  %v2802_v51 = vld [vmem:[%s3025_s12 + $0xa4] ss:$8 sps:$4 sm:$0xff]  }
  0x1e   : > { %v2804_v52 = vld [vmem:[%s3019_s9 + $0xa0] ss:$8 sps:$4 sm:$0xff]   ;;  %v2806_v54 = vld [vmem:[%s3019_s9 + $0xb4] ss:$8 sps:$4 sm:$0xff]   ;;  %v2810_v56 = vld [vmem:[%s3019_s9 + $0xb0] ss:$8 sps:$4 sm:$0xff]  }
  0x1f   : > { %651 = vmatpush1.bf16.msra.mxu0 %v3063_v9  ;;  %1068 = vmatpush1.bf16.msra.mxu1 %v3063_v9  ;;  %v2805_v53 = vld [vmem:[%s3025_s12 + $0xa0] ss:$8 sps:$4 sm:$0xff]   ;;  %v2808_v55 = vld [vmem:[%s3025_s12 + $0xb4] ss:$8 sps:$4 sm:$0xff]   ;;  %v2811_v57 = vld [vmem:[%s3025_s12 + $0xb0] ss:$8 sps:$4 sm:$0xff]  }
  0x20   : > { %652 = vmatprep.subr.bf16.mxu0 %v2941_v1  ;;  %1069 = vmatprep.subr.bf16.mxu1 %v2941_v1  ;;  %v2812_v58 = vld [vmem:[%s3019_s9 + $0xc4] ss:$8 sps:$4 sm:$0xff]   ;;  %v2816_v60 = vld [vmem:[%s3019_s9 + $0xc0] ss:$8 sps:$4 sm:$0xff]   ;;  %v2818_v62 = vld [vmem:[%s3019_s9 + $0xd4] ss:$8 sps:$4 sm:$0xff]  }
  0x21   : > { %v2814_v59 = vld [vmem:[%s3025_s12 + $0xc4] ss:$8 sps:$4 sm:$0xff]   ;;  %v2817_v61 = vld [vmem:[%s3025_s12 + $0xc0] ss:$8 sps:$4 sm:$0xff]   ;;  %v2820_v63 = vld [vmem:[%s3025_s12 + $0xd4] ss:$8 sps:$4 sm:$0xff]  }
  0x22   : > { %v2829_v5 = vld [vmem:[%s3025_s12 + $0xe0] ss:$8 sps:$4 sm:$0xff]   ;;  %v2830_v6 = vld [vmem:[%s3019_s9 + $0xf4] ss:$8 sps:$4 sm:$0xff]  }
  0x23   : > { %653 = vmatpush1.bf16.msra.mxu0 %v3072_v10  ;;  %1070 = vmatpush1.bf16.msra.mxu1 %v3072_v10 }
  0x24   : > { %654 = vmatprep.subr.bf16.mxu0 %v2941_v1  ;;  %1071 = vmatprep.subr.bf16.mxu1 %v2941_v1 }
  0x27   : > { %655 = vmatpush1.bf16.msra.mxu0 %v3081_v11  ;;  %1072 = vmatpush1.bf16.msra.mxu1 %v3081_v11 }
  0x28   : > { %1504 = vmatprep.subr.bf16.mxu0 %v2941_v1  ;;  %1921 = vmatprep.subr.bf16.mxu1 %v2941_v1 }
  0x2a   : > { %671 = vmatmul.mubr.bf16.vlgmr.msra.gmra.mrb[0].mxu0 %v2740_v12  ;;  %1088 = vmatmul.mubr.bf16.vlgmr.msra.gmra.mrb[0].mxu1 %v2743_v13  ;;  %v2836_v12 = vld [vmem:[%s3121_s29] ss:$8 sps:$4 sm:$0xff]  }
  0x2b   : > { %1505 = vmatpush1.bf16.msra.mxu0 %v2988_v0  ;;  %1922 = vmatpush1.bf16.msra.mxu1 %v2988_v0  ;;  %v2822_v0 = vld [vmem:[%s3019_s9 + $0xd0] ss:$8 sps:$4 sm:$0xff]   ;;  %v2839_v13 = vld [vmem:[%s3131_s10] ss:$8 sps:$4 sm:$0xff]  }
  0x2c   : > { %2493 = vmatprep.mubr.msk.bf16.mxu0 %vm589_vm0, %v2746_v14  ;;  %2541 = vmatprep.mubr.msk.bf16.mxu1 %vm589_vm0, %v2748_v15  ;;  %v2842_v14 = vld [vmem:[%s3121_s29 + $0x14] ss:$8 sps:$4 sm:$0xff]  }
  0x2d   : > { %1506 = vmatprep.subr.bf16.mxu0 %v2941_v1  ;;  %1923 = vmatprep.subr.bf16.mxu1 %v2941_v1  ;;  %v2844_v15 = vld [vmem:[%s3131_s10 + $0x14] ss:$8 sps:$4 sm:$0xff]  }
  0x2f   : > { %1507 = vmatpush1.bf16.msra.mxu0 %v2997_v2  ;;  %1924 = vmatpush1.bf16.msra.mxu1 %v2997_v2  ;;  %v2824_v2 = vld [vmem:[%s3019_s9 + $0xe4] ss:$8 sps:$4 sm:$0xff]  }
  0x30   : > { %1508 = vmatprep.subr.bf16.mxu0 %v2941_v1  ;;  %1925 = vmatprep.subr.bf16.mxu1 %v2941_v1 }
  0x32   : > { %679 = vmatmul.mubr.bf16.gmra.mrb[4].mxu0 %v2750_v16  ;;  %1096 = vmatmul.mubr.bf16.gmra.mrb[4].mxu1 %v2751_v17  ;;  %v2846_v16 = vld [vmem:[%s3121_s29 + $0x10] ss:$8 sps:$4 sm:$0xff]  }
  0x33   : > { %2494 = vmatprep.mubr.msk.bf16.mxu0 %vm589_vm0, %v2752_v18  ;;  %2542 = vmatprep.mubr.msk.bf16.mxu1 %vm589_vm0, %v2754_v19  ;;  %v2847_v17 = vld [vmem:[%s3131_s10 + $0x10] ss:$8 sps:$4 sm:$0xff]   ;;  %v2848_v18 = vld [vmem:[%s3121_s29 + $0x24] ss:$8 sps:$4 sm:$0xff]  }
  0x34   : > { %1509 = vmatpush1.bf16.msra.mxu0 %v3008_v3  ;;  %1926 = vmatpush1.bf16.msra.mxu1 %v3008_v3  ;;  %v2826_v3 = vld [vmem:[%s3025_s12 + $0xe4] ss:$8 sps:$4 sm:$0xff]  }
  0x35   : > { %1510 = vmatprep.subr.bf16.mxu0 %v2941_v1  ;;  %1927 = vmatprep.subr.bf16.mxu1 %v2941_v1  ;;  %v2850_v19 = vld [vmem:[%s3131_s10 + $0x24] ss:$8 sps:$4 sm:$0xff]  }
  0x38   : > { %1511 = vmatpush1.bf16.msra.mxu0 %v3030_v4  ;;  %1928 = vmatpush1.bf16.msra.mxu1 %v3030_v4  ;;  %v2828_v4 = vld [vmem:[%s3019_s9 + $0xe0] ss:$8 sps:$4 sm:$0xff]  }
  0x39   : > { %1512 = vmatprep.subr.bf16.mxu0 %v2941_v1  ;;  %1929 = vmatprep.subr.bf16.mxu1 %v2941_v1 }
  0x3a   : > { %687 = vmatmul.mubr.bf16.gmra.mrb[8].mxu0 %v2756_v20  ;;  %1104 = vmatmul.mubr.bf16.gmra.mrb[8].mxu1 %v2757_v21  ;;  %v2852_v20 = vld [vmem:[%s3121_s29 + $0x20] ss:$8 sps:$4 sm:$0xff]  }
  0x3b   : > { %2495 = vmatprep.mubr.msk.bf16.mxu0 %vm589_vm0, %v2758_v22  ;;  %2543 = vmatprep.mubr.msk.bf16.mxu1 %vm589_vm0, %v2760_v23  ;;  %v2853_v21 = vld [vmem:[%s3131_s10 + $0x20] ss:$8 sps:$4 sm:$0xff]   ;;  %v2854_v22 = vld [vmem:[%s3121_s29 + $0x34] ss:$8 sps:$4 sm:$0xff]  }
  0x3c   : > { %1513 = vmatpush1.bf16.msra.mxu0 %v3045_v7  ;;  %1930 = vmatpush1.bf16.msra.mxu1 %v3045_v7  ;;  %v2832_v7 = vld [vmem:[%s3025_s12 + $0xf4] ss:$8 sps:$4 sm:$0xff]  }
  0x3d   : > { %1514 = vmatprep.subr.bf16.mxu0 %v2941_v1  ;;  %1931 = vmatprep.subr.bf16.mxu1 %v2941_v1  ;;  %v2856_v23 = vld [vmem:[%s3131_s10 + $0x34] ss:$8 sps:$4 sm:$0xff]  }
  0x40   : > { %1515 = vmatpush1.bf16.msra.mxu0 %v3054_v8  ;;  %1932 = vmatpush1.bf16.msra.mxu1 %v3054_v8  ;;  %v2834_v8 = vld [vmem:[%s3019_s9 + $0xf0] ss:$8 sps:$4 sm:$0xff]  }
  0x41   : > { %1516 = vmatprep.subr.bf16.mxu0 %v2941_v1  ;;  %1933 = vmatprep.subr.bf16.mxu1 %v2941_v1 }
  0x42   : > { %695 = vmatmul.mubr.bf16.gmra.mrb[12].mxu0 %v2762_v24  ;;  %1112 = vmatmul.mubr.bf16.gmra.mrb[12].mxu1 %v2763_v25  ;;  %v2858_v24 = vld [vmem:[%s3121_s29 + $0x30] ss:$8 sps:$4 sm:$0xff]  }
  0x43   : > { %2496 = vmatprep.mubr.msk.bf16.mxu0 %vm589_vm0, %v2764_v26  ;;  %2544 = vmatprep.mubr.msk.bf16.mxu1 %vm589_vm0, %v2766_v27  ;;  %v2859_v25 = vld [vmem:[%s3131_s10 + $0x30] ss:$8 sps:$4 sm:$0xff]   ;;  %v2860_v26 = vld [vmem:[%s3121_s29 + $0x44] ss:$8 sps:$4 sm:$0xff]  }
  0x44   : > { %1517 = vmatpush1.bf16.msra.mxu0 %v3063_v9  ;;  %1934 = vmatpush1.bf16.msra.mxu1 %v3063_v9  ;;  %v2835_v9 = vld [vmem:[%s3025_s12 + $0xf0] ss:$8 sps:$4 sm:$0xff]   ;;  %v2862_v27 = vld [vmem:[%s3131_s10 + $0x44] ss:$8 sps:$4 sm:$0xff]  }
  0x45   : > { %1518 = vmatprep.subr.bf16.mxu0 %v2941_v1  ;;  %1935 = vmatprep.subr.bf16.mxu1 %v2941_v1 }
  0x48   : > { %1519 = vmatpush1.bf16.msra.mxu0 %v3072_v10  ;;  %1936 = vmatpush1.bf16.msra.mxu1 %v3072_v10  ;;  %v2838_v10 = vld [vmem:[%s3121_s29 + $0x4] ss:$8 sps:$4 sm:$0xff]  }
  0x49   : > { %1520 = vmatprep.subr.bf16.mxu0 %v2941_v1  ;;  %1937 = vmatprep.subr.bf16.mxu1 %v2941_v1  ;;  %v2823_v1 = vld [vmem:[%s3025_s12 + $0xd0] ss:$8 sps:$4 sm:$0xff]  }
  0x4a   : > { %703 = vmatmul.mubr.bf16.gmra.mrb[16].mxu0 %v2768_v28  ;;  %1120 = vmatmul.mubr.bf16.gmra.mrb[16].mxu1 %v2769_v29  ;;  %v2864_v28 = vld [vmem:[%s3121_s29 + $0x40] ss:$8 sps:$4 sm:$0xff]  }
  0x4b   : > { %2497 = vmatprep.mubr.msk.bf16.mxu0 %vm589_vm0, %v2770_v30  ;;  %2545 = vmatprep.mubr.msk.bf16.mxu1 %vm589_vm0, %v2772_v31  ;;  %v2865_v29 = vld [vmem:[%s3131_s10 + $0x40] ss:$8 sps:$4 sm:$0xff]   ;;  %v2866_v30 = vld [vmem:[%s3121_s29 + $0x54] ss:$8 sps:$4 sm:$0xff]  }
  0x4c   : > { %1521 = vmatpush1.bf16.msra.mxu0 %v3081_v11  ;;  %1938 = vmatpush1.bf16.msra.mxu1 %v3081_v11  ;;  %v2841_v11 = vld [vmem:[%s3131_s10 + $0x4] ss:$8 sps:$4 sm:$0xff]   ;;  %v2868_v31 = vld [vmem:[%s3131_s10 + $0x54] ss:$8 sps:$4 sm:$0xff]  }
  0x52   : > { %711 = vmatmul.mubr.bf16.gmra.mrb[20].mxu0 %v2774_v32  ;;  %1128 = vmatmul.mubr.bf16.gmra.mrb[20].mxu1 %v2775_v33  ;;  %v2870_v32 = vld [vmem:[%s3121_s29 + $0x50] ss:$8 sps:$4 sm:$0xff]  }
  0x53   : > { %2498 = vmatprep.mubr.msk.bf16.mxu0 %vm589_vm0, %v2776_v34  ;;  %2546 = vmatprep.mubr.msk.bf16.mxu1 %vm589_vm0, %v2778_v35  ;;  %v2871_v33 = vld [vmem:[%s3131_s10 + $0x50] ss:$8 sps:$4 sm:$0xff]   ;;  %v2872_v34 = vld [vmem:[%s3121_s29 + $0x64] ss:$8 sps:$4 sm:$0xff]  }
  0x54   : > { %v2874_v35 = vld [vmem:[%s3131_s10 + $0x64] ss:$8 sps:$4 sm:$0xff]  }
  0x5a   : > { %719 = vmatmul.mubr.bf16.gmra.mrb[24].mxu0 %v2780_v36  ;;  %1136 = vmatmul.mubr.bf16.gmra.mrb[24].mxu1 %v2781_v37  ;;  %v2876_v36 = vld [vmem:[%s3121_s29 + $0x60] ss:$8 sps:$4 sm:$0xff]  }
  0x5b   : > { %2499 = vmatprep.mubr.msk.bf16.mxu0 %vm589_vm0, %v2782_v38  ;;  %2547 = vmatprep.mubr.msk.bf16.mxu1 %vm589_vm0, %v2784_v39  ;;  %v2877_v37 = vld [vmem:[%s3131_s10 + $0x60] ss:$8 sps:$4 sm:$0xff]   ;;  %v2878_v38 = vld [vmem:[%s3121_s29 + $0x74] ss:$8 sps:$4 sm:$0xff]  }
  0x5c   : > { %v2880_v39 = vld [vmem:[%s3131_s10 + $0x74] ss:$8 sps:$4 sm:$0xff]  }
  0x62   : > { %727 = vmatmul.mubr.bf16.gmra.mrb[28].mxu0 %v2786_v40  ;;  %1144 = vmatmul.mubr.bf16.gmra.mrb[28].mxu1 %v2787_v41  ;;  %v2882_v40 = vld [vmem:[%s3121_s29 + $0x70] ss:$8 sps:$4 sm:$0xff]  }
  0x63   : > { %2500 = vmatprep.mubr.msk.bf16.mxu0 %vm589_vm0, %v2788_v42  ;;  %2548 = vmatprep.mubr.msk.bf16.mxu1 %vm589_vm0, %v2790_v43  ;;  %v2883_v41 = vld [vmem:[%s3131_s10 + $0x70] ss:$8 sps:$4 sm:$0xff]   ;;  %v2884_v42 = vld [vmem:[%s3121_s29 + $0x84] ss:$8 sps:$4 sm:$0xff]  }
  0x64   : > { %v2886_v43 = vld [vmem:[%s3131_s10 + $0x84] ss:$8 sps:$4 sm:$0xff]  }
  0x6a   : > { %735 = vmatmul.mubr.bf16.gmra.mrb[32].mxu0 %v2792_v44  ;;  %1152 = vmatmul.mubr.bf16.gmra.mrb[32].mxu1 %v2793_v45  ;;  %v2888_v44 = vld [vmem:[%s3121_s29 + $0x80] ss:$8 sps:$4 sm:$0xff]  }
  0x6b   : > { %2501 = vmatprep.mubr.msk.bf16.mxu0 %vm589_vm0, %v2794_v46  ;;  %2549 = vmatprep.mubr.msk.bf16.mxu1 %vm589_vm0, %v2796_v47  ;;  %v2889_v45 = vld [vmem:[%s3131_s10 + $0x80] ss:$8 sps:$4 sm:$0xff]   ;;  %v2890_v46 = vld [vmem:[%s3121_s29 + $0x94] ss:$8 sps:$4 sm:$0xff]  }
  0x6c   : > { %v2892_v47 = vld [vmem:[%s3131_s10 + $0x94] ss:$8 sps:$4 sm:$0xff]  }
  0x72   : > { %743 = vmatmul.mubr.bf16.gmra.mrb[36].mxu0 %v2798_v48  ;;  %1160 = vmatmul.mubr.bf16.gmra.mrb[36].mxu1 %v2799_v49  ;;  %v2894_v48 = vld [vmem:[%s3121_s29 + $0x90] ss:$8 sps:$4 sm:$0xff]  }
  0x73   : > { %2502 = vmatprep.mubr.msk.bf16.mxu0 %vm589_vm0, %v2800_v50  ;;  %2550 = vmatprep.mubr.msk.bf16.mxu1 %vm589_vm0, %v2802_v51  ;;  %v2895_v49 = vld [vmem:[%s3131_s10 + $0x90] ss:$8 sps:$4 sm:$0xff]   ;;  %v2896_v50 = vld [vmem:[%s3121_s29 + $0xa4] ss:$8 sps:$4 sm:$0xff]  }
  0x74   : > { %v2898_v51 = vld [vmem:[%s3131_s10 + $0xa4] ss:$8 sps:$4 sm:$0xff]  }
  0x7a   : > { %751 = vmatmul.mubr.bf16.gmra.mrb[40].mxu0 %v2804_v52  ;;  %1168 = vmatmul.mubr.bf16.gmra.mrb[40].mxu1 %v2805_v53  ;;  %v2900_v52 = vld [vmem:[%s3121_s29 + $0xa0] ss:$8 sps:$4 sm:$0xff]  }
  0x7b   : > { %2503 = vmatprep.mubr.msk.bf16.mxu0 %vm589_vm0, %v2806_v54  ;;  %2551 = vmatprep.mubr.msk.bf16.mxu1 %vm589_vm0, %v2808_v55  ;;  %v2901_v53 = vld [vmem:[%s3131_s10 + $0xa0] ss:$8 sps:$4 sm:$0xff]   ;;  %v2902_v54 = vld [vmem:[%s3121_s29 + $0xb4] ss:$8 sps:$4 sm:$0xff]  }
  0x7c   : > { %v2904_v55 = vld [vmem:[%s3131_s10 + $0xb4] ss:$8 sps:$4 sm:$0xff]  }
  0x82   : > { %759 = vmatmul.mubr.bf16.gmra.mrb[44].mxu0 %v2810_v56  ;;  %1176 = vmatmul.mubr.bf16.gmra.mrb[44].mxu1 %v2811_v57  ;;  %v3298_v56 = vld [vmem:[%s3635_s5] ss:$0 sm:$0xff] }
  0x83   : > { %2504 = vmatprep.mubr.msk.bf16.mxu0 %vm589_vm0, %v2812_v58  ;;  %2552 = vmatprep.mubr.msk.bf16.mxu1 %vm589_vm0, %v2814_v59 }
  0x8a   : > { %767 = vmatmul.mubr.bf16.gmra.mrb[48].mxu0 %v2816_v60  ;;  %1184 = vmatmul.mubr.bf16.gmra.mrb[48].mxu1 %v2817_v61 }
  0x8b   : > { %2505 = vmatprep.mubr.msk.bf16.mxu0 %vm589_vm0, %v2818_v62  ;;  %2553 = vmatprep.mubr.msk.bf16.mxu1 %vm589_vm0, %v2820_v63  ;;  %v2906_v63 = vld [vmem:[%s3121_s29 + $0xb0] ss:$8 sps:$4 sm:$0xff]  }
  0x92   : > { %775 = vmatmul.mubr.bf16.gmra.mrb[52].mxu0 %v2822_v0  ;;  %1192 = vmatmul.mubr.bf16.gmra.mrb[52].mxu1 %v2823_v1  ;;  %v2907_v0 = vld [vmem:[%s3131_s10 + $0xb0] ss:$8 sps:$4 sm:$0xff]  }
  0x93   : > { %2506 = vmatprep.mubr.msk.bf16.mxu0 %vm589_vm0, %v2824_v2  ;;  %2554 = vmatprep.mubr.msk.bf16.mxu1 %vm589_vm0, %v2826_v3  ;;  %v2908_v3 = vld [vmem:[%s3121_s29 + $0xc4] ss:$8 sps:$4 sm:$0xff]  }
  0x9a   : > { %783 = vmatmul.mubr.bf16.gmra.mrb[56].mxu0 %v2828_v4  ;;  %1200 = vmatmul.mubr.bf16.gmra.mrb[56].mxu1 %v2829_v5  ;;  %v2910_v4 = vld [vmem:[%s3131_s10 + $0xc4] ss:$8 sps:$4 sm:$0xff]  }
  0x9b   : > { %2507 = vmatprep.mubr.msk.bf16.mxu0 %vm589_vm0, %v2830_v6  ;;  %2555 = vmatprep.mubr.msk.bf16.mxu1 %vm589_vm0, %v2832_v7 }
  0xa2   : > { %791 = vmatmul.mubr.bf16.gmra.mrb[60].mxu0 %v2834_v8  ;;  %1208 = vmatmul.mubr.bf16.gmra.mrb[60].mxu1 %v2835_v9 }
  0xa3   : > { %2588 = vmatprep.mubr.msk.bf16.mxu0 %vm589_vm0, %v2838_v10  ;;  %2636 = vmatprep.mubr.msk.bf16.mxu1 %vm589_vm0, %v2841_v11 }
  0xaa   : > { %1537 = vmatmul.mubr.bf16.vlgmr.msra.gmra.mrb[64].mxu0 %v2836_v12  ;;  %1954 = vmatmul.mubr.bf16.vlgmr.msra.gmra.mrb[64].mxu1 %v2839_v13 }
  0xab   : > { %2589 = vmatprep.mubr.msk.bf16.mxu0 %vm589_vm0, %v2842_v14  ;;  %2637 = vmatprep.mubr.msk.bf16.mxu1 %vm589_vm0, %v2844_v15 }
  0xb2   : > { %1545 = vmatmul.mubr.bf16.gmra.mrb[68].mxu0 %v2846_v16  ;;  %1962 = vmatmul.mubr.bf16.gmra.mrb[68].mxu1 %v2847_v17 }
  0xb3   : > { %2590 = vmatprep.mubr.msk.bf16.mxu0 %vm589_vm0, %v2848_v18  ;;  %2638 = vmatprep.mubr.msk.bf16.mxu1 %vm589_vm0, %v2850_v19 }
  0xba   : > { %1553 = vmatmul.mubr.bf16.gmra.mrb[72].mxu0 %v2852_v20  ;;  %1970 = vmatmul.mubr.bf16.gmra.mrb[72].mxu1 %v2853_v21  ;;  %v2912_v21 = vld [vmem:[%s3121_s29 + $0xc0] ss:$8 sps:$4 sm:$0xff]  }
  0xbb   : > { %2591 = vmatprep.mubr.msk.bf16.mxu0 %vm589_vm0, %v2854_v22  ;;  %2639 = vmatprep.mubr.msk.bf16.mxu1 %vm589_vm0, %v2856_v23  ;;  %v2913_v22 = vld [vmem:[%s3131_s10 + $0xc0] ss:$8 sps:$4 sm:$0xff]  }
  0xc2   : > { %1561 = vmatmul.mubr.bf16.gmra.mrb[76].mxu0 %v2858_v24  ;;  %1978 = vmatmul.mubr.bf16.gmra.mrb[76].mxu1 %v2859_v25  ;;  %v2914_v25 = vld [vmem:[%s3121_s29 + $0xd4] ss:$8 sps:$4 sm:$0xff]  }
  0xc3   : > { %2592 = vmatprep.mubr.msk.bf16.mxu0 %vm589_vm0, %v2860_v26  ;;  %2640 = vmatprep.mubr.msk.bf16.mxu1 %vm589_vm0, %v2862_v27  ;;  %v2916_v26 = vld [vmem:[%s3131_s10 + $0xd4] ss:$8 sps:$4 sm:$0xff]  }
  0xca   : > { %1569 = vmatmul.mubr.bf16.gmra.mrb[80].mxu0 %v2864_v28  ;;  %1986 = vmatmul.mubr.bf16.gmra.mrb[80].mxu1 %v2865_v29 }
  0xcb   : > { %2593 = vmatprep.mubr.msk.bf16.mxu0 %vm589_vm0, %v2866_v30  ;;  %2641 = vmatprep.mubr.msk.bf16.mxu1 %vm589_vm0, %v2868_v31 }
  0xd2   : > { %1577 = vmatmul.mubr.bf16.gmra.mrb[84].mxu0 %v2870_v32  ;;  %1994 = vmatmul.mubr.bf16.gmra.mrb[84].mxu1 %v2871_v33 }
  0xd3   : > { %2594 = vmatprep.mubr.msk.bf16.mxu0 %vm589_vm0, %v2872_v34  ;;  %2642 = vmatprep.mubr.msk.bf16.mxu1 %vm589_vm0, %v2874_v35 }
  0xda   : > { %1585 = vmatmul.mubr.bf16.gmra.mrb[88].mxu0 %v2876_v36  ;;  %2002 = vmatmul.mubr.bf16.gmra.mrb[88].mxu1 %v2877_v37 }
  0xdb   : > { %2595 = vmatprep.mubr.msk.bf16.mxu0 %vm589_vm0, %v2878_v38  ;;  %2643 = vmatprep.mubr.msk.bf16.mxu1 %vm589_vm0, %v2880_v39 }
  0xe2   : > { %1593 = vmatmul.mubr.bf16.gmra.mrb[92].mxu0 %v2882_v40  ;;  %2010 = vmatmul.mubr.bf16.gmra.mrb[92].mxu1 %v2883_v41 }
  0xe3   : > { %2596 = vmatprep.mubr.msk.bf16.mxu0 %vm589_vm0, %v2884_v42  ;;  %2644 = vmatprep.mubr.msk.bf16.mxu1 %vm589_vm0, %v2886_v43  ;;  %v2918_v43 = vld [vmem:[%s3121_s29 + $0xd0] ss:$8 sps:$4 sm:$0xff]  }
  0xea   : > { %1601 = vmatmul.mubr.bf16.gmra.mrb[96].mxu0 %v2888_v44  ;;  %2018 = vmatmul.mubr.bf16.gmra.mrb[96].mxu1 %v2889_v45  ;;  %v2919_v44 = vld [vmem:[%s3131_s10 + $0xd0] ss:$8 sps:$4 sm:$0xff]  }
  0xeb   : > { %2597 = vmatprep.mubr.msk.bf16.mxu0 %vm589_vm0, %v2890_v46  ;;  %2645 = vmatprep.mubr.msk.bf16.mxu1 %vm589_vm0, %v2892_v47  ;;  %v2920_v47 = vld [vmem:[%s3121_s29 + $0xe4] ss:$8 sps:$4 sm:$0xff]  }
  0xf2   : > { %1609 = vmatmul.mubr.bf16.gmra.mrb[100].mxu0 %v2894_v48  ;;  %2026 = vmatmul.mubr.bf16.gmra.mrb[100].mxu1 %v2895_v49  ;;  %v2922_v48 = vld [vmem:[%s3131_s10 + $0xe4] ss:$8 sps:$4 sm:$0xff]  }
  0xf3   : > { %2598 = vmatprep.mubr.msk.bf16.mxu0 %vm589_vm0, %v2896_v50  ;;  %2646 = vmatprep.mubr.msk.bf16.mxu1 %vm589_vm0, %v2898_v51 }
  0xfa   : > { %1617 = vmatmul.mubr.bf16.gmra.mrb[104].mxu0 %v2900_v52  ;;  %2034 = vmatmul.mubr.bf16.gmra.mrb[104].mxu1 %v2901_v53 }
  0xfb   : > { %2599 = vmatprep.mubr.msk.bf16.mxu0 %vm589_vm0, %v2902_v54  ;;  %2647 = vmatprep.mubr.msk.bf16.mxu1 %vm589_vm0, %v2904_v55 }
  0xfd   : > { %v672_v57 = vpop.f32.mrb[0].mxu0  ;;  %v1089_v58 = vpop.f32.mrb[0].mxu1 }
  0xfe   : > { %v673_v59 = vadd.f32 %v3298_v56, %v672_v57  ;;  %v1090_v60 = vadd.f32 %v3298_v56, %v1089_v58  ;;  %v674_v61 = vpop.f32.mrb[1].mxu0  ;;  %v1091_v62 = vpop.f32.mrb[1].mxu1 }
  0xff   : > { %v675_v1 = vpop.f32.mrb[2].mxu0  ;;  %v1092_v2 = vpop.f32.mrb[2].mxu1 }
 0x100   : > { %v799_v5 = vmax.f32 %v673_v59, 0.0  ;;  %v1216_v6 = vmax.f32 %v1090_v60, 0.0  ;;  %v676_v7 = vadd.f32 %v3298_v56, %v675_v1  ;;  %v1093_v8 = vadd.f32 %v3298_v56, %v1092_v2  ;;  %v677_v9 = vpop.f32.mrb[3].mxu0  ;;  %v1094_v10 = vpop.f32.mrb[3].mxu1  ;;  %v2924_v2 = vld [vmem:[%s3121_s29 + $0xe0] ss:$8 sps:$4 sm:$0xff]  }
 0x102   : > { %v3310_v11 = vmax.f32 %v799_v5, %v1216_v6  ;;  %v800_v12 = vmax.f32 %v676_v7, 0.0  ;;  %v1217_v13 = vmax.f32 %v1093_v8, 0.0  ;;  %1625 = vmatmul.mubr.bf16.gmra.mrb[108].mxu0 %v2906_v63  ;;  %2042 = vmatmul.mubr.bf16.gmra.mrb[108].mxu1 %v2907_v0  ;;  %v2926_v6 = vld [vmem:[%s3121_s29 + $0xf4] ss:$8 sps:$4 sm:$0xff]  }
 0x103   : > { %2600 = vmatprep.mubr.msk.bf16.mxu0 %vm589_vm0, %v2908_v3  ;;  %2648 = vmatprep.mubr.msk.bf16.mxu1 %vm589_vm0, %v2910_v4  ;;  %v2925_v3 = vld [vmem:[%s3131_s10 + $0xe0] ss:$8 sps:$4 sm:$0xff]   ;;  %v2928_v7 = vld [vmem:[%s3131_s10 + $0xf4] ss:$8 sps:$4 sm:$0xff]  }
 0x104   : > { %v3314_v14 = vmax.f32 %v800_v12, %v1217_v13 }
 0x105   : > { %v680_v15 = vpop.f32.mrb[4].mxu0  ;;  %v1097_v16 = vpop.f32.mrb[4].mxu1 }
 0x106   : > { %v681_v17 = vadd.f32 %v3298_v56, %v680_v15  ;;  %v1098_v18 = vadd.f32 %v3298_v56, %v1097_v16  ;;  %v682_v19 = vpop.f32.mrb[5].mxu0  ;;  %v1099_v20 = vpop.f32.mrb[5].mxu1 }
 0x107   : > { %v683_v23 = vpop.f32.mrb[6].mxu0  ;;  %v1100_v24 = vpop.f32.mrb[6].mxu1 }
 0x108   : > { %v801_v27 = vmax.f32 %v681_v17, 0.0  ;;  %v1218_v28 = vmax.f32 %v1098_v18, 0.0  ;;  %v684_v29 = vadd.f32 %v3298_v56, %v683_v23  ;;  %v1101_v30 = vadd.f32 %v3298_v56, %v1100_v24  ;;  %v685_v31 = vpop.f32.mrb[7].mxu0  ;;  %v1102_v32 = vpop.f32.mrb[7].mxu1 }
 0x10a   : > { %v3324_v33 = vmax.f32 %v801_v27, %v1218_v28  ;;  %v802_v34 = vmax.f32 %v684_v29, 0.0  ;;  %v1219_v35 = vmax.f32 %v1101_v30, 0.0  ;;  %1633 = vmatmul.mubr.bf16.gmra.mrb[112].mxu0 %v2912_v21  ;;  %2050 = vmatmul.mubr.bf16.gmra.mrb[112].mxu1 %v2913_v22  ;;  %v2931_v27 = vld [vmem:[%s3131_s10 + $0xf0] ss:$8 sps:$4 sm:$0xff]  }
 0x10b   : > { %2601 = vmatprep.mubr.msk.bf16.mxu0 %vm589_vm0, %v2914_v25  ;;  %2649 = vmatprep.mubr.msk.bf16.mxu1 %vm589_vm0, %v2916_v26  ;;  %v2930_v26 = vld [vmem:[%s3121_s29 + $0xf0] ss:$8 sps:$4 sm:$0xff]  }
 0x10c   : > { %v3328_v36 = vmax.f32 %v802_v34, %v1219_v35 }
 0x10d   : > { %v688_v37 = vpop.f32.mrb[8].mxu0  ;;  %v1105_v38 = vpop.f32.mrb[8].mxu1 }
 0x10e   : > { %v689_v39 = vadd.f32 %v3298_v56, %v688_v37  ;;  %v1106_v40 = vadd.f32 %v3298_v56, %v1105_v38  ;;  %v690_v41 = vpop.f32.mrb[9].mxu0  ;;  %v1107_v42 = vpop.f32.mrb[9].mxu1 }
 0x10f   : > { %v691_v45 = vpop.f32.mrb[10].mxu0  ;;  %v1108_v46 = vpop.f32.mrb[10].mxu1 }
 0x110   : > { %v803_v49 = vmax.f32 %v689_v39, 0.0  ;;  %v1220_v50 = vmax.f32 %v1106_v40, 0.0  ;;  %v692_v51 = vadd.f32 %v3298_v56, %v691_v45  ;;  %v1109_v52 = vadd.f32 %v3298_v56, %v1108_v46  ;;  %v693_v53 = vpop.f32.mrb[11].mxu0  ;;  %v1110_v54 = vpop.f32.mrb[11].mxu1 }
 0x112   : > { %v3338_v55 = vmax.f32 %v803_v49, %v1220_v50  ;;  %v804_v57 = vmax.f32 %v692_v51, 0.0  ;;  %v1221_v58 = vmax.f32 %v1109_v52, 0.0  ;;  %1641 = vmatmul.mubr.bf16.gmra.mrb[116].mxu0 %v2918_v43  ;;  %2058 = vmatmul.mubr.bf16.gmra.mrb[116].mxu1 %v2919_v44 }
 0x113   : > { %2602 = vmatprep.mubr.msk.bf16.mxu0 %vm589_vm0, %v2920_v47  ;;  %2650 = vmatprep.mubr.msk.bf16.mxu1 %vm589_vm0, %v2922_v48 }
 0x114   : > { %v3342_v59 = vmax.f32 %v804_v57, %v1221_v58 }
 0x115   : > { %v696_v60 = vpop.f32.mrb[12].mxu0  ;;  %v1113_v61 = vpop.f32.mrb[12].mxu1 }
 0x116   : > { %v697_v62 = vadd.f32 %v3298_v56, %v696_v60  ;;  %v1114_v63 = vadd.f32 %v3298_v56, %v1113_v61  ;;  %v698_v0 = vpop.f32.mrb[13].mxu0  ;;  %v1115_v1 = vpop.f32.mrb[13].mxu1 }
 0x117   : > { %v699_v4 = vpop.f32.mrb[14].mxu0  ;;  %v1116_v5 = vpop.f32.mrb[14].mxu1 }
 0x118   : > { %v805_v8 = vmax.f32 %v697_v62, 0.0  ;;  %v1222_v9 = vmax.f32 %v1114_v63, 0.0  ;;  %v700_v10 = vadd.f32 %v3298_v56, %v699_v4  ;;  %v1117_v12 = vadd.f32 %v3298_v56, %v1116_v5  ;;  %v701_v13 = vpop.f32.mrb[15].mxu0  ;;  %v1118_v15 = vpop.f32.mrb[15].mxu1 }
 0x11a   : > { %v3352_v16 = vmax.f32 %v805_v8, %v1222_v9  ;;  %v806_v17 = vmax.f32 %v700_v10, 0.0  ;;  %v1223_v18 = vmax.f32 %v1117_v12, 0.0  ;;  %1649 = vmatmul.mubr.bf16.gmra.mrb[120].mxu0 %v2924_v2  ;;  %2066 = vmatmul.mubr.bf16.gmra.mrb[120].mxu1 %v2925_v3 }
 0x11b   : > { %2603 = vmatprep.mubr.msk.bf16.mxu0 %vm589_vm0, %v2926_v6  ;;  %2651 = vmatprep.mubr.msk.bf16.mxu1 %vm589_vm0, %v2928_v7 }
 0x11c   : > { %v3356_v19 = vmax.f32 %v806_v17, %v1223_v18 }
 0x11d   : > { %v704_v20 = vpop.f32.mrb[16].mxu0  ;;  %v1121_v21 = vpop.f32.mrb[16].mxu1 }
 0x11e   : > { %v705_v22 = vadd.f32 %v3298_v56, %v704_v20  ;;  %v1122_v23 = vadd.f32 %v3298_v56, %v1121_v21  ;;  %v706_v24 = vpop.f32.mrb[17].mxu0  ;;  %v1123_v25 = vpop.f32.mrb[17].mxu1 }
 0x11f   : > { %v707_v28 = vpop.f32.mrb[18].mxu0  ;;  %v1124_v29 = vpop.f32.mrb[18].mxu1 }
 0x120   : > { %v807_v30 = vmax.f32 %v705_v22, 0.0  ;;  %v1224_v31 = vmax.f32 %v1122_v23, 0.0  ;;  %v708_v32 = vadd.f32 %v3298_v56, %v707_v28  ;;  %v1125_v34 = vadd.f32 %v3298_v56, %v1124_v29  ;;  %v709_v35 = vpop.f32.mrb[19].mxu0  ;;  %v1126_v37 = vpop.f32.mrb[19].mxu1 }
 0x122   : > { %v3364_v38 = vmax.f32 %v807_v30, %v1224_v31  ;;  %v808_v39 = vmax.f32 %v708_v32, 0.0  ;;  %v1225_v40 = vmax.f32 %v1125_v34, 0.0  ;;  %1657 = vmatmul.mubr.bf16.gmra.mrb[124].mxu0 %v2930_v26  ;;  %2074 = vmatmul.mubr.bf16.gmra.mrb[124].mxu1 %v2931_v27 }
 0x124   : > { %v3366_v41 = vmax.f32 %v808_v39, %v1225_v40 }
 0x125   : > { %v712_v42 = vpop.f32.mrb[20].mxu0  ;;  %v1129_v43 = vpop.f32.mrb[20].mxu1 }
 0x126   : > { %v713_v44 = vadd.f32 %v3298_v56, %v712_v42  ;;  %v1130_v45 = vadd.f32 %v3298_v56, %v1129_v43  ;;  %v714_v46 = vpop.f32.mrb[21].mxu0  ;;  %v1131_v47 = vpop.f32.mrb[21].mxu1 }
 0x127   : > { %v715_v48 = vpop.f32.mrb[22].mxu0  ;;  %v1132_v49 = vpop.f32.mrb[22].mxu1 }
 0x128   : > { %v809_v50 = vmax.f32 %v713_v44, 0.0  ;;  %v1226_v51 = vmax.f32 %v1130_v45, 0.0  ;;  %v716_v52 = vadd.f32 %v3298_v56, %v715_v48  ;;  %v1133_v53 = vadd.f32 %v3298_v56, %v1132_v49  ;;  %v717_v54 = vpop.f32.mrb[23].mxu0  ;;  %v1134_v57 = vpop.f32.mrb[23].mxu1 }
 0x12a   : > { %v3372_v58 = vmax.f32 %v809_v50, %v1226_v51  ;;  %v810_v60 = vmax.f32 %v716_v52, 0.0  ;;  %v1227_v61 = vmax.f32 %v1133_v53, 0.0 }
 0x12c   : > { %v3374_v62 = vmax.f32 %v810_v60, %v1227_v61 }
 0x12d   : > { %v720_v63 = vpop.f32.mrb[24].mxu0  ;;  %v1137_v0 = vpop.f32.mrb[24].mxu1 }
 0x12e   : > { %v721_v1 = vadd.f32 %v3298_v56, %v720_v63  ;;  %v1138_v2 = vadd.f32 %v3298_v56, %v1137_v0  ;;  %v722_v3 = vpop.f32.mrb[25].mxu0  ;;  %v1139_v4 = vpop.f32.mrb[25].mxu1 }
 0x12f   : > { %v723_v5 = vpop.f32.mrb[26].mxu0  ;;  %v1140_v6 = vpop.f32.mrb[26].mxu1 }
 0x130   : > { %v811_v7 = vmax.f32 %v721_v1, 0.0  ;;  %v1228_v8 = vmax.f32 %v1138_v2, 0.0  ;;  %v724_v9 = vadd.f32 %v3298_v56, %v723_v5  ;;  %v1141_v10 = vadd.f32 %v3298_v56, %v1140_v6  ;;  %v725_v12 = vpop.f32.mrb[27].mxu0  ;;  %v1142_v13 = vpop.f32.mrb[27].mxu1 }
 0x132   : > { %v3380_v15 = vmax.f32 %v811_v7, %v1228_v8  ;;  %v812_v17 = vmax.f32 %v724_v9, 0.0  ;;  %v1229_v18 = vmax.f32 %v1141_v10, 0.0 }
 0x134   : > { %v3382_v20 = vmax.f32 %v812_v17, %v1229_v18 }
 0x135   : > { %v728_v21 = vpop.f32.mrb[28].mxu0  ;;  %v1145_v22 = vpop.f32.mrb[28].mxu1 }
 0x136   : > { %v729_v23 = vadd.f32 %v3298_v56, %v728_v21  ;;  %v1146_v24 = vadd.f32 %v3298_v56, %v1145_v22  ;;  %v730_v25 = vpop.f32.mrb[29].mxu0  ;;  %v1147_v26 = vpop.f32.mrb[29].mxu1 }
 0x137   : > { %v731_v27 = vpop.f32.mrb[30].mxu0  ;;  %v1148_v28 = vpop.f32.mrb[30].mxu1 }
 0x138   : > { %v813_v29 = vmax.f32 %v729_v23, 0.0  ;;  %v1230_v30 = vmax.f32 %v1146_v24, 0.0  ;;  %v732_v31 = vadd.f32 %v3298_v56, %v731_v27  ;;  %v1149_v32 = vadd.f32 %v3298_v56, %v1148_v28  ;;  %v733_v34 = vpop.f32.mrb[31].mxu0  ;;  %v1150_v35 = vpop.f32.mrb[31].mxu1 }
 0x13a   : > { %v3388_v37 = vmax.f32 %v813_v29, %v1230_v30  ;;  %v814_v39 = vmax.f32 %v732_v31, 0.0  ;;  %v1231_v40 = vmax.f32 %v1149_v32, 0.0 }
 0x13c   : > { %v3390_v42 = vmax.f32 %v814_v39, %v1231_v40 }
 0x13d   : > { %v736_v43 = vpop.f32.mrb[32].mxu0  ;;  %v1153_v44 = vpop.f32.mrb[32].mxu1 }
 0x13e   : > { %v737_v45 = vadd.f32 %v3298_v56, %v736_v43  ;;  %v1154_v46 = vadd.f32 %v3298_v56, %v1153_v44  ;;  %v738_v47 = vpop.f32.mrb[33].mxu0  ;;  %v1155_v48 = vpop.f32.mrb[33].mxu1 }
 0x13f   : > { %v739_v49 = vpop.f32.mrb[34].mxu0  ;;  %v1156_v50 = vpop.f32.mrb[34].mxu1 }
 0x140   : > { %v815_v51 = vmax.f32 %v737_v45, 0.0  ;;  %v1232_v52 = vmax.f32 %v1154_v46, 0.0  ;;  %v740_v53 = vadd.f32 %v3298_v56, %v739_v49  ;;  %v1157_v54 = vadd.f32 %v3298_v56, %v1156_v50  ;;  %v741_v57 = vpop.f32.mrb[35].mxu0  ;;  %v1158_v60 = vpop.f32.mrb[35].mxu1 }
 0x142   : > { %v3396_v61 = vmax.f32 %v815_v51, %v1232_v52  ;;  %v816_v63 = vmax.f32 %v740_v53, 0.0  ;;  %v1233_v0 = vmax.f32 %v1157_v54, 0.0 }
 0x144   : > { %v3398_v1 = vmax.f32 %v816_v63, %v1233_v0 }
 0x145   : > { %v744_v2 = vpop.f32.mrb[36].mxu0  ;;  %v1161_v3 = vpop.f32.mrb[36].mxu1 }
 0x146   : > { %v745_v4 = vadd.f32 %v3298_v56, %v744_v2  ;;  %v1162_v5 = vadd.f32 %v3298_v56, %v1161_v3  ;;  %v746_v6 = vpop.f32.mrb[37].mxu0  ;;  %v1163_v7 = vpop.f32.mrb[37].mxu1 }
 0x147   : > { %v747_v8 = vpop.f32.mrb[38].mxu0  ;;  %v1164_v9 = vpop.f32.mrb[38].mxu1 }
 0x148   : > { %v817_v10 = vmax.f32 %v745_v4, 0.0  ;;  %v1234_v12 = vmax.f32 %v1162_v5, 0.0  ;;  %v748_v13 = vadd.f32 %v3298_v56, %v747_v8  ;;  %v1165_v17 = vadd.f32 %v3298_v56, %v1164_v9  ;;  %v749_v18 = vpop.f32.mrb[39].mxu0  ;;  %v1166_v21 = vpop.f32.mrb[39].mxu1 }
 0x14a   : > { %v3404_v22 = vmax.f32 %v817_v10, %v1234_v12  ;;  %v818_v23 = vmax.f32 %v748_v13, 0.0  ;;  %v1235_v24 = vmax.f32 %v1165_v17, 0.0 }
 0x14c   : > { %v3406_v25 = vmax.f32 %v818_v23, %v1235_v24 }
 0x14d   : > { %v752_v26 = vpop.f32.mrb[40].mxu0  ;;  %v1169_v27 = vpop.f32.mrb[40].mxu1 }
 0x14e   : > { %v753_v28 = vadd.f32 %v3298_v56, %v752_v26  ;;  %v1170_v29 = vadd.f32 %v3298_v56, %v1169_v27  ;;  %v754_v30 = vpop.f32.mrb[41].mxu0  ;;  %v1171_v31 = vpop.f32.mrb[41].mxu1 }
 0x14f   : > { %v755_v32 = vpop.f32.mrb[42].mxu0  ;;  %v1172_v34 = vpop.f32.mrb[42].mxu1 }
 0x150   : > { %v819_v35 = vmax.f32 %v753_v28, 0.0  ;;  %v1236_v39 = vmax.f32 %v1170_v29, 0.0  ;;  %v756_v40 = vadd.f32 %v3298_v56, %v755_v32  ;;  %v1173_v43 = vadd.f32 %v3298_v56, %v1172_v34  ;;  %v757_v44 = vpop.f32.mrb[43].mxu0  ;;  %v1174_v45 = vpop.f32.mrb[43].mxu1 }
 0x152   : > { %v3412_v46 = vmax.f32 %v819_v35, %v1236_v39  ;;  %v820_v47 = vmax.f32 %v756_v40, 0.0  ;;  %v1237_v48 = vmax.f32 %v1173_v43, 0.0 }
 0x154   : > { %v3414_v49 = vmax.f32 %v820_v47, %v1237_v48 }
 0x155   : > { %v760_v50 = vpop.f32.mrb[44].mxu0  ;;  %v1177_v51 = vpop.f32.mrb[44].mxu1 }
 0x156   : > { %v761_v52 = vadd.f32 %v3298_v56, %v760_v50  ;;  %v1178_v53 = vadd.f32 %v3298_v56, %v1177_v51  ;;  %v762_v54 = vpop.f32.mrb[45].mxu0  ;;  %v1179_v57 = vpop.f32.mrb[45].mxu1 }
 0x157   : > { %v763_v60 = vpop.f32.mrb[46].mxu0  ;;  %v1180_v63 = vpop.f32.mrb[46].mxu1 }
 0x158   : > { %v821_v0 = vmax.f32 %v761_v52, 0.0  ;;  %v1238_v2 = vmax.f32 %v1178_v53, 0.0  ;;  %v764_v3 = vadd.f32 %v3298_v56, %v763_v60  ;;  %v1181_v4 = vadd.f32 %v3298_v56, %v1180_v63  ;;  %v765_v5 = vpop.f32.mrb[47].mxu0  ;;  %v1182_v6 = vpop.f32.mrb[47].mxu1 }
 0x15a   : > { %v3420_v7 = vmax.f32 %v821_v0, %v1238_v2  ;;  %v822_v8 = vmax.f32 %v764_v3, 0.0  ;;  %v1239_v9 = vmax.f32 %v1181_v4, 0.0 }
 0x15c   : > { %v3422_v10 = vmax.f32 %v822_v8, %v1239_v9 }
 0x15d   : > { %v768_v12 = vpop.f32.mrb[48].mxu0  ;;  %v1185_v13 = vpop.f32.mrb[48].mxu1 }
 0x15e   : > { %v769_v17 = vadd.f32 %v3298_v56, %v768_v12  ;;  %v1186_v18 = vadd.f32 %v3298_v56, %v1185_v13  ;;  %v770_v21 = vpop.f32.mrb[49].mxu0  ;;  %v1187_v23 = vpop.f32.mrb[49].mxu1 }
 0x15f   : > { %v771_v24 = vpop.f32.mrb[50].mxu0  ;;  %v1188_v26 = vpop.f32.mrb[50].mxu1 }
 0x160   : > { %v823_v27 = vmax.f32 %v769_v17, 0.0  ;;  %v1240_v28 = vmax.f32 %v1186_v18, 0.0  ;;  %v772_v29 = vadd.f32 %v3298_v56, %v771_v24  ;;  %v1189_v30 = vadd.f32 %v3298_v56, %v1188_v26  ;;  %v773_v31 = vpop.f32.mrb[51].mxu0  ;;  %v1190_v32 = vpop.f32.mrb[51].mxu1 }
 0x162   : > { %v3428_v34 = vmax.f32 %v823_v27, %v1240_v28  ;;  %v824_v35 = vmax.f32 %v772_v29, 0.0  ;;  %v1241_v39 = vmax.f32 %v1189_v30, 0.0 }
 0x164   : > { %v3430_v40 = vmax.f32 %v824_v35, %v1241_v39 }
 0x165   : > { %v776_v43 = vpop.f32.mrb[52].mxu0  ;;  %v1193_v44 = vpop.f32.mrb[52].mxu1 }
 0x166   : > { %v777_v45 = vadd.f32 %v3298_v56, %v776_v43  ;;  %v1194_v47 = vadd.f32 %v3298_v56, %v1193_v44  ;;  %v778_v48 = vpop.f32.mrb[53].mxu0  ;;  %v1195_v50 = vpop.f32.mrb[53].mxu1 }
 0x167   : > { %v779_v51 = vpop.f32.mrb[54].mxu0  ;;  %v1196_v52 = vpop.f32.mrb[54].mxu1 }
 0x168   : > { %v825_v53 = vmax.f32 %v777_v45, 0.0  ;;  %v1242_v54 = vmax.f32 %v1194_v47, 0.0  ;;  %v780_v57 = vadd.f32 %v3298_v56, %v779_v51  ;;  %v1197_v60 = vadd.f32 %v3298_v56, %v1196_v52  ;;  %v781_v63 = vpop.f32.mrb[55].mxu0  ;;  %v1198_v0 = vpop.f32.mrb[55].mxu1 }
 0x16a   : > { %v3436_v2 = vmax.f32 %v825_v53, %v1242_v54  ;;  %v826_v3 = vmax.f32 %v780_v57, 0.0  ;;  %v1243_v4 = vmax.f32 %v1197_v60, 0.0 }
 0x16c   : > { %v3438_v5 = vmax.f32 %v826_v3, %v1243_v4 }
 0x16d   : > { %v784_v6 = vpop.f32.mrb[56].mxu0  ;;  %v1201_v8 = vpop.f32.mrb[56].mxu1 }
 0x16e   : > { %v785_v9 = vadd.f32 %v3298_v56, %v784_v6  ;;  %v1202_v12 = vadd.f32 %v3298_v56, %v1201_v8  ;;  %v786_v13 = vpop.f32.mrb[57].mxu0  ;;  %v1203_v17 = vpop.f32.mrb[57].mxu1 }
 0x16f   : > { %v787_v18 = vpop.f32.mrb[58].mxu0  ;;  %v1204_v21 = vpop.f32.mrb[58].mxu1 }
 0x170   : > { %v827_v23 = vmax.f32 %v785_v9, 0.0  ;;  %v1244_v24 = vmax.f32 %v1202_v12, 0.0  ;;  %v788_v26 = vadd.f32 %v3298_v56, %v787_v18  ;;  %v1205_v27 = vadd.f32 %v3298_v56, %v1204_v21  ;;  %v789_v28 = vpop.f32.mrb[59].mxu0  ;;  %v1206_v29 = vpop.f32.mrb[59].mxu1 }
 0x172   : > { %v3444_v30 = vmax.f32 %v827_v23, %v1244_v24  ;;  %v828_v31 = vmax.f32 %v788_v26, 0.0  ;;  %v1245_v32 = vmax.f32 %v1205_v27, 0.0 }
 0x174   : > { %v3446_v35 = vmax.f32 %v828_v31, %v1245_v32 }
 0x175   : > { %v792_v39 = vpop.f32.mrb[60].mxu0  ;;  %v1209_v43 = vpop.f32.mrb[60].mxu1 }
 0x176   : > { %v793_v44 = vadd.f32 %v3298_v56, %v792_v39  ;;  %v1210_v45 = vadd.f32 %v3298_v56, %v1209_v43  ;;  %v794_v47 = vpop.f32.mrb[61].mxu0  ;;  %v1211_v48 = vpop.f32.mrb[61].mxu1 }
 0x177   : > { %v795_v50 = vpop.f32.mrb[62].mxu0  ;;  %v1212_v51 = vpop.f32.mrb[62].mxu1 }
 0x178   : > { %v829_v52 = vmax.f32 %v793_v44, 0.0  ;;  %v1246_v53 = vmax.f32 %v1210_v45, 0.0  ;;  %v796_v54 = vadd.f32 %v3298_v56, %v795_v50  ;;  %v1213_v57 = vadd.f32 %v3298_v56, %v1212_v51  ;;  %v797_v60 = vpop.f32.mrb[63].mxu0  ;;  %v1214_v63 = vpop.f32.mrb[63].mxu1 }
 0x17a   : > { %v3452_v0 = vmax.f32 %v829_v52, %v1246_v53  ;;  %v830_v3 = vmax.f32 %v796_v54, 0.0  ;;  %v1247_v4 = vmax.f32 %v1213_v57, 0.0 }
 0x17c   : > { %v3454_v6 = vmax.f32 %v830_v3, %v1247_v4 }
 0x17d   : > { %v1538_v8 = vpop.f32.mrb[64].mxu0  ;;  %v1955_v9 = vpop.f32.mrb[64].mxu1 }
 0x17e   : > { %v1539_v12 = vadd.f32 %v3298_v56, %v1538_v8  ;;  %v1956_v13 = vadd.f32 %v3298_v56, %v1955_v9  ;;  %v1540_v17 = vpop.f32.mrb[65].mxu0  ;;  %v1957_v18 = vpop.f32.mrb[65].mxu1 }
 0x17f   : > { %v1541_v21 = vpop.f32.mrb[66].mxu0  ;;  %v1958_v23 = vpop.f32.mrb[66].mxu1 }
 0x180   : > { %v1665_v24 = vmax.f32 %v1539_v12, 0.0  ;;  %v2082_v26 = vmax.f32 %v1956_v13, 0.0  ;;  %v1542_v27 = vadd.f32 %v3298_v56, %v1541_v21  ;;  %v1959_v28 = vadd.f32 %v3298_v56, %v1958_v23  ;;  %v1543_v29 = vpop.f32.mrb[67].mxu0  ;;  %v1960_v31 = vpop.f32.mrb[67].mxu1 }
 0x182   : > { %v2114_v32 = vmax.f32 %v1665_v24, %v2082_v26  ;;  %v1666_v39 = vmax.f32 %v1542_v27, 0.0  ;;  %v2083_v43 = vmax.f32 %v1959_v28, 0.0 }
 0x184   : > { %v2146_v44 = vmax.f32 %v3310_v11, %v2114_v32  ;;  %v2115_v45 = vmax.f32 %v1666_v39, %v2083_v43 }
 0x185   : > { %v1546_v47 = vpop.f32.mrb[68].mxu0  ;;  %v1963_v48 = vpop.f32.mrb[68].mxu1 }
 0x186   : > { %v2690_v50 = vpack.c.bf16 %v2146_v44, %v2146_v44  ;;  %v2147_v51 = vmax.f32 %v3314_v14, %v2115_v45  ;;  %v1547_v52 = vadd.f32 %v3298_v56, %v1546_v47  ;;  %v1964_v53 = vadd.f32 %v3298_v56, %v1963_v48  ;;  %v1548_v54 = vpop.f32.mrb[69].mxu0  ;;  %v1965_v11 = vpop.f32.mrb[69].mxu1 }
 0x187   : > { %v1549_v57 = vpop.f32.mrb[70].mxu0  ;;  %v1966_v60 = vpop.f32.mrb[70].mxu1 }
 0x188   : > { %2307 = vst.msk [vmem:[%s3465_s14] sm:$0xf] %vm2306_vm1, %v2690_v50  ;;  %v2691_v63 = vpack.c.bf16 %v2147_v51, %v2147_v51  ;;  %v1667_v3 = vmax.f32 %v1547_v52, 0.0  ;;  %v2084_v4 = vmax.f32 %v1964_v53, 0.0  ;;  %v1550_v8 = vadd.f32 %v3298_v56, %v1549_v57  ;;  %v1551_v9 = vpop.f32.mrb[71].mxu0  ;;  %v1968_v12 = vpop.f32.mrb[71].mxu1 }
 0x189   : > { %v1967_v13 = vadd.f32 %v3298_v56, %v1966_v60 }
 0x18a   : > { %2308 = vst.msk [vmem:[%s3465_s14 + $0x4] sm:$0xf] %vm2306_vm1, %v2691_v63  ;;  %v2116_v14 = vmax.f32 %v1667_v3, %v2084_v4  ;;  %v1668_v17 = vmax.f32 %v1550_v8, 0.0 }
 0x18b   : > { %v2085_v18 = vmax.f32 %v1967_v13, 0.0 }
 0x18c   : > { %v2148_v21 = vmax.f32 %v3324_v33, %v2116_v14 }
 0x18d   : > { %v2117_v23 = vmax.f32 %v1668_v17, %v2085_v18  ;;  %v1554_v24 = vpop.f32.mrb[72].mxu0  ;;  %v1971_v26 = vpop.f32.mrb[72].mxu1 }
 0x18e   : > { %v2692_v27 = vpack.c.bf16 %v2148_v21, %v2148_v21  ;;  %v1555_v28 = vadd.f32 %v3298_v56, %v1554_v24  ;;  %v1972_v29 = vadd.f32 %v3298_v56, %v1971_v26  ;;  %v1556_v31 = vpop.f32.mrb[73].mxu0  ;;  %v1973_v32 = vpop.f32.mrb[73].mxu1 }
 0x18f   : > { %v2149_v39 = vmax.f32 %v3328_v36, %v2117_v23  ;;  %v1557_v43 = vpop.f32.mrb[74].mxu0  ;;  %v1974_v44 = vpop.f32.mrb[74].mxu1 }
 0x190   : > { %2309 = vst.msk [vmem:[%s3465_s14 + $0x8] sm:$0xf] %vm2306_vm1, %v2692_v27  ;;  %v1669_v45 = vmax.f32 %v1555_v28, 0.0  ;;  %v2086_v47 = vmax.f32 %v1972_v29, 0.0  ;;  %v1558_v33 = vadd.f32 %v3298_v56, %v1557_v43  ;;  %v1975_v48 = vadd.f32 %v3298_v56, %v1974_v44  ;;  %v1559_v50 = vpop.f32.mrb[75].mxu0  ;;  %v1976_v51 = vpop.f32.mrb[75].mxu1 }
 0x191   : > { %v2693_v52 = vpack.c.bf16 %v2149_v39, %v2149_v39 }
 0x192   : > { %v2118_v53 = vmax.f32 %v1669_v45, %v2086_v47  ;;  %v1670_v54 = vmax.f32 %v1558_v33, 0.0  ;;  %v2087_v11 = vmax.f32 %v1975_v48, 0.0 }
 0x193   : > { %2310 = vst.msk [vmem:[%s3465_s14 + $0xc] sm:$0xf] %vm2306_vm1, %v2693_v52 }
 0x194   : > { %v2150_v36 = vmax.f32 %v3338_v55, %v2118_v53  ;;  %v2119_v57 = vmax.f32 %v1670_v54, %v2087_v11 }
 0x195   : > { %v1562_v60 = vpop.f32.mrb[76].mxu0  ;;  %v1979_v63 = vpop.f32.mrb[76].mxu1 }
 0x196   : > { %v2694_v3 = vpack.c.bf16 %v2150_v36, %v2150_v36  ;;  %v2151_v4 = vmax.f32 %v3342_v59, %v2119_v57  ;;  %v1563_v8 = vadd.f32 %v3298_v56, %v1562_v60  ;;  %v1980_v9 = vadd.f32 %v3298_v56, %v1979_v63  ;;  %v1564_v12 = vpop.f32.mrb[77].mxu0  ;;  %v1981_v13 = vpop.f32.mrb[77].mxu1 }
 0x197   : > { %v1565_v14 = vpop.f32.mrb[78].mxu0  ;;  %v1982_v17 = vpop.f32.mrb[78].mxu1 }
 0x198   : > { %2311 = vst.msk [vmem:[%s3465_s14 + $0x10] sm:$0xf] %vm2306_vm1, %v2694_v3  ;;  %v2695_v18 = vpack.c.bf16 %v2151_v4, %v2151_v4  ;;  %v1671_v21 = vmax.f32 %v1563_v8, 0.0  ;;  %v2088_v55 = vmax.f32 %v1980_v9, 0.0  ;;  %v1566_v23 = vadd.f32 %v3298_v56, %v1565_v14  ;;  %v1567_v24 = vpop.f32.mrb[79].mxu0  ;;  %v1984_v26 = vpop.f32.mrb[79].mxu1 }
 0x199   : > { %v1983_v27 = vadd.f32 %v3298_v56, %v1982_v17 }
 0x19a   : > { %2312 = vst.msk [vmem:[%s3465_s14 + $0x14] sm:$0xf] %vm2306_vm1, %v2695_v18  ;;  %v2120_v59 = vmax.f32 %v1671_v21, %v2088_v55  ;;  %v1672_v28 = vmax.f32 %v1566_v23, 0.0 }
 0x19b   : > { %v2089_v29 = vmax.f32 %v1983_v27, 0.0 }
 0x19c   : > { %v2152_v31 = vmax.f32 %v3352_v16, %v2120_v59 }
 0x19d   : > { %v2121_v32 = vmax.f32 %v1672_v28, %v2089_v29  ;;  %v1570_v39 = vpop.f32.mrb[80].mxu0  ;;  %v1987_v43 = vpop.f32.mrb[80].mxu1 }
 0x19e   : > { %v2696_v44 = vpack.c.bf16 %v2152_v31, %v2152_v31  ;;  %v1571_v45 = vadd.f32 %v3298_v56, %v1570_v39  ;;  %v1988_v47 = vadd.f32 %v3298_v56, %v1987_v43  ;;  %v1572_v33 = vpop.f32.mrb[81].mxu0  ;;  %v1989_v48 = vpop.f32.mrb[81].mxu1 }
 0x19f   : > { %v2153_v50 = vmax.f32 %v3356_v19, %v2121_v32  ;;  %v1573_v51 = vpop.f32.mrb[82].mxu0  ;;  %v1990_v52 = vpop.f32.mrb[82].mxu1 }
 0x1a0   : > { %2313 = vst.msk [vmem:[%s3465_s14 + $0x18] sm:$0xf] %vm2306_vm1, %v2696_v44  ;;  %v1673_v53 = vmax.f32 %v1571_v45, 0.0  ;;  %v2090_v54 = vmax.f32 %v1988_v47, 0.0  ;;  %v1574_v16 = vadd.f32 %v3298_v56, %v1573_v51  ;;  %v1991_v11 = vadd.f32 %v3298_v56, %v1990_v52  ;;  %v1575_v36 = vpop.f32.mrb[83].mxu0  ;;  %v1992_v57 = vpop.f32.mrb[83].mxu1 }
 0x1a1   : > { %v2697_v60 = vpack.c.bf16 %v2153_v50, %v2153_v50 }
 0x1a2   : > { %v2122_v63 = vmax.f32 %v1673_v53, %v2090_v54  ;;  %v1674_v3 = vmax.f32 %v1574_v16, 0.0  ;;  %v2091_v4 = vmax.f32 %v1991_v11, 0.0 }
 0x1a3   : > { %2314 = vst.msk [vmem:[%s3465_s14 + $0x1c] sm:$0xf] %vm2306_vm1, %v2697_v60 }
 0x1a4   : > { %v2154_v19 = vmax.f32 %v3364_v38, %v2122_v63  ;;  %v2123_v8 = vmax.f32 %v1674_v3, %v2091_v4 }
 0x1a5   : > { %v1578_v9 = vpop.f32.mrb[84].mxu0  ;;  %v1995_v12 = vpop.f32.mrb[84].mxu1 }
 0x1a6   : > { %v2698_v13 = vpack.c.bf16 %v2154_v19, %v2154_v19  ;;  %v2155_v14 = vmax.f32 %v3366_v41, %v2123_v8  ;;  %v1579_v17 = vadd.f32 %v3298_v56, %v1578_v9  ;;  %v1996_v18 = vadd.f32 %v3298_v56, %v1995_v12  ;;  %v1580_v21 = vpop.f32.mrb[85].mxu0  ;;  %v1997_v55 = vpop.f32.mrb[85].mxu1 }
 0x1a7   : > { %v1581_v23 = vpop.f32.mrb[86].mxu0  ;;  %v1998_v24 = vpop.f32.mrb[86].mxu1 }
 0x1a8   : > { %2315 = vst.msk [vmem:[%s3465_s14 + $0x20] sm:$0xf] %vm2306_vm1, %v2698_v13  ;;  %v2699_v26 = vpack.c.bf16 %v2155_v14, %v2155_v14  ;;  %v1675_v27 = vmax.f32 %v1579_v17, 0.0  ;;  %v2092_v38 = vmax.f32 %v1996_v18, 0.0  ;;  %v1582_v59 = vadd.f32 %v3298_v56, %v1581_v23  ;;  %v1583_v28 = vpop.f32.mrb[87].mxu0  ;;  %v2000_v29 = vpop.f32.mrb[87].mxu1 }
 0x1a9   : > { %v1999_v31 = vadd.f32 %v3298_v56, %v1998_v24 }
 0x1aa   : > { %2316 = vst.msk [vmem:[%s3465_s14 + $0x24] sm:$0xf] %vm2306_vm1, %v2699_v26  ;;  %v2124_v41 = vmax.f32 %v1675_v27, %v2092_v38  ;;  %v1676_v32 = vmax.f32 %v1582_v59, 0.0 }
 0x1ab   : > { %v2093_v39 = vmax.f32 %v1999_v31, 0.0 }
 0x1ac   : > { %v2156_v43 = vmax.f32 %v3372_v58, %v2124_v41 }
 0x1ad   : > { %v2125_v44 = vmax.f32 %v1676_v32, %v2093_v39  ;;  %v1586_v45 = vpop.f32.mrb[88].mxu0  ;;  %v2003_v47 = vpop.f32.mrb[88].mxu1 }
 0x1ae   : > { %v2700_v33 = vpack.c.bf16 %v2156_v43, %v2156_v43  ;;  %v1587_v48 = vadd.f32 %v3298_v56, %v1586_v45  ;;  %v2004_v50 = vadd.f32 %v3298_v56, %v2003_v47  ;;  %v1588_v51 = vpop.f32.mrb[89].mxu0  ;;  %v2005_v52 = vpop.f32.mrb[89].mxu1 }
 0x1af   : > { %v2157_v53 = vmax.f32 %v3374_v62, %v2125_v44  ;;  %v1589_v54 = vpop.f32.mrb[90].mxu0  ;;  %v2006_v16 = vpop.f32.mrb[90].mxu1 }
 0x1b0   : > { %2317 = vst.msk [vmem:[%s3465_s14 + $0x28] sm:$0xf] %vm2306_vm1, %v2700_v33  ;;  %v1677_v11 = vmax.f32 %v1587_v48, 0.0  ;;  %v2094_v36 = vmax.f32 %v2004_v50, 0.0  ;;  %v1590_v58 = vadd.f32 %v3298_v56, %v1589_v54  ;;  %v2007_v57 = vadd.f32 %v3298_v56, %v2006_v16  ;;  %v1591_v60 = vpop.f32.mrb[91].mxu0  ;;  %v2008_v63 = vpop.f32.mrb[91].mxu1 }
 0x1b1   : > { %v2701_v3 = vpack.c.bf16 %v2157_v53, %v2157_v53  ;;  %v3540_v33 = vld [vmem:[%s3635_s5] ss:$0 sm:$0xff] }
 0x1b2   : > { %v2126_v4 = vmax.f32 %v1677_v11, %v2094_v36  ;;  %v1678_v19 = vmax.f32 %v1590_v58, 0.0  ;;  %v2095_v8 = vmax.f32 %v2007_v57, 0.0 }
 0x1b3   : > { %2318 = vst.msk [vmem:[%s3465_s14 + $0x2c] sm:$0xf] %vm2306_vm1, %v2701_v3 }
 0x1b4   : > { %v2158_v62 = vmax.f32 %v3380_v15, %v2126_v4  ;;  %v2127_v9 = vmax.f32 %v1678_v19, %v2095_v8 }
 0x1b5   : > { %v1594_v12 = vpop.f32.mrb[92].mxu0  ;;  %v2011_v13 = vpop.f32.mrb[92].mxu1 }
 0x1b6   : > { %v2702_v14 = vpack.c.bf16 %v2158_v62, %v2158_v62  ;;  %v2159_v17 = vmax.f32 %v3382_v20, %v2127_v9  ;;  %v1595_v18 = vadd.f32 %v3298_v56, %v1594_v12  ;;  %v2012_v21 = vadd.f32 %v3298_v56, %v2011_v13  ;;  %v1596_v55 = vpop.f32.mrb[93].mxu0  ;;  %v2013_v23 = vpop.f32.mrb[93].mxu1 }
 0x1b7   : > { %v1597_v24 = vpop.f32.mrb[94].mxu0  ;;  %v2014_v26 = vpop.f32.mrb[94].mxu1 }
 0x1b8   : > { %2319 = vst.msk [vmem:[%s3465_s14 + $0x30] sm:$0xf] %vm2306_vm1, %v2702_v14  ;;  %v2703_v27 = vpack.c.bf16 %v2159_v17, %v2159_v17  ;;  %v1679_v38 = vmax.f32 %v1595_v18, 0.0  ;;  %v2096_v15 = vmax.f32 %v2012_v21, 0.0  ;;  %v1598_v59 = vadd.f32 %v3298_v56, %v1597_v24  ;;  %v1599_v28 = vpop.f32.mrb[95].mxu0  ;;  %v2016_v29 = vpop.f32.mrb[95].mxu1 }
 0x1b9   : > { %v2015_v31 = vadd.f32 %v3298_v56, %v2014_v26 }
 0x1ba   : > { %2320 = vst.msk [vmem:[%s3465_s14 + $0x34] sm:$0xf] %vm2306_vm1, %v2703_v27  ;;  %v2128_v20 = vmax.f32 %v1679_v38, %v2096_v15  ;;  %v1680_v41 = vmax.f32 %v1598_v59, 0.0 }
 0x1bb   : > { %v2097_v32 = vmax.f32 %v2015_v31, 0.0 }
 0x1bc   : > { %v2160_v39 = vmax.f32 %v3388_v37, %v2128_v20 }
 0x1bd   : > { %v2129_v43 = vmax.f32 %v1680_v41, %v2097_v32  ;;  %v1602_v44 = vpop.f32.mrb[96].mxu0  ;;  %v2019_v45 = vpop.f32.mrb[96].mxu1 }
 0x1be   : > { %v2704_v47 = vpack.c.bf16 %v2160_v39, %v2160_v39  ;;  %v1603_v48 = vadd.f32 %v3540_v33, %v1602_v44  ;;  %v2020_v56 = vadd.f32 %v3540_v33, %v2019_v45  ;;  %v1604_v50 = vpop.f32.mrb[97].mxu0  ;;  %v2021_v51 = vpop.f32.mrb[97].mxu1 }
 0x1bf   : > { %v2161_v52 = vmax.f32 %v3390_v42, %v2129_v43  ;;  %v1605_v53 = vpop.f32.mrb[98].mxu0  ;;  %v2022_v37 = vpop.f32.mrb[98].mxu1 }
 0x1c0   : > { %2321 = vst.msk [vmem:[%s3465_s14 + $0x38] sm:$0xf] %vm2306_vm1, %v2704_v47  ;;  %v1681_v54 = vmax.f32 %v1603_v48, 0.0  ;;  %v2098_v16 = vmax.f32 %v2020_v56, 0.0  ;;  %v1606_v11 = vadd.f32 %v3540_v33, %v1605_v53  ;;  %v2023_v36 = vadd.f32 %v3540_v33, %v2022_v37  ;;  %v1607_v58 = vpop.f32.mrb[99].mxu0  ;;  %v2024_v57 = vpop.f32.mrb[99].mxu1 }
 0x1c1   : > { %v2705_v60 = vpack.c.bf16 %v2161_v52, %v2161_v52 }
 0x1c2   : > { %v2130_v63 = vmax.f32 %v1681_v54, %v2098_v16  ;;  %v1682_v3 = vmax.f32 %v1606_v11, 0.0  ;;  %v2099_v4 = vmax.f32 %v2023_v36, 0.0 }
 0x1c3   : > { %2322 = vst.msk [vmem:[%s3465_s14 + $0x3c] sm:$0xf] %vm2306_vm1, %v2705_v60 }
 0x1c4   : > { %v2162_v42 = vmax.f32 %v3396_v61, %v2130_v63  ;;  %v2131_v19 = vmax.f32 %v1682_v3, %v2099_v4 }
 0x1c5   : > { %v1610_v8 = vpop.f32.mrb[100].mxu0  ;;  %v2027_v62 = vpop.f32.mrb[100].mxu1 }
 0x1c6   : > { %v2706_v9 = vpack.c.bf16 %v2162_v42, %v2162_v42  ;;  %v2163_v12 = vmax.f32 %v3398_v1, %v2131_v19  ;;  %v1611_v13 = vadd.f32 %v3540_v33, %v1610_v8  ;;  %v2028_v14 = vadd.f32 %v3540_v33, %v2027_v62  ;;  %v1612_v17 = vpop.f32.mrb[101].mxu0  ;;  %v2029_v18 = vpop.f32.mrb[101].mxu1 }
 0x1c7   : > { %v1613_v21 = vpop.f32.mrb[102].mxu0  ;;  %v2030_v55 = vpop.f32.mrb[102].mxu1 }
 0x1c8   : > { %2323 = vst.msk [vmem:[%s3465_s14 + $0x40] sm:$0xf] %vm2306_vm1, %v2706_v9  ;;  %v2707_v23 = vpack.c.bf16 %v2163_v12, %v2163_v12  ;;  %v1683_v24 = vmax.f32 %v1611_v13, 0.0  ;;  %v2100_v61 = vmax.f32 %v2028_v14, 0.0  ;;  %v1614_v26 = vadd.f32 %v3540_v33, %v1613_v21  ;;  %v1615_v27 = vpop.f32.mrb[103].mxu0  ;;  %v2032_v38 = vpop.f32.mrb[103].mxu1 }
 0x1c9   : > { %v2031_v15 = vadd.f32 %v3540_v33, %v2030_v55 }
 0x1ca   : > { %2324 = vst.msk [vmem:[%s3465_s14 + $0x44] sm:$0xf] %vm2306_vm1, %v2707_v23  ;;  %v2132_v1 = vmax.f32 %v1683_v24, %v2100_v61  ;;  %v1684_v59 = vmax.f32 %v1614_v26, 0.0 }
 0x1cb   : > { %v2101_v28 = vmax.f32 %v2031_v15, 0.0 }
 0x1cc   : > { %v2164_v29 = vmax.f32 %v3404_v22, %v2132_v1 }
 0x1cd   : > { %v2133_v31 = vmax.f32 %v1684_v59, %v2101_v28  ;;  %v1618_v20 = vpop.f32.mrb[104].mxu0  ;;  %v2035_v41 = vpop.f32.mrb[104].mxu1 }
 0x1ce   : > { %v2708_v32 = vpack.c.bf16 %v2164_v29, %v2164_v29  ;;  %v1619_v39 = vadd.f32 %v3540_v33, %v1618_v20  ;;  %v2036_v43 = vadd.f32 %v3540_v33, %v2035_v41  ;;  %v1620_v44 = vpop.f32.mrb[105].mxu0  ;;  %v2037_v45 = vpop.f32.mrb[105].mxu1 }
 0x1cf   : > { %v2165_v47 = vmax.f32 %v3406_v25, %v2133_v31  ;;  %v1621_v48 = vpop.f32.mrb[106].mxu0  ;;  %v2038_v56 = vpop.f32.mrb[106].mxu1 }
 0x1d0   : > { %2325 = vst.msk [vmem:[%s3465_s14 + $0x48] sm:$0xf] %vm2306_vm1, %v2708_v32  ;;  %v1685_v50 = vmax.f32 %v1619_v39, 0.0  ;;  %v2102_v51 = vmax.f32 %v2036_v43, 0.0  ;;  %v1622_v22 = vadd.f32 %v3540_v33, %v1621_v48  ;;  %v2039_v52 = vadd.f32 %v3540_v33, %v2038_v56  ;;  %v1623_v53 = vpop.f32.mrb[107].mxu0  ;;  %v2040_v37 = vpop.f32.mrb[107].mxu1 }
 0x1d1   : > { %v2709_v54 = vpack.c.bf16 %v2165_v47, %v2165_v47 }
 0x1d2   : > { %v2134_v16 = vmax.f32 %v1685_v50, %v2102_v51  ;;  %v1686_v11 = vmax.f32 %v1622_v22, 0.0  ;;  %v2103_v36 = vmax.f32 %v2039_v52, 0.0 }
 0x1d3   : > { %2326 = vst.msk [vmem:[%s3465_s14 + $0x4c] sm:$0xf] %vm2306_vm1, %v2709_v54 }
 0x1d4   : > { %v2166_v25 = vmax.f32 %v3412_v46, %v2134_v16  ;;  %v2135_v58 = vmax.f32 %v1686_v11, %v2103_v36 }
 0x1d5   : > { %v1626_v57 = vpop.f32.mrb[108].mxu0  ;;  %v2043_v60 = vpop.f32.mrb[108].mxu1 }
 0x1d6   : > { %v2710_v63 = vpack.c.bf16 %v2166_v25, %v2166_v25  ;;  %v2167_v3 = vmax.f32 %v3414_v49, %v2135_v58  ;;  %v1627_v4 = vadd.f32 %v3540_v33, %v1626_v57  ;;  %v2044_v42 = vadd.f32 %v3540_v33, %v2043_v60  ;;  %v1628_v19 = vpop.f32.mrb[109].mxu0  ;;  %v2045_v8 = vpop.f32.mrb[109].mxu1 }
 0x1d7   : > { %v1629_v62 = vpop.f32.mrb[110].mxu0  ;;  %v2046_v9 = vpop.f32.mrb[110].mxu1 }
 0x1d8   : > { %2327 = vst.msk [vmem:[%s3465_s14 + $0x50] sm:$0xf] %vm2306_vm1, %v2710_v63  ;;  %v2711_v12 = vpack.c.bf16 %v2167_v3, %v2167_v3  ;;  %v1687_v13 = vmax.f32 %v1627_v4, 0.0  ;;  %v2104_v46 = vmax.f32 %v2044_v42, 0.0  ;;  %v1630_v14 = vadd.f32 %v3540_v33, %v1629_v62  ;;  %v1631_v17 = vpop.f32.mrb[111].mxu0  ;;  %v2048_v18 = vpop.f32.mrb[111].mxu1 }
 0x1d9   : > { %v2047_v21 = vadd.f32 %v3540_v33, %v2046_v9 }
 0x1da   : > { %2328 = vst.msk [vmem:[%s3465_s14 + $0x54] sm:$0xf] %vm2306_vm1, %v2711_v12  ;;  %v2136_v49 = vmax.f32 %v1687_v13, %v2104_v46  ;;  %v1688_v55 = vmax.f32 %v1630_v14, 0.0 }
 0x1db   : > { %v2105_v23 = vmax.f32 %v2047_v21, 0.0 }
 0x1dc   : > { %v2168_v24 = vmax.f32 %v3420_v7, %v2136_v49 }
 0x1dd   : > { %v2137_v61 = vmax.f32 %v1688_v55, %v2105_v23  ;;  %v1634_v26 = vpop.f32.mrb[112].mxu0  ;;  %v2051_v27 = vpop.f32.mrb[112].mxu1 }
 0x1de   : > { %v2712_v38 = vpack.c.bf16 %v2168_v24, %v2168_v24  ;;  %v1635_v15 = vadd.f32 %v3540_v33, %v1634_v26  ;;  %v2052_v1 = vadd.f32 %v3540_v33, %v2051_v27  ;;  %v1636_v59 = vpop.f32.mrb[113].mxu0  ;;  %v2053_v28 = vpop.f32.mrb[113].mxu1 }
 0x1df   : > { %v2169_v29 = vmax.f32 %v3422_v10, %v2137_v61  ;;  %v1637_v31 = vpop.f32.mrb[114].mxu0  ;;  %v2054_v20 = vpop.f32.mrb[114].mxu1 }
 0x1e0   : > { %2329 = vst.msk [vmem:[%s3465_s14 + $0x58] sm:$0xf] %vm2306_vm1, %v2712_v38  ;;  %v1689_v41 = vmax.f32 %v1635_v15, 0.0  ;;  %v2106_v32 = vmax.f32 %v2052_v1, 0.0  ;;  %v1638_v7 = vadd.f32 %v3540_v33, %v1637_v31  ;;  %v2055_v39 = vadd.f32 %v3540_v33, %v2054_v20  ;;  %v1639_v43 = vpop.f32.mrb[115].mxu0  ;;  %v2056_v44 = vpop.f32.mrb[115].mxu1 }
 0x1e1   : > { %v2713_v45 = vpack.c.bf16 %v2169_v29, %v2169_v29 }
 0x1e2   : > { %v2138_v47 = vmax.f32 %v1689_v41, %v2106_v32  ;;  %v1690_v48 = vmax.f32 %v1638_v7, 0.0  ;;  %v2107_v56 = vmax.f32 %v2055_v39, 0.0 }
 0x1e3   : > { %2330 = vst.msk [vmem:[%s3465_s14 + $0x5c] sm:$0xf] %vm2306_vm1, %v2713_v45 }
 0x1e4   : > { %v2170_v10 = vmax.f32 %v3428_v34, %v2138_v47  ;;  %v2139_v50 = vmax.f32 %v1690_v48, %v2107_v56 }
 0x1e5   : > { %v1642_v51 = vpop.f32.mrb[116].mxu0  ;;  %v2059_v22 = vpop.f32.mrb[116].mxu1 }
 0x1e6   : > { %v2714_v52 = vpack.c.bf16 %v2170_v10, %v2170_v10  ;;  %v2171_v53 = vmax.f32 %v3430_v40, %v2139_v50  ;;  %v1643_v37 = vadd.f32 %v3540_v33, %v1642_v51  ;;  %v2060_v54 = vadd.f32 %v3540_v33, %v2059_v22  ;;  %v1644_v16 = vpop.f32.mrb[117].mxu0  ;;  %v2061_v11 = vpop.f32.mrb[117].mxu1 }
 0x1e7   : > { %v1645_v36 = vpop.f32.mrb[118].mxu0  ;;  %v2062_v25 = vpop.f32.mrb[118].mxu1 }
 0x1e8   : > { %2331 = vst.msk [vmem:[%s3465_s14 + $0x60] sm:$0xf] %vm2306_vm1, %v2714_v52  ;;  %v2715_v58 = vpack.c.bf16 %v2171_v53, %v2171_v53  ;;  %v1691_v57 = vmax.f32 %v1643_v37, 0.0  ;;  %v2108_v34 = vmax.f32 %v2060_v54, 0.0  ;;  %v1646_v60 = vadd.f32 %v3540_v33, %v1645_v36  ;;  %v1647_v63 = vpop.f32.mrb[119].mxu0  ;;  %v2064_v3 = vpop.f32.mrb[119].mxu1 }
 0x1e9   : > { %v2063_v4 = vadd.f32 %v3540_v33, %v2062_v25 }
 0x1ea   : > { %2332 = vst.msk [vmem:[%s3465_s14 + $0x64] sm:$0xf] %vm2306_vm1, %v2715_v58  ;;  %v2140_v40 = vmax.f32 %v1691_v57, %v2108_v34  ;;  %v1692_v42 = vmax.f32 %v1646_v60, 0.0 }
 0x1eb   : > { %v2109_v19 = vmax.f32 %v2063_v4, 0.0 }
 0x1ec   : > { %v2172_v8 = vmax.f32 %v3436_v2, %v2140_v40 }
 0x1ed   : > { %v2141_v62 = vmax.f32 %v1692_v42, %v2109_v19  ;;  %v1650_v9 = vpop.f32.mrb[120].mxu0  ;;  %v2067_v12 = vpop.f32.mrb[120].mxu1 }
 0x1ee   : > { %v2716_v13 = vpack.c.bf16 %v2172_v8, %v2172_v8  ;;  %v1651_v46 = vadd.f32 %v3540_v33, %v1650_v9  ;;  %v2068_v14 = vadd.f32 %v3540_v33, %v2067_v12  ;;  %v1652_v17 = vpop.f32.mrb[121].mxu0  ;;  %v2069_v18 = vpop.f32.mrb[121].mxu1 }
 0x1ef   : > { %v2173_v21 = vmax.f32 %v3438_v5, %v2141_v62  ;;  %v1653_v49 = vpop.f32.mrb[122].mxu0  ;;  %v2070_v55 = vpop.f32.mrb[122].mxu1 }
 0x1f0   : > { %2333 = vst.msk [vmem:[%s3465_s14 + $0x68] sm:$0xf] %vm2306_vm1, %v2716_v13  ;;  %v1693_v23 = vmax.f32 %v1651_v46, 0.0  ;;  %v2110_v24 = vmax.f32 %v2068_v14, 0.0  ;;  %v1654_v2 = vadd.f32 %v3540_v33, %v1653_v49  ;;  %v2071_v61 = vadd.f32 %v3540_v33, %v2070_v55  ;;  %v1655_v26 = vpop.f32.mrb[123].mxu0  ;;  %v2072_v27 = vpop.f32.mrb[123].mxu1 }
 0x1f1   : > { %v2717_v38 = vpack.c.bf16 %v2173_v21, %v2173_v21 }
 0x1f2   : > { %v2142_v15 = vmax.f32 %v1693_v23, %v2110_v24  ;;  %v1694_v1 = vmax.f32 %v1654_v2, 0.0  ;;  %v2111_v59 = vmax.f32 %v2071_v61, 0.0 }
 0x1f3   : > { %2334 = vst.msk [vmem:[%s3465_s14 + $0x6c] sm:$0xf] %vm2306_vm1, %v2717_v38 }
 0x1f4   : > { %v2174_v5 = vmax.f32 %v3444_v30, %v2142_v15  ;;  %v2143_v28 = vmax.f32 %v1694_v1, %v2111_v59 }
 0x1f5   : > { %v1658_v29 = vpop.f32.mrb[124].mxu0  ;;  %v2075_v31 = vpop.f32.mrb[124].mxu1 }
 0x1f6   : > { %v2718_v20 = vpack.c.bf16 %v2174_v5, %v2174_v5  ;;  %v2175_v41 = vmax.f32 %v3446_v35, %v2143_v28  ;;  %v1659_v32 = vadd.f32 %v3540_v33, %v1658_v29  ;;  %v2076_v7 = vadd.f32 %v3540_v33, %v2075_v31  ;;  %v1660_v39 = vpop.f32.mrb[125].mxu0  ;;  %v2077_v43 = vpop.f32.mrb[125].mxu1 }
 0x1f7   : > { %v1661_v44 = vpop.f32.mrb[126].mxu0  ;;  %v2078_v45 = vpop.f32.mrb[126].mxu1 }
 0x1f8   : > { %2335 = vst.msk [vmem:[%s3465_s14 + $0x70] sm:$0xf] %vm2306_vm1, %v2718_v20  ;;  %v2719_v47 = vpack.c.bf16 %v2175_v41, %v2175_v41  ;;  %v1695_v30 = vmax.f32 %v1659_v32, 0.0  ;;  %v2112_v48 = vmax.f32 %v2076_v7, 0.0  ;;  %v1662_v56 = vadd.f32 %v3540_v33, %v1661_v44  ;;  %v1663_v10 = vpop.f32.mrb[127].mxu0  ;;  %v2080_v50 = vpop.f32.mrb[127].mxu1 }
 0x1f9   : > { %v2079_v35 = vadd.f32 %v3540_v33, %v2078_v45 }
 0x1fa   : > { %2336 = vst.msk [vmem:[%s3465_s14 + $0x74] sm:$0xf] %vm2306_vm1, %v2719_v47  ;;  %v2144_v51 = vmax.f32 %v1695_v30, %v2112_v48  ;;  %v1696_v22 = vmax.f32 %v1662_v56, 0.0 }
 0x1fb   : > { %v2113_v52 = vmax.f32 %v2079_v35, 0.0 }
 0x1fc   : > { %v2176_v53 = vmax.f32 %v3452_v0, %v2144_v51 }
 0x1fd   : > { %v2145_v37 = vmax.f32 %v1696_v22, %v2113_v52 }
 0x1fe   : > { %v2720_v54 = vpack.c.bf16 %v2176_v53, %v2176_v53 }
 0x1ff   : > { %v2177_v16 = vmax.f32 %v3454_v6, %v2145_v37 }
 0x200   : > { %2337 = vst.msk [vmem:[%s3465_s14 + $0x78] sm:$0xf] %vm2306_vm1, %v2720_v54 }
 0x201   : > { %v2721_v11 = vpack.c.bf16 %v2177_v16, %v2177_v16 }
 0x203   : > { %2338 = vst.msk [vmem:[%s3465_s14 + $0x7c] sm:$0xf] %vm2306_vm1, %v2721_v11 }
 0x204 PF: > { %s16_s21 = sadd.s32 1, %s2939_s21  }
 0x205   : > { %p13_p4 = scmp.ge.s32.totalorder %s16_s21, 4  }
 0x207   :  { %15 = sbr.rel (!%p13_p4) target bundleno = 1 (0x1), region = 83 }

// kernel: cnn_forward.5
= control target key start
LH: loop header
LB: loop body
LE: loop exit
PB: predicated region body
PF: predicated region fallthrough
CT: control target
= control target key end

     0   :  { %10 = vsyncpa [#allocation4], 0  ;;  %s5992_s18 = smov 0   ;;  %s6764_s0 = inlined_call_operand.vmem [shape: bf16[2,8192], index: 0, kind: input, shape index: {}]   ;;  %s6765_s1 = inlined_call_operand.vmem [shape: bf16[8192,256], index: 1, kind: input, shape index: {}]   ;;  %s6766_s2 = inlined_call_operand.vmem [shape: f32[1,256], index: 2, kind: input, shape index: {}]   ;;  %s6767_s3 = inlined_call_operand.vmem [shape: bf16[256,10], index: 3, kind: input, shape index: {}]   ;;  %s6768_s4 = inlined_call_operand.vmem [shape: f32[1,10], index: 4, kind: input, shape index: {}]   ;;  %s6769_s5 = inlined_call_operand.hbm [shape: f32[2,10], index: 5, kind: output, shape index: {}]  }
   0x1 LB: > { %s5998_s19 = sadd.s32 4294967295, %s5956_s18   ;;  %p4493_p0 = scmp.ge.s32.totalorder %s5956_s18, 1  ;;  %s5956_s18 = sphi %s5992_s18, %s16_s18  }
   0x2   : > { %p195_p1 = scmp.lt.s32.totalorder %s5956_s18, 3 }
   0x4   : > { %p196_p2 = pnand %p4493_p0, %p195_p1 }
   0x5   : > { %s4494_s20 = sshll.u32 (!%p196_p2), %s5998_s19, 5  ;;  %s4495_s21 = sshll.u32 (!%p196_p2), %s5998_s19, 9 }
   0x6   : > { %199 = sbr.rel (%p196_p2) target bundleno = 1019 (0x3fb), region = 40  ;;  %p224_p3 = scmp.lt.s32.totalorder (!%p196_p2), %s4494_s20, 63 }
   0x7   : > { %p229_p4 = scmp.lt.s32.totalorder (!%p196_p2), %s4495_s21, 1023  ;;  %p4498_p5 = scmp.ne.s32.totalorder (!%p196_p2), %s5998_s19, 0 }
   0xd   : > { %s6771_s20 = smov (!%p224_p3, %s4494_s20), 63  ;;  %s6773_s21 = smov (!%p229_p4, %s4495_s21), 1023 }
   0xe   : > { %s6007_s24 = scalar_lea.vmem %s6764_s0, %s6771_s20  ;;  %s5033_s25 = sshll.u32 %s6773_s21, 3  ;;  %v5958_v0 = vmov (!%p4498_p5), 0.0  }
   0xf   : > { %s6012_s28 = scalar_lea.vmem %s6765_s1, %s5033_s25  ;;  %239 = sbr.rel (%p4498_p5) target bundleno = 22 (0x16), region = 44  ;;  %240 = vst [vmem:[#allocation2] sm:$0xf] (!%p4498_p5), %v5958_v0 }
  0x16 PF: > { %v5132_v1 = vld [vmem:[%s6012_s28 + $0x4] ss:$8 sps:$4 sm:$0xff]   ;;  %v5136_v3 = vld [vmem:[%s6012_s28] ss:$8 sps:$4 sm:$0xff]   ;;  %v5138_v5 = vld [vmem:[%s6012_s28 + $0x14] ss:$8 sps:$4 sm:$0xff]   ;;  %v766_v39 = vlaneseq }
  0x17   : > { %v5134_v2 = vld [vmem:[%s6012_s28 + $0x804] ss:$8 sps:$4 sm:$0xff]   ;;  %3550 = vmatprep.subr.bf16.mxu1 %v5132_v1  ;;  %v5137_v4 = vld [vmem:[%s6012_s28 + $0x800] ss:$8 sps:$4 sm:$0xff]   ;;  %v5140_v6 = vld [vmem:[%s6012_s28 + $0x814] ss:$8 sps:$4 sm:$0xff]  }
  0x18   : > { %3878 = vmatprep.subr.bf16.mxu0 %v5134_v2  ;;  %3551 = vmatpush1.bf16.msra.mxu1 %v5136_v3  ;;  %v5142_v7 = vld [vmem:[%s6012_s28 + $0x10] ss:$8 sps:$4 sm:$0xff]   ;;  %v5144_v9 = vld [vmem:[%s6012_s28 + $0x24] ss:$8 sps:$4 sm:$0xff]   ;;  %v5148_v11 = vld [vmem:[%s6012_s28 + $0x20] ss:$8 sps:$4 sm:$0xff]  }
  0x19   : > { %3879 = vmatpush1.bf16.msra.mxu0 %v5137_v4  ;;  %3552 = vmatprep.subr.bf16.mxu1 %v5138_v5  ;;  %v5143_v8 = vld [vmem:[%s6012_s28 + $0x810] ss:$8 sps:$4 sm:$0xff]   ;;  %v5146_v10 = vld [vmem:[%s6012_s28 + $0x824] ss:$8 sps:$4 sm:$0xff]   ;;  %v5149_v12 = vld [vmem:[%s6012_s28 + $0x820] ss:$8 sps:$4 sm:$0xff]  }
  0x1a   : > { %3880 = vmatprep.subr.bf16.mxu0 %v5140_v6  ;;  %v5150_v13 = vld [vmem:[%s6012_s28 + $0x34] ss:$8 sps:$4 sm:$0xff]   ;;  %v5154_v15 = vld [vmem:[%s6012_s28 + $0x30] ss:$8 sps:$4 sm:$0xff]   ;;  %v5156_v17 = vld [vmem:[%s6012_s28 + $0x44] ss:$8 sps:$4 sm:$0xff]  }
  0x1b   : > { %v5152_v14 = vld [vmem:[%s6012_s28 + $0x834] ss:$8 sps:$4 sm:$0xff]   ;;  %v5155_v16 = vld [vmem:[%s6012_s28 + $0x830] ss:$8 sps:$4 sm:$0xff]   ;;  %v5158_v18 = vld [vmem:[%s6012_s28 + $0x844] ss:$8 sps:$4 sm:$0xff]  }
  0x1c   : > { %3553 = vmatpush1.bf16.msra.mxu1 %v5142_v7  ;;  %v5160_v19 = vld [vmem:[%s6012_s28 + $0x40] ss:$8 sps:$4 sm:$0xff]   ;;  %v5162_v21 = vld [vmem:[%s6012_s28 + $0x54] ss:$8 sps:$4 sm:$0xff]   ;;  %v5166_v23 = vld [vmem:[%s6012_s28 + $0x50] ss:$8 sps:$4 sm:$0xff]  }
  0x1d   : > { %3881 = vmatpush1.bf16.msra.mxu0 %v5143_v8  ;;  %3554 = vmatprep.subr.bf16.mxu1 %v5144_v9  ;;  %v5161_v20 = vld [vmem:[%s6012_s28 + $0x840] ss:$8 sps:$4 sm:$0xff]   ;;  %v5164_v22 = vld [vmem:[%s6012_s28 + $0x854] ss:$8 sps:$4 sm:$0xff]   ;;  %v5167_v24 = vld [vmem:[%s6012_s28 + $0x850] ss:$8 sps:$4 sm:$0xff]  }
  0x1e   : > { %3882 = vmatprep.subr.bf16.mxu0 %v5146_v10  ;;  %v5168_v25 = vld [vmem:[%s6012_s28 + $0x64] ss:$8 sps:$4 sm:$0xff]   ;;  %v5172_v27 = vld [vmem:[%s6012_s28 + $0x60] ss:$8 sps:$4 sm:$0xff]   ;;  %v5174_v29 = vld [vmem:[%s6012_s28 + $0x74] ss:$8 sps:$4 sm:$0xff]  }
  0x1f   : > { %v5170_v26 = vld [vmem:[%s6012_s28 + $0x864] ss:$8 sps:$4 sm:$0xff]   ;;  %v5173_v28 = vld [vmem:[%s6012_s28 + $0x860] ss:$8 sps:$4 sm:$0xff]   ;;  %v5176_v30 = vld [vmem:[%s6012_s28 + $0x874] ss:$8 sps:$4 sm:$0xff]  }
  0x20   : > { %3555 = vmatpush1.bf16.msra.mxu1 %v5148_v11  ;;  %v5178_v31 = vld [vmem:[%s6012_s28 + $0x70] ss:$8 sps:$4 sm:$0xff]   ;;  %v5180_v33 = vld [vmem:[%s6012_s28 + $0x84] ss:$8 sps:$4 sm:$0xff]   ;;  %v5184_v35 = vld [vmem:[%s6012_s28 + $0x80] ss:$8 sps:$4 sm:$0xff]  }
  0x21   : > { %3883 = vmatpush1.bf16.msra.mxu0 %v5149_v12  ;;  %3556 = vmatprep.subr.bf16.mxu1 %v5150_v13  ;;  %v5179_v32 = vld [vmem:[%s6012_s28 + $0x870] ss:$8 sps:$4 sm:$0xff]   ;;  %v5182_v34 = vld [vmem:[%s6012_s28 + $0x884] ss:$8 sps:$4 sm:$0xff]   ;;  %v5185_v36 = vld [vmem:[%s6012_s28 + $0x880] ss:$8 sps:$4 sm:$0xff]  }
  0x22   : > { %3884 = vmatprep.subr.bf16.mxu0 %v5152_v14  ;;  %v5959_v37 = vmov 1966171168   ;;  %v5186_v40 = vld [vmem:[%s6012_s28 + $0x94] ss:$8 sps:$4 sm:$0xff]   ;;  %v5190_v42 = vld [vmem:[%s6012_s28 + $0x90] ss:$8 sps:$4 sm:$0xff]  }
  0x23   : > { %v764_v38 = vunpack.c.l.s4 %v5959_v37  ;;  %v5188_v41 = vld [vmem:[%s6012_s28 + $0x894] ss:$8 sps:$4 sm:$0xff]   ;;  %v6054_v44 = vshrl.u32 %v766_v39, 7  ;;  %v5191_v45 = vld [vmem:[%s6012_s28 + $0x890] ss:$8 sps:$4 sm:$0xff]   ;;  %v6067_v53 = vld [vmem:[%s6007_s24] sm:$0xff] }
  0x24   : > { %3557 = vmatpush1.bf16.msra.mxu1 %v5154_v15  ;;  %v5192_v46 = vld [vmem:[%s6012_s28 + $0xa4] ss:$8 sps:$4 sm:$0xff]   ;;  %v5196_v48 = vld [vmem:[%s6012_s28 + $0xa0] ss:$8 sps:$4 sm:$0xff]   ;;  %v5198_v51 = vld [vmem:[%s6012_s28 + $0xb4] ss:$8 sps:$4 sm:$0xff]  }
  0x25   : > { %3885 = vmatpush1.bf16.msra.mxu0 %v5155_v16  ;;  %3558 = vmatprep.subr.bf16.mxu1 %v5156_v17  ;;  %v765_v43 = vunpack.c.0.s8 %v764_v38  ;;  %v5194_v47 = vld [vmem:[%s6012_s28 + $0x8a4] ss:$8 sps:$4 sm:$0xff]   ;;  %v5197_v49 = vld [vmem:[%s6012_s28 + $0x8a0] ss:$8 sps:$4 sm:$0xff]   ;;  %v5200_v52 = vld [vmem:[%s6012_s28 + $0x8b4] ss:$8 sps:$4 sm:$0xff]  }
  0x26   : > { %3886 = vmatprep.subr.bf16.mxu0 %v5158_v18  ;;  %v5202_v54 = vld [vmem:[%s6012_s28 + $0xb0] ss:$8 sps:$4 sm:$0xff]   ;;  %v5204_v58 = vld [vmem:[%s6012_s28 + $0xc4] ss:$8 sps:$4 sm:$0xff]   ;;  %v5208_v0 = vld [vmem:[%s6012_s28 + $0xc0] ss:$8 sps:$4 sm:$0xff]  }
  0x27   : > { %v6062_v50 = vsub.s32 %v765_v43, %v6054_v44  ;;  %v5203_v56 = vld [vmem:[%s6012_s28 + $0x8b0] ss:$8 sps:$4 sm:$0xff]   ;;  %v5206_v59 = vld [vmem:[%s6012_s28 + $0x8c4] ss:$8 sps:$4 sm:$0xff]   ;;  %v5209_v1 = vld [vmem:[%s6012_s28 + $0x8c0] ss:$8 sps:$4 sm:$0xff]  }
  0x28   : > { %3559 = vmatpush1.bf16.msra.mxu1 %v5160_v19  ;;  %v6074_v57 = vld [vmem:[%s6007_s24 + $0x10] sm:$0xff]  ;;  %v5216_v7 = vld [vmem:[%s6012_s28 + $0xe4] ss:$8 sps:$4 sm:$0xff]   ;;  %v5220_v9 = vld [vmem:[%s6012_s28 + $0xe0] ss:$8 sps:$4 sm:$0xff]   ;;  %p5011_p6 = scmp.ne.s32.totalorder %s5998_s19, 1 }
  0x29   : > { %3887 = vmatpush1.bf16.msra.mxu0 %v5161_v20  ;;  %3560 = vmatprep.subr.bf16.mxu1 %v5162_v21  ;;  %v769_v55 = vrot.slane %v6067_v53, %v6062_v50  ;;  %v867_v61 = vrot.slane %v6074_v57, %v6062_v50  ;;  %v5210_v2 = vld [vmem:[%s6012_s28 + $0xd4] ss:$8 sps:$4 sm:$0xff]   ;;  %v5214_v5 = vld [vmem:[%s6012_s28 + $0xd0] ss:$8 sps:$4 sm:$0xff]   ;;  %v5218_v8 = vld [vmem:[%s6012_s28 + $0x8e4] ss:$8 sps:$4 sm:$0xff]  }
  0x2a   : > { %3888 = vmatprep.subr.bf16.mxu0 %v5164_v22  ;;  %v5212_v3 = vld [vmem:[%s6012_s28 + $0x8d4] ss:$8 sps:$4 sm:$0xff]   ;;  %v5215_v6 = vld [vmem:[%s6012_s28 + $0x8d0] ss:$8 sps:$4 sm:$0xff]   ;;  %v5221_v10 = vld [vmem:[%s6012_s28 + $0x8e0] ss:$8 sps:$4 sm:$0xff]  }
  0x2b   : > { %v777_v60 = vcombine.high %v769_v55, %v769_v55  ;;  %v875_v63 = vcombine.high %v867_v61, %v867_v61  ;;  %v5222_v11 = vld [vmem:[%s6012_s28 + $0xf4] ss:$8 sps:$4 sm:$0xff]   ;;  %v5226_v13 = vld [vmem:[%s6012_s28 + $0xf0] ss:$8 sps:$4 sm:$0xff]   ;;  %v5231_v15 = vld [vmem:[%s6012_s28 + $0x104] ss:$8 sps:$4 sm:$0xff]   ;;  %v6099_v17 = vrot.slane %v769_v55, %v6062_v50  ;;  %v6102_v18 = vrot.slane %v867_v61, %v6062_v50 }
  0x2c   : > { %3561 = vmatpush1.bf16.msra.mxu1 %v5166_v23  ;;  %v5224_v12 = vld [vmem:[%s6012_s28 + $0x8f4] ss:$8 sps:$4 sm:$0xff]   ;;  %v5227_v14 = vld [vmem:[%s6012_s28 + $0x8f0] ss:$8 sps:$4 sm:$0xff]   ;;  %v5235_v16 = vld [vmem:[%s6012_s28 + $0x904] ss:$8 sps:$4 sm:$0xff]  }
  0x2d   : > { %3889 = vmatpush1.bf16.msra.mxu0 %v5167_v24  ;;  %3562 = vmatprep.subr.bf16.mxu1 %v5168_v25  ;;  %v799_v62 = vrot.slane %v777_v60, %v6062_v50  ;;  %v897_v4 = vrot.slane %v875_v63, %v6062_v50  ;;  %v5229_v19 = vld [vmem:[%s6012_s28 + $0x100] ss:$8 sps:$4 sm:$0xff]   ;;  %v5238_v21 = vld [vmem:[%s6012_s28 + $0x114] ss:$8 sps:$4 sm:$0xff]   ;;  %v5236_v25 = vld [vmem:[%s6012_s28 + $0x110] ss:$8 sps:$4 sm:$0xff]  }
  0x2e   : > { %3890 = vmatprep.subr.bf16.mxu0 %v5170_v26  ;;  %v5233_v20 = vld [vmem:[%s6012_s28 + $0x900] ss:$8 sps:$4 sm:$0xff]   ;;  %v5241_v22 = vld [vmem:[%s6012_s28 + $0x914] ss:$8 sps:$4 sm:$0xff]   ;;  %v5239_v26 = vld [vmem:[%s6012_s28 + $0x910] ss:$8 sps:$4 sm:$0xff]  }
  0x2f   : > { %3582 = vmatprep.mubr.bf16.mxu1 %v799_v62  ;;  %3910 = vmatprep.mubr.bf16.mxu0 %v897_v4  ;;  %v809_v23 = vcombine.high %v799_v62, %v799_v62  ;;  %v907_v24 = vcombine.high %v897_v4, %v897_v4  ;;  %v5254_v37 = vld [vmem:[%s6012_s28 + $0x140] ss:$8 sps:$4 sm:$0xff]   ;;  %v5262_v39 = vld [vmem:[%s6012_s28 + $0x154] ss:$8 sps:$4 sm:$0xff]   ;;  %v5268_v43 = vld [vmem:[%s6012_s28 + $0x164] ss:$8 sps:$4 sm:$0xff]  }
  0x30   : > { %3563 = vmatpush1.bf16.msra.mxu1 %v5172_v27  ;;  %v5244_v27 = vld [vmem:[%s6012_s28 + $0x124] ss:$8 sps:$4 sm:$0xff]   ;;  %v5257_v38 = vld [vmem:[%s6012_s28 + $0x940] ss:$8 sps:$4 sm:$0xff]   ;;  %v5289_v60 = vld [vmem:[%s6012_s28 + $0x994] ss:$8 sps:$4 sm:$0xff]  }
  0x31   : > { %3891 = vmatpush1.bf16.msra.mxu0 %v5173_v28  ;;  %3564 = vmatprep.subr.bf16.mxu1 %v5174_v29  ;;  %v5247_v28 = vld [vmem:[%s6012_s28 + $0x924] ss:$8 sps:$4 sm:$0xff]   ;;  %v5242_v29 = vld [vmem:[%s6012_s28 + $0x120] ss:$8 sps:$4 sm:$0xff]   ;;  %v5284_v61 = vld [vmem:[%s6012_s28 + $0x190] ss:$8 sps:$4 sm:$0xff]  }
  0x32   : > { %3892 = vmatprep.subr.bf16.mxu0 %v5176_v30  ;;  %v5245_v30 = vld [vmem:[%s6012_s28 + $0x920] ss:$8 sps:$4 sm:$0xff]   ;;  %v5283_v55 = vld [vmem:[%s6012_s28 + $0x984] ss:$8 sps:$4 sm:$0xff]   ;;  %v5287_v62 = vld [vmem:[%s6012_s28 + $0x990] ss:$8 sps:$4 sm:$0xff]  }
  0x33   : > { %v5292_v63 = vld [vmem:[%s6012_s28 + $0x1a4] ss:$8 sps:$4 sm:$0xff]   ;;  %v5301_v4 = vld [vmem:[%s6012_s28 + $0x9b4] ss:$8 sps:$4 sm:$0xff]   ;;  %vm4433_vm0 = vcmask (!%p5011_p6), 74752  }
  0x34   : > { %3565 = vmatpush1.bf16.msra.mxu1 %v5178_v31  ;;  %v5250_v31 = vld [vmem:[%s6012_s28 + $0x134] ss:$8 sps:$4 sm:$0xff]  }
  0x35   : > { %3893 = vmatpush1.bf16.msra.mxu0 %v5179_v32  ;;  %3566 = vmatprep.subr.bf16.mxu1 %v5180_v33  ;;  %v5253_v32 = vld [vmem:[%s6012_s28 + $0x934] ss:$8 sps:$4 sm:$0xff]   ;;  %v5248_v33 = vld [vmem:[%s6012_s28 + $0x130] ss:$8 sps:$4 sm:$0xff]  }
  0x36   : > { %3894 = vmatprep.subr.bf16.mxu0 %v5182_v34  ;;  %v5251_v34 = vld [vmem:[%s6012_s28 + $0x930] ss:$8 sps:$4 sm:$0xff]  }
  0x38   : > { %3567 = vmatpush1.bf16.msra.mxu1 %v5184_v35  ;;  %v5256_v35 = vld [vmem:[%s6012_s28 + $0x144] ss:$8 sps:$4 sm:$0xff]  }
  0x39   : > { %3895 = vmatpush1.bf16.msra.mxu0 %v5185_v36  ;;  %3568 = vmatprep.subr.bf16.mxu1 %v5186_v40  ;;  %v5259_v36 = vld [vmem:[%s6012_s28 + $0x944] ss:$8 sps:$4 sm:$0xff]   ;;  %v5265_v40 = vld [vmem:[%s6012_s28 + $0x954] ss:$8 sps:$4 sm:$0xff]  }
  0x3a   : > { %3896 = vmatprep.subr.bf16.mxu0 %v5188_v41  ;;  %v5260_v41 = vld [vmem:[%s6012_s28 + $0x150] ss:$8 sps:$4 sm:$0xff]  }
  0x3c   : > { %3569 = vmatpush1.bf16.msra.mxu1 %v5190_v42  ;;  %v5263_v42 = vld [vmem:[%s6012_s28 + $0x950] ss:$8 sps:$4 sm:$0xff]  }
  0x3d   : > { %3897 = vmatpush1.bf16.msra.mxu0 %v5191_v45  ;;  %3570 = vmatprep.subr.bf16.mxu1 %v5192_v46  ;;  %v5271_v45 = vld [vmem:[%s6012_s28 + $0x964] ss:$8 sps:$4 sm:$0xff]   ;;  %v5266_v46 = vld [vmem:[%s6012_s28 + $0x160] ss:$8 sps:$4 sm:$0xff]  }
  0x3e   : > { %3898 = vmatprep.subr.bf16.mxu0 %v5194_v47  ;;  %v5269_v47 = vld [vmem:[%s6012_s28 + $0x960] ss:$8 sps:$4 sm:$0xff]  }
  0x40   : > { %3571 = vmatpush1.bf16.msra.mxu1 %v5196_v48  ;;  %v5274_v48 = vld [vmem:[%s6012_s28 + $0x174] ss:$8 sps:$4 sm:$0xff]  }
  0x41   : > { %3899 = vmatpush1.bf16.msra.mxu0 %v5197_v49  ;;  %3572 = vmatprep.subr.bf16.mxu1 %v5198_v51  ;;  %v5277_v49 = vld [vmem:[%s6012_s28 + $0x974] ss:$8 sps:$4 sm:$0xff]   ;;  %v5272_v51 = vld [vmem:[%s6012_s28 + $0x170] ss:$8 sps:$4 sm:$0xff]  }
  0x42   : > { %3900 = vmatprep.subr.bf16.mxu0 %v5200_v52  ;;  %v5275_v52 = vld [vmem:[%s6012_s28 + $0x970] ss:$8 sps:$4 sm:$0xff]  }
  0x44   : > { %3573 = vmatpush1.bf16.msra.mxu1 %v5202_v54  ;;  %v5280_v54 = vld [vmem:[%s6012_s28 + $0x184] ss:$8 sps:$4 sm:$0xff]  }
  0x45   : > { %3901 = vmatpush1.bf16.msra.mxu0 %v5203_v56  ;;  %3574 = vmatprep.subr.bf16.mxu1 %v5204_v58  ;;  %v5278_v56 = vld [vmem:[%s6012_s28 + $0x180] ss:$8 sps:$4 sm:$0xff]  }
  0x46   : > { %3902 = vmatprep.subr.bf16.mxu0 %v5206_v59  ;;  %v5281_v58 = vld [vmem:[%s6012_s28 + $0x980] ss:$8 sps:$4 sm:$0xff]   ;;  %v5286_v59 = vld [vmem:[%s6012_s28 + $0x194] ss:$8 sps:$4 sm:$0xff]  }
  0x48   : > { %3575 = vmatpush1.bf16.msra.mxu1 %v5208_v0  ;;  %v5295_v0 = vld [vmem:[%s6012_s28 + $0x9a4] ss:$8 sps:$4 sm:$0xff]  }
  0x49   : > { %3903 = vmatpush1.bf16.msra.mxu0 %v5209_v1  ;;  %3576 = vmatprep.subr.bf16.mxu1 %v5210_v2  ;;  %v5290_v1 = vld [vmem:[%s6012_s28 + $0x1a0] ss:$8 sps:$4 sm:$0xff]  }
  0x4a   : > { %3904 = vmatprep.subr.bf16.mxu0 %v5212_v3  ;;  %v5293_v2 = vld [vmem:[%s6012_s28 + $0x9a0] ss:$8 sps:$4 sm:$0xff]   ;;  %v5298_v3 = vld [vmem:[%s6012_s28 + $0x1b4] ss:$8 sps:$4 sm:$0xff]  }
  0x4c   : > { %3577 = vmatpush1.bf16.msra.mxu1 %v5214_v5  ;;  %v5296_v5 = vld [vmem:[%s6012_s28 + $0x1b0] ss:$8 sps:$4 sm:$0xff]  }
  0x4d   : > { %3905 = vmatpush1.bf16.msra.mxu0 %v5215_v6  ;;  %3578 = vmatprep.subr.bf16.mxu1 %v5216_v7  ;;  %v5299_v6 = vld [vmem:[%s6012_s28 + $0x9b0] ss:$8 sps:$4 sm:$0xff]   ;;  %v5304_v7 = vld [vmem:[%s6012_s28 + $0x1c4] ss:$8 sps:$4 sm:$0xff]  }
  0x4e   : > { %3906 = vmatprep.subr.bf16.mxu0 %v5218_v8  ;;  %v5307_v8 = vld [vmem:[%s6012_s28 + $0x9c4] ss:$8 sps:$4 sm:$0xff]  }
  0x50   : > { %3579 = vmatpush1.bf16.msra.mxu1 %v5220_v9  ;;  %v5302_v9 = vld [vmem:[%s6012_s28 + $0x1c0] ss:$8 sps:$4 sm:$0xff]  }
  0x51   : > { %3907 = vmatpush1.bf16.msra.mxu0 %v5221_v10  ;;  %3580 = vmatprep.subr.bf16.mxu1 %v5222_v11  ;;  %v5305_v10 = vld [vmem:[%s6012_s28 + $0x9c0] ss:$8 sps:$4 sm:$0xff]   ;;  %v5310_v11 = vld [vmem:[%s6012_s28 + $0x1d4] ss:$8 sps:$4 sm:$0xff]  }
  0x52   : > { %3908 = vmatprep.subr.bf16.mxu0 %v5224_v12  ;;  %v5313_v12 = vld [vmem:[%s6012_s28 + $0x9d4] ss:$8 sps:$4 sm:$0xff]  }
  0x54   : > { %3581 = vmatpush1.bf16.msra.mxu1 %v5226_v13  ;;  %v5308_v13 = vld [vmem:[%s6012_s28 + $0x1d0] ss:$8 sps:$4 sm:$0xff]  }
  0x55   : > { %3909 = vmatpush1.bf16.msra.mxu0 %v5227_v14  ;;  %3591 = vmatprep.subr.bf16.mxu1 %v5231_v15  ;;  %v5311_v14 = vld [vmem:[%s6012_s28 + $0x9d0] ss:$8 sps:$4 sm:$0xff]   ;;  %v5316_v15 = vld [vmem:[%s6012_s28 + $0x1e4] ss:$8 sps:$4 sm:$0xff]  }
  0x56   : > { %3919 = vmatprep.subr.bf16.mxu0 %v5235_v16  ;;  %v5319_v16 = vld [vmem:[%s6012_s28 + $0x9e4] ss:$8 sps:$4 sm:$0xff]  }
  0x57   : > { %3583 = vmatmul.mubr.bf16.vlgmr.msra.gmra.mrb[0].mxu1 %v6099_v17 }
  0x58   : > { %3911 = vmatmul.mubr.bf16.vlgmr.msra.gmra.mrb[0].mxu0 %v6102_v18  ;;  %3592 = vmatpush1.bf16.msra.mxu1 %v5229_v19  ;;  %v762_v19 = vcombine.high %v6067_v53, %v6067_v53  ;;  %v5320_v53 = vld [vmem:[%s6012_s28 + $0x1f0] ss:$8 sps:$4 sm:$0xff]  }
  0x59   : > { %3920 = vmatpush1.bf16.msra.mxu0 %v5233_v20  ;;  %3593 = vmatprep.subr.bf16.mxu1 %v5238_v21  ;;  %v860_v20 = vcombine.high %v6074_v57, %v6074_v57  ;;  %v5314_v21 = vld [vmem:[%s6012_s28 + $0x1e0] ss:$8 sps:$4 sm:$0xff]   ;;  %v5323_v57 = vld [vmem:[%s6012_s28 + $0x9f0] ss:$8 sps:$4 sm:$0xff]  }
  0x5a   : > { %3921 = vmatprep.subr.bf16.mxu0 %v5241_v22  ;;  %3623 = vmatprep.mubr.bf16.mxu1 %v809_v23  ;;  %v5317_v22 = vld [vmem:[%s6012_s28 + $0x9e0] ss:$8 sps:$4 sm:$0xff]   ;;  %v5322_v23 = vld [vmem:[%s6012_s28 + $0x1f4] ss:$8 sps:$4 sm:$0xff]  }
  0x5b   : > { %3951 = vmatprep.mubr.bf16.mxu0 %v907_v24  ;;  %v5325_v24 = vld [vmem:[%s6012_s28 + $0x9f4] ss:$8 sps:$4 sm:$0xff]  }
  0x5c   : > { %3594 = vmatpush1.bf16.msra.mxu1 %v5236_v25  ;;  %v6171_v25 = vrot.slane %v762_v19, %v6062_v50  ;;  %v5392_v19 = vld [vmem:[%s6012_s28 + $0x2b0] ss:$8 sps:$4 sm:$0xff]  }
  0x5d   : > { %3922 = vmatpush1.bf16.msra.mxu0 %v5239_v26  ;;  %3595 = vmatprep.subr.bf16.mxu1 %v5244_v27  ;;  %v6174_v26 = vrot.slane %v860_v20, %v6062_v50  ;;  %v5328_v27 = vld [vmem:[%s6012_s28 + $0x204] ss:$8 sps:$4 sm:$0xff]   ;;  %v5395_v20 = vld [vmem:[%s6012_s28 + $0xab0] ss:$8 sps:$4 sm:$0xff]  }
  0x5e   : > { %3923 = vmatprep.subr.bf16.mxu0 %v5247_v28  ;;  %v5331_v28 = vld [vmem:[%s6012_s28 + $0xa04] ss:$8 sps:$4 sm:$0xff]  }
  0x60   : > { %3596 = vmatpush1.bf16.msra.mxu1 %v5242_v29  ;;  %v778_v29 = vcombine.high %v6171_v25, %v6171_v25 }
  0x61   : > { %3924 = vmatpush1.bf16.msra.mxu0 %v5245_v30  ;;  %3597 = vmatprep.subr.bf16.mxu1 %v5250_v31  ;;  %v876_v30 = vcombine.high %v6174_v26, %v6174_v26  ;;  %v807_v31 = vcombine.high %v6099_v17, %v6099_v17 }
  0x62   : > { %3925 = vmatprep.subr.bf16.mxu0 %v5253_v32  ;;  %v905_v32 = vcombine.high %v6102_v18, %v6102_v18  ;;  %v5332_v18 = vld [vmem:[%s6012_s28 + $0x210] ss:$8 sps:$4 sm:$0xff]  }
  0x63   : > { %v6196_v17 = vrot.slane %v876_v30, %v6062_v50  ;;  %v5415_v30 = vld [vmem:[%s6012_s28 + $0xae4] ss:$8 sps:$4 sm:$0xff]  }
  0x64   : > { %3598 = vmatpush1.bf16.msra.mxu1 %v5248_v33  ;;  %v5326_v33 = vld [vmem:[%s6012_s28 + $0x200] ss:$8 sps:$4 sm:$0xff]  }
  0x65   : > { %3926 = vmatpush1.bf16.msra.mxu0 %v5251_v34  ;;  %3599 = vmatprep.subr.bf16.mxu1 %v5256_v35  ;;  %v5329_v34 = vld [vmem:[%s6012_s28 + $0xa00] ss:$8 sps:$4 sm:$0xff]   ;;  %v5334_v35 = vld [vmem:[%s6012_s28 + $0x214] ss:$8 sps:$4 sm:$0xff]  }
  0x66   : > { %3927 = vmatprep.subr.bf16.mxu0 %v5259_v36  ;;  %v5337_v36 = vld [vmem:[%s6012_s28 + $0xa14] ss:$8 sps:$4 sm:$0xff]  }
  0x68   : > { %3600 = vmatpush1.bf16.msra.mxu1 %v5254_v37  ;;  %v6193_v37 = vrot.slane %v778_v29, %v6062_v50  ;;  %v5412_v29 = vld [vmem:[%s6012_s28 + $0x2e4] ss:$8 sps:$4 sm:$0xff]  }
  0x69   : > { %3928 = vmatpush1.bf16.msra.mxu0 %v5257_v38  ;;  %3601 = vmatprep.subr.bf16.mxu1 %v5262_v39  ;;  %v5335_v38 = vld [vmem:[%s6012_s28 + $0xa10] ss:$8 sps:$4 sm:$0xff]   ;;  %v5340_v39 = vld [vmem:[%s6012_s28 + $0x224] ss:$8 sps:$4 sm:$0xff]  }
  0x6a   : > { %3929 = vmatprep.subr.bf16.mxu0 %v5265_v40  ;;  %v5343_v40 = vld [vmem:[%s6012_s28 + $0xa24] ss:$8 sps:$4 sm:$0xff]  }
  0x6c   : > { %3602 = vmatpush1.bf16.msra.mxu1 %v5260_v41  ;;  %v5338_v41 = vld [vmem:[%s6012_s28 + $0x220] ss:$8 sps:$4 sm:$0xff]  }
  0x6d   : > { %3930 = vmatpush1.bf16.msra.mxu0 %v5263_v42  ;;  %3603 = vmatprep.subr.bf16.mxu1 %v5268_v43  ;;  %v5341_v42 = vld [vmem:[%s6012_s28 + $0xa20] ss:$8 sps:$4 sm:$0xff]   ;;  %v5346_v43 = vld [vmem:[%s6012_s28 + $0x234] ss:$8 sps:$4 sm:$0xff]  }
  0x6e   : > { %3931 = vmatprep.subr.bf16.mxu0 %v5271_v45  ;;  %v5349_v45 = vld [vmem:[%s6012_s28 + $0xa34] ss:$8 sps:$4 sm:$0xff]  }
  0x70   : > { %3604 = vmatpush1.bf16.msra.mxu1 %v5266_v46  ;;  %v5344_v46 = vld [vmem:[%s6012_s28 + $0x230] ss:$8 sps:$4 sm:$0xff]  }
  0x71   : > { %3932 = vmatpush1.bf16.msra.mxu0 %v5269_v47  ;;  %3605 = vmatprep.subr.bf16.mxu1 %v5274_v48  ;;  %v5347_v47 = vld [vmem:[%s6012_s28 + $0xa30] ss:$8 sps:$4 sm:$0xff]   ;;  %v5352_v48 = vld [vmem:[%s6012_s28 + $0x244] ss:$8 sps:$4 sm:$0xff]  }
  0x72   : > { %3933 = vmatprep.subr.bf16.mxu0 %v5277_v49  ;;  %v5355_v49 = vld [vmem:[%s6012_s28 + $0xa44] ss:$8 sps:$4 sm:$0xff]  }
  0x74   : > { %3606 = vmatpush1.bf16.msra.mxu1 %v5272_v51  ;;  %v5350_v51 = vld [vmem:[%s6012_s28 + $0x240] ss:$8 sps:$4 sm:$0xff]  }
  0x75   : > { %3934 = vmatpush1.bf16.msra.mxu0 %v5275_v52  ;;  %3607 = vmatprep.subr.bf16.mxu1 %v5280_v54  ;;  %v5353_v52 = vld [vmem:[%s6012_s28 + $0xa40] ss:$8 sps:$4 sm:$0xff]   ;;  %v5358_v54 = vld [vmem:[%s6012_s28 + $0x254] ss:$8 sps:$4 sm:$0xff]  }
  0x76   : > { %3935 = vmatprep.subr.bf16.mxu0 %v5283_v55  ;;  %v5361_v55 = vld [vmem:[%s6012_s28 + $0xa54] ss:$8 sps:$4 sm:$0xff]  }
  0x78   : > { %3608 = vmatpush1.bf16.msra.mxu1 %v5278_v56  ;;  %v5356_v56 = vld [vmem:[%s6012_s28 + $0x250] ss:$8 sps:$4 sm:$0xff]  }
  0x79   : > { %3936 = vmatpush1.bf16.msra.mxu0 %v5281_v58  ;;  %3609 = vmatprep.subr.bf16.mxu1 %v5286_v59  ;;  %v5359_v58 = vld [vmem:[%s6012_s28 + $0xa50] ss:$8 sps:$4 sm:$0xff]   ;;  %v5364_v59 = vld [vmem:[%s6012_s28 + $0x264] ss:$8 sps:$4 sm:$0xff]  }
  0x7a   : > { %3937 = vmatprep.subr.bf16.mxu0 %v5289_v60  ;;  %v5367_v60 = vld [vmem:[%s6012_s28 + $0xa64] ss:$8 sps:$4 sm:$0xff]  }
  0x7c   : > { %3610 = vmatpush1.bf16.msra.mxu1 %v5284_v61  ;;  %v5362_v61 = vld [vmem:[%s6012_s28 + $0x260] ss:$8 sps:$4 sm:$0xff]  }
  0x7d   : > { %3938 = vmatpush1.bf16.msra.mxu0 %v5287_v62  ;;  %3611 = vmatprep.subr.bf16.mxu1 %v5292_v63  ;;  %v5365_v62 = vld [vmem:[%s6012_s28 + $0xa60] ss:$8 sps:$4 sm:$0xff]   ;;  %v5370_v63 = vld [vmem:[%s6012_s28 + $0x274] ss:$8 sps:$4 sm:$0xff]  }
  0x7e   : > { %3939 = vmatprep.subr.bf16.mxu0 %v5295_v0  ;;  %v5373_v0 = vld [vmem:[%s6012_s28 + $0xa74] ss:$8 sps:$4 sm:$0xff]  }
  0x80   : > { %3612 = vmatpush1.bf16.msra.mxu1 %v5290_v1  ;;  %v5368_v1 = vld [vmem:[%s6012_s28 + $0x270] ss:$8 sps:$4 sm:$0xff]  }
  0x81   : > { %3940 = vmatpush1.bf16.msra.mxu0 %v5293_v2  ;;  %3613 = vmatprep.subr.bf16.mxu1 %v5298_v3  ;;  %v5371_v2 = vld [vmem:[%s6012_s28 + $0xa70] ss:$8 sps:$4 sm:$0xff]   ;;  %v5376_v3 = vld [vmem:[%s6012_s28 + $0x284] ss:$8 sps:$4 sm:$0xff]  }
  0x82   : > { %3941 = vmatprep.subr.bf16.mxu0 %v5301_v4  ;;  %v5379_v4 = vld [vmem:[%s6012_s28 + $0xa84] ss:$8 sps:$4 sm:$0xff]  }
  0x84   : > { %3614 = vmatpush1.bf16.msra.mxu1 %v5296_v5  ;;  %v5374_v5 = vld [vmem:[%s6012_s28 + $0x280] ss:$8 sps:$4 sm:$0xff]  }
  0x85   : > { %3942 = vmatpush1.bf16.msra.mxu0 %v5299_v6  ;;  %3615 = vmatprep.subr.bf16.mxu1 %v5304_v7  ;;  %v5377_v6 = vld [vmem:[%s6012_s28 + $0xa80] ss:$8 sps:$4 sm:$0xff]   ;;  %v5382_v7 = vld [vmem:[%s6012_s28 + $0x294] ss:$8 sps:$4 sm:$0xff]  }
  0x86   : > { %3943 = vmatprep.subr.bf16.mxu0 %v5307_v8  ;;  %v5385_v8 = vld [vmem:[%s6012_s28 + $0xa94] ss:$8 sps:$4 sm:$0xff]  }
  0x88   : > { %3616 = vmatpush1.bf16.msra.mxu1 %v5302_v9  ;;  %v5380_v9 = vld [vmem:[%s6012_s28 + $0x290] ss:$8 sps:$4 sm:$0xff]  }
  0x89   : > { %3944 = vmatpush1.bf16.msra.mxu0 %v5305_v10  ;;  %3617 = vmatprep.subr.bf16.mxu1 %v5310_v11  ;;  %v5383_v10 = vld [vmem:[%s6012_s28 + $0xa90] ss:$8 sps:$4 sm:$0xff]   ;;  %v5388_v11 = vld [vmem:[%s6012_s28 + $0x2a4] ss:$8 sps:$4 sm:$0xff]  }
  0x8a   : > { %3945 = vmatprep.subr.bf16.mxu0 %v5313_v12  ;;  %v5391_v12 = vld [vmem:[%s6012_s28 + $0xaa4] ss:$8 sps:$4 sm:$0xff]  }
  0x8c   : > { %3618 = vmatpush1.bf16.msra.mxu1 %v5308_v13  ;;  %v5386_v13 = vld [vmem:[%s6012_s28 + $0x2a0] ss:$8 sps:$4 sm:$0xff]  }
  0x8d   : > { %3946 = vmatpush1.bf16.msra.mxu0 %v5311_v14  ;;  %3619 = vmatprep.subr.bf16.mxu1 %v5316_v15  ;;  %v5389_v14 = vld [vmem:[%s6012_s28 + $0xaa0] ss:$8 sps:$4 sm:$0xff]   ;;  %v5394_v15 = vld [vmem:[%s6012_s28 + $0x2b4] ss:$8 sps:$4 sm:$0xff]  }
  0x8e   : > { %3947 = vmatprep.subr.bf16.mxu0 %v5319_v16  ;;  %v5397_v16 = vld [vmem:[%s6012_s28 + $0xab4] ss:$8 sps:$4 sm:$0xff]  }
  0x90   : > { %3620 = vmatpush1.bf16.msra.mxu1 %v5314_v21  ;;  %v5400_v21 = vld [vmem:[%s6012_s28 + $0x2c4] ss:$8 sps:$4 sm:$0xff]  }
  0x91   : > { %3948 = vmatpush1.bf16.msra.mxu0 %v5317_v22  ;;  %3621 = vmatprep.subr.bf16.mxu1 %v5322_v23  ;;  %v5403_v22 = vld [vmem:[%s6012_s28 + $0xac4] ss:$8 sps:$4 sm:$0xff]   ;;  %v5398_v23 = vld [vmem:[%s6012_s28 + $0x2c0] ss:$8 sps:$4 sm:$0xff]  }
  0x92   : > { %3949 = vmatprep.subr.bf16.mxu0 %v5325_v24  ;;  %v5401_v24 = vld [vmem:[%s6012_s28 + $0xac0] ss:$8 sps:$4 sm:$0xff]  }
  0x94   : > { %3622 = vmatpush1.bf16.msra.mxu1 %v5320_v53  ;;  %v5406_v53 = vld [vmem:[%s6012_s28 + $0x2d4] ss:$8 sps:$4 sm:$0xff]  }
  0x95   : > { %3950 = vmatpush1.bf16.msra.mxu0 %v5323_v57  ;;  %3632 = vmatprep.subr.bf16.mxu1 %v5328_v27  ;;  %v5409_v57 = vld [vmem:[%s6012_s28 + $0xad4] ss:$8 sps:$4 sm:$0xff]   ;;  %v5404_v27 = vld [vmem:[%s6012_s28 + $0x2d0] ss:$8 sps:$4 sm:$0xff]  }
  0x96   : > { %3960 = vmatprep.subr.bf16.mxu0 %v5331_v28  ;;  %v5407_v28 = vld [vmem:[%s6012_s28 + $0xad0] ss:$8 sps:$4 sm:$0xff]  }
  0x97   : > { %3624 = vmatmul.mubr.bf16.vlgmr.msra.gmra.mrb[0].mxu1 %v807_v31  ;;  %v5410_v31 = vld [vmem:[%s6012_s28 + $0x2e0] ss:$8 sps:$4 sm:$0xff]  }
  0x98   : > { %3952 = vmatmul.mubr.bf16.vlgmr.msra.gmra.mrb[0].mxu0 %v905_v32  ;;  %3633 = vmatpush1.bf16.msra.mxu1 %v5326_v33  ;;  %v5413_v32 = vld [vmem:[%s6012_s28 + $0xae0] ss:$8 sps:$4 sm:$0xff]   ;;  %v5418_v33 = vld [vmem:[%s6012_s28 + $0x2f4] ss:$8 sps:$4 sm:$0xff]  }
  0x99   : > { %3961 = vmatpush1.bf16.msra.mxu0 %v5329_v34  ;;  %3634 = vmatprep.subr.bf16.mxu1 %v5334_v35  ;;  %v5421_v34 = vld [vmem:[%s6012_s28 + $0xaf4] ss:$8 sps:$4 sm:$0xff]   ;;  %v5416_v35 = vld [vmem:[%s6012_s28 + $0x2f0] ss:$8 sps:$4 sm:$0xff]  }
  0x9a   : > { %3962 = vmatprep.subr.bf16.mxu0 %v5337_v36  ;;  %3664 = vmatprep.mubr.bf16.mxu1 %v6193_v37  ;;  %v5419_v36 = vld [vmem:[%s6012_s28 + $0xaf0] ss:$8 sps:$4 sm:$0xff]  }
  0x9b   : > { %3992 = vmatprep.mubr.bf16.mxu0 %v6196_v17 }
  0x9c   : > { %3635 = vmatpush1.bf16.msra.mxu1 %v5332_v18  ;;  %v5424_v18 = vld [vmem:[%s6012_s28 + $0x304] ss:$8 sps:$4 sm:$0xff]  }
  0x9d   : > { %3963 = vmatpush1.bf16.msra.mxu0 %v5335_v38  ;;  %3636 = vmatprep.subr.bf16.mxu1 %v5340_v39  ;;  %v5427_v38 = vld [vmem:[%s6012_s28 + $0xb04] ss:$8 sps:$4 sm:$0xff]   ;;  %v6262_v39 = vrot.slane %v6171_v25, %v6062_v50  ;;  %v810_v25 = vcombine.high %v6193_v37, %v6193_v37 }
  0x9e   : > { %3964 = vmatprep.subr.bf16.mxu0 %v5343_v40  ;;  %v6266_v40 = vrot.slane %v6174_v26, %v6062_v50  ;;  %v5428_v26 = vld [vmem:[%s6012_s28 + $0x310] ss:$8 sps:$4 sm:$0xff]   ;;  %v5436_v37 = vld [vmem:[%s6012_s28 + $0x324] ss:$8 sps:$4 sm:$0xff]  }
  0xa0   : > { %3637 = vmatpush1.bf16.msra.mxu1 %v5338_v41  ;;  %v5422_v41 = vld [vmem:[%s6012_s28 + $0x300] ss:$8 sps:$4 sm:$0xff]  }
  0xa1   : > { %3965 = vmatpush1.bf16.msra.mxu0 %v5341_v42  ;;  %3638 = vmatprep.subr.bf16.mxu1 %v5346_v43  ;;  %v5425_v42 = vld [vmem:[%s6012_s28 + $0xb00] ss:$8 sps:$4 sm:$0xff]   ;;  %v5430_v43 = vld [vmem:[%s6012_s28 + $0x314] ss:$8 sps:$4 sm:$0xff]  }
  0xa2   : > { %3966 = vmatprep.subr.bf16.mxu0 %v5349_v45  ;;  %v5433_v45 = vld [vmem:[%s6012_s28 + $0xb14] ss:$8 sps:$4 sm:$0xff]  }
  0xa4   : > { %3639 = vmatpush1.bf16.msra.mxu1 %v5344_v46  ;;  %v908_v46 = vcombine.high %v6196_v17, %v6196_v17  ;;  %v5434_v17 = vld [vmem:[%s6012_s28 + $0x320] ss:$8 sps:$4 sm:$0xff]  }
  0xa5   : > { %3967 = vmatpush1.bf16.msra.mxu0 %v5347_v47  ;;  %3640 = vmatprep.subr.bf16.mxu1 %v5352_v48  ;;  %v5431_v47 = vld [vmem:[%s6012_s28 + $0xb10] ss:$8 sps:$4 sm:$0xff]   ;;  %v5439_v48 = vld [vmem:[%s6012_s28 + $0xb24] ss:$8 sps:$4 sm:$0xff]  }
  0xa6   : > { %3968 = vmatprep.subr.bf16.mxu0 %v5355_v49  ;;  %v5437_v49 = vld [vmem:[%s6012_s28 + $0xb20] ss:$8 sps:$4 sm:$0xff]  }
  0xa8   : > { %3641 = vmatpush1.bf16.msra.mxu1 %v5350_v51  ;;  %v5442_v51 = vld [vmem:[%s6012_s28 + $0x334] ss:$8 sps:$4 sm:$0xff]  }
  0xa9   : > { %3969 = vmatpush1.bf16.msra.mxu0 %v5353_v52  ;;  %3642 = vmatprep.subr.bf16.mxu1 %v5358_v54  ;;  %v5445_v52 = vld [vmem:[%s6012_s28 + $0xb34] ss:$8 sps:$4 sm:$0xff]   ;;  %v5440_v54 = vld [vmem:[%s6012_s28 + $0x330] ss:$8 sps:$4 sm:$0xff]  }
  0xaa   : > { %3970 = vmatprep.subr.bf16.mxu0 %v5361_v55  ;;  %v5443_v55 = vld [vmem:[%s6012_s28 + $0xb30] ss:$8 sps:$4 sm:$0xff]  }
  0xac   : > { %3643 = vmatpush1.bf16.msra.mxu1 %v5356_v56  ;;  %v5448_v56 = vld [vmem:[%s6012_s28 + $0x344] ss:$8 sps:$4 sm:$0xff]  }
  0xad   : > { %3971 = vmatpush1.bf16.msra.mxu0 %v5359_v58  ;;  %3644 = vmatprep.subr.bf16.mxu1 %v5364_v59  ;;  %v5451_v58 = vld [vmem:[%s6012_s28 + $0xb44] ss:$8 sps:$4 sm:$0xff]   ;;  %v5446_v59 = vld [vmem:[%s6012_s28 + $0x340] ss:$8 sps:$4 sm:$0xff]  }
  0xae   : > { %3972 = vmatprep.subr.bf16.mxu0 %v5367_v60  ;;  %v5449_v60 = vld [vmem:[%s6012_s28 + $0xb40] ss:$8 sps:$4 sm:$0xff]  }
  0xb0   : > { %3645 = vmatpush1.bf16.msra.mxu1 %v5362_v61  ;;  %v5454_v61 = vld [vmem:[%s6012_s28 + $0x354] ss:$8 sps:$4 sm:$0xff]  }
  0xb1   : > { %3973 = vmatpush1.bf16.msra.mxu0 %v5365_v62  ;;  %3646 = vmatprep.subr.bf16.mxu1 %v5370_v63  ;;  %v5457_v62 = vld [vmem:[%s6012_s28 + $0xb54] ss:$8 sps:$4 sm:$0xff]   ;;  %v5452_v63 = vld [vmem:[%s6012_s28 + $0x350] ss:$8 sps:$4 sm:$0xff]  }
  0xb2   : > { %3974 = vmatprep.subr.bf16.mxu0 %v5373_v0  ;;  %v5455_v0 = vld [vmem:[%s6012_s28 + $0xb50] ss:$8 sps:$4 sm:$0xff]  }
  0xb4   : > { %3647 = vmatpush1.bf16.msra.mxu1 %v5368_v1  ;;  %v5460_v1 = vld [vmem:[%s6012_s28 + $0x364] ss:$8 sps:$4 sm:$0xff]  }
  0xb5   : > { %3975 = vmatpush1.bf16.msra.mxu0 %v5371_v2  ;;  %3648 = vmatprep.subr.bf16.mxu1 %v5376_v3  ;;  %v5463_v2 = vld [vmem:[%s6012_s28 + $0xb64] ss:$8 sps:$4 sm:$0xff]   ;;  %v5458_v3 = vld [vmem:[%s6012_s28 + $0x360] ss:$8 sps:$4 sm:$0xff]  }
  0xb6   : > { %3976 = vmatprep.subr.bf16.mxu0 %v5379_v4  ;;  %v5461_v4 = vld [vmem:[%s6012_s28 + $0xb60] ss:$8 sps:$4 sm:$0xff]  }
  0xb8   : > { %3649 = vmatpush1.bf16.msra.mxu1 %v5374_v5  ;;  %v5466_v5 = vld [vmem:[%s6012_s28 + $0x374] ss:$8 sps:$4 sm:$0xff]  }
  0xb9   : > { %3977 = vmatpush1.bf16.msra.mxu0 %v5377_v6  ;;  %3650 = vmatprep.subr.bf16.mxu1 %v5382_v7  ;;  %v5469_v6 = vld [vmem:[%s6012_s28 + $0xb74] ss:$8 sps:$4 sm:$0xff]   ;;  %v5464_v7 = vld [vmem:[%s6012_s28 + $0x370] ss:$8 sps:$4 sm:$0xff]  }
  0xba   : > { %3978 = vmatprep.subr.bf16.mxu0 %v5385_v8  ;;  %v5467_v8 = vld [vmem:[%s6012_s28 + $0xb70] ss:$8 sps:$4 sm:$0xff]  }
  0xbc   : > { %3651 = vmatpush1.bf16.msra.mxu1 %v5380_v9  ;;  %v5472_v9 = vld [vmem:[%s6012_s28 + $0x384] ss:$8 sps:$4 sm:$0xff]  }
  0xbd   : > { %3979 = vmatpush1.bf16.msra.mxu0 %v5383_v10  ;;  %3652 = vmatprep.subr.bf16.mxu1 %v5388_v11  ;;  %v5475_v10 = vld [vmem:[%s6012_s28 + $0xb84] ss:$8 sps:$4 sm:$0xff]   ;;  %v5470_v11 = vld [vmem:[%s6012_s28 + $0x380] ss:$8 sps:$4 sm:$0xff]  }
  0xbe   : > { %3980 = vmatprep.subr.bf16.mxu0 %v5391_v12  ;;  %v5473_v12 = vld [vmem:[%s6012_s28 + $0xb80] ss:$8 sps:$4 sm:$0xff]  }
  0xc0   : > { %3653 = vmatpush1.bf16.msra.mxu1 %v5386_v13  ;;  %v5478_v13 = vld [vmem:[%s6012_s28 + $0x394] ss:$8 sps:$4 sm:$0xff]  }
  0xc1   : > { %3981 = vmatpush1.bf16.msra.mxu0 %v5389_v14  ;;  %3654 = vmatprep.subr.bf16.mxu1 %v5394_v15  ;;  %v5481_v14 = vld [vmem:[%s6012_s28 + $0xb94] ss:$8 sps:$4 sm:$0xff]   ;;  %v5476_v15 = vld [vmem:[%s6012_s28 + $0x390] ss:$8 sps:$4 sm:$0xff]  }
  0xc2   : > { %3982 = vmatprep.subr.bf16.mxu0 %v5397_v16  ;;  %v5479_v16 = vld [vmem:[%s6012_s28 + $0xb90] ss:$8 sps:$4 sm:$0xff]  }
  0xc4   : > { %3655 = vmatpush1.bf16.msra.mxu1 %v5392_v19  ;;  %v5484_v19 = vld [vmem:[%s6012_s28 + $0x3a4] ss:$8 sps:$4 sm:$0xff]  }
  0xc5   : > { %3983 = vmatpush1.bf16.msra.mxu0 %v5395_v20  ;;  %3656 = vmatprep.subr.bf16.mxu1 %v5400_v21  ;;  %v5487_v20 = vld [vmem:[%s6012_s28 + $0xba4] ss:$8 sps:$4 sm:$0xff]   ;;  %v5482_v21 = vld [vmem:[%s6012_s28 + $0x3a0] ss:$8 sps:$4 sm:$0xff]  }
  0xc6   : > { %3984 = vmatprep.subr.bf16.mxu0 %v5403_v22  ;;  %v5485_v22 = vld [vmem:[%s6012_s28 + $0xba0] ss:$8 sps:$4 sm:$0xff]  }
  0xc8   : > { %3657 = vmatpush1.bf16.msra.mxu1 %v5398_v23  ;;  %v5490_v23 = vld [vmem:[%s6012_s28 + $0x3b4] ss:$8 sps:$4 sm:$0xff]  }
  0xc9   : > { %3985 = vmatpush1.bf16.msra.mxu0 %v5401_v24  ;;  %3658 = vmatprep.subr.bf16.mxu1 %v5406_v53  ;;  %v5493_v24 = vld [vmem:[%s6012_s28 + $0xbb4] ss:$8 sps:$4 sm:$0xff]   ;;  %v5488_v53 = vld [vmem:[%s6012_s28 + $0x3b0] ss:$8 sps:$4 sm:$0xff]  }
  0xca   : > { %3986 = vmatprep.subr.bf16.mxu0 %v5409_v57  ;;  %v5491_v57 = vld [vmem:[%s6012_s28 + $0xbb0] ss:$8 sps:$4 sm:$0xff]  }
  0xcc   : > { %3659 = vmatpush1.bf16.msra.mxu1 %v5404_v27  ;;  %v5496_v27 = vld [vmem:[%s6012_s28 + $0x3c4] ss:$8 sps:$4 sm:$0xff]  }
  0xcd   : > { %3987 = vmatpush1.bf16.msra.mxu0 %v5407_v28  ;;  %3660 = vmatprep.subr.bf16.mxu1 %v5412_v29  ;;  %v5499_v28 = vld [vmem:[%s6012_s28 + $0xbc4] ss:$8 sps:$4 sm:$0xff]   ;;  %v5494_v29 = vld [vmem:[%s6012_s28 + $0x3c0] ss:$8 sps:$4 sm:$0xff]  }
  0xce   : > { %3988 = vmatprep.subr.bf16.mxu0 %v5415_v30  ;;  %v5497_v30 = vld [vmem:[%s6012_s28 + $0xbc0] ss:$8 sps:$4 sm:$0xff]  }
  0xd0   : > { %3661 = vmatpush1.bf16.msra.mxu1 %v5410_v31  ;;  %v5502_v31 = vld [vmem:[%s6012_s28 + $0x3d4] ss:$8 sps:$4 sm:$0xff]  }
  0xd1   : > { %3989 = vmatpush1.bf16.msra.mxu0 %v5413_v32  ;;  %3662 = vmatprep.subr.bf16.mxu1 %v5418_v33  ;;  %v5505_v32 = vld [vmem:[%s6012_s28 + $0xbd4] ss:$8 sps:$4 sm:$0xff]   ;;  %v5500_v33 = vld [vmem:[%s6012_s28 + $0x3d0] ss:$8 sps:$4 sm:$0xff]  }
  0xd2   : > { %3990 = vmatprep.subr.bf16.mxu0 %v5421_v34  ;;  %v5503_v34 = vld [vmem:[%s6012_s28 + $0xbd0] ss:$8 sps:$4 sm:$0xff]  }
  0xd4   : > { %3663 = vmatpush1.bf16.msra.mxu1 %v5416_v35  ;;  %v5508_v35 = vld [vmem:[%s6012_s28 + $0x3e4] ss:$8 sps:$4 sm:$0xff]  }
  0xd5   : > { %3991 = vmatpush1.bf16.msra.mxu0 %v5419_v36  ;;  %3673 = vmatprep.subr.bf16.mxu1 %v5424_v18  ;;  %v5511_v36 = vld [vmem:[%s6012_s28 + $0xbe4] ss:$8 sps:$4 sm:$0xff]   ;;  %v5506_v18 = vld [vmem:[%s6012_s28 + $0x3e0] ss:$8 sps:$4 sm:$0xff]  }
  0xd6   : > { %4001 = vmatprep.subr.bf16.mxu0 %v5427_v38  ;;  %v5509_v38 = vld [vmem:[%s6012_s28 + $0xbe0] ss:$8 sps:$4 sm:$0xff]  }
  0xd7   : > { %3665 = vmatmul.mubr.bf16.vlgmr.msra.gmra.mrb[0].mxu1 %v6262_v39 }
  0xd8   : > { %3993 = vmatmul.mubr.bf16.vlgmr.msra.gmra.mrb[0].mxu0 %v6266_v40  ;;  %3674 = vmatpush1.bf16.msra.mxu1 %v5422_v41  ;;  %v6333_v41 = vld [vmem:[%s6007_s24 + $0x8] sm:$0xff] }
  0xd9   : > { %4002 = vmatpush1.bf16.msra.mxu0 %v5425_v42  ;;  %3675 = vmatprep.subr.bf16.mxu1 %v5430_v43  ;;  %v6336_v42 = vld [vmem:[%s6007_s24 + $0x18] sm:$0xff] }
  0xda   : > { %4003 = vmatprep.subr.bf16.mxu0 %v5433_v45  ;;  %3705 = vmatprep.mubr.bf16.mxu1 %v810_v25  ;;  %v5514_v43 = vld [vmem:[%s6012_s28 + $0x3f4] ss:$8 sps:$4 sm:$0xff]   ;;  %v6342_v25 = vrot.slane %v6333_v41, %v6062_v50 }
  0xdb   : > { %4033 = vmatprep.mubr.bf16.mxu0 %v908_v46  ;;  %v5517_v45 = vld [vmem:[%s6012_s28 + $0xbf4] ss:$8 sps:$4 sm:$0xff]   ;;  %v6346_v46 = vrot.slane %v6336_v42, %v6062_v50 }
  0xdc   : > { %3676 = vmatpush1.bf16.msra.mxu1 %v5428_v26  ;;  %v5512_v26 = vld [vmem:[%s6012_s28 + $0x3f0] ss:$8 sps:$4 sm:$0xff]  }
  0xdd   : > { %4004 = vmatpush1.bf16.msra.mxu0 %v5431_v47  ;;  %3677 = vmatprep.subr.bf16.mxu1 %v5436_v37  ;;  %v5515_v47 = vld [vmem:[%s6012_s28 + $0xbf0] ss:$8 sps:$4 sm:$0xff]   ;;  %v5520_v37 = vld [vmem:[%s6012_s28 + $0x404] ss:$8 sps:$4 sm:$0xff]  }
  0xde   : > { %4005 = vmatprep.subr.bf16.mxu0 %v5439_v48  ;;  %v5523_v48 = vld [vmem:[%s6012_s28 + $0xc04] ss:$8 sps:$4 sm:$0xff]  }
  0xe0   : > { %3678 = vmatpush1.bf16.msra.mxu1 %v5434_v17  ;;  %v826_v17 = vcombine.high %v6342_v25, %v6342_v25 }
  0xe1   : > { %4006 = vmatpush1.bf16.msra.mxu0 %v5437_v49  ;;  %3679 = vmatprep.subr.bf16.mxu1 %v5442_v51  ;;  %v924_v49 = vcombine.high %v6346_v46, %v6346_v46  ;;  %v5518_v51 = vld [vmem:[%s6012_s28 + $0x400] ss:$8 sps:$4 sm:$0xff]  }
  0xe2   : > { %4007 = vmatprep.subr.bf16.mxu0 %v5445_v52  ;;  %v5521_v52 = vld [vmem:[%s6012_s28 + $0xc00] ss:$8 sps:$4 sm:$0xff]  }
  0xe4   : > { %3680 = vmatpush1.bf16.msra.mxu1 %v5440_v54  ;;  %v808_v54 = vcombine.high %v6262_v39, %v6262_v39  ;;  %v5524_v39 = vld [vmem:[%s6012_s28 + $0x410] ss:$8 sps:$4 sm:$0xff]  }
  0xe5   : > { %4008 = vmatpush1.bf16.msra.mxu0 %v5443_v55  ;;  %3681 = vmatprep.subr.bf16.mxu1 %v5448_v56  ;;  %v906_v55 = vcombine.high %v6266_v40, %v6266_v40  ;;  %v5526_v56 = vld [vmem:[%s6012_s28 + $0x414] ss:$8 sps:$4 sm:$0xff]   ;;  %v5527_v40 = vld [vmem:[%s6012_s28 + $0xc10] ss:$8 sps:$4 sm:$0xff]  }
  0xe6   : > { %4009 = vmatprep.subr.bf16.mxu0 %v5451_v58  ;;  %v5529_v58 = vld [vmem:[%s6012_s28 + $0xc14] ss:$8 sps:$4 sm:$0xff]  }
  0xe8   : > { %3682 = vmatpush1.bf16.msra.mxu1 %v5446_v59  ;;  %v6365_v59 = vrot.slane %v826_v17, %v6062_v50  ;;  %v5596_v17 = vld [vmem:[%s6012_s28 + $0x4d0] ss:$8 sps:$4 sm:$0xff]  }
  0xe9   : > { %4010 = vmatpush1.bf16.msra.mxu0 %v5449_v60  ;;  %3683 = vmatprep.subr.bf16.mxu1 %v5454_v61  ;;  %v6368_v60 = vrot.slane %v924_v49, %v6062_v50  ;;  %v5532_v61 = vld [vmem:[%s6012_s28 + $0x424] ss:$8 sps:$4 sm:$0xff]   ;;  %v5599_v49 = vld [vmem:[%s6012_s28 + $0xcd0] ss:$8 sps:$4 sm:$0xff]  }
  0xea   : > { %4011 = vmatprep.subr.bf16.mxu0 %v5457_v62  ;;  %v5535_v62 = vld [vmem:[%s6012_s28 + $0xc24] ss:$8 sps:$4 sm:$0xff]  }
  0xec   : > { %3684 = vmatpush1.bf16.msra.mxu1 %v5452_v63  ;;  %v5530_v63 = vld [vmem:[%s6012_s28 + $0x420] ss:$8 sps:$4 sm:$0xff]  }
  0xed   : > { %4012 = vmatpush1.bf16.msra.mxu0 %v5455_v0  ;;  %3685 = vmatprep.subr.bf16.mxu1 %v5460_v1  ;;  %v5533_v0 = vld [vmem:[%s6012_s28 + $0xc20] ss:$8 sps:$4 sm:$0xff]   ;;  %v5538_v1 = vld [vmem:[%s6012_s28 + $0x434] ss:$8 sps:$4 sm:$0xff]  }
  0xee   : > { %4013 = vmatprep.subr.bf16.mxu0 %v5463_v2  ;;  %v5541_v2 = vld [vmem:[%s6012_s28 + $0xc34] ss:$8 sps:$4 sm:$0xff]  }
  0xf0   : > { %3686 = vmatpush1.bf16.msra.mxu1 %v5458_v3  ;;  %v5536_v3 = vld [vmem:[%s6012_s28 + $0x430] ss:$8 sps:$4 sm:$0xff]  }
  0xf1   : > { %4014 = vmatpush1.bf16.msra.mxu0 %v5461_v4  ;;  %3687 = vmatprep.subr.bf16.mxu1 %v5466_v5  ;;  %v5539_v4 = vld [vmem:[%s6012_s28 + $0xc30] ss:$8 sps:$4 sm:$0xff]   ;;  %v5544_v5 = vld [vmem:[%s6012_s28 + $0x444] ss:$8 sps:$4 sm:$0xff]  }
  0xf2   : > { %4015 = vmatprep.subr.bf16.mxu0 %v5469_v6  ;;  %v5547_v6 = vld [vmem:[%s6012_s28 + $0xc44] ss:$8 sps:$4 sm:$0xff]  }
  0xf4   : > { %3688 = vmatpush1.bf16.msra.mxu1 %v5464_v7  ;;  %v5542_v7 = vld [vmem:[%s6012_s28 + $0x440] ss:$8 sps:$4 sm:$0xff]  }
  0xf5   : > { %4016 = vmatpush1.bf16.msra.mxu0 %v5467_v8  ;;  %3689 = vmatprep.subr.bf16.mxu1 %v5472_v9  ;;  %v5545_v8 = vld [vmem:[%s6012_s28 + $0xc40] ss:$8 sps:$4 sm:$0xff]   ;;  %v5550_v9 = vld [vmem:[%s6012_s28 + $0x454] ss:$8 sps:$4 sm:$0xff]  }
  0xf6   : > { %4017 = vmatprep.subr.bf16.mxu0 %v5475_v10  ;;  %v5553_v10 = vld [vmem:[%s6012_s28 + $0xc54] ss:$8 sps:$4 sm:$0xff]  }
  0xf8   : > { %3690 = vmatpush1.bf16.msra.mxu1 %v5470_v11  ;;  %v5548_v11 = vld [vmem:[%s6012_s28 + $0x450] ss:$8 sps:$4 sm:$0xff]  }
  0xf9   : > { %4018 = vmatpush1.bf16.msra.mxu0 %v5473_v12  ;;  %3691 = vmatprep.subr.bf16.mxu1 %v5478_v13  ;;  %v5551_v12 = vld [vmem:[%s6012_s28 + $0xc50] ss:$8 sps:$4 sm:$0xff]   ;;  %v5556_v13 = vld [vmem:[%s6012_s28 + $0x464] ss:$8 sps:$4 sm:$0xff]  }
  0xfa   : > { %4019 = vmatprep.subr.bf16.mxu0 %v5481_v14  ;;  %v5559_v14 = vld [vmem:[%s6012_s28 + $0xc64] ss:$8 sps:$4 sm:$0xff]  }
  0xfc   : > { %3692 = vmatpush1.bf16.msra.mxu1 %v5476_v15  ;;  %v5554_v15 = vld [vmem:[%s6012_s28 + $0x460] ss:$8 sps:$4 sm:$0xff]  }
  0xfd   : > { %4020 = vmatpush1.bf16.msra.mxu0 %v5479_v16  ;;  %3693 = vmatprep.subr.bf16.mxu1 %v5484_v19  ;;  %v5557_v16 = vld [vmem:[%s6012_s28 + $0xc60] ss:$8 sps:$4 sm:$0xff]   ;;  %v5562_v19 = vld [vmem:[%s6012_s28 + $0x474] ss:$8 sps:$4 sm:$0xff]  }
  0xfe   : > { %4021 = vmatprep.subr.bf16.mxu0 %v5487_v20  ;;  %v5565_v20 = vld [vmem:[%s6012_s28 + $0xc74] ss:$8 sps:$4 sm:$0xff]  }
 0x100   : > { %3694 = vmatpush1.bf16.msra.mxu1 %v5482_v21  ;;  %v5560_v21 = vld [vmem:[%s6012_s28 + $0x470] ss:$8 sps:$4 sm:$0xff]  }
 0x101   : > { %4022 = vmatpush1.bf16.msra.mxu0 %v5485_v22  ;;  %3695 = vmatprep.subr.bf16.mxu1 %v5490_v23  ;;  %v5563_v22 = vld [vmem:[%s6012_s28 + $0xc70] ss:$8 sps:$4 sm:$0xff]   ;;  %v5568_v23 = vld [vmem:[%s6012_s28 + $0x484] ss:$8 sps:$4 sm:$0xff]  }
 0x102   : > { %4023 = vmatprep.subr.bf16.mxu0 %v5493_v24  ;;  %v5571_v24 = vld [vmem:[%s6012_s28 + $0xc84] ss:$8 sps:$4 sm:$0xff]  }
 0x104   : > { %3696 = vmatpush1.bf16.msra.mxu1 %v5488_v53  ;;  %v5566_v53 = vld [vmem:[%s6012_s28 + $0x480] ss:$8 sps:$4 sm:$0xff]  }
 0x105   : > { %4024 = vmatpush1.bf16.msra.mxu0 %v5491_v57  ;;  %3697 = vmatprep.subr.bf16.mxu1 %v5496_v27  ;;  %v5569_v57 = vld [vmem:[%s6012_s28 + $0xc80] ss:$8 sps:$4 sm:$0xff]   ;;  %v5574_v27 = vld [vmem:[%s6012_s28 + $0x494] ss:$8 sps:$4 sm:$0xff]  }
 0x106   : > { %4025 = vmatprep.subr.bf16.mxu0 %v5499_v28  ;;  %v5577_v28 = vld [vmem:[%s6012_s28 + $0xc94] ss:$8 sps:$4 sm:$0xff]  }
 0x108   : > { %3698 = vmatpush1.bf16.msra.mxu1 %v5494_v29  ;;  %v5572_v29 = vld [vmem:[%s6012_s28 + $0x490] ss:$8 sps:$4 sm:$0xff]  }
 0x109   : > { %4026 = vmatpush1.bf16.msra.mxu0 %v5497_v30  ;;  %3699 = vmatprep.subr.bf16.mxu1 %v5502_v31  ;;  %v5575_v30 = vld [vmem:[%s6012_s28 + $0xc90] ss:$8 sps:$4 sm:$0xff]   ;;  %v5580_v31 = vld [vmem:[%s6012_s28 + $0x4a4] ss:$8 sps:$4 sm:$0xff]  }
 0x10a   : > { %4027 = vmatprep.subr.bf16.mxu0 %v5505_v32  ;;  %v5583_v32 = vld [vmem:[%s6012_s28 + $0xca4] ss:$8 sps:$4 sm:$0xff]  }
 0x10c   : > { %3700 = vmatpush1.bf16.msra.mxu1 %v5500_v33  ;;  %v5578_v33 = vld [vmem:[%s6012_s28 + $0x4a0] ss:$8 sps:$4 sm:$0xff]  }
 0x10d   : > { %4028 = vmatpush1.bf16.msra.mxu0 %v5503_v34  ;;  %3701 = vmatprep.subr.bf16.mxu1 %v5508_v35  ;;  %v5581_v34 = vld [vmem:[%s6012_s28 + $0xca0] ss:$8 sps:$4 sm:$0xff]   ;;  %v5586_v35 = vld [vmem:[%s6012_s28 + $0x4b4] ss:$8 sps:$4 sm:$0xff]  }
 0x10e   : > { %4029 = vmatprep.subr.bf16.mxu0 %v5511_v36  ;;  %v5589_v36 = vld [vmem:[%s6012_s28 + $0xcb4] ss:$8 sps:$4 sm:$0xff]  }
 0x110   : > { %3702 = vmatpush1.bf16.msra.mxu1 %v5506_v18  ;;  %v5584_v18 = vld [vmem:[%s6012_s28 + $0x4b0] ss:$8 sps:$4 sm:$0xff]  }
 0x111   : > { %4030 = vmatpush1.bf16.msra.mxu0 %v5509_v38  ;;  %3703 = vmatprep.subr.bf16.mxu1 %v5514_v43  ;;  %v5587_v38 = vld [vmem:[%s6012_s28 + $0xcb0] ss:$8 sps:$4 sm:$0xff]   ;;  %v5592_v43 = vld [vmem:[%s6012_s28 + $0x4c4] ss:$8 sps:$4 sm:$0xff]  }
 0x112   : > { %4031 = vmatprep.subr.bf16.mxu0 %v5517_v45  ;;  %v5595_v45 = vld [vmem:[%s6012_s28 + $0xcc4] ss:$8 sps:$4 sm:$0xff]  }
 0x114   : > { %3704 = vmatpush1.bf16.msra.mxu1 %v5512_v26  ;;  %v5590_v26 = vld [vmem:[%s6012_s28 + $0x4c0] ss:$8 sps:$4 sm:$0xff]  }
 0x115   : > { %4032 = vmatpush1.bf16.msra.mxu0 %v5515_v47  ;;  %3714 = vmatprep.subr.bf16.mxu1 %v5520_v37  ;;  %v5593_v47 = vld [vmem:[%s6012_s28 + $0xcc0] ss:$8 sps:$4 sm:$0xff]   ;;  %v5598_v37 = vld [vmem:[%s6012_s28 + $0x4d4] ss:$8 sps:$4 sm:$0xff]  }
 0x116   : > { %4042 = vmatprep.subr.bf16.mxu0 %v5523_v48  ;;  %v5601_v48 = vld [vmem:[%s6012_s28 + $0xcd4] ss:$8 sps:$4 sm:$0xff]  }
 0x117   : > { %3706 = vmatmul.mubr.bf16.vlgmr.msra.gmra.mrb[0].mxu1 %v808_v54  ;;  %v5602_v54 = vld [vmem:[%s6012_s28 + $0x4e0] ss:$8 sps:$4 sm:$0xff]  }
 0x118   : > { %4034 = vmatmul.mubr.bf16.vlgmr.msra.gmra.mrb[0].mxu0 %v906_v55  ;;  %3715 = vmatpush1.bf16.msra.mxu1 %v5518_v51  ;;  %v5604_v51 = vld [vmem:[%s6012_s28 + $0x4e4] ss:$8 sps:$4 sm:$0xff]   ;;  %v5605_v55 = vld [vmem:[%s6012_s28 + $0xce0] ss:$8 sps:$4 sm:$0xff]  }
 0x119   : > { %4043 = vmatpush1.bf16.msra.mxu0 %v5521_v52  ;;  %3716 = vmatprep.subr.bf16.mxu1 %v5526_v56  ;;  %v5607_v52 = vld [vmem:[%s6012_s28 + $0xce4] ss:$8 sps:$4 sm:$0xff]   ;;  %v5610_v56 = vld [vmem:[%s6012_s28 + $0x4f4] ss:$8 sps:$4 sm:$0xff]  }
 0x11a   : > { %4044 = vmatprep.subr.bf16.mxu0 %v5529_v58  ;;  %3746 = vmatprep.mubr.bf16.mxu1 %v6365_v59  ;;  %v5613_v58 = vld [vmem:[%s6012_s28 + $0xcf4] ss:$8 sps:$4 sm:$0xff]  }
 0x11b   : > { %4074 = vmatprep.mubr.bf16.mxu0 %v6368_v60 }
 0x11c   : > { %3717 = vmatpush1.bf16.msra.mxu1 %v5524_v39  ;;  %v5608_v39 = vld [vmem:[%s6012_s28 + $0x4f0] ss:$8 sps:$4 sm:$0xff]  }
 0x11d   : > { %4045 = vmatpush1.bf16.msra.mxu0 %v5527_v40  ;;  %3718 = vmatprep.subr.bf16.mxu1 %v5532_v61  ;;  %v5611_v40 = vld [vmem:[%s6012_s28 + $0xcf0] ss:$8 sps:$4 sm:$0xff]   ;;  %v5616_v61 = vld [vmem:[%s6012_s28 + $0x504] ss:$8 sps:$4 sm:$0xff]  }
 0x11e   : > { %4046 = vmatprep.subr.bf16.mxu0 %v5535_v62  ;;  %v5619_v62 = vld [vmem:[%s6012_s28 + $0xd04] ss:$8 sps:$4 sm:$0xff]  }
 0x120   : > { %3719 = vmatpush1.bf16.msra.mxu1 %v5530_v63  ;;  %v6434_v63 = vrot.slane %v6342_v25, %v6062_v50  ;;  %v858_v25 = vcombine.high %v6365_v59, %v6365_v59  ;;  %v5628_v59 = vld [vmem:[%s6012_s28 + $0x524] ss:$8 sps:$4 sm:$0xff]  }
 0x121   : > { %4047 = vmatpush1.bf16.msra.mxu0 %v5533_v0  ;;  %3720 = vmatprep.subr.bf16.mxu1 %v5538_v1  ;;  %v6438_v0 = vrot.slane %v6346_v46, %v6062_v50  ;;  %v5614_v1 = vld [vmem:[%s6012_s28 + $0x500] ss:$8 sps:$4 sm:$0xff]   ;;  %v5620_v46 = vld [vmem:[%s6012_s28 + $0x510] ss:$8 sps:$4 sm:$0xff]  }
 0x122   : > { %4048 = vmatprep.subr.bf16.mxu0 %v5541_v2  ;;  %v5617_v2 = vld [vmem:[%s6012_s28 + $0xd00] ss:$8 sps:$4 sm:$0xff]  }
 0x124   : > { %3721 = vmatpush1.bf16.msra.mxu1 %v5536_v3  ;;  %v5622_v3 = vld [vmem:[%s6012_s28 + $0x514] ss:$8 sps:$4 sm:$0xff]  }
 0x125   : > { %4049 = vmatpush1.bf16.msra.mxu0 %v5539_v4  ;;  %3722 = vmatprep.subr.bf16.mxu1 %v5544_v5  ;;  %v5625_v4 = vld [vmem:[%s6012_s28 + $0xd14] ss:$8 sps:$4 sm:$0xff]   ;;  %v956_v5 = vcombine.high %v6368_v60, %v6368_v60  ;;  %v5626_v60 = vld [vmem:[%s6012_s28 + $0x520] ss:$8 sps:$4 sm:$0xff]  }
 0x126   : > { %4050 = vmatprep.subr.bf16.mxu0 %v5547_v6  ;;  %v5623_v6 = vld [vmem:[%s6012_s28 + $0xd10] ss:$8 sps:$4 sm:$0xff]  }
 0x128   : > { %3723 = vmatpush1.bf16.msra.mxu1 %v5542_v7  ;;  %v5631_v7 = vld [vmem:[%s6012_s28 + $0xd24] ss:$8 sps:$4 sm:$0xff]  }
 0x129   : > { %4051 = vmatpush1.bf16.msra.mxu0 %v5545_v8  ;;  %3724 = vmatprep.subr.bf16.mxu1 %v5550_v9  ;;  %v5629_v8 = vld [vmem:[%s6012_s28 + $0xd20] ss:$8 sps:$4 sm:$0xff]   ;;  %v5634_v9 = vld [vmem:[%s6012_s28 + $0x534] ss:$8 sps:$4 sm:$0xff]  }
 0x12a   : > { %4052 = vmatprep.subr.bf16.mxu0 %v5553_v10  ;;  %v5637_v10 = vld [vmem:[%s6012_s28 + $0xd34] ss:$8 sps:$4 sm:$0xff]  }
 0x12c   : > { %3725 = vmatpush1.bf16.msra.mxu1 %v5548_v11  ;;  %v5632_v11 = vld [vmem:[%s6012_s28 + $0x530] ss:$8 sps:$4 sm:$0xff]  }
 0x12d   : > { %4053 = vmatpush1.bf16.msra.mxu0 %v5551_v12  ;;  %3726 = vmatprep.subr.bf16.mxu1 %v5556_v13  ;;  %v5635_v12 = vld [vmem:[%s6012_s28 + $0xd30] ss:$8 sps:$4 sm:$0xff]   ;;  %v5640_v13 = vld [vmem:[%s6012_s28 + $0x544] ss:$8 sps:$4 sm:$0xff]  }
 0x12e   : > { %4054 = vmatprep.subr.bf16.mxu0 %v5559_v14  ;;  %v5643_v14 = vld [vmem:[%s6012_s28 + $0xd44] ss:$8 sps:$4 sm:$0xff]  }
 0x130   : > { %3727 = vmatpush1.bf16.msra.mxu1 %v5554_v15  ;;  %v5638_v15 = vld [vmem:[%s6012_s28 + $0x540] ss:$8 sps:$4 sm:$0xff]  }
 0x131   : > { %4055 = vmatpush1.bf16.msra.mxu0 %v5557_v16  ;;  %3728 = vmatprep.subr.bf16.mxu1 %v5562_v19  ;;  %v5641_v16 = vld [vmem:[%s6012_s28 + $0xd40] ss:$8 sps:$4 sm:$0xff]   ;;  %v5646_v19 = vld [vmem:[%s6012_s28 + $0x554] ss:$8 sps:$4 sm:$0xff]  }
 0x132   : > { %4056 = vmatprep.subr.bf16.mxu0 %v5565_v20  ;;  %v5649_v20 = vld [vmem:[%s6012_s28 + $0xd54] ss:$8 sps:$4 sm:$0xff]  }
 0x134   : > { %3729 = vmatpush1.bf16.msra.mxu1 %v5560_v21  ;;  %v5644_v21 = vld [vmem:[%s6012_s28 + $0x550] ss:$8 sps:$4 sm:$0xff]  }
 0x135   : > { %4057 = vmatpush1.bf16.msra.mxu0 %v5563_v22  ;;  %3730 = vmatprep.subr.bf16.mxu1 %v5568_v23  ;;  %v5647_v22 = vld [vmem:[%s6012_s28 + $0xd50] ss:$8 sps:$4 sm:$0xff]   ;;  %v5652_v23 = vld [vmem:[%s6012_s28 + $0x564] ss:$8 sps:$4 sm:$0xff]  }
 0x136   : > { %4058 = vmatprep.subr.bf16.mxu0 %v5571_v24  ;;  %v5655_v24 = vld [vmem:[%s6012_s28 + $0xd64] ss:$8 sps:$4 sm:$0xff]  }
 0x138   : > { %3731 = vmatpush1.bf16.msra.mxu1 %v5566_v53  ;;  %v5650_v53 = vld [vmem:[%s6012_s28 + $0x560] ss:$8 sps:$4 sm:$0xff]  }
 0x139   : > { %4059 = vmatpush1.bf16.msra.mxu0 %v5569_v57  ;;  %3732 = vmatprep.subr.bf16.mxu1 %v5574_v27  ;;  %v5653_v57 = vld [vmem:[%s6012_s28 + $0xd60] ss:$8 sps:$4 sm:$0xff]   ;;  %v5658_v27 = vld [vmem:[%s6012_s28 + $0x574] ss:$8 sps:$4 sm:$0xff]  }
 0x13a   : > { %4060 = vmatprep.subr.bf16.mxu0 %v5577_v28  ;;  %v5661_v28 = vld [vmem:[%s6012_s28 + $0xd74] ss:$8 sps:$4 sm:$0xff]  }
 0x13c   : > { %3733 = vmatpush1.bf16.msra.mxu1 %v5572_v29  ;;  %v5656_v29 = vld [vmem:[%s6012_s28 + $0x570] ss:$8 sps:$4 sm:$0xff]  }
 0x13d   : > { %4061 = vmatpush1.bf16.msra.mxu0 %v5575_v30  ;;  %3734 = vmatprep.subr.bf16.mxu1 %v5580_v31  ;;  %v5659_v30 = vld [vmem:[%s6012_s28 + $0xd70] ss:$8 sps:$4 sm:$0xff]   ;;  %v5664_v31 = vld [vmem:[%s6012_s28 + $0x584] ss:$8 sps:$4 sm:$0xff]  }
 0x13e   : > { %4062 = vmatprep.subr.bf16.mxu0 %v5583_v32  ;;  %v5667_v32 = vld [vmem:[%s6012_s28 + $0xd84] ss:$8 sps:$4 sm:$0xff]  }
 0x140   : > { %3735 = vmatpush1.bf16.msra.mxu1 %v5578_v33  ;;  %v5662_v33 = vld [vmem:[%s6012_s28 + $0x580] ss:$8 sps:$4 sm:$0xff]  }
 0x141   : > { %4063 = vmatpush1.bf16.msra.mxu0 %v5581_v34  ;;  %3736 = vmatprep.subr.bf16.mxu1 %v5586_v35  ;;  %v5665_v34 = vld [vmem:[%s6012_s28 + $0xd80] ss:$8 sps:$4 sm:$0xff]   ;;  %v5670_v35 = vld [vmem:[%s6012_s28 + $0x594] ss:$8 sps:$4 sm:$0xff]  }
 0x142   : > { %4064 = vmatprep.subr.bf16.mxu0 %v5589_v36  ;;  %v5673_v36 = vld [vmem:[%s6012_s28 + $0xd94] ss:$8 sps:$4 sm:$0xff]  }
 0x144   : > { %3737 = vmatpush1.bf16.msra.mxu1 %v5584_v18  ;;  %v5668_v18 = vld [vmem:[%s6012_s28 + $0x590] ss:$8 sps:$4 sm:$0xff]  }
 0x145   : > { %4065 = vmatpush1.bf16.msra.mxu0 %v5587_v38  ;;  %3738 = vmatprep.subr.bf16.mxu1 %v5592_v43  ;;  %v5671_v38 = vld [vmem:[%s6012_s28 + $0xd90] ss:$8 sps:$4 sm:$0xff]   ;;  %v5676_v43 = vld [vmem:[%s6012_s28 + $0x5a4] ss:$8 sps:$4 sm:$0xff]  }
 0x146   : > { %4066 = vmatprep.subr.bf16.mxu0 %v5595_v45  ;;  %v5679_v45 = vld [vmem:[%s6012_s28 + $0xda4] ss:$8 sps:$4 sm:$0xff]  }
 0x148   : > { %3739 = vmatpush1.bf16.msra.mxu1 %v5590_v26  ;;  %v5674_v26 = vld [vmem:[%s6012_s28 + $0x5a0] ss:$8 sps:$4 sm:$0xff]  }
 0x149   : > { %4067 = vmatpush1.bf16.msra.mxu0 %v5593_v47  ;;  %3740 = vmatprep.subr.bf16.mxu1 %v5598_v37  ;;  %v5677_v47 = vld [vmem:[%s6012_s28 + $0xda0] ss:$8 sps:$4 sm:$0xff]   ;;  %v5682_v37 = vld [vmem:[%s6012_s28 + $0x5b4] ss:$8 sps:$4 sm:$0xff]  }
 0x14a   : > { %4068 = vmatprep.subr.bf16.mxu0 %v5601_v48  ;;  %v5685_v48 = vld [vmem:[%s6012_s28 + $0xdb4] ss:$8 sps:$4 sm:$0xff]  }
 0x14c   : > { %3741 = vmatpush1.bf16.msra.mxu1 %v5596_v17  ;;  %v5680_v17 = vld [vmem:[%s6012_s28 + $0x5b0] ss:$8 sps:$4 sm:$0xff]  }
 0x14d   : > { %4069 = vmatpush1.bf16.msra.mxu0 %v5599_v49  ;;  %3742 = vmatprep.subr.bf16.mxu1 %v5604_v51  ;;  %v5683_v49 = vld [vmem:[%s6012_s28 + $0xdb0] ss:$8 sps:$4 sm:$0xff]   ;;  %v5688_v51 = vld [vmem:[%s6012_s28 + $0x5c4] ss:$8 sps:$4 sm:$0xff]  }
 0x14e   : > { %4070 = vmatprep.subr.bf16.mxu0 %v5607_v52  ;;  %v5691_v52 = vld [vmem:[%s6012_s28 + $0xdc4] ss:$8 sps:$4 sm:$0xff]  }
 0x150   : > { %3743 = vmatpush1.bf16.msra.mxu1 %v5602_v54  ;;  %v5686_v54 = vld [vmem:[%s6012_s28 + $0x5c0] ss:$8 sps:$4 sm:$0xff]  }
 0x151   : > { %4071 = vmatpush1.bf16.msra.mxu0 %v5605_v55  ;;  %3744 = vmatprep.subr.bf16.mxu1 %v5610_v56  ;;  %v5689_v55 = vld [vmem:[%s6012_s28 + $0xdc0] ss:$8 sps:$4 sm:$0xff]   ;;  %v5694_v56 = vld [vmem:[%s6012_s28 + $0x5d4] ss:$8 sps:$4 sm:$0xff]  }
 0x152   : > { %4072 = vmatprep.subr.bf16.mxu0 %v5613_v58  ;;  %v5697_v58 = vld [vmem:[%s6012_s28 + $0xdd4] ss:$8 sps:$4 sm:$0xff]  }
 0x154   : > { %3745 = vmatpush1.bf16.msra.mxu1 %v5608_v39  ;;  %v5692_v39 = vld [vmem:[%s6012_s28 + $0x5d0] ss:$8 sps:$4 sm:$0xff]  }
 0x155   : > { %4073 = vmatpush1.bf16.msra.mxu0 %v5611_v40  ;;  %3755 = vmatprep.subr.bf16.mxu1 %v5616_v61  ;;  %v5695_v40 = vld [vmem:[%s6012_s28 + $0xdd0] ss:$8 sps:$4 sm:$0xff]   ;;  %v5700_v61 = vld [vmem:[%s6012_s28 + $0x5e4] ss:$8 sps:$4 sm:$0xff]  }
 0x156   : > { %4083 = vmatprep.subr.bf16.mxu0 %v5619_v62  ;;  %v5703_v62 = vld [vmem:[%s6012_s28 + $0xde4] ss:$8 sps:$4 sm:$0xff]  }
 0x157   : > { %3747 = vmatmul.mubr.bf16.vlgmr.msra.gmra.mrb[0].mxu1 %v6434_v63 }
 0x158   : > { %4075 = vmatmul.mubr.bf16.vlgmr.msra.gmra.mrb[0].mxu0 %v6438_v0  ;;  %3756 = vmatpush1.bf16.msra.mxu1 %v5614_v1  ;;  %v811_v1 = vcombine.high %v6333_v41, %v6333_v41  ;;  %v5704_v41 = vld [vmem:[%s6012_s28 + $0x5f0] ss:$8 sps:$4 sm:$0xff]  }
 0x159   : > { %4084 = vmatpush1.bf16.msra.mxu0 %v5617_v2  ;;  %3757 = vmatprep.subr.bf16.mxu1 %v5622_v3  ;;  %v909_v2 = vcombine.high %v6336_v42, %v6336_v42  ;;  %v5698_v3 = vld [vmem:[%s6012_s28 + $0x5e0] ss:$8 sps:$4 sm:$0xff]   ;;  %v5707_v42 = vld [vmem:[%s6012_s28 + $0xdf0] ss:$8 sps:$4 sm:$0xff]  }
 0x15a   : > { %4085 = vmatprep.subr.bf16.mxu0 %v5625_v4  ;;  %3787 = vmatprep.mubr.bf16.mxu1 %v858_v25  ;;  %v5701_v4 = vld [vmem:[%s6012_s28 + $0xde0] ss:$8 sps:$4 sm:$0xff]   ;;  %v5706_v25 = vld [vmem:[%s6012_s28 + $0x5f4] ss:$8 sps:$4 sm:$0xff]  }
 0x15b   : > { %4115 = vmatprep.mubr.bf16.mxu0 %v956_v5  ;;  %v5709_v5 = vld [vmem:[%s6012_s28 + $0xdf4] ss:$8 sps:$4 sm:$0xff]  }
 0x15c   : > { %3758 = vmatpush1.bf16.msra.mxu1 %v5620_v46  ;;  %v6511_v46 = vrot.slane %v811_v1, %v6062_v50  ;;  %v5776_v1 = vld [vmem:[%s6012_s28 + $0x6b0] ss:$8 sps:$4 sm:$0xff]  }
 0x15d   : > { %4086 = vmatpush1.bf16.msra.mxu0 %v5623_v6  ;;  %3759 = vmatprep.subr.bf16.mxu1 %v5628_v59  ;;  %v6514_v6 = vrot.slane %v909_v2, %v6062_v50  ;;  %v5712_v59 = vld [vmem:[%s6012_s28 + $0x604] ss:$8 sps:$4 sm:$0xff]   ;;  %v5779_v2 = vld [vmem:[%s6012_s28 + $0xeb0] ss:$8 sps:$4 sm:$0xff]  }
 0x15e   : > { %4087 = vmatprep.subr.bf16.mxu0 %v5631_v7  ;;  %v5715_v7 = vld [vmem:[%s6012_s28 + $0xe04] ss:$8 sps:$4 sm:$0xff]  }
 0x160   : > { %3760 = vmatpush1.bf16.msra.mxu1 %v5626_v60  ;;  %v827_v60 = vcombine.high %v6511_v46, %v6511_v46 }
 0x161   : > { %4088 = vmatpush1.bf16.msra.mxu0 %v5629_v8  ;;  %3761 = vmatprep.subr.bf16.mxu1 %v5634_v9  ;;  %v925_v8 = vcombine.high %v6514_v6, %v6514_v6  ;;  %v856_v9 = vcombine.high %v6434_v63, %v6434_v63 }
 0x162   : > { %4089 = vmatprep.subr.bf16.mxu0 %v5637_v10  ;;  %v954_v10 = vcombine.high %v6438_v0, %v6438_v0  ;;  %v5716_v0 = vld [vmem:[%s6012_s28 + $0x610] ss:$8 sps:$4 sm:$0xff]  }
 0x163   : > { %v6536_v63 = vrot.slane %v925_v8, %v6062_v50  ;;  %v5799_v8 = vld [vmem:[%s6012_s28 + $0xee4] ss:$8 sps:$4 sm:$0xff]  }
 0x164   : > { %3762 = vmatpush1.bf16.msra.mxu1 %v5632_v11  ;;  %v5710_v11 = vld [vmem:[%s6012_s28 + $0x600] ss:$8 sps:$4 sm:$0xff]  }
 0x165   : > { %4090 = vmatpush1.bf16.msra.mxu0 %v5635_v12  ;;  %3763 = vmatprep.subr.bf16.mxu1 %v5640_v13  ;;  %v5713_v12 = vld [vmem:[%s6012_s28 + $0xe00] ss:$8 sps:$4 sm:$0xff]   ;;  %v5718_v13 = vld [vmem:[%s6012_s28 + $0x614] ss:$8 sps:$4 sm:$0xff]  }
 0x166   : > { %4091 = vmatprep.subr.bf16.mxu0 %v5643_v14  ;;  %v5721_v14 = vld [vmem:[%s6012_s28 + $0xe14] ss:$8 sps:$4 sm:$0xff]  }
 0x168   : > { %3764 = vmatpush1.bf16.msra.mxu1 %v5638_v15  ;;  %v6533_v15 = vrot.slane %v827_v60, %v6062_v50  ;;  %v5796_v60 = vld [vmem:[%s6012_s28 + $0x6e4] ss:$8 sps:$4 sm:$0xff]  }
 0x169   : > { %4092 = vmatpush1.bf16.msra.mxu0 %v5641_v16  ;;  %3765 = vmatprep.subr.bf16.mxu1 %v5646_v19  ;;  %v5719_v16 = vld [vmem:[%s6012_s28 + $0xe10] ss:$8 sps:$4 sm:$0xff]   ;;  %v5724_v19 = vld [vmem:[%s6012_s28 + $0x624] ss:$8 sps:$4 sm:$0xff]  }
 0x16a   : > { %4093 = vmatprep.subr.bf16.mxu0 %v5649_v20  ;;  %v5727_v20 = vld [vmem:[%s6012_s28 + $0xe24] ss:$8 sps:$4 sm:$0xff]  }
 0x16c   : > { %3766 = vmatpush1.bf16.msra.mxu1 %v5644_v21  ;;  %v5722_v21 = vld [vmem:[%s6012_s28 + $0x620] ss:$8 sps:$4 sm:$0xff]  }
 0x16d   : > { %4094 = vmatpush1.bf16.msra.mxu0 %v5647_v22  ;;  %3767 = vmatprep.subr.bf16.mxu1 %v5652_v23  ;;  %v5725_v22 = vld [vmem:[%s6012_s28 + $0xe20] ss:$8 sps:$4 sm:$0xff]   ;;  %v5730_v23 = vld [vmem:[%s6012_s28 + $0x634] ss:$8 sps:$4 sm:$0xff]  }
 0x16e   : > { %4095 = vmatprep.subr.bf16.mxu0 %v5655_v24  ;;  %v5733_v24 = vld [vmem:[%s6012_s28 + $0xe34] ss:$8 sps:$4 sm:$0xff]  }
 0x170   : > { %3768 = vmatpush1.bf16.msra.mxu1 %v5650_v53  ;;  %v5728_v53 = vld [vmem:[%s6012_s28 + $0x630] ss:$8 sps:$4 sm:$0xff]  }
 0x171   : > { %4096 = vmatpush1.bf16.msra.mxu0 %v5653_v57  ;;  %3769 = vmatprep.subr.bf16.mxu1 %v5658_v27  ;;  %v5731_v57 = vld [vmem:[%s6012_s28 + $0xe30] ss:$8 sps:$4 sm:$0xff]   ;;  %v5736_v27 = vld [vmem:[%s6012_s28 + $0x644] ss:$8 sps:$4 sm:$0xff]  }
 0x172   : > { %4097 = vmatprep.subr.bf16.mxu0 %v5661_v28  ;;  %v5739_v28 = vld [vmem:[%s6012_s28 + $0xe44] ss:$8 sps:$4 sm:$0xff]  }
 0x174   : > { %3770 = vmatpush1.bf16.msra.mxu1 %v5656_v29  ;;  %v5734_v29 = vld [vmem:[%s6012_s28 + $0x640] ss:$8 sps:$4 sm:$0xff]  }
 0x175   : > { %4098 = vmatpush1.bf16.msra.mxu0 %v5659_v30  ;;  %3771 = vmatprep.subr.bf16.mxu1 %v5664_v31  ;;  %v5737_v30 = vld [vmem:[%s6012_s28 + $0xe40] ss:$8 sps:$4 sm:$0xff]   ;;  %v5742_v31 = vld [vmem:[%s6012_s28 + $0x654] ss:$8 sps:$4 sm:$0xff]  }
 0x176   : > { %4099 = vmatprep.subr.bf16.mxu0 %v5667_v32  ;;  %v5745_v32 = vld [vmem:[%s6012_s28 + $0xe54] ss:$8 sps:$4 sm:$0xff]  }
 0x178   : > { %3772 = vmatpush1.bf16.msra.mxu1 %v5662_v33  ;;  %v5740_v33 = vld [vmem:[%s6012_s28 + $0x650] ss:$8 sps:$4 sm:$0xff]  }
 0x179   : > { %4100 = vmatpush1.bf16.msra.mxu0 %v5665_v34  ;;  %3773 = vmatprep.subr.bf16.mxu1 %v5670_v35  ;;  %v5743_v34 = vld [vmem:[%s6012_s28 + $0xe50] ss:$8 sps:$4 sm:$0xff]   ;;  %v5748_v35 = vld [vmem:[%s6012_s28 + $0x664] ss:$8 sps:$4 sm:$0xff]  }
 0x17a   : > { %4101 = vmatprep.subr.bf16.mxu0 %v5673_v36  ;;  %v5751_v36 = vld [vmem:[%s6012_s28 + $0xe64] ss:$8 sps:$4 sm:$0xff]  }
 0x17c   : > { %3774 = vmatpush1.bf16.msra.mxu1 %v5668_v18  ;;  %v5746_v18 = vld [vmem:[%s6012_s28 + $0x660] ss:$8 sps:$4 sm:$0xff]  }
 0x17d   : > { %4102 = vmatpush1.bf16.msra.mxu0 %v5671_v38  ;;  %3775 = vmatprep.subr.bf16.mxu1 %v5676_v43  ;;  %v5749_v38 = vld [vmem:[%s6012_s28 + $0xe60] ss:$8 sps:$4 sm:$0xff]   ;;  %v5754_v43 = vld [vmem:[%s6012_s28 + $0x674] ss:$8 sps:$4 sm:$0xff]  }
 0x17e   : > { %4103 = vmatprep.subr.bf16.mxu0 %v5679_v45  ;;  %v5757_v45 = vld [vmem:[%s6012_s28 + $0xe74] ss:$8 sps:$4 sm:$0xff]  }
 0x180   : > { %3776 = vmatpush1.bf16.msra.mxu1 %v5674_v26  ;;  %v5752_v26 = vld [vmem:[%s6012_s28 + $0x670] ss:$8 sps:$4 sm:$0xff]  }
 0x181   : > { %4104 = vmatpush1.bf16.msra.mxu0 %v5677_v47  ;;  %3777 = vmatprep.subr.bf16.mxu1 %v5682_v37  ;;  %v5755_v47 = vld [vmem:[%s6012_s28 + $0xe70] ss:$8 sps:$4 sm:$0xff]   ;;  %v5760_v37 = vld [vmem:[%s6012_s28 + $0x684] ss:$8 sps:$4 sm:$0xff]  }
 0x182   : > { %4105 = vmatprep.subr.bf16.mxu0 %v5685_v48  ;;  %v5763_v48 = vld [vmem:[%s6012_s28 + $0xe84] ss:$8 sps:$4 sm:$0xff]  }
 0x184   : > { %3778 = vmatpush1.bf16.msra.mxu1 %v5680_v17  ;;  %v5758_v17 = vld [vmem:[%s6012_s28 + $0x680] ss:$8 sps:$4 sm:$0xff]  }
 0x185   : > { %4106 = vmatpush1.bf16.msra.mxu0 %v5683_v49  ;;  %3779 = vmatprep.subr.bf16.mxu1 %v5688_v51  ;;  %v5761_v49 = vld [vmem:[%s6012_s28 + $0xe80] ss:$8 sps:$4 sm:$0xff]   ;;  %v5766_v51 = vld [vmem:[%s6012_s28 + $0x694] ss:$8 sps:$4 sm:$0xff]  }
 0x186   : > { %4107 = vmatprep.subr.bf16.mxu0 %v5691_v52  ;;  %v5769_v52 = vld [vmem:[%s6012_s28 + $0xe94] ss:$8 sps:$4 sm:$0xff]  }
 0x188   : > { %3780 = vmatpush1.bf16.msra.mxu1 %v5686_v54  ;;  %v5764_v54 = vld [vmem:[%s6012_s28 + $0x690] ss:$8 sps:$4 sm:$0xff]  }
 0x189   : > { %4108 = vmatpush1.bf16.msra.mxu0 %v5689_v55  ;;  %3781 = vmatprep.subr.bf16.mxu1 %v5694_v56  ;;  %v5767_v55 = vld [vmem:[%s6012_s28 + $0xe90] ss:$8 sps:$4 sm:$0xff]   ;;  %v5772_v56 = vld [vmem:[%s6012_s28 + $0x6a4] ss:$8 sps:$4 sm:$0xff]  }
 0x18a   : > { %4109 = vmatprep.subr.bf16.mxu0 %v5697_v58  ;;  %v5775_v58 = vld [vmem:[%s6012_s28 + $0xea4] ss:$8 sps:$4 sm:$0xff]  }
 0x18c   : > { %3782 = vmatpush1.bf16.msra.mxu1 %v5692_v39  ;;  %v5770_v39 = vld [vmem:[%s6012_s28 + $0x6a0] ss:$8 sps:$4 sm:$0xff]  }
 0x18d   : > { %4110 = vmatpush1.bf16.msra.mxu0 %v5695_v40  ;;  %3783 = vmatprep.subr.bf16.mxu1 %v5700_v61  ;;  %v5773_v40 = vld [vmem:[%s6012_s28 + $0xea0] ss:$8 sps:$4 sm:$0xff]   ;;  %v5778_v61 = vld [vmem:[%s6012_s28 + $0x6b4] ss:$8 sps:$4 sm:$0xff]  }
 0x18e   : > { %4111 = vmatprep.subr.bf16.mxu0 %v5703_v62  ;;  %v5781_v62 = vld [vmem:[%s6012_s28 + $0xeb4] ss:$8 sps:$4 sm:$0xff]  }
 0x190   : > { %3784 = vmatpush1.bf16.msra.mxu1 %v5698_v3  ;;  %v5784_v3 = vld [vmem:[%s6012_s28 + $0x6c4] ss:$8 sps:$4 sm:$0xff]  }
 0x191   : > { %4112 = vmatpush1.bf16.msra.mxu0 %v5701_v4  ;;  %3785 = vmatprep.subr.bf16.mxu1 %v5706_v25  ;;  %v5787_v4 = vld [vmem:[%s6012_s28 + $0xec4] ss:$8 sps:$4 sm:$0xff]   ;;  %v5782_v25 = vld [vmem:[%s6012_s28 + $0x6c0] ss:$8 sps:$4 sm:$0xff]  }
 0x192   : > { %4113 = vmatprep.subr.bf16.mxu0 %v5709_v5  ;;  %v5785_v5 = vld [vmem:[%s6012_s28 + $0xec0] ss:$8 sps:$4 sm:$0xff]  }
 0x194   : > { %3786 = vmatpush1.bf16.msra.mxu1 %v5704_v41  ;;  %v5790_v41 = vld [vmem:[%s6012_s28 + $0x6d4] ss:$8 sps:$4 sm:$0xff]  }
 0x195   : > { %4114 = vmatpush1.bf16.msra.mxu0 %v5707_v42  ;;  %3796 = vmatprep.subr.bf16.mxu1 %v5712_v59  ;;  %v5793_v42 = vld [vmem:[%s6012_s28 + $0xed4] ss:$8 sps:$4 sm:$0xff]   ;;  %v5788_v59 = vld [vmem:[%s6012_s28 + $0x6d0] ss:$8 sps:$4 sm:$0xff]  }
 0x196   : > { %4124 = vmatprep.subr.bf16.mxu0 %v5715_v7  ;;  %v5791_v7 = vld [vmem:[%s6012_s28 + $0xed0] ss:$8 sps:$4 sm:$0xff]  }
 0x197   : > { %3788 = vmatmul.mubr.bf16.vlgmr.msra.gmra.mrb[0].mxu1 %v856_v9  ;;  %v5794_v9 = vld [vmem:[%s6012_s28 + $0x6e0] ss:$8 sps:$4 sm:$0xff]  }
 0x198   : > { %4116 = vmatmul.mubr.bf16.vlgmr.msra.gmra.mrb[0].mxu0 %v954_v10  ;;  %3797 = vmatpush1.bf16.msra.mxu1 %v5710_v11  ;;  %v5797_v10 = vld [vmem:[%s6012_s28 + $0xee0] ss:$8 sps:$4 sm:$0xff]   ;;  %v5802_v11 = vld [vmem:[%s6012_s28 + $0x6f4] ss:$8 sps:$4 sm:$0xff]  }
 0x199   : > { %4125 = vmatpush1.bf16.msra.mxu0 %v5713_v12  ;;  %3798 = vmatprep.subr.bf16.mxu1 %v5718_v13  ;;  %v5805_v12 = vld [vmem:[%s6012_s28 + $0xef4] ss:$8 sps:$4 sm:$0xff]   ;;  %v5800_v13 = vld [vmem:[%s6012_s28 + $0x6f0] ss:$8 sps:$4 sm:$0xff]  }
 0x19a   : > { %4126 = vmatprep.subr.bf16.mxu0 %v5721_v14  ;;  %3828 = vmatprep.mubr.bf16.mxu1 %v6533_v15  ;;  %v5803_v14 = vld [vmem:[%s6012_s28 + $0xef0] ss:$8 sps:$4 sm:$0xff]  }
 0x19b   : > { %4156 = vmatprep.mubr.bf16.mxu0 %v6536_v63 }
 0x19c   : > { %3799 = vmatpush1.bf16.msra.mxu1 %v5716_v0  ;;  %v5809_v0 = vld [vmem:[%s6012_s28 + $0x704] ss:$8 sps:$4 sm:$0xff]  }
 0x19d   : > { %4127 = vmatpush1.bf16.msra.mxu0 %v5719_v16  ;;  %3800 = vmatprep.subr.bf16.mxu1 %v5724_v19  ;;  %v5813_v16 = vld [vmem:[%s6012_s28 + $0xf04] ss:$8 sps:$4 sm:$0xff]   ;;  %v6602_v19 = vrot.slane %v6511_v46, %v6062_v50  ;;  %v859_v46 = vcombine.high %v6533_v15, %v6533_v15 }
 0x19e   : > { %4128 = vmatprep.subr.bf16.mxu0 %v5727_v20  ;;  %v6606_v20 = vrot.slane %v6514_v6, %v6062_v50  ;;  %v5814_v50 = vld [vmem:[%s6012_s28 + $0x710] ss:$8 sps:$4 sm:$0xff]   ;;  %v5822_v15 = vld [vmem:[%s6012_s28 + $0x724] ss:$8 sps:$4 sm:$0xff]  }
 0x19f   : > { %v5817_v6 = vld [vmem:[%s6012_s28 + $0xf10] ss:$8 sps:$4 sm:$0xff]  }
 0x1a0   : > { %3801 = vmatpush1.bf16.msra.mxu1 %v5722_v21  ;;  %v5807_v21 = vld [vmem:[%s6012_s28 + $0x700] ss:$8 sps:$4 sm:$0xff]  }
 0x1a1   : > { %4129 = vmatpush1.bf16.msra.mxu0 %v5725_v22  ;;  %3802 = vmatprep.subr.bf16.mxu1 %v5730_v23  ;;  %v5811_v22 = vld [vmem:[%s6012_s28 + $0xf00] ss:$8 sps:$4 sm:$0xff]   ;;  %v5816_v23 = vld [vmem:[%s6012_s28 + $0x714] ss:$8 sps:$4 sm:$0xff]  }
 0x1a2   : > { %4130 = vmatprep.subr.bf16.mxu0 %v5733_v24  ;;  %v5819_v24 = vld [vmem:[%s6012_s28 + $0xf14] ss:$8 sps:$4 sm:$0xff]  }
 0x1a4   : > { %3803 = vmatpush1.bf16.msra.mxu1 %v5728_v53  ;;  %v957_v53 = vcombine.high %v6536_v63, %v6536_v63  ;;  %v5820_v63 = vld [vmem:[%s6012_s28 + $0x720] ss:$8 sps:$4 sm:$0xff]  }
 0x1a5   : > { %4131 = vmatpush1.bf16.msra.mxu0 %v5731_v57  ;;  %3804 = vmatprep.subr.bf16.mxu1 %v5736_v27  ;;  %v5825_v57 = vld [vmem:[%s6012_s28 + $0xf24] ss:$8 sps:$4 sm:$0xff]   ;;  %v5823_v27 = vld [vmem:[%s6012_s28 + $0xf20] ss:$8 sps:$4 sm:$0xff]  }
 0x1a6   : > { %4132 = vmatprep.subr.bf16.mxu0 %v5739_v28  ;;  %v5828_v28 = vld [vmem:[%s6012_s28 + $0x734] ss:$8 sps:$4 sm:$0xff]  }
 0x1a8   : > { %3805 = vmatpush1.bf16.msra.mxu1 %v5734_v29  ;;  %v5831_v29 = vld [vmem:[%s6012_s28 + $0xf34] ss:$8 sps:$4 sm:$0xff]  }
 0x1a9   : > { %4133 = vmatpush1.bf16.msra.mxu0 %v5737_v30  ;;  %3806 = vmatprep.subr.bf16.mxu1 %v5742_v31  ;;  %v5826_v30 = vld [vmem:[%s6012_s28 + $0x730] ss:$8 sps:$4 sm:$0xff]  }
 0x1aa   : > { %4134 = vmatprep.subr.bf16.mxu0 %v5745_v32  ;;  %v5829_v31 = vld [vmem:[%s6012_s28 + $0xf30] ss:$8 sps:$4 sm:$0xff]   ;;  %v5834_v32 = vld [vmem:[%s6012_s28 + $0x744] ss:$8 sps:$4 sm:$0xff]  }
 0x1ac   : > { %3807 = vmatpush1.bf16.msra.mxu1 %v5740_v33  ;;  %v5837_v33 = vld [vmem:[%s6012_s28 + $0xf44] ss:$8 sps:$4 sm:$0xff]  }
 0x1ad   : > { %4135 = vmatpush1.bf16.msra.mxu0 %v5743_v34  ;;  %3808 = vmatprep.subr.bf16.mxu1 %v5748_v35  ;;  %v5832_v34 = vld [vmem:[%s6012_s28 + $0x740] ss:$8 sps:$4 sm:$0xff]  }
 0x1ae   : > { %4136 = vmatprep.subr.bf16.mxu0 %v5751_v36  ;;  %v5835_v35 = vld [vmem:[%s6012_s28 + $0xf40] ss:$8 sps:$4 sm:$0xff]   ;;  %v5840_v36 = vld [vmem:[%s6012_s28 + $0x754] ss:$8 sps:$4 sm:$0xff]  }
 0x1b0   : > { %3809 = vmatpush1.bf16.msra.mxu1 %v5746_v18  ;;  %v5843_v18 = vld [vmem:[%s6012_s28 + $0xf54] ss:$8 sps:$4 sm:$0xff]  }
 0x1b1   : > { %4137 = vmatpush1.bf16.msra.mxu0 %v5749_v38  ;;  %3810 = vmatprep.subr.bf16.mxu1 %v5754_v43  ;;  %v5838_v38 = vld [vmem:[%s6012_s28 + $0x750] ss:$8 sps:$4 sm:$0xff]  }
 0x1b2   : > { %4138 = vmatprep.subr.bf16.mxu0 %v5757_v45  ;;  %v5841_v43 = vld [vmem:[%s6012_s28 + $0xf50] ss:$8 sps:$4 sm:$0xff]   ;;  %v5846_v45 = vld [vmem:[%s6012_s28 + $0x764] ss:$8 sps:$4 sm:$0xff]  }
 0x1b4   : > { %3811 = vmatpush1.bf16.msra.mxu1 %v5752_v26  ;;  %v5849_v26 = vld [vmem:[%s6012_s28 + $0xf64] ss:$8 sps:$4 sm:$0xff]  }
 0x1b5   : > { %4139 = vmatpush1.bf16.msra.mxu0 %v5755_v47  ;;  %3812 = vmatprep.subr.bf16.mxu1 %v5760_v37  ;;  %v5844_v47 = vld [vmem:[%s6012_s28 + $0x760] ss:$8 sps:$4 sm:$0xff]  }
 0x1b6   : > { %4140 = vmatprep.subr.bf16.mxu0 %v5763_v48  ;;  %v5847_v37 = vld [vmem:[%s6012_s28 + $0xf60] ss:$8 sps:$4 sm:$0xff]   ;;  %v5852_v48 = vld [vmem:[%s6012_s28 + $0x774] ss:$8 sps:$4 sm:$0xff]  }
 0x1b8   : > { %3813 = vmatpush1.bf16.msra.mxu1 %v5758_v17  ;;  %v5855_v17 = vld [vmem:[%s6012_s28 + $0xf74] ss:$8 sps:$4 sm:$0xff]  }
 0x1b9   : > { %4141 = vmatpush1.bf16.msra.mxu0 %v5761_v49  ;;  %3814 = vmatprep.subr.bf16.mxu1 %v5766_v51  ;;  %v5850_v49 = vld [vmem:[%s6012_s28 + $0x770] ss:$8 sps:$4 sm:$0xff]  }
 0x1ba   : > { %4142 = vmatprep.subr.bf16.mxu0 %v5769_v52  ;;  %v5853_v51 = vld [vmem:[%s6012_s28 + $0xf70] ss:$8 sps:$4 sm:$0xff]   ;;  %v5858_v52 = vld [vmem:[%s6012_s28 + $0x784] ss:$8 sps:$4 sm:$0xff]  }
 0x1bc   : > { %3815 = vmatpush1.bf16.msra.mxu1 %v5764_v54  ;;  %v5861_v54 = vld [vmem:[%s6012_s28 + $0xf84] ss:$8 sps:$4 sm:$0xff]  }
 0x1bd   : > { %4143 = vmatpush1.bf16.msra.mxu0 %v5767_v55  ;;  %3816 = vmatprep.subr.bf16.mxu1 %v5772_v56  ;;  %v5856_v55 = vld [vmem:[%s6012_s28 + $0x780] ss:$8 sps:$4 sm:$0xff]  }
 0x1be   : > { %4144 = vmatprep.subr.bf16.mxu0 %v5775_v58  ;;  %v5859_v56 = vld [vmem:[%s6012_s28 + $0xf80] ss:$8 sps:$4 sm:$0xff]   ;;  %v5864_v58 = vld [vmem:[%s6012_s28 + $0x794] ss:$8 sps:$4 sm:$0xff]  }
 0x1c0   : > { %3817 = vmatpush1.bf16.msra.mxu1 %v5770_v39  ;;  %v5867_v39 = vld [vmem:[%s6012_s28 + $0xf94] ss:$8 sps:$4 sm:$0xff]  }
 0x1c1   : > { %4145 = vmatpush1.bf16.msra.mxu0 %v5773_v40  ;;  %3818 = vmatprep.subr.bf16.mxu1 %v5778_v61  ;;  %v5862_v40 = vld [vmem:[%s6012_s28 + $0x790] ss:$8 sps:$4 sm:$0xff]  }
 0x1c2   : > { %4146 = vmatprep.subr.bf16.mxu0 %v5781_v62  ;;  %v5865_v61 = vld [vmem:[%s6012_s28 + $0xf90] ss:$8 sps:$4 sm:$0xff]   ;;  %v5870_v62 = vld [vmem:[%s6012_s28 + $0x7a4] ss:$8 sps:$4 sm:$0xff]  }
 0x1c4   : > { %3819 = vmatpush1.bf16.msra.mxu1 %v5776_v1  ;;  %v5873_v1 = vld [vmem:[%s6012_s28 + $0xfa4] ss:$8 sps:$4 sm:$0xff]  }
 0x1c5   : > { %4147 = vmatpush1.bf16.msra.mxu0 %v5779_v2  ;;  %3820 = vmatprep.subr.bf16.mxu1 %v5784_v3  ;;  %v5868_v2 = vld [vmem:[%s6012_s28 + $0x7a0] ss:$8 sps:$4 sm:$0xff]  }
 0x1c6   : > { %4148 = vmatprep.subr.bf16.mxu0 %v5787_v4  ;;  %v5871_v3 = vld [vmem:[%s6012_s28 + $0xfa0] ss:$8 sps:$4 sm:$0xff]   ;;  %v5876_v4 = vld [vmem:[%s6012_s28 + $0x7b4] ss:$8 sps:$4 sm:$0xff]  }
 0x1c8   : > { %3821 = vmatpush1.bf16.msra.mxu1 %v5782_v25  ;;  %v5879_v25 = vld [vmem:[%s6012_s28 + $0xfb4] ss:$8 sps:$4 sm:$0xff]  }
 0x1c9   : > { %4149 = vmatpush1.bf16.msra.mxu0 %v5785_v5  ;;  %3822 = vmatprep.subr.bf16.mxu1 %v5790_v41  ;;  %v5874_v5 = vld [vmem:[%s6012_s28 + $0x7b0] ss:$8 sps:$4 sm:$0xff]  }
 0x1ca   : > { %4150 = vmatprep.subr.bf16.mxu0 %v5793_v42  ;;  %v5877_v41 = vld [vmem:[%s6012_s28 + $0xfb0] ss:$8 sps:$4 sm:$0xff]   ;;  %v5882_v42 = vld [vmem:[%s6012_s28 + $0x7c4] ss:$8 sps:$4 sm:$0xff]  }
 0x1cc   : > { %3823 = vmatpush1.bf16.msra.mxu1 %v5788_v59  ;;  %v5885_v59 = vld [vmem:[%s6012_s28 + $0xfc4] ss:$8 sps:$4 sm:$0xff]  }
 0x1cd   : > { %4151 = vmatpush1.bf16.msra.mxu0 %v5791_v7  ;;  %3824 = vmatprep.subr.bf16.mxu1 %v5796_v60  ;;  %v5880_v7 = vld [vmem:[%s6012_s28 + $0x7c0] ss:$8 sps:$4 sm:$0xff]  }
 0x1ce   : > { %4152 = vmatprep.subr.bf16.mxu0 %v5799_v8  ;;  %v5883_v60 = vld [vmem:[%s6012_s28 + $0xfc0] ss:$8 sps:$4 sm:$0xff]   ;;  %v5888_v8 = vld [vmem:[%s6012_s28 + $0x7d4] ss:$8 sps:$4 sm:$0xff]  }
 0x1d0   : > { %3825 = vmatpush1.bf16.msra.mxu1 %v5794_v9  ;;  %v5891_v9 = vld [vmem:[%s6012_s28 + $0xfd4] ss:$8 sps:$4 sm:$0xff]  }
 0x1d1   : > { %4153 = vmatpush1.bf16.msra.mxu0 %v5797_v10  ;;  %3826 = vmatprep.subr.bf16.mxu1 %v5802_v11  ;;  %v5886_v10 = vld [vmem:[%s6012_s28 + $0x7d0] ss:$8 sps:$4 sm:$0xff]  }
 0x1d2   : > { %4154 = vmatprep.subr.bf16.mxu0 %v5805_v12  ;;  %v5889_v11 = vld [vmem:[%s6012_s28 + $0xfd0] ss:$8 sps:$4 sm:$0xff]   ;;  %v5894_v12 = vld [vmem:[%s6012_s28 + $0x7e4] ss:$8 sps:$4 sm:$0xff]  }
 0x1d4   : > { %3827 = vmatpush1.bf16.msra.mxu1 %v5800_v13  ;;  %v5897_v13 = vld [vmem:[%s6012_s28 + $0xfe4] ss:$8 sps:$4 sm:$0xff]  }
 0x1d5   : > { %4155 = vmatpush1.bf16.msra.mxu0 %v5803_v14  ;;  %3837 = vmatprep.subr.bf16.mxu1 %v5809_v0  ;;  %v5892_v14 = vld [vmem:[%s6012_s28 + $0x7e0] ss:$8 sps:$4 sm:$0xff]  }
 0x1d6   : > { %4165 = vmatprep.subr.bf16.mxu0 %v5813_v16  ;;  %v5895_v0 = vld [vmem:[%s6012_s28 + $0xfe0] ss:$8 sps:$4 sm:$0xff]   ;;  %v5900_v16 = vld [vmem:[%s6012_s28 + $0x7f4] ss:$8 sps:$4 sm:$0xff]  }
 0x1d7   : > { %3829 = vmatmul.mubr.bf16.vlgmr.msra.gmra.mrb[0].mxu1 %v6602_v19 }
 0x1d8   : > { %4157 = vmatmul.mubr.bf16.vlgmr.msra.gmra.mrb[0].mxu0 %v6606_v20  ;;  %3838 = vmatpush1.bf16.msra.mxu1 %v5807_v21  ;;  %v5903_v21 = vld [vmem:[%s6012_s28 + $0xff4] ss:$8 sps:$4 sm:$0xff]  }
 0x1d9   : > { %4166 = vmatpush1.bf16.msra.mxu0 %v5811_v22  ;;  %3839 = vmatprep.subr.bf16.mxu1 %v5816_v23  ;;  %v5898_v22 = vld [vmem:[%s6012_s28 + $0x7f0] ss:$8 sps:$4 sm:$0xff]  }
 0x1da   : > { %4167 = vmatprep.subr.bf16.mxu0 %v5819_v24  ;;  %3869 = vmatprep.mubr.bf16.mxu1 %v859_v46  ;;  %v5901_v23 = vld [vmem:[%s6012_s28 + $0xff0] ss:$8 sps:$4 sm:$0xff]   ;;  %v857_v24 = vcombine.high %v6602_v19, %v6602_v19  ;;  %v955_v46 = vcombine.high %v6606_v20, %v6606_v20 }
 0x1db   : > { %4197 = vmatprep.mubr.bf16.mxu0 %v957_v53  ;;  %v5960_v53 = vmov 1983009808  }
 0x1dc   : > { %3840 = vmatpush1.bf16.msra.mxu1 %v5814_v50  ;;  %v4210_v50 = vunpack.c.l.s4 %v5960_v53 }
 0x1dd   : > { %4168 = vmatpush1.bf16.msra.mxu0 %v5817_v6  ;;  %3841 = vmatprep.subr.bf16.mxu1 %v5822_v15 }
 0x1de   : > { %4169 = vmatprep.subr.bf16.mxu0 %v5825_v57  ;;  %v4211_v6 = vunpack.c.0.s8 %v4210_v50 }
 0x1e0   : > { %3842 = vmatpush1.bf16.msra.mxu1 %v5820_v63 }
 0x1e1   : > { %4170 = vmatpush1.bf16.msra.mxu0 %v5823_v27  ;;  %3843 = vmatprep.subr.bf16.mxu1 %v5828_v28 }
 0x1e2   : > { %4171 = vmatprep.subr.bf16.mxu0 %v5831_v29 }
 0x1e4   : > { %3844 = vmatpush1.bf16.msra.mxu1 %v5826_v30  ;;  %v4214_v30 = vsub.s32 %v4211_v6, %v6054_v44 }
 0x1e5   : > { %4172 = vmatpush1.bf16.msra.mxu0 %v5829_v31  ;;  %3845 = vmatprep.subr.bf16.mxu1 %v5834_v32 }
 0x1e6   : > { %4173 = vmatprep.subr.bf16.mxu0 %v5837_v33 }
 0x1e8   : > { %3846 = vmatpush1.bf16.msra.mxu1 %v5832_v34  ;;  %v241_v34 = vld [vmem:[#allocation2] sm:$0xf] }
 0x1e9   : > { %4174 = vmatpush1.bf16.msra.mxu0 %v5835_v35  ;;  %3847 = vmatprep.subr.bf16.mxu1 %v5840_v36 }
 0x1ea   : > { %4175 = vmatprep.subr.bf16.mxu0 %v5843_v18  ;;  %v5904_v18 = vld [vmem:[%s6767_s3 + $0x40] sm:$0xff] (!%p5011_p6)  }
 0x1ec   : > { %3848 = vmatpush1.bf16.msra.mxu1 %v5838_v38  ;;  %v5905_v38 = vld [vmem:[%s6767_s3] sm:$0xff] (!%p5011_p6)  }
 0x1ed   : > { %4176 = vmatpush1.bf16.msra.mxu0 %v5841_v43  ;;  %3849 = vmatprep.subr.bf16.mxu1 %v5846_v45  ;;  %v5906_v43 = vld [vmem:[%s6767_s3 + $0x48] sm:$0xff] (!%p5011_p6)  }
 0x1ee   : > { %4177 = vmatprep.subr.bf16.mxu0 %v5849_v26  ;;  %v5907_v45 = vld [vmem:[%s6767_s3 + $0x8] sm:$0xff] (!%p5011_p6)   ;;  %v5908_v26 = vld [vmem:[%s6767_s3 + $0x50] sm:$0xff] (!%p5011_p6)  }
 0x1f0   : > { %3850 = vmatpush1.bf16.msra.mxu1 %v5844_v47  ;;  %v5909_v47 = vld [vmem:[%s6767_s3 + $0x10] sm:$0xff] (!%p5011_p6)  }
 0x1f1   : > { %4178 = vmatpush1.bf16.msra.mxu0 %v5847_v37  ;;  %3851 = vmatprep.subr.bf16.mxu1 %v5852_v48  ;;  %v5910_v37 = vld [vmem:[%s6767_s3 + $0x58] sm:$0xff] (!%p5011_p6)  }
 0x1f2   : > { %4179 = vmatprep.subr.bf16.mxu0 %v5855_v17  ;;  %v5911_v48 = vld [vmem:[%s6767_s3 + $0x18] sm:$0xff] (!%p5011_p6)   ;;  %v5912_v17 = vld [vmem:[%s6767_s3 + $0x60] sm:$0xff] (!%p5011_p6)  }
 0x1f4   : > { %3852 = vmatpush1.bf16.msra.mxu1 %v5850_v49  ;;  %v4228_v49 = vsub.s32 (!%p5011_p6), 0, %v6054_v44 }
 0x1f5   : > { %4180 = vmatpush1.bf16.msra.mxu0 %v5853_v51  ;;  %3853 = vmatprep.subr.bf16.mxu1 %v5858_v52  ;;  %v4232_v51 = vsub.s32 (!%p5011_p6), 1, %v6054_v44  ;;  %v5913_v52 = vld [vmem:[%s6767_s3 + $0x20] sm:$0xff] (!%p5011_p6)   ;;  %v5915_v44 = vld [vmem:[%s6767_s3 + $0x28] sm:$0xff] (!%p5011_p6)  }
 0x1f6   : > { %4181 = vmatprep.subr.bf16.mxu0 %v5861_v54  ;;  %v5914_v54 = vld [vmem:[%s6767_s3 + $0x68] sm:$0xff] (!%p5011_p6)  }
 0x1f8   : > { %3854 = vmatpush1.bf16.msra.mxu1 %v5856_v55  ;;  %v4224_v55 = vld [vmem:[%s6766_s2] sm:$0x3] (!%p5011_p6) }
 0x1f9   : > { %4182 = vmatpush1.bf16.msra.mxu0 %v5859_v56  ;;  %3855 = vmatprep.subr.bf16.mxu1 %v5864_v58  ;;  %v4229_v56 = vrot.slane (!%p5011_p6), %v4224_v55, %v4228_v49  ;;  %v4233_v58 = vrot.slane (!%p5011_p6), %v4224_v55, %v4232_v51 }
 0x1fa   : > { %4183 = vmatprep.subr.bf16.mxu0 %v5867_v39 }
 0x1fb   : > { %v4234_v39 = vcombine.low (!%p5011_p6), %v4229_v56, %v4233_v58 }
 0x1fc   : > { %3856 = vmatpush1.bf16.msra.mxu1 %v5862_v40  ;;  %v5916_v40 = vld [vmem:[%s6767_s3 + $0x70] sm:$0xff] (!%p5011_p6)  }
 0x1fd   : > { %4184 = vmatpush1.bf16.msra.mxu0 %v5865_v61  ;;  %3857 = vmatprep.subr.bf16.mxu1 %v5870_v62  ;;  %v4241_v62 = vrot.slane (!%p5011_p6), %v4234_v39, %v4214_v30 }
 0x1fe   : > { %4185 = vmatprep.subr.bf16.mxu0 %v5873_v1  ;;  %v5917_v1 = vld [vmem:[%s6767_s3 + $0x30] sm:$0xff] (!%p5011_p6)  }
 0x200   : > { %3858 = vmatpush1.bf16.msra.mxu1 %v5868_v2 }
 0x201   : > { %4186 = vmatpush1.bf16.msra.mxu0 %v5871_v3  ;;  %3859 = vmatprep.subr.bf16.mxu1 %v5876_v4  ;;  %v5918_v3 = vld [vmem:[%s6767_s3 + $0x78] sm:$0xff] (!%p5011_p6)  }
 0x202   : > { %4187 = vmatprep.subr.bf16.mxu0 %v5879_v25  ;;  %v5919_v25 = vld [vmem:[%s6767_s3 + $0x38] sm:$0xff] (!%p5011_p6)  }
 0x204   : > { %3860 = vmatpush1.bf16.msra.mxu1 %v5874_v5 }
 0x205   : > { %4188 = vmatpush1.bf16.msra.mxu0 %v5877_v41  ;;  %3861 = vmatprep.subr.bf16.mxu1 %v5882_v42 }
 0x206   : > { %4189 = vmatprep.subr.bf16.mxu0 %v5885_v59 }
 0x208   : > { %3862 = vmatpush1.bf16.msra.mxu1 %v5880_v7 }
 0x209   : > { %4190 = vmatpush1.bf16.msra.mxu0 %v5883_v60  ;;  %3863 = vmatprep.subr.bf16.mxu1 %v5888_v8  ;;  %v5012_v60 = vld [vmem:[%s6768_s4] ss:$0 sm:$0xff] (!%p5011_p6) }
 0x20a   : > { %4191 = vmatprep.subr.bf16.mxu0 %v5891_v9 }
 0x20c   : > { %3864 = vmatpush1.bf16.msra.mxu1 %v5886_v10 }
 0x20d   : > { %4192 = vmatpush1.bf16.msra.mxu0 %v5889_v11  ;;  %3865 = vmatprep.subr.bf16.mxu1 %v5894_v12 }
 0x20e   : > { %4193 = vmatprep.subr.bf16.mxu0 %v5897_v13 }
 0x210   : > { %3866 = vmatpush1.bf16.msra.mxu1 %v5892_v14 }
 0x211   : > { %4194 = vmatpush1.bf16.msra.mxu0 %v5895_v0  ;;  %3867 = vmatprep.subr.bf16.mxu1 %v5900_v16 }
 0x212   : > { %4195 = vmatprep.subr.bf16.mxu0 %v5903_v21 }
 0x214   : > { %3868 = vmatpush1.bf16.msra.mxu1 %v5898_v22 }
 0x215   : > { %4196 = vmatpush1.bf16.msra.mxu0 %v5901_v23 }
 0x216   : > { %5034 = vmatprep.subr.bf16.mxu0 (!%p5011_p6), %v5904_v18 }
 0x217   : > { %3870 = vmatmul.mubr.bf16.vlgmr.msra.gmra.mrb[0].mxu1 %v857_v24 }
 0x218   : > { %4198 = vmatmul.mubr.bf16.vlgmr.msra.gmra.mrb[0].mxu0 %v955_v46 }
 0x219   : > { %5035 = vmatpush3.bf16.msra.mxu0 (!%p5011_p6), %v5905_v38 }
 0x21a   : > { %5036 = vmatprep.subr.bf16.mxu0 (!%p5011_p6), %v5906_v43 }
 0x21d   : > { %5037 = vmatpush3.bf16.msra.mxu0 (!%p5011_p6), %v5907_v45 }
 0x21e   : > { %5038 = vmatprep.subr.bf16.mxu0 (!%p5011_p6), %v5908_v26 }
 0x221   : > { %5039 = vmatpush3.bf16.msra.mxu0 (!%p5011_p6), %v5909_v47 }
 0x222   : > { %5040 = vmatprep.subr.bf16.mxu0 (!%p5011_p6), %v5910_v37 }
 0x225   : > { %5041 = vmatpush3.bf16.msra.mxu0 (!%p5011_p6), %v5911_v48 }
 0x226   : > { %5042 = vmatprep.subr.bf16.mxu0 (!%p5011_p6), %v5912_v17 }
 0x229   : > { %5043 = vmatpush3.bf16.msra.mxu0 (!%p5011_p6), %v5913_v52 }
 0x22a   : > { %5044 = vmatprep.subr.bf16.mxu0 (!%p5011_p6), %v5914_v54 }
 0x22d   : > { %5045 = vmatpush3.bf16.msra.mxu0 (!%p5011_p6), %v5915_v44 }
 0x22e   : > { %5046 = vmatprep.subr.bf16.mxu0 (!%p5011_p6), %v5916_v40 }
 0x231   : > { %5047 = vmatpush3.bf16.msra.mxu0 (!%p5011_p6), %v5917_v1 }
 0x232   : > { %5048 = vmatprep.subr.bf16.mxu0 (!%p5011_p6), %v5918_v3 }
 0x235   : > { %5049 = vmatpush3.bf16.msra.mxu0 (!%p5011_p6), %v5919_v25 }
 0x2ea   : > { %v3871_v15 = vpop.f32.mrb[0].mxu1 }
 0x2eb   : > { %v4199_v57 = vpop.f32.mrb[0].mxu0  ;;  %v3873_v27 = vpop.f32.mrb[1].mxu1 }
 0x2ec   : > { %v5056_v63 = vadd.f32 %v4199_v57, %v3871_v15  ;;  %v4201_v28 = vpop.f32.mrb[1].mxu0  ;;  %v3875_v31 = vpop.f32.mrb[2].mxu1 }
 0x2ed   : > { %v5057_v29 = vadd.f32 %v4201_v28, %v3873_v27  ;;  %v4203_v19 = vpop.f32.mrb[2].mxu0  ;;  %v3876_v32 = vpop.f32.mrb[3].mxu1 }
 0x2ee   : > { %v4204_v33 = vpop.f32.mrb[3].mxu0 }
 0x2ef   : > { %v4208_v20 = vcombine.low %v5056_v63, %v5057_v29  ;;  %4222 = sbr.rel (%p5011_p6) target bundleno = 994 (0x3e2), region = 48 }
 0x2f1   : > { %v4215_v35 = vrot.slane %v4208_v20, %v4214_v30 }
 0x2f3   : > { %v4217_v36 = vadd.f32 %v4215_v35, %v241_v34 }
 0x2f5   : > { %4218 = vst [vmem:[#allocation2] sm:$0xf] %v4217_v36 }
 0x2fc   : > { %v4223_v61 = vld [vmem:[#allocation2] sm:$0xf] }
 0x2fd   : > { %v4243_v2 = vadd.f32 %v4241_v62, %v4223_v61 }
 0x2ff   : > { %v4244_v4 = vmax.f32 %v4243_v2, 0.0 }
 0x301   : > { %v4252_v5 = vrot.slane %v4244_v4, %v4214_v30 }
 0x303   : > { %v4253_v41 = vcombine.high %v4252_v5, %v4252_v5  ;;  %v4256_v42 = vpack.c.bf16 %v4252_v5, %v4252_v5 }
 0x305   : > { %v4257_v59 = vpack.c.bf16 %v4253_v41, %v4253_v41 }
 0x307   : > { %4425 = vmatprep.mubr.bf16.mxu0 %v4257_v59 }
 0x308   : > { %4426 = vmatmul.mubr.bf16.vlgmr.msra.gmra.mrb[0].mxu0 %v4256_v42 }
 0x3db   : > { %v5050_v7 = vpop.f32.mrb[0].mxu0 }
 0x3dc   : > { %v5051_v8 = vpop.f32.mrb[1].mxu0 }
 0x3dd   : > { %v5052_v9 = vadd.f32 %v5051_v8, %v5050_v7  ;;  %v5053_v10 = vpop.f32.mrb[2].mxu0 }
 0x3de   : > { %v5054_v11 = vpop.f32.mrb[3].mxu0 }
 0x3df   : > { %v4428_v12 = vadd.f32 %v5052_v9, %v5012_v60 }
 0x3e1   : > { %4434 = vst.msk [vmem:[#allocation3] sm:$0x3] %vm4433_vm0, %v4428_v12 }
 0x3e2 PF: > { %p5118_p7 = scmp.eq.s32.totalorder %s5998_s19, 1  ;;  %s5961_s17 = smov [#allocation3]  }
 0x3e3   : > { %s4442_s20 = sshll.u32 %s5961_s17, 4  ;;  %s4443_s20 = int_to_ptr.vmem [resolvable:$true] %s4442_s20 }
 0x3e4   : > { %s5920_s21 = scalar_lea.vmem %s4443_s20, 32  ;;  %p5927_p11 = scmp.lt.s32.totalorder %s4443_s20, %s4443_s20 }
 0x3e5   : > { %p5921_p8 = scmp.ne.s32.totalorder %s4443_s20, %s5920_s21  ;;  %p5928_p12 = scmp.lt.s32.totalorder %s5920_s21, %s5920_s21 }
 0x3e7   : > { %p5922_p9 = pnand %p5921_p8, %p5118_p7  ;;  %p5929_p13 = por %p5928_p12, %p5927_p11 }
 0x3e9   : > { %p5923_p10 = pneg %p5922_p9 }
 0x3eb   : > { %p5930_p0 = pnand %p5929_p13, %p5923_p10 }
 0x3ed   : > { %5933 = shalt.err (!%p5930_p0)
}
 0x3ee   : > { %s5934_s24 = scalar_lea.hbm %s6769_s5, 32 }
 0x3ef   : > { %p5935_p1 = scmp.ne.s32.totalorder %s6769_s5, %s5934_s24  ;;  %p5940_p4 = scmp.lt.u32.totalorder %s5934_s24, %s6769_s5 }
 0x3f1   : > { %p5936_p2 = pnand %p5935_p1, %p5118_p7 }
 0x3f3   : > { %p5937_p3 = pneg %p5936_p2 }
 0x3f5   : > { %p5942_p5 = pnand %p5940_p4, %p5937_p3 }
 0x3f7   : > { %5945 = shalt.err (!%p5942_p5)
}
 0x3f8   : > { %5115 = dma.vmem_to_hbm [thread:$0]  (%p5118_p7), %s4443_s20, 32, %s6769_s5, [#allocation4]  }
 0x3f9   : > { %5951 = dma.done.wait (%p5118_p7), [#allocation4], 32  }
 0x3fa   : > { %5953 = vsyncadd (%p5118_p7), [#allocation4], 4294967264 }
 0x3fb PF: > { %s16_s18 = sadd.s32 1, %s5956_s18  }
 0x3fc   : > { %p13_p6 = scmp.ge.s32.totalorder %s16_s18, 4  }
 0x3fe   :  { %15 = sbr.rel (!%p13_p6) target bundleno = 1 (0x1), region = 78 }
 0x405   :  { %4455 = vsyncpa [#allocation4], 1 }
 0x406   :  { %4457 = vsyncpa [#allocation4 + $0x1], 1 }

</bundles_post_ra>
